<compile_context>
chip_gen: v7x
topology: tpu7x:2x2x1
jax: 0.10.0
libtpu: 0.0.40
codegen_flags: <defaults>
</compile_context>

<pallas_src>
import math
import functools

import jax
import jax.numpy as jnp
from jax.experimental import pallas as pl
from jax.experimental.pallas import tpu as pltpu


# ----------------------------------------------------------------------------
# Pallas kernel 1: multichannel layer norm over the feature (last) axis.
#   One grid step = one batch element (1, C, T, F); per-channel affine (C, F).
# ----------------------------------------------------------------------------
def _mc_layernorm_kernel(x_ref, w_ref, b_ref, o_ref, *, eps):
    x = x_ref[0].astype(jnp.float32)                        # (C, T, F)
    mean = jnp.mean(x, axis=-1, keepdims=True)
    var = jnp.mean(jnp.square(x - mean), axis=-1, keepdims=True)
    y = (x - mean) * jax.lax.rsqrt(var + eps)
    w = w_ref[...][:, None, :]
    b = b_ref[...][:, None, :]
    o_ref[0] = (y * w + b).astype(o_ref.dtype)


def mc_layernorm(x, w, b, eps=1e-5, use_pallas=True):
    # x: [B, C, T, F]; w, b: [C, F]
    B, C, T, F = x.shape
    if not use_pallas:
        mean = jnp.mean(x, axis=-1, keepdims=True)
        var = jnp.mean(jnp.square(x - mean), axis=-1, keepdims=True)
        return ((x - mean) * jax.lax.rsqrt(var + eps)
                * w[None, :, None, :] + b[None, :, None, :]).astype(x.dtype)
    return pl.pallas_call(
        functools.partial(_mc_layernorm_kernel, eps=eps),
        out_shape=jax.ShapeDtypeStruct((B, C, T, F), x.dtype),
        grid=(B,),
        in_specs=[
            pl.BlockSpec((1, C, T, F), lambda b_: (b_, 0, 0, 0)),
            pl.BlockSpec((C, F), lambda b_: (0, 0)),
            pl.BlockSpec((C, F), lambda b_: (0, 0)),
        ],
        out_specs=pl.BlockSpec((1, C, T, F), lambda b_: (b_, 0, 0, 0)),
        compiler_params=pltpu.CompilerParams(dimension_semantics=("parallel",)),
    )(x, w, b)


# ----------------------------------------------------------------------------
# Pallas kernel 2: 'same' Conv2d as shifted dot-accumulates over a flattened
# (T*F) spatial axis.  No HBM im2col: each tap is a lane-shifted slice of the
# VMEM-resident input tile, matmul'ed (bf16 -> f32) with its (Co, Cin) weight.
# Bias and any number of residual tensors are fused into the epilogue; output
# last dim is the lane-dense flattened spatial axis.
# ----------------------------------------------------------------------------
def _conv_flat_kernel(*refs, shifts, use_mask, n_res):
    x_ref, w_ref, b_ref = refs[0], refs[1], refs[2]
    pos = 3
    mask_ref = None
    if use_mask:
        mask_ref = refs[pos]
        pos += 1
    res_refs = refs[pos:pos + n_res]
    o_ref = refs[pos + n_res]

    Co, S = o_ref.shape[1], o_ref.shape[2]
    acc = jnp.zeros((Co, S), jnp.float32)
    for i, sh in enumerate(shifts):
        xs = x_ref[0, :, sh:sh + S]                          # (Cin, S) lane-shifted view
        if use_mask:
            xs = xs * mask_ref[i]                            # zero taps that cross an F row
        acc = acc + jnp.dot(w_ref[i].astype(jnp.bfloat16), xs.astype(jnp.bfloat16),
                            preferred_element_type=jnp.float32)
    acc = acc + b_ref[...]                                   # (Co, 1) broadcast over lanes
    for r in res_refs:
        acc = acc + r[0]                                     # fused residual add(s)
    o_ref[0] = acc.astype(o_ref.dtype)


def conv2d_same(x, w, b, residuals=(), use_pallas=True):
    # x: [B, Cin, T, F] (canonical layout); w: [Co, Cin, kF, kT] = PyTorch [Co, Ci, kH, kW]
    # with H = features (F), W = frames (T).  Returns [B, Co, T, F] (+ fused residuals).
    B, Cin, T, F = x.shape
    Co, _, kF, kT = w.shape
    pt, pf = kT // 2, kF // 2
    S = T * F
    # Halo pad along T, flatten (T, F) onto lanes, tiny pad for the F-halo of edge taps.
    xp = jnp.pad(x, ((0, 0), (0, 0), (pt, kT - 1 - pt), (0, 0)))
    xp = xp.reshape(B, Cin, (T + kT - 1) * F)
    xp = jnp.pad(xp, ((0, 0), (0, 0), (pf, kF - 1 - pf)))
    Sp = xp.shape[-1]

    shifts = tuple(dt * F + df for dt in range(kT) for df in range(kF))
    w_taps = jnp.stack([w[:, :, df, dt] for dt in range(kT) for df in range(kF)])  # (taps,Co,Cin)
    bias = b.reshape(Co, 1).astype(jnp.float32)
    use_mask = kF > 1
    if use_mask:
        col = jnp.arange(S, dtype=jnp.int32) % F
        masks = jnp.stack([((col + (df - pf) >= 0) & (col + (df - pf) < F)).astype(x.dtype)
                           for dt in range(kT) for df in range(kF)])
        masks = masks[:, None, :]                            # (taps, 1, S)
    res_flat = tuple(r.reshape(B, Co, S) for r in residuals)

    if not use_pallas:                                       # pure-JAX reference (same math)
        acc = jnp.zeros((B, Co, S), jnp.float32)
        for i, sh in enumerate(shifts):
            xs = xp[:, :, sh:sh + S]
            if use_mask:
                xs = xs * masks[i]
            acc = acc + jnp.einsum("oc,bcs->bos", w_taps[i].astype(jnp.bfloat16),
                                   xs.astype(jnp.bfloat16),
                                   preferred_element_type=jnp.float32)
        acc = acc + bias[None]
        for r in res_flat:
            acc = acc + r
        return acc.astype(x.dtype).reshape(B, Co, T, F)

    in_specs = [
        pl.BlockSpec((1, Cin, Sp), lambda b_: (b_, 0, 0)),
        pl.BlockSpec(w_taps.shape, lambda b_: (0, 0, 0)),
        pl.BlockSpec((Co, 1), lambda b_: (0, 0)),
    ]
    args = [xp, w_taps, bias]
    if use_mask:
        in_specs.append(pl.BlockSpec(masks.shape, lambda b_: (0, 0, 0)))
        args.append(masks)
    for r in res_flat:
        in_specs.append(pl.BlockSpec((1, Co, S), lambda b_: (b_, 0, 0)))
        args.append(r)

    out = pl.pallas_call(
        functools.partial(_conv_flat_kernel, shifts=shifts, use_mask=use_mask,
                          n_res=len(res_flat)),
        out_shape=jax.ShapeDtypeStruct((B, Co, S), x.dtype),
        grid=(B,),
        in_specs=in_specs,
        out_specs=pl.BlockSpec((1, Co, S), lambda b_: (b_, 0, 0)),
        compiler_params=pltpu.CompilerParams(
            dimension_semantics=("parallel",),
            vmem_limit_bytes=32 * 1024 * 1024),
        # TODO(synk): tile the flattened spatial axis (with halo) for production-size T*F.
    )(*args)
    return out.reshape(B, Co, T, F)


# ----------------------------------------------------------------------------
# Pallas kernel 3: multichannel multi-head attention core.
#   One grid step handles (1, Gc, T, F) = Gc channels x num_heads heads of one batch
#   element (batched groups, >= 2 grid steps).  Rotary embedding is applied in-kernel
#   from precomputed tables (pair rotation expressed with lane-shifted copies); per head:
#   QK^T (bf16 -> f32 + scale), optional +prev, store logits, f32 softmax with
#   pl.reciprocal(approx=True), PV (bf16 -> f32); heads are merged back into F lanes.
# ----------------------------------------------------------------------------
def _attn_kernel(*refs, num_heads, scale, has_prev):
    q_ref, k_ref, v_ref, cos_ref, sin_odd_ref, sin_even_ref = refs[:6]
    pos = 6
    prev_ref = None
    if has_prev:
        prev_ref = refs[pos]
        pos += 1
    o_ref, qk_ref = refs[pos], refs[pos + 1]

    F = q_ref.shape[-1]
    D = F // num_heads
    cos = cos_ref[...]
    sin_odd = sin_odd_ref[...]
    sin_even = sin_even_ref[...]

    def shift_right(x):   # y[..., j] = x[..., j-1]  (wrapped lane has zero table weight)
        return jnp.concatenate([x[..., F - 1:], x[..., :F - 1]], axis=-1)

    def shift_left(x):    # y[..., j] = x[..., j+1]
        return jnp.concatenate([x[..., 1:], x[..., :1]], axis=-1)

    def rope(x):
        return x * cos + shift_right(x) * sin_odd + shift_left(x) * sin_even

    q = rope(q_ref[0].astype(jnp.float32))                   # (Gc, T, F)
    k = rope(k_ref[0].astype(jnp.float32))
    v = v_ref[0]

    for h in range(num_heads):
        lo, hi = h * D, (h + 1) * D
        qh = q[:, :, lo:hi].astype(jnp.bfloat16)
        kh = k[:, :, lo:hi].astype(jnp.bfloat16)
        s = jnp.einsum("gtd,gsd->gts", qh, kh,
                       preferred_element_type=jnp.float32) * scale
        if has_prev:
            s = s + prev_ref[0, :, h]
        qk_ref[0, :, h] = s
        m = jnp.max(s, axis=-1, keepdims=True)
        e = jnp.exp(s - m)
        p = e * pl.reciprocal(jnp.sum(e, axis=-1, keepdims=True), approx=True)
        vh = v[:, :, lo:hi].astype(jnp.bfloat16)
        oh = jnp.einsum("gts,gsd->gtd", p.astype(jnp.bfloat16), vh,
                        preferred_element_type=jnp.float32)
        o_ref[0, :, :, lo:hi] = oh.astype(o_ref.dtype)


def _rope_tables(T, F, num_heads):
    # lucidrains RotaryEmbedding (theta=10000, interleaved pairs), tiled across heads.
    D = F // num_heads
    inv_freq = 1.0 / (10000.0 ** (jnp.arange(0, D, 2, dtype=jnp.float32) / D))
    freqs = jnp.arange(T, dtype=jnp.float32)[:, None] * inv_freq[None, :]   # (T, D/2)
    freqs = jnp.repeat(freqs, 2, axis=-1)                                   # (T, D)
    cos = jnp.tile(jnp.cos(freqs), (1, num_heads))                          # (T, F)
    sin = jnp.tile(jnp.sin(freqs), (1, num_heads))
    lane_odd = (jnp.arange(F) % 2 == 1).astype(jnp.float32)[None, :]        # (1, F)
    # y[2i]   = x[2i]*cos - x[2i+1]*sin   (shift-left term, even lanes)
    # y[2i+1] = x[2i+1]*cos + x[2i]*sin   (shift-right term, odd lanes)
    return cos, sin * lane_odd, -sin * (1.0 - lane_odd)


def _rope_ref(x, cos, sin_odd, sin_even):
    return x * cos + jnp.roll(x, 1, axis=-1) * sin_odd + jnp.roll(x, -1, axis=-1) * sin_even


def _largest_divisor_leq(n, cap):
    for d in range(min(n, cap), 0, -1):
        if n % d == 0:
            return d
    return 1


def attention_core(q_src, k_src, v_src, oc, num_heads, scale, prev_qk=None, use_pallas=True):
    # q_src/k_src/v_src: (array [B, Ctot, T, F], channel offset).  The arrays can be the
    # fused qkv / kv projection outputs -- offsets select the channel block via BlockSpec
    # index maps, so q/k/v are never sliced out in HBM.
    q_arr, q_off = q_src
    k_arr, k_off = k_src
    v_arr, v_off = v_src
    B, _, T, F = q_arr.shape
    assert F % num_heads == 0 and (F // num_heads) % 2 == 0
    D = F // num_heads
    cos, sin_odd, sin_even = _rope_tables(T, F, num_heads)

    if not use_pallas:                                       # pure-JAX reference (same math)
        q = _rope_ref(q_arr[:, q_off:q_off + oc], cos, sin_odd, sin_even)
        k = _rope_ref(k_arr[:, k_off:k_off + oc], cos, sin_odd, sin_even)
        v = v_arr[:, v_off:v_off + oc]
        qh = q.reshape(B, oc, T, num_heads, D).astype(jnp.bfloat16)
        kh = k.reshape(B, oc, T, num_heads, D).astype(jnp.bfloat16)
        vh = v.reshape(B, oc, T, num_heads, D).astype(jnp.bfloat16)
        s = jnp.einsum("bcthd,bcshd->bchts", qh, kh,
                       preferred_element_type=jnp.float32) * scale
        if prev_qk is not None:
            s = s + prev_qk.astype(jnp.float32)
        p = jax.nn.softmax(s, axis=-1)
        o = jnp.einsum("bchts,bcshd->bcthd", p.astype(jnp.bfloat16), vh,
                       preferred_element_type=jnp.float32)
        return o.reshape(B, oc, T, F).astype(q_arr.dtype), s

    gc = _largest_divisor_leq(oc, 8)              # channels (x num_heads groups) per step
    assert q_off % gc == 0 and k_off % gc == 0 and v_off % gc == 0
    grid = (B, oc // gc)
    has_prev = prev_qk is not None

    def _qkv_spec(off):
        return pl.BlockSpec((1, gc, T, F), lambda b_, c_, o_=off // gc: (b_, c_ + o_, 0, 0))

    in_specs = [
        _qkv_spec(q_off), _qkv_spec(k_off), _qkv_spec(v_off),
        pl.BlockSpec((T, F), lambda b_, c_: (0, 0)),
        pl.BlockSpec((T, F), lambda b_, c_: (0, 0)),
        pl.BlockSpec((T, F), lambda b_, c_: (0, 0)),
    ]
    args = [q_arr, k_arr, v_arr, cos, sin_odd, sin_even]
    if has_prev:
        in_specs.append(pl.BlockSpec((1, gc, num_heads, T, T),
                                     lambda b_, c_: (b_, c_, 0, 0, 0)))
        args.append(prev_qk.astype(jnp.float32))

    out, qk = pl.pallas_call(
        functools.partial(_attn_kernel, num_heads=num_heads, scale=scale, has_prev=has_prev),
        out_shape=(
            jax.ShapeDtypeStruct((B, oc, T, F), q_arr.dtype),
            jax.ShapeDtypeStruct((B, oc, num_heads, T, T), jnp.float32),
        ),
        grid=grid,
        in_specs=in_specs,
        out_specs=(
            pl.BlockSpec((1, gc, T, F), lambda b_, c_: (b_, c_, 0, 0)),
            pl.BlockSpec((1, gc, num_heads, T, T), lambda b_, c_: (b_, c_, 0, 0, 0)),
        ),
        compiler_params=pltpu.CompilerParams(
            dimension_semantics=("parallel", "parallel"),
            vmem_limit_bytes=32 * 1024 * 1024),
        # TODO(synk): at production T, tile the key/value frame axis (the full (T, T)
        # logits are a required module output, so only softmax/PV can be streamed).
    )(*args)
    return out, qk


# ----------------------------------------------------------------------------
# Decoder forward (dropout = identity at inference)
# ----------------------------------------------------------------------------
def decoder_forward(params, x, skip, *, num_heads, features,
                    prev_qk1=None, skip_qk=None, use_pallas=True):
    # x, skip: [B, C, F, T] (PyTorch NCHW: H = features, W = frames)
    xc = jnp.transpose(x, (0, 1, 3, 2))         # canonical [B, C, T, F]
    sc = jnp.transpose(skip, (0, 1, 3, 2))
    scale = 1.0 / math.sqrt(features)
    p1, p2 = params["attn1"], params["attn2"]
    OC = p1["q_w"].shape[0]

    # --- self attention: z1, qk1 = attn1(norm1(x)) ------------------------------------
    nx = mc_layernorm(xc, params["norm1_w"], params["norm1_b"], use_pallas=use_pallas)
    qkv_w = jnp.concatenate([p1["q_w"], p1["k_w"], p1["v_w"]], axis=0)   # fused projections
    qkv_b = jnp.concatenate([p1["q_b"], p1["k_b"], p1["v_b"]], axis=0)
    qkv = conv2d_same(nx, qkv_w, qkv_b, use_pallas=use_pallas)           # [B, 3*OC, T, F]
    a1, qk1 = attention_core((qkv, 0), (qkv, OC), (qkv, 2 * OC), OC, num_heads, scale,
                             prev_qk=prev_qk1, use_pallas=use_pallas)
    z1 = conv2d_same(a1, p1["o_w"], p1["o_b"], use_pallas=use_pallas)    # [B, C, T, F]

    # --- cross attention: z2, qk2 = attn2(norm2(z1), mem=skip); h = x + z1 + z2 --------
    nz = mc_layernorm(z1, params["norm2_w"], params["norm2_b"], use_pallas=use_pallas)
    q2 = conv2d_same(nz, p2["q_w"], p2["q_b"], use_pallas=use_pallas)    # [B, OC, T, F]
    kv_w = jnp.concatenate([p2["k_w"], p2["v_w"]], axis=0)               # fused k/v
    kv_b = jnp.concatenate([p2["k_b"], p2["v_b"]], axis=0)
    kv = conv2d_same(sc, kv_w, kv_b, use_pallas=use_pallas)              # [B, 2*OC, T, F]
    a2, qk2 = attention_core((q2, 0), (kv, 0), (kv, OC), OC, num_heads, scale,
                             prev_qk=skip_qk, use_pallas=use_pallas)
    h = conv2d_same(a2, p2["o_w"], p2["o_b"], residuals=(xc, z1),
                    use_pallas=use_pallas)                               # h = x + z1 + z2

    # --- FFN: h = h + conv2(gelu(conv1(norm3(h)))) --------------------------------------
    nh = mc_layernorm(h, params["norm3_w"], params["norm3_b"], use_pallas=use_pallas)
    t = conv2d_same(nh, params["conv1_w"], params["conv1_b"], use_pallas=use_pallas)
    t = jax.nn.gelu(t, approximate=False)    # exact GELU (nn.GELU default); cheap XLA glue
    h = conv2d_same(t, params["conv2_w"], params["conv2_b"], residuals=(h,),
                    use_pallas=use_pallas)

    return jnp.transpose(h, (0, 1, 3, 2)), qk1, qk2


# ----------------------------------------------------------------------------
# Deterministic parameter init (synthetic weights, not a checkpoint)
# ----------------------------------------------------------------------------
def init_params(key, C, OC, F, EXP):
    def w(k, shape, scale=0.05):
        return scale * jax.random.normal(k, shape, jnp.float32)

    def attn_params(k):
        ks = jax.random.split(k, 8)
        return dict(
            q_w=w(ks[0], (OC, C, 1, 3)), q_b=w(ks[1], (OC,)),
            k_w=w(ks[2], (OC, C, 1, 3)), k_b=w(ks[3], (OC,)),
            v_w=w(ks[4], (OC, C, 1, 3)), v_b=w(ks[5], (OC,)),
            o_w=w(ks[6], (C, OC, 1, 3)), o_b=w(ks[7], (C,)),
        )

    keys = jax.random.split(key, 8)
    return dict(
        norm1_w=jnp.ones((C, F), jnp.float32), norm1_b=jnp.zeros((C, F), jnp.float32),
        norm2_w=jnp.ones((C, F), jnp.float32), norm2_b=jnp.zeros((C, F), jnp.float32),
        norm3_w=jnp.ones((C, F), jnp.float32), norm3_b=jnp.zeros((C, F), jnp.float32),
        attn1=attn_params(keys[0]),
        attn2=attn_params(keys[1]),
        conv1_w=w(keys[2], (C * EXP, C, 3, 3)), conv1_b=w(keys[3], (C * EXP,)),
        conv2_w=w(keys[4], (C, C * EXP, 3, 3)), conv2_b=w(keys[5], (C,)),
    )


if __name__ == "__main__":
    B, C, OC, F, T, NH, EXP = 2, 4, 4, 32, 8, 8, 4   # features=32, heads=8 -> head_dim=4, frames=8

    root = jax.random.PRNGKey(0)
    params = init_params(root, C, OC, F, EXP)
    kx, ks = jax.random.split(jax.random.fold_in(root, 123))
    x = jax.random.normal(kx, (B, C, F, T), jnp.float32)
    skip = jax.random.normal(ks, (B, C, F, T), jnp.float32)

    fwd = jax.jit(functools.partial(decoder_forward, num_heads=NH, features=F, use_pallas=True))
    h, qk1, qk2 = fwd(params, x, skip)
    jax.block_until_ready((h, qk1, qk2))

    # Pure-JAX reference (same math, same bf16 cast points, exact softmax divide).
    h_r, qk1_r, qk2_r = decoder_forward(params, x, skip, num_heads=NH, features=F,
                                        use_pallas=False)
    for got, want in ((h, h_r), (qk1, qk1_r), (qk2, qk2_r)):
        err = float(jnp.max(jnp.abs(got - want)))
        assert jnp.allclose(got, want, atol=1e-2, rtol=1e-2), err

    print("KERNEL_OK")
</pallas_src>

<mosaic_0001>
module attributes {stable_mosaic.version = 11 : i64} {
  func.func @_mc_layernorm_kernel(%arg0: i32, %arg1: memref<1x4x8x32xf32, #tpu.memory_space<vmem>>, %arg2: memref<4x32xf32, #tpu.memory_space<vmem>>, %arg3: memref<4x32xf32, #tpu.memory_space<vmem>>, %arg4: memref<1x4x8x32xf32, #tpu.memory_space<vmem>>) attributes {dimension_semantics = [#tpu.dimension_semantics<parallel>], iteration_bounds = array<i64: 2>, scalar_prefetch = 0 : i64, scratch_operands = 0 : i64, tpu.core_type = #tpu.core_type<tc>, window_params = [{transform_indices = @transform_0, window_bounds = array<i64: 1, 4, 8, 32>}, {pipeline_mode = #tpu.pipeline_mode<synchronous>, transform_indices = @transform_1, window_bounds = array<i64: 4, 32>}, {pipeline_mode = #tpu.pipeline_mode<synchronous>, transform_indices = @transform_2, window_bounds = array<i64: 4, 32>}, {transform_indices = @transform_3, window_bounds = array<i64: 1, 4, 8, 32>}]} {
    %c0 = arith.constant 0 : index
    %c0_0 = arith.constant 0 : index
    %c0_1 = arith.constant 0 : index
    %c0_2 = arith.constant 0 : index
    %0 = vector.load %arg1[%c0, %c0_0, %c0_1, %c0_2] : memref<1x4x8x32xf32, #tpu.memory_space<vmem>>, vector<1x4x8x32xf32>
    %1 = vector.shape_cast %0 : vector<1x4x8x32xf32> to vector<4x8x32xf32>
    %cst = arith.constant dense<0.000000e+00> : vector<4x8xf32>
    %2 = vector.multi_reduction <add>, %1, %cst [2] : vector<4x8x32xf32> to vector<4x8xf32>
    %3 = vector.shape_cast %2 : vector<4x8xf32> to vector<4x8x1xf32>
    %cst_3 = arith.constant 3.200000e+01 : f32
    %4 = vector.broadcast %cst_3 : f32 to vector<4x8x1xf32>
    %5 = arith.divf %3, %4 : vector<4x8x1xf32>
    %6 = vector.broadcast %5 : vector<4x8x1xf32> to vector<4x8x32xf32>
    %7 = arith.subf %1, %6 : vector<4x8x32xf32>
    %8 = arith.mulf %7, %7 : vector<4x8x32xf32>
    %cst_4 = arith.constant dense<0.000000e+00> : vector<4x8xf32>
    %9 = vector.multi_reduction <add>, %8, %cst_4 [2] : vector<4x8x32xf32> to vector<4x8xf32>
    %10 = vector.shape_cast %9 : vector<4x8xf32> to vector<4x8x1xf32>
    %cst_5 = arith.constant 3.200000e+01 : f32
    %11 = vector.broadcast %cst_5 : f32 to vector<4x8x1xf32>
    %12 = arith.divf %10, %11 : vector<4x8x1xf32>
    %13 = vector.broadcast %5 : vector<4x8x1xf32> to vector<4x8x32xf32>
    %14 = arith.subf %1, %13 : vector<4x8x32xf32>
    %cst_6 = arith.constant 9.99999974E-6 : f32
    %15 = vector.broadcast %cst_6 : f32 to vector<4x8x1xf32>
    %16 = arith.addf %12, %15 : vector<4x8x1xf32>
    %17 = math.rsqrt %16 : vector<4x8x1xf32>
    %18 = vector.broadcast %17 : vector<4x8x1xf32> to vector<4x8x32xf32>
    %19 = arith.mulf %14, %18 : vector<4x8x32xf32>
    %c0_7 = arith.constant 0 : index
    %c0_8 = arith.constant 0 : index
    %20 = vector.load %arg2[%c0_7, %c0_8] : memref<4x32xf32, #tpu.memory_space<vmem>>, vector<4x32xf32>
    %21 = vector.shape_cast %20 : vector<4x32xf32> to vector<4x1x32xf32>
    %c0_9 = arith.constant 0 : index
    %c0_10 = arith.constant 0 : index
    %22 = vector.load %arg3[%c0_9, %c0_10] : memref<4x32xf32, #tpu.memory_space<vmem>>, vector<4x32xf32>
    %23 = vector.shape_cast %22 : vector<4x32xf32> to vector<4x1x32xf32>
    %24 = vector.broadcast %21 : vector<4x1x32xf32> to vector<4x8x32xf32>
    %25 = arith.mulf %19, %24 : vector<4x8x32xf32>
    %26 = vector.broadcast %23 : vector<4x1x32xf32> to vector<4x8x32xf32>
    %27 = arith.addf %25, %26 : vector<4x8x32xf32>
    %c0_11 = arith.constant 0 : index
    %c0_12 = arith.constant 0 : index
    %c0_13 = arith.constant 0 : index
    %c0_14 = arith.constant 0 : index
    %28 = vector.load %arg4[%c0_11, %c0_12, %c0_13, %c0_14] : memref<1x4x8x32xf32, #tpu.memory_space<vmem>>, vector<1x4x8x32xf32>
    %29 = vector.shape_cast %28 : vector<1x4x8x32xf32> to vector<4x8x32xf32>
    %30 = vector.shape_cast %27 : vector<4x8x32xf32> to vector<1x4x8x32xf32>
    tpu.vector_store %arg4[%c0_11, %c0_12, %c0_13, %c0_14], %30 {strides = array<i32>} : memref<1x4x8x32xf32, #tpu.memory_space<vmem>>, vector<1x4x8x32xf32>,
    return
  }
  func.func @transform_0(%arg0: i32) -> (i32, i32, i32, i32) {
    %c0_i32 = arith.constant 0 : i32
    %c0_i32_0 = arith.constant 0 : i32
    %c0_i32_1 = arith.constant 0 : i32
    %c0_i32_2 = arith.constant 0 : i32
    return %arg0, %c0_i32, %c0_i32_0, %c0_i32_1 : i32, i32, i32, i32
  }
  func.func @transform_1(%arg0: i32) -> (i32, i32) {
    %c0_i32 = arith.constant 0 : i32
    %c0_i32_0 = arith.constant 0 : i32
    %c0_i32_1 = arith.constant 0 : i32
    return %c0_i32, %c0_i32_0 : i32, i32
  }
  func.func @transform_2(%arg0: i32) -> (i32, i32) {
    %c0_i32 = arith.constant 0 : i32
    %c0_i32_0 = arith.constant 0 : i32
    %c0_i32_1 = arith.constant 0 : i32
    return %c0_i32, %c0_i32_0 : i32, i32
  }
  func.func @transform_3(%arg0: i32) -> (i32, i32, i32, i32) {
    %c0_i32 = arith.constant 0 : i32
    %c0_i32_0 = arith.constant 0 : i32
    %c0_i32_1 = arith.constant 0 : i32
    %c0_i32_2 = arith.constant 0 : i32
    return %arg0, %c0_i32, %c0_i32_0, %c0_i32_1 : i32, i32, i32, i32
  }
}

module attributes {stable_mosaic.version = 11 : i64} {
  func.func @_conv_flat_kernel(%arg0: i32, %arg1: memref<1x4x320xf32, #tpu.memory_space<vmem>>, %arg2: memref<3x12x4xf32, #tpu.memory_space<vmem>>, %arg3: memref<12x1xf32, #tpu.memory_space<vmem>>, %arg4: memref<1x12x256xf32, #tpu.memory_space<vmem>>) attributes {dimension_semantics = [#tpu.dimension_semantics<parallel>], iteration_bounds = array<i64: 2>, scalar_prefetch = 0 : i64, scratch_operands = 0 : i64, tpu.core_type = #tpu.core_type<tc>, window_params = [{transform_indices = @transform_0, window_bounds = array<i64: 1, 4, 320>}, {pipeline_mode = #tpu.pipeline_mode<synchronous>, transform_indices = @transform_1, window_bounds = array<i64: 3, 12, 4>}, {pipeline_mode = #tpu.pipeline_mode<synchronous>, transform_indices = @transform_2, window_bounds = array<i64: 12, 1>}, {transform_indices = @transform_3, window_bounds = array<i64: 1, 12, 256>}]} {
    %cst = arith.constant 0.000000e+00 : f32
    %0 = vector.broadcast %cst : f32 to vector<12x256xf32>
    %c0 = arith.constant 0 : index
    %c0_0 = arith.constant 0 : index
    %c0_1 = arith.constant 0 : index
    %1 = vector.load %arg1[%c0, %c0_0, %c0_1] : memref<1x4x320xf32, #tpu.memory_space<vmem>>, vector<1x4x256xf32>
    %2 = vector.shape_cast %1 : vector<1x4x256xf32> to vector<4x256xf32>
    %c0_2 = arith.constant 0 : index
    %c0_3 = arith.constant 0 : index
    %c0_4 = arith.constant 0 : index
    %3 = vector.load %arg2[%c0_2, %c0_3, %c0_4] : memref<3x12x4xf32, #tpu.memory_space<vmem>>, vector<1x12x4xf32>
    %4 = vector.shape_cast %3 : vector<1x12x4xf32> to vector<12x4xf32>
    %5 = arith.truncf %4 : vector<12x4xf32> to vector<12x4xbf16>
    %6 = arith.truncf %2 : vector<4x256xf32> to vector<4x256xbf16>
    %cst_5 = arith.constant dense<0.000000e+00> : vector<12x256xf32>
    %7 = tpu.matmul %5, %6, %cst_5 {dimension_numbers = #tpu.dot_dimension_numbers<[1], [0], [0], [1], [0, 0, 1, 1], [], []>} : vector<12x4xbf16>, vector<4x256xbf16>, vector<12x256xf32> -> vector<12x256xf32>
    %8 = arith.addf %0, %7 : vector<12x256xf32>
    %c0_6 = arith.constant 0 : index
    %c0_7 = arith.constant 0 : index
    %c32 = arith.constant 32 : index
    %9 = vector.load %arg1[%c0_6, %c0_7, %c32] : memref<1x4x320xf32, #tpu.memory_space<vmem>>, vector<1x4x256xf32>
    %10 = vector.shape_cast %9 : vector<1x4x256xf32> to vector<4x256xf32>
    %c1 = arith.constant 1 : index
    %c0_8 = arith.constant 0 : index
    %c0_9 = arith.constant 0 : index
    %11 = vector.load %arg2[%c1, %c0_8, %c0_9] : memref<3x12x4xf32, #tpu.memory_space<vmem>>, vector<1x12x4xf32>
    %12 = vector.shape_cast %11 : vector<1x12x4xf32> to vector<12x4xf32>
    %13 = arith.truncf %12 : vector<12x4xf32> to vector<12x4xbf16>
    %14 = arith.truncf %10 : vector<4x256xf32> to vector<4x256xbf16>
    %cst_10 = arith.constant dense<0.000000e+00> : vector<12x256xf32>
    %15 = tpu.matmul %13, %14, %cst_10 {dimension_numbers = #tpu.dot_dimension_numbers<[1], [0], [0], [1], [0, 0, 1, 1], [], []>} : vector<12x4xbf16>, vector<4x256xbf16>, vector<12x256xf32> -> vector<12x256xf32>
    %16 = arith.addf %8, %15 : vector<12x256xf32>
    %c0_11 = arith.constant 0 : index
    %c0_12 = arith.constant 0 : index
    %c64 = arith.constant 64 : index
    %17 = vector.load %arg1[%c0_11, %c0_12, %c64] : memref<1x4x320xf32, #tpu.memory_space<vmem>>, vector<1x4x256xf32>
    %18 = vector.shape_cast %17 : vector<1x4x256xf32> to vector<4x256xf32>
    %c2 = arith.constant 2 : index
    %c0_13 = arith.constant 0 : index
    %c0_14 = arith.constant 0 : index
    %19 = vector.load %arg2[%c2, %c0_13, %c0_14] : memref<3x12x4xf32, #tpu.memory_space<vmem>>, vector<1x12x4xf32>
    %20 = vector.shape_cast %19 : vector<1x12x4xf32> to vector<12x4xf32>
    %21 = arith.truncf %20 : vector<12x4xf32> to vector<12x4xbf16>
    %22 = arith.truncf %18 : vector<4x256xf32> to vector<4x256xbf16>
    %cst_15 = arith.constant dense<0.000000e+00> : vector<12x256xf32>
    %23 = tpu.matmul %21, %22, %cst_15 {dimension_numbers = #tpu.dot_dimension_numbers<[1], [0], [0], [1], [0, 0, 1, 1], [], []>} : vector<12x4xbf16>, vector<4x256xbf16>, vector<12x256xf32> -> vector<12x256xf32>
    %24 = arith.addf %16, %23 : vector<12x256xf32>
    %c0_16 = arith.constant 0 : index
    %c0_17 = arith.constant 0 : index
    %25 = vector.load %arg3[%c0_16, %c0_17] : memref<12x1xf32, #tpu.memory_space<vmem>>, vector<12x1xf32>
    %26 = vector.broadcast %25 : vector<12x1xf32> to vector<12x256xf32>
    %27 = arith.addf %24, %26 : vector<12x256xf32>
    %c0_18 = arith.constant 0 : index
    %c0_19 = arith.constant 0 : index
    %c0_20 = arith.constant 0 : index
    %28 = vector.load %arg4[%c0_18, %c0_19, %c0_20] : memref<1x12x256xf32, #tpu.memory_space<vmem>>, vector<1x12x256xf32>
    %29 = vector.shape_cast %28 : vector<1x12x256xf32> to vector<12x256xf32>
    %30 = vector.shape_cast %27 : vector<12x256xf32> to vector<1x12x256xf32>
    tpu.vector_store %arg4[%c0_18, %c0_19, %c0_20], %30 {strides = array<i32>} : memref<1x12x256xf32, #tpu.memory_space<vmem>>, vector<1x12x256xf32>,
    return
  }
  func.func @transform_0(%arg0: i32) -> (i32, i32, i32) {
    %c0_i32 = arith.constant 0 : i32
    %c0_i32_0 = arith.constant 0 : i32
    %c0_i32_1 = arith.constant 0 : i32
    return %arg0, %c0_i32, %c0_i32_0 : i32, i32, i32
  }
  func.func @transform_1(%arg0: i32) -> (i32, i32, i32) {
    %c0_i32 = arith.constant 0 : i32
    %c0_i32_0 = arith.constant 0 : i32
    %c0_i32_1 = arith.constant 0 : i32
    %c0_i32_2 = arith.constant 0 : i32
    return %c0_i32, %c0_i32_0, %c0_i32_1 : i32, i32, i32
  }
  func.func @transform_2(%arg0: i32) -> (i32, i32) {
    %c0_i32 = arith.constant 0 : i32
    %c0_i32_0 = arith.constant 0 : i32
    %c0_i32_1 = arith.constant 0 : i32
    return %c0_i32, %c0_i32_0 : i32, i32
  }
  func.func @transform_3(%arg0: i32) -> (i32, i32, i32) {
    %c0_i32 = arith.constant 0 : i32
    %c0_i32_0 = arith.constant 0 : i32
    %c0_i32_1 = arith.constant 0 : i32
    return %arg0, %c0_i32, %c0_i32_0 : i32, i32, i32
  }
}

module attributes {stable_mosaic.version = 11 : i64} {
  func.func @_attn_kernel(%arg0: i32, %arg1: i32, %arg2: memref<1x4x8x32xf32, #tpu.memory_space<vmem>>, %arg3: memref<1x4x8x32xf32, #tpu.memory_space<vmem>>, %arg4: memref<1x4x8x32xf32, #tpu.memory_space<vmem>>, %arg5: memref<8x32xf32, #tpu.memory_space<vmem>>, %arg6: memref<8x32xf32, #tpu.memory_space<vmem>>, %arg7: memref<8x32xf32, #tpu.memory_space<vmem>>, %arg8: memref<1x4x8x32xf32, #tpu.memory_space<vmem>>, %arg9: memref<1x4x8x8x8xf32, #tpu.memory_space<vmem>>) attributes {dimension_semantics = [#tpu.dimension_semantics<parallel>, #tpu.dimension_semantics<parallel>], iteration_bounds = array<i64: 2, 1>, scalar_prefetch = 0 : i64, scratch_operands = 0 : i64, tpu.core_type = #tpu.core_type<tc>, window_params = [{transform_indices = @transform_0, window_bounds = array<i64: 1, 4, 8, 32>}, {transform_indices = @transform_1, window_bounds = array<i64: 1, 4, 8, 32>}, {transform_indices = @transform_2, window_bounds = array<i64: 1, 4, 8, 32>}, {pipeline_mode = #tpu.pipeline_mode<synchronous>, transform_indices = @transform_3, window_bounds = array<i64: 8, 32>}, {pipeline_mode = #tpu.pipeline_mode<synchronous>, transform_indices = @transform_4, window_bounds = array<i64: 8, 32>}, {pipeline_mode = #tpu.pipeline_mode<synchronous>, transform_indices = @transform_5, window_bounds = array<i64: 8, 32>}, {transform_indices = @transform_6, window_bounds = array<i64: 1, 4, 8, 32>}, {transform_indices = @transform_7, window_bounds = array<i64: 1, 4, 8, 8, 8>}]} {
    %c0 = arith.constant 0 : index
    %c0_0 = arith.constant 0 : index
    %0 = vector.load %arg5[%c0, %c0_0] : memref<8x32xf32, #tpu.memory_space<vmem>>, vector<8x32xf32>
    %c0_1 = arith.constant 0 : index
    %c0_2 = arith.constant 0 : index
    %1 = vector.load %arg6[%c0_1, %c0_2] : memref<8x32xf32, #tpu.memory_space<vmem>>, vector<8x32xf32>
    %c0_3 = arith.constant 0 : index
    %c0_4 = arith.constant 0 : index
    %2 = vector.load %arg7[%c0_3, %c0_4] : memref<8x32xf32, #tpu.memory_space<vmem>>, vector<8x32xf32>
    %c0_5 = arith.constant 0 : index
    %c0_6 = arith.constant 0 : index
    %c0_7 = arith.constant 0 : index
    %c0_8 = arith.constant 0 : index
    %3 = vector.load %arg2[%c0_5, %c0_6, %c0_7, %c0_8] : memref<1x4x8x32xf32, #tpu.memory_space<vmem>>, vector<1x4x8x32xf32>
    %4 = vector.shape_cast %3 : vector<1x4x8x32xf32> to vector<4x8x32xf32>
    %5 = vector.shape_cast %0 : vector<8x32xf32> to vector<1x8x32xf32>
    %6 = vector.broadcast %5 : vector<1x8x32xf32> to vector<4x8x32xf32>
    %7 = arith.mulf %4, %6 : vector<4x8x32xf32>
    %8 = vector.extract_strided_slice %4 {offsets = [0, 0, 31], sizes = [4, 8, 1], strides = [1, 1, 1]} : vector<4x8x32xf32> to vector<4x8x1xf32>
    %9 = vector.extract_strided_slice %4 {offsets = [0, 0, 0], sizes = [4, 8, 31], strides = [1, 1, 1]} : vector<4x8x32xf32> to vector<4x8x31xf32>
    %10 = tpu.concatenate %8, %9 in 2 : vector<4x8x1xf32>, vector<4x8x31xf32> -> vector<4x8x32xf32>
    %11 = vector.shape_cast %1 : vector<8x32xf32> to vector<1x8x32xf32>
    %12 = vector.broadcast %11 : vector<1x8x32xf32> to vector<4x8x32xf32>
    %13 = arith.mulf %10, %12 : vector<4x8x32xf32>
    %14 = arith.addf %7, %13 : vector<4x8x32xf32>
    %15 = vector.extract_strided_slice %4 {offsets = [0, 0, 1], sizes = [4, 8, 31], strides = [1, 1, 1]} : vector<4x8x32xf32> to vector<4x8x31xf32>
    %16 = vector.extract_strided_slice %4 {offsets = [0, 0, 0], sizes = [4, 8, 1], strides = [1, 1, 1]} : vector<4x8x32xf32> to vector<4x8x1xf32>
    %17 = tpu.concatenate %15, %16 in 2 : vector<4x8x31xf32>, vector<4x8x1xf32> -> vector<4x8x32xf32>
    %18 = vector.shape_cast %2 : vector<8x32xf32> to vector<1x8x32xf32>
    %19 = vector.broadcast %18 : vector<1x8x32xf32> to vector<4x8x32xf32>
    %20 = arith.mulf %17, %19 : vector<4x8x32xf32>
    %21 = arith.addf %14, %20 : vector<4x8x32xf32>
    %c0_9 = arith.constant 0 : index
    %c0_10 = arith.constant 0 : index
    %c0_11 = arith.constant 0 : index
    %c0_12 = arith.constant 0 : index
    %22 = vector.load %arg3[%c0_9, %c0_10, %c0_11, %c0_12] : memref<1x4x8x32xf32, #tpu.memory_space<vmem>>, vector<1x4x8x32xf32>
    %23 = vector.shape_cast %22 : vector<1x4x8x32xf32> to vector<4x8x32xf32>
    %24 = vector.shape_cast %0 : vector<8x32xf32> to vector<1x8x32xf32>
    %25 = vector.broadcast %24 : vector<1x8x32xf32> to vector<4x8x32xf32>
    %26 = arith.mulf %23, %25 : vector<4x8x32xf32>
    %27 = vector.extract_strided_slice %23 {offsets = [0, 0, 31], sizes = [4, 8, 1], strides = [1, 1, 1]} : vector<4x8x32xf32> to vector<4x8x1xf32>
    %28 = vector.extract_strided_slice %23 {offsets = [0, 0, 0], sizes = [4, 8, 31], strides = [1, 1, 1]} : vector<4x8x32xf32> to vector<4x8x31xf32>
    %29 = tpu.concatenate %27, %28 in 2 : vector<4x8x1xf32>, vector<4x8x31xf32> -> vector<4x8x32xf32>
    %30 = vector.shape_cast %1 : vector<8x32xf32> to vector<1x8x32xf32>
    %31 = vector.broadcast %30 : vector<1x8x32xf32> to vector<4x8x32xf32>
    %32 = arith.mulf %29, %31 : vector<4x8x32xf32>
    %33 = arith.addf %26, %32 : vector<4x8x32xf32>
    %34 = vector.extract_strided_slice %23 {offsets = [0, 0, 1], sizes = [4, 8, 31], strides = [1, 1, 1]} : vector<4x8x32xf32> to vector<4x8x31xf32>
    %35 = vector.extract_strided_slice %23 {offsets = [0, 0, 0], sizes = [4, 8, 1], strides = [1, 1, 1]} : vector<4x8x32xf32> to vector<4x8x1xf32>
    %36 = tpu.concatenate %34, %35 in 2 : vector<4x8x31xf32>, vector<4x8x1xf32> -> vector<4x8x32xf32>
    %37 = vector.shape_cast %2 : vector<8x32xf32> to vector<1x8x32xf32>
    %38 = vector.broadcast %37 : vector<1x8x32xf32> to vector<4x8x32xf32>
    %39 = arith.mulf %36, %38 : vector<4x8x32xf32>
    %40 = arith.addf %33, %39 : vector<4x8x32xf32>
    %c0_13 = arith.constant 0 : index
    %c0_14 = arith.constant 0 : index
    %c0_15 = arith.constant 0 : index
    %c0_16 = arith.constant 0 : index
    %41 = vector.load %arg4[%c0_13, %c0_14, %c0_15, %c0_16] : memref<1x4x8x32xf32, #tpu.memory_space<vmem>>, vector<1x4x8x32xf32>
    %42 = vector.shape_cast %41 : vector<1x4x8x32xf32> to vector<4x8x32xf32>
    %43 = vector.extract_strided_slice %21 {offsets = [0, 0, 0], sizes = [4, 8, 4], strides = [1, 1, 1]} : vector<4x8x32xf32> to vector<4x8x4xf32>
    %44 = arith.truncf %43 : vector<4x8x4xf32> to vector<4x8x4xbf16>
    %45 = vector.extract_strided_slice %40 {offsets = [0, 0, 0], sizes = [4, 8, 4], strides = [1, 1, 1]} : vector<4x8x32xf32> to vector<4x8x4xf32>
    %46 = arith.truncf %45 : vector<4x8x4xf32> to vector<4x8x4xbf16>
    "tpu.trace_start"() <{level = 10 : i32, message = "gtd,gsd->gts"}> : () -> ()
    %cst = arith.constant dense<0.000000e+00> : vector<4x8x8xf32>
    %47 = tpu.matmul %44, %46, %cst {dimension_numbers = #tpu.dot_dimension_numbers<[2], [2], [1], [1], [0, 0, 0, 1, 1, 1], [0], [0]>} : vector<4x8x4xbf16>, vector<4x8x4xbf16>, vector<4x8x8xf32> -> vector<4x8x8xf32>
    "tpu.trace_stop"() : () -> ()
    %cst_17 = arith.constant 0.176776692 : f32
    %48 = vector.broadcast %cst_17 : f32 to vector<4x8x8xf32>
    %49 = arith.mulf %47, %48 : vector<4x8x8xf32>
    %c0_18 = arith.constant 0 : index
    %c0_19 = arith.constant 0 : index
    %c0_20 = arith.constant 0 : index
    %c0_21 = arith.constant 0 : index
    %c0_22 = arith.constant 0 : index
    %50 = vector.load %arg9[%c0_18, %c0_19, %c0_20, %c0_21, %c0_22] : memref<1x4x8x8x8xf32, #tpu.memory_space<vmem>>, vector<1x4x1x8x8xf32>
    %51 = vector.shape_cast %50 : vector<1x4x1x8x8xf32> to vector<4x8x8xf32>
    %52 = vector.shape_cast %49 : vector<4x8x8xf32> to vector<1x4x1x8x8xf32>
    tpu.vector_store %arg9[%c0_18, %c0_19, %c0_20, %c0_21, %c0_22], %52 {strides = array<i32>} : memref<1x4x8x8x8xf32, #tpu.memory_space<vmem>>, vector<1x4x1x8x8xf32>,
    %cst_23 = arith.constant dense<0xFF800000> : vector<4x8xf32>
    %53 = vector.multi_reduction <maximumf>, %49, %cst_23 [2] : vector<4x8x8xf32> to vector<4x8xf32>
    %54 = vector.shape_cast %53 : vector<4x8xf32> to vector<4x8x1xf32>
    %55 = vector.broadcast %54 : vector<4x8x1xf32> to vector<4x8x8xf32>
    %56 = arith.subf %49, %55 : vector<4x8x8xf32>
    %57 = math.exp %56 : vector<4x8x8xf32>
    %cst_24 = arith.constant dense<0.000000e+00> : vector<4x8xf32>
    %58 = vector.multi_reduction <add>, %57, %cst_24 [2] : vector<4x8x8xf32> to vector<4x8xf32>
    %59 = vector.shape_cast %58 : vector<4x8xf32> to vector<4x8x1xf32>
    %60 = tpu.reciprocal %59 {approx = true} : vector<4x8x1xf32> -> vector<4x8x1xf32>
    %61 = vector.broadcast %60 : vector<4x8x1xf32> to vector<4x8x8xf32>
    %62 = arith.mulf %57, %61 : vector<4x8x8xf32>
    %63 = vector.extract_strided_slice %42 {offsets = [0, 0, 0], sizes = [4, 8, 4], strides = [1, 1, 1]} : vector<4x8x32xf32> to vector<4x8x4xf32>
    %64 = arith.truncf %63 : vector<4x8x4xf32> to vector<4x8x4xbf16>
    %65 = arith.truncf %62 : vector<4x8x8xf32> to vector<4x8x8xbf16>
    "tpu.trace_start"() <{level = 10 : i32, message = "gts,gsd->gtd"}> : () -> ()
    %cst_25 = arith.constant dense<0.000000e+00> : vector<4x8x4xf32>
    %66 = tpu.matmul %65, %64, %cst_25 {dimension_numbers = #tpu.dot_dimension_numbers<[2], [1], [1], [2], [0, 0, 0, 1, 1, 2], [0], [0]>} : vector<4x8x8xbf16>, vector<4x8x4xbf16>, vector<4x8x4xf32> -> vector<4x8x4xf32>
    "tpu.trace_stop"() : () -> ()
    %c0_26 = arith.constant 0 : index
    %c0_27 = arith.constant 0 : index
    %c0_28 = arith.constant 0 : index
    %c0_29 = arith.constant 0 : index
    %67 = vector.load %arg8[%c0_26, %c0_27, %c0_28, %c0_29] : memref<1x4x8x32xf32, #tpu.memory_space<vmem>>, vector<1x4x8x4xf32>
    %68 = vector.shape_cast %67 : vector<1x4x8x4xf32> to vector<4x8x4xf32>
    %69 = vector.shape_cast %66 : vector<4x8x4xf32> to vector<1x4x8x4xf32>
    tpu.vector_store %arg8[%c0_26, %c0_27, %c0_28, %c0_29], %69 {strides = array<i32>} : memref<1x4x8x32xf32, #tpu.memory_space<vmem>>, vector<1x4x8x4xf32>,
    %70 = vector.extract_strided_slice %21 {offsets = [0, 0, 4], sizes = [4, 8, 4], strides = [1, 1, 1]} : vector<4x8x32xf32> to vector<4x8x4xf32>
    %71 = arith.truncf %70 : vector<4x8x4xf32> to vector<4x8x4xbf16>
    %72 = vector.extract_strided_slice %40 {offsets = [0, 0, 4], sizes = [4, 8, 4], strides = [1, 1, 1]} : vector<4x8x32xf32> to vector<4x8x4xf32>
    %73 = arith.truncf %72 : vector<4x8x4xf32> to vector<4x8x4xbf16>
    "tpu.trace_start"() <{level = 10 : i32, message = "gtd,gsd->gts"}> : () -> ()
    %cst_30 = arith.constant dense<0.000000e+00> : vector<4x8x8xf32>
    %74 = tpu.matmul %71, %73, %cst_30 {dimension_numbers = #tpu.dot_dimension_numbers<[2], [2], [1], [1], [0, 0, 0, 1, 1, 1], [0], [0]>} : vector<4x8x4xbf16>, vector<4x8x4xbf16>, vector<4x8x8xf32> -> vector<4x8x8xf32>
    "tpu.trace_stop"() : () -> ()
    %cst_31 = arith.constant 0.176776692 : f32
    %75 = vector.broadcast %cst_31 : f32 to vector<4x8x8xf32>
    %76 = arith.mulf %74, %75 : vector<4x8x8xf32>
    %c0_32 = arith.constant 0 : index
    %c0_33 = arith.constant 0 : index
    %c1 = arith.constant 1 : index
    %c0_34 = arith.constant 0 : index
    %c0_35 = arith.constant 0 : index
    %77 = vector.load %arg9[%c0_32, %c0_33, %c1, %c0_34, %c0_35] : memref<1x4x8x8x8xf32, #tpu.memory_space<vmem>>, vector<1x4x1x8x8xf32>
    %78 = vector.shape_cast %77 : vector<1x4x1x8x8xf32> to vector<4x8x8xf32>
    %79 = vector.shape_cast %76 : vector<4x8x8xf32> to vector<1x4x1x8x8xf32>
    tpu.vector_store %arg9[%c0_32, %c0_33, %c1, %c0_34, %c0_35], %79 {strides = array<i32>} : memref<1x4x8x8x8xf32, #tpu.memory_space<vmem>>, vector<1x4x1x8x8xf32>,
    %cst_36 = arith.constant dense<0xFF800000> : vector<4x8xf32>
    %80 = vector.multi_reduction <maximumf>, %76, %cst_36 [2] : vector<4x8x8xf32> to vector<4x8xf32>
    %81 = vector.shape_cast %80 : vector<4x8xf32> to vector<4x8x1xf32>
    %82 = vector.broadcast %81 : vector<4x8x1xf32> to vector<4x8x8xf32>
    %83 = arith.subf %76, %82 : vector<4x8x8xf32>
    %84 = math.exp %83 : vector<4x8x8xf32>
    %cst_37 = arith.constant dense<0.000000e+00> : vector<4x8xf32>
    %85 = vector.multi_reduction <add>, %84, %cst_37 [2] : vector<4x8x8xf32> to vector<4x8xf32>
    %86 = vector.shape_cast %85 : vector<4x8xf32> to vector<4x8x1xf32>
    %87 = tpu.reciprocal %86 {approx = true} : vector<4x8x1xf32> -> vector<4x8x1xf32>
    %88 = vector.broadcast %87 : vector<4x8x1xf32> to vector<4x8x8xf32>
    %89 = arith.mulf %84, %88 : vector<4x8x8xf32>
    %90 = vector.extract_strided_slice %42 {offsets = [0, 0, 4], sizes = [4, 8, 4], strides = [1, 1, 1]} : vector<4x8x32xf32> to vector<4x8x4xf32>
    %91 = arith.truncf %90 : vector<4x8x4xf32> to vector<4x8x4xbf16>
    %92 = arith.truncf %89 : vector<4x8x8xf32> to vector<4x8x8xbf16>
    "tpu.trace_start"() <{level = 10 : i32, message = "gts,gsd->gtd"}> : () -> ()
    %cst_38 = arith.constant dense<0.000000e+00> : vector<4x8x4xf32>
    %93 = tpu.matmul %92, %91, %cst_38 {dimension_numbers = #tpu.dot_dimension_numbers<[2], [1], [1], [2], [0, 0, 0, 1, 1, 2], [0], [0]>} : vector<4x8x8xbf16>, vector<4x8x4xbf16>, vector<4x8x4xf32> -> vector<4x8x4xf32>
    "tpu.trace_stop"() : () -> ()
    %c0_39 = arith.constant 0 : index
    %c0_40 = arith.constant 0 : index
    %c0_41 = arith.constant 0 : index
    %c4 = arith.constant 4 : index
    %94 = vector.load %arg8[%c0_39, %c0_40, %c0_41, %c4] : memref<1x4x8x32xf32, #tpu.memory_space<vmem>>, vector<1x4x8x4xf32>
    %95 = vector.shape_cast %94 : vector<1x4x8x4xf32> to vector<4x8x4xf32>
    %96 = vector.shape_cast %93 : vector<4x8x4xf32> to vector<1x4x8x4xf32>
    tpu.vector_store %arg8[%c0_39, %c0_40, %c0_41, %c4], %96 {strides = array<i32>} : memref<1x4x8x32xf32, #tpu.memory_space<vmem>>, vector<1x4x8x4xf32>,
    %97 = vector.extract_strided_slice %21 {offsets = [0, 0, 8], sizes = [4, 8, 4], strides = [1, 1, 1]} : vector<4x8x32xf32> to vector<4x8x4xf32>
    %98 = arith.truncf %97 : vector<4x8x4xf32> to vector<4x8x4xbf16>
    %99 = vector.extract_strided_slice %40 {offsets = [0, 0, 8], sizes = [4, 8, 4], strides = [1, 1, 1]} : vector<4x8x32xf32> to vector<4x8x4xf32>
    %100 = arith.truncf %99 : vector<4x8x4xf32> to vector<4x8x4xbf16>
    "tpu.trace_start"() <{level = 10 : i32, message = "gtd,gsd->gts"}> : () -> ()
    %cst_42 = arith.constant dense<0.000000e+00> : vector<4x8x8xf32>
    %101 = tpu.matmul %98, %100, %cst_42 {dimension_numbers = #tpu.dot_dimension_numbers<[2], [2], [1], [1], [0, 0, 0, 1, 1, 1], [0], [0]>} : vector<4x8x4xbf16>, vector<4x8x4xbf16>, vector<4x8x8xf32> -> vector<4x8x8xf32>
    "tpu.trace_stop"() : () -> ()
    %cst_43 = arith.constant 0.176776692 : f32
    %102 = vector.broadcast %cst_43 : f32 to vector<4x8x8xf32>
    %103 = arith.mulf %101, %102 : vector<4x8x8xf32>
    %c0_44 = arith.constant 0 : index
    %c0_45 = arith.constant 0 : index
    %c2 = arith.constant 2 : index
    %c0_46 = arith.constant 0 : index
    %c0_47 = arith.constant 0 : index
    %104 = vector.load %arg9[%c0_44, %c0_45, %c2, %c0_46, %c0_47] : memref<1x4x8x8x8xf32, #tpu.memory_space<vmem>>, vector<1x4x1x8x8xf32>
    %105 = vector.shape_cast %104 : vector<1x4x1x8x8xf32> to vector<4x8x8xf32>
    %106 = vector.shape_cast %103 : vector<4x8x8xf32> to vector<1x4x1x8x8xf32>
    tpu.vector_store %arg9[%c0_44, %c0_45, %c2, %c0_46, %c0_47], %106 {strides = array<i32>} : memref<1x4x8x8x8xf32, #tpu.memory_space<vmem>>, vector<1x4x1x8x8xf32>,
    %cst_48 = arith.constant dense<0xFF800000> : vector<4x8xf32>
    %107 = vector.multi_reduction <maximumf>, %103, %cst_48 [2] : vector<4x8x8xf32> to vector<4x8xf32>
    %108 = vector.shape_cast %107 : vector<4x8xf32> to vector<4x8x1xf32>
    %109 = vector.broadcast %108 : vector<4x8x1xf32> to vector<4x8x8xf32>
    %110 = arith.subf %103, %109 : vector<4x8x8xf32>
    %111 = math.exp %110 : vector<4x8x8xf32>
    %cst_49 = arith.constant dense<0.000000e+00> : vector<4x8xf32>
    %112 = vector.multi_reduction <add>, %111, %cst_49 [2] : vector<4x8x8xf32> to vector<4x8xf32>
    %113 = vector.shape_cast %112 : vector<4x8xf32> to vector<4x8x1xf32>
    %114 = tpu.reciprocal %113 {approx = true} : vector<4x8x1xf32> -> vector<4x8x1xf32>
    %115 = vector.broadcast %114 : vector<4x8x1xf32> to vector<4x8x8xf32>
    %116 = arith.mulf %111, %115 : vector<4x8x8xf32>
    %117 = vector.extract_strided_slice %42 {offsets = [0, 0, 8], sizes = [4, 8, 4], strides = [1, 1, 1]} : vector<4x8x32xf32> to vector<4x8x4xf32>
    %118 = arith.truncf %117 : vector<4x8x4xf32> to vector<4x8x4xbf16>
    %119 = arith.truncf %116 : vector<4x8x8xf32> to vector<4x8x8xbf16>
    "tpu.trace_start"() <{level = 10 : i32, message = "gts,gsd->gtd"}> : () -> ()
    %cst_50 = arith.constant dense<0.000000e+00> : vector<4x8x4xf32>
    %120 = tpu.matmul %119, %118, %cst_50 {dimension_numbers = #tpu.dot_dimension_numbers<[2], [1], [1], [2], [0, 0, 0, 1, 1, 2], [0], [0]>} : vector<4x8x8xbf16>, vector<4x8x4xbf16>, vector<4x8x4xf32> -> vector<4x8x4xf32>
    "tpu.trace_stop"() : () -> ()
    %c0_51 = arith.constant 0 : index
    %c0_52 = arith.constant 0 : index
    %c0_53 = arith.constant 0 : index
    %c8 = arith.constant 8 : index
    %121 = vector.load %arg8[%c0_51, %c0_52, %c0_53, %c8] : memref<1x4x8x32xf32, #tpu.memory_space<vmem>>, vector<1x4x8x4xf32>
    %122 = vector.shape_cast %121 : vector<1x4x8x4xf32> to vector<4x8x4xf32>
    %123 = vector.shape_cast %120 : vector<4x8x4xf32> to vector<1x4x8x4xf32>
    tpu.vector_store %arg8[%c0_51, %c0_52, %c0_53, %c8], %123 {strides = array<i32>} : memref<1x4x8x32xf32, #tpu.memory_space<vmem>>, vector<1x4x8x4xf32>,
    %124 = vector.extract_strided_slice %21 {offsets = [0, 0, 12], sizes = [4, 8, 4], strides = [1, 1, 1]} : vector<4x8x32xf32> to vector<4x8x4xf32>
    %125 = arith.truncf %124 : vector<4x8x4xf32> to vector<4x8x4xbf16>
    %126 = vector.extract_strided_slice %40 {offsets = [0, 0, 12], sizes = [4, 8, 4], strides = [1, 1, 1]} : vector<4x8x32xf32> to vector<4x8x4xf32>
    %127 = arith.truncf %126 : vector<4x8x4xf32> to vector<4x8x4xbf16>
    "tpu.trace_start"() <{level = 10 : i32, message = "gtd,gsd->gts"}> : () -> ()
    %cst_54 = arith.constant dense<0.000000e+00> : vector<4x8x8xf32>
    %128 = tpu.matmul %125, %127, %cst_54 {dimension_numbers = #tpu.dot_dimension_numbers<[2], [2], [1], [1], [0, 0, 0, 1, 1, 1], [0], [0]>} : vector<4x8x4xbf16>, vector<4x8x4xbf16>, vector<4x8x8xf32> -> vector<4x8x8xf32>
    "tpu.trace_stop"() : () -> ()
    %cst_55 = arith.constant 0.176776692 : f32
    %129 = vector.broadcast %cst_55 : f32 to vector<4x8x8xf32>
    %130 = arith.mulf %128, %129 : vector<4x8x8xf32>
    %c0_56 = arith.constant 0 : index
    %c0_57 = arith.constant 0 : index
    %c3 = arith.constant 3 : index
    %c0_58 = arith.constant 0 : index
    %c0_59 = arith.constant 0 : index
    %131 = vector.load %arg9[%c0_56, %c0_57, %c3, %c0_58, %c0_59] : memref<1x4x8x8x8xf32, #tpu.memory_space<vmem>>, vector<1x4x1x8x8xf32>
    %132 = vector.shape_cast %131 : vector<1x4x1x8x8xf32> to vector<4x8x8xf32>
    %133 = vector.shape_cast %130 : vector<4x8x8xf32> to vector<1x4x1x8x8xf32>
    tpu.vector_store %arg9[%c0_56, %c0_57, %c3, %c0_58, %c0_59], %133 {strides = array<i32>} : memref<1x4x8x8x8xf32, #tpu.memory_space<vmem>>, vector<1x4x1x8x8xf32>,
    %cst_60 = arith.constant dense<0xFF800000> : vector<4x8xf32>
    %134 = vector.multi_reduction <maximumf>, %130, %cst_60 [2] : vector<4x8x8xf32> to vector<4x8xf32>
    %135 = vector.shape_cast %134 : vector<4x8xf32> to vector<4x8x1xf32>
    %136 = vector.broadcast %135 : vector<4x8x1xf32> to vector<4x8x8xf32>
    %137 = arith.subf %130, %136 : vector<4x8x8xf32>
    %138 = math.exp %137 : vector<4x8x8xf32>
    %cst_61 = arith.constant dense<0.000000e+00> : vector<4x8xf32>
    %139 = vector.multi_reduction <add>, %138, %cst_61 [2] : vector<4x8x8xf32> to vector<4x8xf32>
    %140 = vector.shape_cast %139 : vector<4x8xf32> to vector<4x8x1xf32>
    %141 = tpu.reciprocal %140 {approx = true} : vector<4x8x1xf32> -> vector<4x8x1xf32>
    %142 = vector.broadcast %141 : vector<4x8x1xf32> to vector<4x8x8xf32>
    %143 = arith.mulf %138, %142 : vector<4x8x8xf32>
    %144 = vector.extract_strided_slice %42 {offsets = [0, 0, 12], sizes = [4, 8, 4], strides = [1, 1, 1]} : vector<4x8x32xf32> to vector<4x8x4xf32>
    %145 = arith.truncf %144 : vector<4x8x4xf32> to vector<4x8x4xbf16>
    %146 = arith.truncf %143 : vector<4x8x8xf32> to vector<4x8x8xbf16>
    "tpu.trace_start"() <{level = 10 : i32, message = "gts,gsd->gtd"}> : () -> ()
    %cst_62 = arith.constant dense<0.000000e+00> : vector<4x8x4xf32>
    %147 = tpu.matmul %146, %145, %cst_62 {dimension_numbers = #tpu.dot_dimension_numbers<[2], [1], [1], [2], [0, 0, 0, 1, 1, 2], [0], [0]>} : vector<4x8x8xbf16>, vector<4x8x4xbf16>, vector<4x8x4xf32> -> vector<4x8x4xf32>
    "tpu.trace_stop"() : () -> ()
    %c0_63 = arith.constant 0 : index
    %c0_64 = arith.constant 0 : index
    %c0_65 = arith.constant 0 : index
    %c12 = arith.constant 12 : index
    %148 = vector.load %arg8[%c0_63, %c0_64, %c0_65, %c12] : memref<1x4x8x32xf32, #tpu.memory_space<vmem>>, vector<1x4x8x4xf32>
    %149 = vector.shape_cast %148 : vector<1x4x8x4xf32> to vector<4x8x4xf32>
    %150 = vector.shape_cast %147 : vector<4x8x4xf32> to vector<1x4x8x4xf32>
    tpu.vector_store %arg8[%c0_63, %c0_64, %c0_65, %c12], %150 {strides = array<i32>} : memref<1x4x8x32xf32, #tpu.memory_space<vmem>>, vector<1x4x8x4xf32>,
    %151 = vector.extract_strided_slice %21 {offsets = [0, 0, 16], sizes = [4, 8, 4], strides = [1, 1, 1]} : vector<4x8x32xf32> to vector<4x8x4xf32>
    %152 = arith.truncf %151 : vector<4x8x4xf32> to vector<4x8x4xbf16>
    %153 = vector.extract_strided_slice %40 {offsets = [0, 0, 16], sizes = [4, 8, 4], strides = [1, 1, 1]} : vector<4x8x32xf32> to vector<4x8x4xf32>
    %154 = arith.truncf %153 : vector<4x8x4xf32> to vector<4x8x4xbf16>
    "tpu.trace_start"() <{level = 10 : i32, message = "gtd,gsd->gts"}> : () -> ()
    %cst_66 = arith.constant dense<0.000000e+00> : vector<4x8x8xf32>
    %155 = tpu.matmul %152, %154, %cst_66 {dimension_numbers = #tpu.dot_dimension_numbers<[2], [2], [1], [1], [0, 0, 0, 1, 1, 1], [0], [0]>} : vector<4x8x4xbf16>, vector<4x8x4xbf16>, vector<4x8x8xf32> -> vector<4x8x8xf32>
    "tpu.trace_stop"() : () -> ()
    %cst_67 = arith.constant 0.176776692 : f32
    %156 = vector.broadcast %cst_67 : f32 to vector<4x8x8xf32>
    %157 = arith.mulf %155, %156 : vector<4x8x8xf32>
    %c0_68 = arith.constant 0 : index
    %c0_69 = arith.constant 0 : index
    %c4_70 = arith.constant 4 : index
    %c0_71 = arith.constant 0 : index
    %c0_72 = arith.constant 0 : index
    %158 = vector.load %arg9[%c0_68, %c0_69, %c4_70, %c0_71, %c0_72] : memref<1x4x8x8x8xf32, #tpu.memory_space<vmem>>, vector<1x4x1x8x8xf32>
    %159 = vector.shape_cast %158 : vector<1x4x1x8x8xf32> to vector<4x8x8xf32>
    %160 = vector.shape_cast %157 : vector<4x8x8xf32> to vector<1x4x1x8x8xf32>
    tpu.vector_store %arg9[%c0_68, %c0_69, %c4_70, %c0_71, %c0_72], %160 {strides = array<i32>} : memref<1x4x8x8x8xf32, #tpu.memory_space<vmem>>, vector<1x4x1x8x8xf32>,
    %cst_73 = arith.constant dense<0xFF800000> : vector<4x8xf32>
    %161 = vector.multi_reduction <maximumf>, %157, %cst_73 [2] : vector<4x8x8xf32> to vector<4x8xf32>
    %162 = vector.shape_cast %161 : vector<4x8xf32> to vector<4x8x1xf32>
    %163 = vector.broadcast %162 : vector<4x8x1xf32> to vector<4x8x8xf32>
    %164 = arith.subf %157, %163 : vector<4x8x8xf32>
    %165 = math.exp %164 : vector<4x8x8xf32>
    %cst_74 = arith.constant dense<0.000000e+00> : vector<4x8xf32>
    %166 = vector.multi_reduction <add>, %165, %cst_74 [2] : vector<4x8x8xf32> to vector<4x8xf32>
    %167 = vector.shape_cast %166 : vector<4x8xf32> to vector<4x8x1xf32>
    %168 = tpu.reciprocal %167 {approx = true} : vector<4x8x1xf32> -> vector<4x8x1xf32>
    %169 = vector.broadcast %168 : vector<4x8x1xf32> to vector<4x8x8xf32>
    %170 = arith.mulf %165, %169 : vector<4x8x8xf32>
    %171 = vector.extract_strided_slice %42 {offsets = [0, 0, 16], sizes = [4, 8, 4], strides = [1, 1, 1]} : vector<4x8x32xf32> to vector<4x8x4xf32>
    %172 = arith.truncf %171 : vector<4x8x4xf32> to vector<4x8x4xbf16>
    %173 = arith.truncf %170 : vector<4x8x8xf32> to vector<4x8x8xbf16>
    "tpu.trace_start"() <{level = 10 : i32, message = "gts,gsd->gtd"}> : () -> ()
    %cst_75 = arith.constant dense<0.000000e+00> : vector<4x8x4xf32>
    %174 = tpu.matmul %173, %172, %cst_75 {dimension_numbers = #tpu.dot_dimension_numbers<[2], [1], [1], [2], [0, 0, 0, 1, 1, 2], [0], [0]>} : vector<4x8x8xbf16>, vector<4x8x4xbf16>, vector<4x8x4xf32> -> vector<4x8x4xf32>
    "tpu.trace_stop"() : () -> ()
    %c0_76 = arith.constant 0 : index
    %c0_77 = arith.constant 0 : index
    %c0_78 = arith.constant 0 : index
    %c16 = arith.constant 16 : index
    %175 = vector.load %arg8[%c0_76, %c0_77, %c0_78, %c16] : memref<1x4x8x32xf32, #tpu.memory_space<vmem>>, vector<1x4x8x4xf32>
    %176 = vector.shape_cast %175 : vector<1x4x8x4xf32> to vector<4x8x4xf32>
    %177 = vector.shape_cast %174 : vector<4x8x4xf32> to vector<1x4x8x4xf32>
    tpu.vector_store %arg8[%c0_76, %c0_77, %c0_78, %c16], %177 {strides = array<i32>} : memref<1x4x8x32xf32, #tpu.memory_space<vmem>>, vector<1x4x8x4xf32>,
    %178 = vector.extract_strided_slice %21 {offsets = [0, 0, 20], sizes = [4, 8, 4], strides = [1, 1, 1]} : vector<4x8x32xf32> to vector<4x8x4xf32>
    %179 = arith.truncf %178 : vector<4x8x4xf32> to vector<4x8x4xbf16>
    %180 = vector.extract_strided_slice %40 {offsets = [0, 0, 20], sizes = [4, 8, 4], strides = [1, 1, 1]} : vector<4x8x32xf32> to vector<4x8x4xf32>
    %181 = arith.truncf %180 : vector<4x8x4xf32> to vector<4x8x4xbf16>
    "tpu.trace_start"() <{level = 10 : i32, message = "gtd,gsd->gts"}> : () -> ()
    %cst_79 = arith.constant dense<0.000000e+00> : vector<4x8x8xf32>
    %182 = tpu.matmul %179, %181, %cst_79 {dimension_numbers = #tpu.dot_dimension_numbers<[2], [2], [1], [1], [0, 0, 0, 1, 1, 1], [0], [0]>} : vector<4x8x4xbf16>, vector<4x8x4xbf16>, vector<4x8x8xf32> -> vector<4x8x8xf32>
    "tpu.trace_stop"() : () -> ()
    %cst_80 = arith.constant 0.176776692 : f32
    %183 = vector.broadcast %cst_80 : f32 to vector<4x8x8xf32>
    %184 = arith.mulf %182, %183 : vector<4x8x8xf32>
    %c0_81 = arith.constant 0 : index
    %c0_82 = arith.constant 0 : index
    %c5 = arith.constant 5 : index
    %c0_83 = arith.constant 0 : index
    %c0_84 = arith.constant 0 : index
    %185 = vector.load %arg9[%c0_81, %c0_82, %c5, %c0_83, %c0_84] : memref<1x4x8x8x8xf32, #tpu.memory_space<vmem>>, vector<1x4x1x8x8xf32>
    %186 = vector.shape_cast %185 : vector<1x4x1x8x8xf32> to vector<4x8x8xf32>
    %187 = vector.shape_cast %184 : vector<4x8x8xf32> to vector<1x4x1x8x8xf32>
    tpu.vector_store %arg9[%c0_81, %c0_82, %c5, %c0_83, %c0_84], %187 {strides = array<i32>} : memref<1x4x8x8x8xf32, #tpu.memory_space<vmem>>, vector<1x4x1x8x8xf32>,
    %cst_85 = arith.constant dense<0xFF800000> : vector<4x8xf32>
    %188 = vector.multi_reduction <maximumf>, %184, %cst_85 [2] : vector<4x8x8xf32> to vector<4x8xf32>
    %189 = vector.shape_cast %188 : vector<4x8xf32> to vector<4x8x1xf32>
    %190 = vector.broadcast %189 : vector<4x8x1xf32> to vector<4x8x8xf32>
    %191 = arith.subf %184, %190 : vector<4x8x8xf32>
    %192 = math.exp %191 : vector<4x8x8xf32>
    %cst_86 = arith.constant dense<0.000000e+00> : vector<4x8xf32>
    %193 = vector.multi_reduction <add>, %192, %cst_86 [2] : vector<4x8x8xf32> to vector<4x8xf32>
    %194 = vector.shape_cast %193 : vector<4x8xf32> to vector<4x8x1xf32>
    %195 = tpu.reciprocal %194 {approx = true} : vector<4x8x1xf32> -> vector<4x8x1xf32>
    %196 = vector.broadcast %195 : vector<4x8x1xf32> to vector<4x8x8xf32>
    %197 = arith.mulf %192, %196 : vector<4x8x8xf32>
    %198 = vector.extract_strided_slice %42 {offsets = [0, 0, 20], sizes = [4, 8, 4], strides = [1, 1, 1]} : vector<4x8x32xf32> to vector<4x8x4xf32>
    %199 = arith.truncf %198 : vector<4x8x4xf32> to vector<4x8x4xbf16>
    %200 = arith.truncf %197 : vector<4x8x8xf32> to vector<4x8x8xbf16>
    "tpu.trace_start"() <{level = 10 : i32, message = "gts,gsd->gtd"}> : () -> ()
    %cst_87 = arith.constant dense<0.000000e+00> : vector<4x8x4xf32>
    %201 = tpu.matmul %200, %199, %cst_87 {dimension_numbers = #tpu.dot_dimension_numbers<[2], [1], [1], [2], [0, 0, 0, 1, 1, 2], [0], [0]>} : vector<4x8x8xbf16>, vector<4x8x4xbf16>, vector<4x8x4xf32> -> vector<4x8x4xf32>
    "tpu.trace_stop"() : () -> ()
    %c0_88 = arith.constant 0 : index
    %c0_89 = arith.constant 0 : index
    %c0_90 = arith.constant 0 : index
    %c20 = arith.constant 20 : index
    %202 = vector.load %arg8[%c0_88, %c0_89, %c0_90, %c20] : memref<1x4x8x32xf32, #tpu.memory_space<vmem>>, vector<1x4x8x4xf32>
    %203 = vector.shape_cast %202 : vector<1x4x8x4xf32> to vector<4x8x4xf32>
    %204 = vector.shape_cast %201 : vector<4x8x4xf32> to vector<1x4x8x4xf32>
    tpu.vector_store %arg8[%c0_88, %c0_89, %c0_90, %c20], %204 {strides = array<i32>} : memref<1x4x8x32xf32, #tpu.memory_space<vmem>>, vector<1x4x8x4xf32>,
    %205 = vector.extract_strided_slice %21 {offsets = [0, 0, 24], sizes = [4, 8, 4], strides = [1, 1, 1]} : vector<4x8x32xf32> to vector<4x8x4xf32>
    %206 = arith.truncf %205 : vector<4x8x4xf32> to vector<4x8x4xbf16>
    %207 = vector.extract_strided_slice %40 {offsets = [0, 0, 24], sizes = [4, 8, 4], strides = [1, 1, 1]} : vector<4x8x32xf32> to vector<4x8x4xf32>
    %208 = arith.truncf %207 : vector<4x8x4xf32> to vector<4x8x4xbf16>
    "tpu.trace_start"() <{level = 10 : i32, message = "gtd,gsd->gts"}> : () -> ()
    %cst_91 = arith.constant dense<0.000000e+00> : vector<4x8x8xf32>
    %209 = tpu.matmul %206, %208, %cst_91 {dimension_numbers = #tpu.dot_dimension_numbers<[2], [2], [1], [1], [0, 0, 0, 1, 1, 1], [0], [0]>} : vector<4x8x4xbf16>, vector<4x8x4xbf16>, vector<4x8x8xf32> -> vector<4x8x8xf32>
    "tpu.trace_stop"() : () -> ()
    %cst_92 = arith.constant 0.176776692 : f32
    %210 = vector.broadcast %cst_92 : f32 to vector<4x8x8xf32>
    %211 = arith.mulf %209, %210 : vector<4x8x8xf32>
    %c0_93 = arith.constant 0 : index
    %c0_94 = arith.constant 0 : index
    %c6 = arith.constant 6 : index
    %c0_95 = arith.constant 0 : index
    %c0_96 = arith.constant 0 : index
    %212 = vector.load %arg9[%c0_93, %c0_94, %c6, %c0_95, %c0_96] : memref<1x4x8x8x8xf32, #tpu.memory_space<vmem>>, vector<1x4x1x8x8xf32>
    %213 = vector.shape_cast %212 : vector<1x4x1x8x8xf32> to vector<4x8x8xf32>
    %214 = vector.shape_cast %211 : vector<4x8x8xf32> to vector<1x4x1x8x8xf32>
    tpu.vector_store %arg9[%c0_93, %c0_94, %c6, %c0_95, %c0_96], %214 {strides = array<i32>} : memref<1x4x8x8x8xf32, #tpu.memory_space<vmem>>, vector<1x4x1x8x8xf32>,
    %cst_97 = arith.constant dense<0xFF800000> : vector<4x8xf32>
    %215 = vector.multi_reduction <maximumf>, %211, %cst_97 [2] : vector<4x8x8xf32> to vector<4x8xf32>
    %216 = vector.shape_cast %215 : vector<4x8xf32> to vector<4x8x1xf32>
    %217 = vector.broadcast %216 : vector<4x8x1xf32> to vector<4x8x8xf32>
    %218 = arith.subf %211, %217 : vector<4x8x8xf32>
    %219 = math.exp %218 : vector<4x8x8xf32>
    %cst_98 = arith.constant dense<0.000000e+00> : vector<4x8xf32>
    %220 = vector.multi_reduction <add>, %219, %cst_98 [2] : vector<4x8x8xf32> to vector<4x8xf32>
    %221 = vector.shape_cast %220 : vector<4x8xf32> to vector<4x8x1xf32>
    %222 = tpu.reciprocal %221 {approx = true} : vector<4x8x1xf32> -> vector<4x8x1xf32>
    %223 = vector.broadcast %222 : vector<4x8x1xf32> to vector<4x8x8xf32>
    %224 = arith.mulf %219, %223 : vector<4x8x8xf32>
    %225 = vector.extract_strided_slice %42 {offsets = [0, 0, 24], sizes = [4, 8, 4], strides = [1, 1, 1]} : vector<4x8x32xf32> to vector<4x8x4xf32>
    %226 = arith.truncf %225 : vector<4x8x4xf32> to vector<4x8x4xbf16>
    %227 = arith.truncf %224 : vector<4x8x8xf32> to vector<4x8x8xbf16>
    "tpu.trace_start"() <{level = 10 : i32, message = "gts,gsd->gtd"}> : () -> ()
    %cst_99 = arith.constant dense<0.000000e+00> : vector<4x8x4xf32>
    %228 = tpu.matmul %227, %226, %cst_99 {dimension_numbers = #tpu.dot_dimension_numbers<[2], [1], [1], [2], [0, 0, 0, 1, 1, 2], [0], [0]>} : vector<4x8x8xbf16>, vector<4x8x4xbf16>, vector<4x8x4xf32> -> vector<4x8x4xf32>
    "tpu.trace_stop"() : () -> ()
    %c0_100 = arith.constant 0 : index
    %c0_101 = arith.constant 0 : index
    %c0_102 = arith.constant 0 : index
    %c24 = arith.constant 24 : index
    %229 = vector.load %arg8[%c0_100, %c0_101, %c0_102, %c24] : memref<1x4x8x32xf32, #tpu.memory_space<vmem>>, vector<1x4x8x4xf32>
    %230 = vector.shape_cast %229 : vector<1x4x8x4xf32> to vector<4x8x4xf32>
    %231 = vector.shape_cast %228 : vector<4x8x4xf32> to vector<1x4x8x4xf32>
    tpu.vector_store %arg8[%c0_100, %c0_101, %c0_102, %c24], %231 {strides = array<i32>} : memref<1x4x8x32xf32, #tpu.memory_space<vmem>>, vector<1x4x8x4xf32>,
    %232 = vector.extract_strided_slice %21 {offsets = [0, 0, 28], sizes = [4, 8, 4], strides = [1, 1, 1]} : vector<4x8x32xf32> to vector<4x8x4xf32>
    %233 = arith.truncf %232 : vector<4x8x4xf32> to vector<4x8x4xbf16>
    %234 = vector.extract_strided_slice %40 {offsets = [0, 0, 28], sizes = [4, 8, 4], strides = [1, 1, 1]} : vector<4x8x32xf32> to vector<4x8x4xf32>
    %235 = arith.truncf %234 : vector<4x8x4xf32> to vector<4x8x4xbf16>
    "tpu.trace_start"() <{level = 10 : i32, message = "gtd,gsd->gts"}> : () -> ()
    %cst_103 = arith.constant dense<0.000000e+00> : vector<4x8x8xf32>
    %236 = tpu.matmul %233, %235, %cst_103 {dimension_numbers = #tpu.dot_dimension_numbers<[2], [2], [1], [1], [0, 0, 0, 1, 1, 1], [0], [0]>} : vector<4x8x4xbf16>, vector<4x8x4xbf16>, vector<4x8x8xf32> -> vector<4x8x8xf32>
    "tpu.trace_stop"() : () -> ()
    %cst_104 = arith.constant 0.176776692 : f32
    %237 = vector.broadcast %cst_104 : f32 to vector<4x8x8xf32>
    %238 = arith.mulf %236, %237 : vector<4x8x8xf32>
    %c0_105 = arith.constant 0 : index
    %c0_106 = arith.constant 0 : index
    %c7 = arith.constant 7 : index
    %c0_107 = arith.constant 0 : index
    %c0_108 = arith.constant 0 : index
    %239 = vector.load %arg9[%c0_105, %c0_106, %c7, %c0_107, %c0_108] : memref<1x4x8x8x8xf32, #tpu.memory_space<vmem>>, vector<1x4x1x8x8xf32>
    %240 = vector.shape_cast %239 : vector<1x4x1x8x8xf32> to vector<4x8x8xf32>
    %241 = vector.shape_cast %238 : vector<4x8x8xf32> to vector<1x4x1x8x8xf32>
    tpu.vector_store %arg9[%c0_105, %c0_106, %c7, %c0_107, %c0_108], %241 {strides = array<i32>} : memref<1x4x8x8x8xf32, #tpu.memory_space<vmem>>, vector<1x4x1x8x8xf32>,
    %cst_109 = arith.constant dense<0xFF800000> : vector<4x8xf32>
    %242 = vector.multi_reduction <maximumf>, %238, %cst_109 [2] : vector<4x8x8xf32> to vector<4x8xf32>
    %243 = vector.shape_cast %242 : vector<4x8xf32> to vector<4x8x1xf32>
    %244 = vector.broadcast %243 : vector<4x8x1xf32> to vector<4x8x8xf32>
    %245 = arith.subf %238, %244 : vector<4x8x8xf32>
    %246 = math.exp %245 : vector<4x8x8xf32>
    %cst_110 = arith.constant dense<0.000000e+00> : vector<4x8xf32>
    %247 = vector.multi_reduction <add>, %246, %cst_110 [2] : vector<4x8x8xf32> to vector<4x8xf32>
    %248 = vector.shape_cast %247 : vector<4x8xf32> to vector<4x8x1xf32>
    %249 = tpu.reciprocal %248 {approx = true} : vector<4x8x1xf32> -> vector<4x8x1xf32>
    %250 = vector.broadcast %249 : vector<4x8x1xf32> to vector<4x8x8xf32>
    %251 = arith.mulf %246, %250 : vector<4x8x8xf32>
    %252 = vector.extract_strided_slice %42 {offsets = [0, 0, 28], sizes = [4, 8, 4], strides = [1, 1, 1]} : vector<4x8x32xf32> to vector<4x8x4xf32>
    %253 = arith.truncf %252 : vector<4x8x4xf32> to vector<4x8x4xbf16>
    %254 = arith.truncf %251 : vector<4x8x8xf32> to vector<4x8x8xbf16>
    "tpu.trace_start"() <{level = 10 : i32, message = "gts,gsd->gtd"}> : () -> ()
    %cst_111 = arith.constant dense<0.000000e+00> : vector<4x8x4xf32>
    %255 = tpu.matmul %254, %253, %cst_111 {dimension_numbers = #tpu.dot_dimension_numbers<[2], [1], [1], [2], [0, 0, 0, 1, 1, 2], [0], [0]>} : vector<4x8x8xbf16>, vector<4x8x4xbf16>, vector<4x8x4xf32> -> vector<4x8x4xf32>
    "tpu.trace_stop"() : () -> ()
    %c0_112 = arith.constant 0 : index
    %c0_113 = arith.constant 0 : index
    %c0_114 = arith.constant 0 : index
    %c28 = arith.constant 28 : index
    %256 = vector.load %arg8[%c0_112, %c0_113, %c0_114, %c28] : memref<1x4x8x32xf32, #tpu.memory_space<vmem>>, vector<1x4x8x4xf32>
    %257 = vector.shape_cast %256 : vector<1x4x8x4xf32> to vector<4x8x4xf32>
    %258 = vector.shape_cast %255 : vector<4x8x4xf32> to vector<1x4x8x4xf32>
    tpu.vector_store %arg8[%c0_112, %c0_113, %c0_114, %c28], %258 {strides = array<i32>} : memref<1x4x8x32xf32, #tpu.memory_space<vmem>>, vector<1x4x8x4xf32>,
    return
  }
  func.func @transform_0(%arg0: i32, %arg1: i32) -> (i32, i32, i32, i32) {
    %c0_i32 = arith.constant 0 : i32
    %0 = arith.addi %arg1, %c0_i32 : i32
    %c0_i32_0 = arith.constant 0 : i32
    %c0_i32_1 = arith.constant 0 : i32
    %c0_i32_2 = arith.constant 0 : i32
    return %arg0, %0, %c0_i32_0, %c0_i32_1 : i32, i32, i32, i32
  }
  func.func @transform_1(%arg0: i32, %arg1: i32) -> (i32, i32, i32, i32) {
    %c1_i32 = arith.constant 1 : i32
    %0 = arith.addi %arg1, %c1_i32 : i32
    %c0_i32 = arith.constant 0 : i32
    %c0_i32_0 = arith.constant 0 : i32
    %c0_i32_1 = arith.constant 0 : i32
    return %arg0, %0, %c0_i32, %c0_i32_0 : i32, i32, i32, i32
  }
  func.func @transform_2(%arg0: i32, %arg1: i32) -> (i32, i32, i32, i32) {
    %c2_i32 = arith.constant 2 : i32
    %0 = arith.addi %arg1, %c2_i32 : i32
    %c0_i32 = arith.constant 0 : i32
    %c0_i32_0 = arith.constant 0 : i32
    %c0_i32_1 = arith.constant 0 : i32
    return %arg0, %0, %c0_i32, %c0_i32_0 : i32, i32, i32, i32
  }
  func.func @transform_3(%arg0: i32, %arg1: i32) -> (i32, i32) {
    %c0_i32 = arith.constant 0 : i32
    %c0_i32_0 = arith.constant 0 : i32
    %c0_i32_1 = arith.constant 0 : i32
    return %c0_i32, %c0_i32_0 : i32, i32
  }
  func.func @transform_4(%arg0: i32, %arg1: i32) -> (i32, i32) {
    %c0_i32 = arith.constant 0 : i32
    %c0_i32_0 = arith.constant 0 : i32
    %c0_i32_1 = arith.constant 0 : i32
    return %c0_i32, %c0_i32_0 : i32, i32
  }
  func.func @transform_5(%arg0: i32, %arg1: i32) -> (i32, i32) {
    %c0_i32 = arith.constant 0 : i32
    %c0_i32_0 = arith.constant 0 : i32
    %c0_i32_1 = arith.constant 0 : i32
    return %c0_i32, %c0_i32_0 : i32, i32
  }
  func.func @transform_6(%arg0: i32, %arg1: i32) -> (i32, i32, i32, i32) {
    %c0_i32 = arith.constant 0 : i32
    %c0_i32_0 = arith.constant 0 : i32
    %c0_i32_1 = arith.constant 0 : i32
    return %arg0, %arg1, %c0_i32, %c0_i32_0 : i32, i32, i32, i32
  }
  func.func @transform_7(%arg0: i32, %arg1: i32) -> (i32, i32, i32, i32, i32) {
    %c0_i32 = arith.constant 0 : i32
    %c0_i32_0 = arith.constant 0 : i32
    %c0_i32_1 = arith.constant 0 : i32
    %c0_i32_2 = arith.constant 0 : i32
    return %arg0, %arg1, %c0_i32, %c0_i32_0, %c0_i32_1 : i32, i32, i32, i32, i32
  }
}

module attributes {stable_mosaic.version = 11 : i64} {
  func.func @_conv_flat_kernel(%arg0: i32, %arg1: memref<1x4x320xf32, #tpu.memory_space<vmem>>, %arg2: memref<3x4x4xf32, #tpu.memory_space<vmem>>, %arg3: memref<4x1xf32, #tpu.memory_space<vmem>>, %arg4: memref<1x4x256xf32, #tpu.memory_space<vmem>>) attributes {dimension_semantics = [#tpu.dimension_semantics<parallel>], iteration_bounds = array<i64: 2>, scalar_prefetch = 0 : i64, scratch_operands = 0 : i64, tpu.core_type = #tpu.core_type<tc>, window_params = [{transform_indices = @transform_0, window_bounds = array<i64: 1, 4, 320>}, {pipeline_mode = #tpu.pipeline_mode<synchronous>, transform_indices = @transform_1, window_bounds = array<i64: 3, 4, 4>}, {pipeline_mode = #tpu.pipeline_mode<synchronous>, transform_indices = @transform_2, window_bounds = array<i64: 4, 1>}, {transform_indices = @transform_3, window_bounds = array<i64: 1, 4, 256>}]} {
    %cst = arith.constant 0.000000e+00 : f32
    %0 = vector.broadcast %cst : f32 to vector<4x256xf32>
    %c0 = arith.constant 0 : index
    %c0_0 = arith.constant 0 : index
    %c0_1 = arith.constant 0 : index
    %1 = vector.load %arg1[%c0, %c0_0, %c0_1] : memref<1x4x320xf32, #tpu.memory_space<vmem>>, vector<1x4x256xf32>
    %2 = vector.shape_cast %1 : vector<1x4x256xf32> to vector<4x256xf32>
    %c0_2 = arith.constant 0 : index
    %c0_3 = arith.constant 0 : index
    %c0_4 = arith.constant 0 : index
    %3 = vector.load %arg2[%c0_2, %c0_3, %c0_4] : memref<3x4x4xf32, #tpu.memory_space<vmem>>, vector<1x4x4xf32>
    %4 = vector.shape_cast %3 : vector<1x4x4xf32> to vector<4x4xf32>
    %5 = arith.truncf %4 : vector<4x4xf32> to vector<4x4xbf16>
    %6 = arith.truncf %2 : vector<4x256xf32> to vector<4x256xbf16>
    %cst_5 = arith.constant dense<0.000000e+00> : vector<4x256xf32>
    %7 = tpu.matmul %5, %6, %cst_5 {dimension_numbers = #tpu.dot_dimension_numbers<[1], [0], [0], [1], [0, 0, 1, 1], [], []>} : vector<4x4xbf16>, vector<4x256xbf16>, vector<4x256xf32> -> vector<4x256xf32>
    %8 = arith.addf %0, %7 : vector<4x256xf32>
    %c0_6 = arith.constant 0 : index
    %c0_7 = arith.constant 0 : index
    %c32 = arith.constant 32 : index
    %9 = vector.load %arg1[%c0_6, %c0_7, %c32] : memref<1x4x320xf32, #tpu.memory_space<vmem>>, vector<1x4x256xf32>
    %10 = vector.shape_cast %9 : vector<1x4x256xf32> to vector<4x256xf32>
    %c1 = arith.constant 1 : index
    %c0_8 = arith.constant 0 : index
    %c0_9 = arith.constant 0 : index
    %11 = vector.load %arg2[%c1, %c0_8, %c0_9] : memref<3x4x4xf32, #tpu.memory_space<vmem>>, vector<1x4x4xf32>
    %12 = vector.shape_cast %11 : vector<1x4x4xf32> to vector<4x4xf32>
    %13 = arith.truncf %12 : vector<4x4xf32> to vector<4x4xbf16>
    %14 = arith.truncf %10 : vector<4x256xf32> to vector<4x256xbf16>
    %cst_10 = arith.constant dense<0.000000e+00> : vector<4x256xf32>
    %15 = tpu.matmul %13, %14, %cst_10 {dimension_numbers = #tpu.dot_dimension_numbers<[1], [0], [0], [1], [0, 0, 1, 1], [], []>} : vector<4x4xbf16>, vector<4x256xbf16>, vector<4x256xf32> -> vector<4x256xf32>
    %16 = arith.addf %8, %15 : vector<4x256xf32>
    %c0_11 = arith.constant 0 : index
    %c0_12 = arith.constant 0 : index
    %c64 = arith.constant 64 : index
    %17 = vector.load %arg1[%c0_11, %c0_12, %c64] : memref<1x4x320xf32, #tpu.memory_space<vmem>>, vector<1x4x256xf32>
    %18 = vector.shape_cast %17 : vector<1x4x256xf32> to vector<4x256xf32>
    %c2 = arith.constant 2 : index
    %c0_13 = arith.constant 0 : index
    %c0_14 = arith.constant 0 : index
    %19 = vector.load %arg2[%c2, %c0_13, %c0_14] : memref<3x4x4xf32, #tpu.memory_space<vmem>>, vector<1x4x4xf32>
    %20 = vector.shape_cast %19 : vector<1x4x4xf32> to vector<4x4xf32>
    %21 = arith.truncf %20 : vector<4x4xf32> to vector<4x4xbf16>
    %22 = arith.truncf %18 : vector<4x256xf32> to vector<4x256xbf16>
    %cst_15 = arith.constant dense<0.000000e+00> : vector<4x256xf32>
    %23 = tpu.matmul %21, %22, %cst_15 {dimension_numbers = #tpu.dot_dimension_numbers<[1], [0], [0], [1], [0, 0, 1, 1], [], []>} : vector<4x4xbf16>, vector<4x256xbf16>, vector<4x256xf32> -> vector<4x256xf32>
    %24 = arith.addf %16, %23 : vector<4x256xf32>
    %c0_16 = arith.constant 0 : index
    %c0_17 = arith.constant 0 : index
    %25 = vector.load %arg3[%c0_16, %c0_17] : memref<4x1xf32, #tpu.memory_space<vmem>>, vector<4x1xf32>
    %26 = vector.broadcast %25 : vector<4x1xf32> to vector<4x256xf32>
    %27 = arith.addf %24, %26 : vector<4x256xf32>
    %c0_18 = arith.constant 0 : index
    %c0_19 = arith.constant 0 : index
    %c0_20 = arith.constant 0 : index
    %28 = vector.load %arg4[%c0_18, %c0_19, %c0_20] : memref<1x4x256xf32, #tpu.memory_space<vmem>>, vector<1x4x256xf32>
    %29 = vector.shape_cast %28 : vector<1x4x256xf32> to vector<4x256xf32>
    %30 = vector.shape_cast %27 : vector<4x256xf32> to vector<1x4x256xf32>
    tpu.vector_store %arg4[%c0_18, %c0_19, %c0_20], %30 {strides = array<i32>} : memref<1x4x256xf32, #tpu.memory_space<vmem>>, vector<1x4x256xf32>,
    return
  }
  func.func @transform_0(%arg0: i32) -> (i32, i32, i32) {
    %c0_i32 = arith.constant 0 : i32
    %c0_i32_0 = arith.constant 0 : i32
    %c0_i32_1 = arith.constant 0 : i32
    return %arg0, %c0_i32, %c0_i32_0 : i32, i32, i32
  }
  func.func @transform_1(%arg0: i32) -> (i32, i32, i32) {
    %c0_i32 = arith.constant 0 : i32
    %c0_i32_0 = arith.constant 0 : i32
    %c0_i32_1 = arith.constant 0 : i32
    %c0_i32_2 = arith.constant 0 : i32
    return %c0_i32, %c0_i32_0, %c0_i32_1 : i32, i32, i32
  }
  func.func @transform_2(%arg0: i32) -> (i32, i32) {
    %c0_i32 = arith.constant 0 : i32
    %c0_i32_0 = arith.constant 0 : i32
    %c0_i32_1 = arith.constant 0 : i32
    return %c0_i32, %c0_i32_0 : i32, i32
  }
  func.func @transform_3(%arg0: i32) -> (i32, i32, i32) {
    %c0_i32 = arith.constant 0 : i32
    %c0_i32_0 = arith.constant 0 : i32
    %c0_i32_1 = arith.constant 0 : i32
    return %arg0, %c0_i32, %c0_i32_0 : i32, i32, i32
  }
}

module attributes {stable_mosaic.version = 11 : i64} {
  func.func @_conv_flat_kernel(%arg0: i32, %arg1: memref<1x4x320xf32, #tpu.memory_space<vmem>>, %arg2: memref<3x8x4xf32, #tpu.memory_space<vmem>>, %arg3: memref<8x1xf32, #tpu.memory_space<vmem>>, %arg4: memref<1x8x256xf32, #tpu.memory_space<vmem>>) attributes {dimension_semantics = [#tpu.dimension_semantics<parallel>], iteration_bounds = array<i64: 2>, scalar_prefetch = 0 : i64, scratch_operands = 0 : i64, tpu.core_type = #tpu.core_type<tc>, window_params = [{transform_indices = @transform_0, window_bounds = array<i64: 1, 4, 320>}, {pipeline_mode = #tpu.pipeline_mode<synchronous>, transform_indices = @transform_1, window_bounds = array<i64: 3, 8, 4>}, {pipeline_mode = #tpu.pipeline_mode<synchronous>, transform_indices = @transform_2, window_bounds = array<i64: 8, 1>}, {transform_indices = @transform_3, window_bounds = array<i64: 1, 8, 256>}]} {
    %cst = arith.constant 0.000000e+00 : f32
    %0 = vector.broadcast %cst : f32 to vector<8x256xf32>
    %c0 = arith.constant 0 : index
    %c0_0 = arith.constant 0 : index
    %c0_1 = arith.constant 0 : index
    %1 = vector.load %arg1[%c0, %c0_0, %c0_1] : memref<1x4x320xf32, #tpu.memory_space<vmem>>, vector<1x4x256xf32>
    %2 = vector.shape_cast %1 : vector<1x4x256xf32> to vector<4x256xf32>
    %c0_2 = arith.constant 0 : index
    %c0_3 = arith.constant 0 : index
    %c0_4 = arith.constant 0 : index
    %3 = vector.load %arg2[%c0_2, %c0_3, %c0_4] : memref<3x8x4xf32, #tpu.memory_space<vmem>>, vector<1x8x4xf32>
    %4 = vector.shape_cast %3 : vector<1x8x4xf32> to vector<8x4xf32>
    %5 = arith.truncf %4 : vector<8x4xf32> to vector<8x4xbf16>
    %6 = arith.truncf %2 : vector<4x256xf32> to vector<4x256xbf16>
    %cst_5 = arith.constant dense<0.000000e+00> : vector<8x256xf32>
    %7 = tpu.matmul %5, %6, %cst_5 {dimension_numbers = #tpu.dot_dimension_numbers<[1], [0], [0], [1], [0, 0, 1, 1], [], []>} : vector<8x4xbf16>, vector<4x256xbf16>, vector<8x256xf32> -> vector<8x256xf32>
    %8 = arith.addf %0, %7 : vector<8x256xf32>
    %c0_6 = arith.constant 0 : index
    %c0_7 = arith.constant 0 : index
    %c32 = arith.constant 32 : index
    %9 = vector.load %arg1[%c0_6, %c0_7, %c32] : memref<1x4x320xf32, #tpu.memory_space<vmem>>, vector<1x4x256xf32>
    %10 = vector.shape_cast %9 : vector<1x4x256xf32> to vector<4x256xf32>
    %c1 = arith.constant 1 : index
    %c0_8 = arith.constant 0 : index
    %c0_9 = arith.constant 0 : index
    %11 = vector.load %arg2[%c1, %c0_8, %c0_9] : memref<3x8x4xf32, #tpu.memory_space<vmem>>, vector<1x8x4xf32>
    %12 = vector.shape_cast %11 : vector<1x8x4xf32> to vector<8x4xf32>
    %13 = arith.truncf %12 : vector<8x4xf32> to vector<8x4xbf16>
    %14 = arith.truncf %10 : vector<4x256xf32> to vector<4x256xbf16>
    %cst_10 = arith.constant dense<0.000000e+00> : vector<8x256xf32>
    %15 = tpu.matmul %13, %14, %cst_10 {dimension_numbers = #tpu.dot_dimension_numbers<[1], [0], [0], [1], [0, 0, 1, 1], [], []>} : vector<8x4xbf16>, vector<4x256xbf16>, vector<8x256xf32> -> vector<8x256xf32>
    %16 = arith.addf %8, %15 : vector<8x256xf32>
    %c0_11 = arith.constant 0 : index
    %c0_12 = arith.constant 0 : index
    %c64 = arith.constant 64 : index
    %17 = vector.load %arg1[%c0_11, %c0_12, %c64] : memref<1x4x320xf32, #tpu.memory_space<vmem>>, vector<1x4x256xf32>
    %18 = vector.shape_cast %17 : vector<1x4x256xf32> to vector<4x256xf32>
    %c2 = arith.constant 2 : index
    %c0_13 = arith.constant 0 : index
    %c0_14 = arith.constant 0 : index
    %19 = vector.load %arg2[%c2, %c0_13, %c0_14] : memref<3x8x4xf32, #tpu.memory_space<vmem>>, vector<1x8x4xf32>
    %20 = vector.shape_cast %19 : vector<1x8x4xf32> to vector<8x4xf32>
    %21 = arith.truncf %20 : vector<8x4xf32> to vector<8x4xbf16>
    %22 = arith.truncf %18 : vector<4x256xf32> to vector<4x256xbf16>
    %cst_15 = arith.constant dense<0.000000e+00> : vector<8x256xf32>
    %23 = tpu.matmul %21, %22, %cst_15 {dimension_numbers = #tpu.dot_dimension_numbers<[1], [0], [0], [1], [0, 0, 1, 1], [], []>} : vector<8x4xbf16>, vector<4x256xbf16>, vector<8x256xf32> -> vector<8x256xf32>
    %24 = arith.addf %16, %23 : vector<8x256xf32>
    %c0_16 = arith.constant 0 : index
    %c0_17 = arith.constant 0 : index
    %25 = vector.load %arg3[%c0_16, %c0_17] : memref<8x1xf32, #tpu.memory_space<vmem>>, vector<8x1xf32>
    %26 = vector.broadcast %25 : vector<8x1xf32> to vector<8x256xf32>
    %27 = arith.addf %24, %26 : vector<8x256xf32>
    %c0_18 = arith.constant 0 : index
    %c0_19 = arith.constant 0 : index
    %c0_20 = arith.constant 0 : index
    %28 = vector.load %arg4[%c0_18, %c0_19, %c0_20] : memref<1x8x256xf32, #tpu.memory_space<vmem>>, vector<1x8x256xf32>
    %29 = vector.shape_cast %28 : vector<1x8x256xf32> to vector<8x256xf32>
    %30 = vector.shape_cast %27 : vector<8x256xf32> to vector<1x8x256xf32>
    tpu.vector_store %arg4[%c0_18, %c0_19, %c0_20], %30 {strides = array<i32>} : memref<1x8x256xf32, #tpu.memory_space<vmem>>, vector<1x8x256xf32>,
    return
  }
  func.func @transform_0(%arg0: i32) -> (i32, i32, i32) {
    %c0_i32 = arith.constant 0 : i32
    %c0_i32_0 = arith.constant 0 : i32
    %c0_i32_1 = arith.constant 0 : i32
    return %arg0, %c0_i32, %c0_i32_0 : i32, i32, i32
  }
  func.func @transform_1(%arg0: i32) -> (i32, i32, i32) {
    %c0_i32 = arith.constant 0 : i32
    %c0_i32_0 = arith.constant 0 : i32
    %c0_i32_1 = arith.constant 0 : i32
    %c0_i32_2 = arith.constant 0 : i32
    return %c0_i32, %c0_i32_0, %c0_i32_1 : i32, i32, i32
  }
  func.func @transform_2(%arg0: i32) -> (i32, i32) {
    %c0_i32 = arith.constant 0 : i32
    %c0_i32_0 = arith.constant 0 : i32
    %c0_i32_1 = arith.constant 0 : i32
    return %c0_i32, %c0_i32_0 : i32, i32
  }
  func.func @transform_3(%arg0: i32) -> (i32, i32, i32) {
    %c0_i32 = arith.constant 0 : i32
    %c0_i32_0 = arith.constant 0 : i32
    %c0_i32_1 = arith.constant 0 : i32
    return %arg0, %c0_i32, %c0_i32_0 : i32, i32, i32
  }
}

module attributes {stable_mosaic.version = 11 : i64} {
  func.func @_attn_kernel(%arg0: i32, %arg1: i32, %arg2: memref<1x4x8x32xf32, #tpu.memory_space<vmem>>, %arg3: memref<1x4x8x32xf32, #tpu.memory_space<vmem>>, %arg4: memref<1x4x8x32xf32, #tpu.memory_space<vmem>>, %arg5: memref<8x32xf32, #tpu.memory_space<vmem>>, %arg6: memref<8x32xf32, #tpu.memory_space<vmem>>, %arg7: memref<8x32xf32, #tpu.memory_space<vmem>>, %arg8: memref<1x4x8x32xf32, #tpu.memory_space<vmem>>, %arg9: memref<1x4x8x8x8xf32, #tpu.memory_space<vmem>>) attributes {dimension_semantics = [#tpu.dimension_semantics<parallel>, #tpu.dimension_semantics<parallel>], iteration_bounds = array<i64: 2, 1>, scalar_prefetch = 0 : i64, scratch_operands = 0 : i64, tpu.core_type = #tpu.core_type<tc>, window_params = [{transform_indices = @transform_0, window_bounds = array<i64: 1, 4, 8, 32>}, {transform_indices = @transform_1, window_bounds = array<i64: 1, 4, 8, 32>}, {transform_indices = @transform_2, window_bounds = array<i64: 1, 4, 8, 32>}, {pipeline_mode = #tpu.pipeline_mode<synchronous>, transform_indices = @transform_3, window_bounds = array<i64: 8, 32>}, {pipeline_mode = #tpu.pipeline_mode<synchronous>, transform_indices = @transform_4, window_bounds = array<i64: 8, 32>}, {pipeline_mode = #tpu.pipeline_mode<synchronous>, transform_indices = @transform_5, window_bounds = array<i64: 8, 32>}, {transform_indices = @transform_6, window_bounds = array<i64: 1, 4, 8, 32>}, {transform_indices = @transform_7, window_bounds = array<i64: 1, 4, 8, 8, 8>}]} {
    %c0 = arith.constant 0 : index
    %c0_0 = arith.constant 0 : index
    %0 = vector.load %arg5[%c0, %c0_0] : memref<8x32xf32, #tpu.memory_space<vmem>>, vector<8x32xf32>
    %c0_1 = arith.constant 0 : index
    %c0_2 = arith.constant 0 : index
    %1 = vector.load %arg6[%c0_1, %c0_2] : memref<8x32xf32, #tpu.memory_space<vmem>>, vector<8x32xf32>
    %c0_3 = arith.constant 0 : index
    %c0_4 = arith.constant 0 : index
    %2 = vector.load %arg7[%c0_3, %c0_4] : memref<8x32xf32, #tpu.memory_space<vmem>>, vector<8x32xf32>
    %c0_5 = arith.constant 0 : index
    %c0_6 = arith.constant 0 : index
    %c0_7 = arith.constant 0 : index
    %c0_8 = arith.constant 0 : index
    %3 = vector.load %arg2[%c0_5, %c0_6, %c0_7, %c0_8] : memref<1x4x8x32xf32, #tpu.memory_space<vmem>>, vector<1x4x8x32xf32>
    %4 = vector.shape_cast %3 : vector<1x4x8x32xf32> to vector<4x8x32xf32>
    %5 = vector.shape_cast %0 : vector<8x32xf32> to vector<1x8x32xf32>
    %6 = vector.broadcast %5 : vector<1x8x32xf32> to vector<4x8x32xf32>
    %7 = arith.mulf %4, %6 : vector<4x8x32xf32>
    %8 = vector.extract_strided_slice %4 {offsets = [0, 0, 31], sizes = [4, 8, 1], strides = [1, 1, 1]} : vector<4x8x32xf32> to vector<4x8x1xf32>
    %9 = vector.extract_strided_slice %4 {offsets = [0, 0, 0], sizes = [4, 8, 31], strides = [1, 1, 1]} : vector<4x8x32xf32> to vector<4x8x31xf32>
    %10 = tpu.concatenate %8, %9 in 2 : vector<4x8x1xf32>, vector<4x8x31xf32> -> vector<4x8x32xf32>
    %11 = vector.shape_cast %1 : vector<8x32xf32> to vector<1x8x32xf32>
    %12 = vector.broadcast %11 : vector<1x8x32xf32> to vector<4x8x32xf32>
    %13 = arith.mulf %10, %12 : vector<4x8x32xf32>
    %14 = arith.addf %7, %13 : vector<4x8x32xf32>
    %15 = vector.extract_strided_slice %4 {offsets = [0, 0, 1], sizes = [4, 8, 31], strides = [1, 1, 1]} : vector<4x8x32xf32> to vector<4x8x31xf32>
    %16 = vector.extract_strided_slice %4 {offsets = [0, 0, 0], sizes = [4, 8, 1], strides = [1, 1, 1]} : vector<4x8x32xf32> to vector<4x8x1xf32>
    %17 = tpu.concatenate %15, %16 in 2 : vector<4x8x31xf32>, vector<4x8x1xf32> -> vector<4x8x32xf32>
    %18 = vector.shape_cast %2 : vector<8x32xf32> to vector<1x8x32xf32>
    %19 = vector.broadcast %18 : vector<1x8x32xf32> to vector<4x8x32xf32>
    %20 = arith.mulf %17, %19 : vector<4x8x32xf32>
    %21 = arith.addf %14, %20 : vector<4x8x32xf32>
    %c0_9 = arith.constant 0 : index
    %c0_10 = arith.constant 0 : index
    %c0_11 = arith.constant 0 : index
    %c0_12 = arith.constant 0 : index
    %22 = vector.load %arg3[%c0_9, %c0_10, %c0_11, %c0_12] : memref<1x4x8x32xf32, #tpu.memory_space<vmem>>, vector<1x4x8x32xf32>
    %23 = vector.shape_cast %22 : vector<1x4x8x32xf32> to vector<4x8x32xf32>
    %24 = vector.shape_cast %0 : vector<8x32xf32> to vector<1x8x32xf32>
    %25 = vector.broadcast %24 : vector<1x8x32xf32> to vector<4x8x32xf32>
    %26 = arith.mulf %23, %25 : vector<4x8x32xf32>
    %27 = vector.extract_strided_slice %23 {offsets = [0, 0, 31], sizes = [4, 8, 1], strides = [1, 1, 1]} : vector<4x8x32xf32> to vector<4x8x1xf32>
    %28 = vector.extract_strided_slice %23 {offsets = [0, 0, 0], sizes = [4, 8, 31], strides = [1, 1, 1]} : vector<4x8x32xf32> to vector<4x8x31xf32>
    %29 = tpu.concatenate %27, %28 in 2 : vector<4x8x1xf32>, vector<4x8x31xf32> -> vector<4x8x32xf32>
    %30 = vector.shape_cast %1 : vector<8x32xf32> to vector<1x8x32xf32>
    %31 = vector.broadcast %30 : vector<1x8x32xf32> to vector<4x8x32xf32>
    %32 = arith.mulf %29, %31 : vector<4x8x32xf32>
    %33 = arith.addf %26, %32 : vector<4x8x32xf32>
    %34 = vector.extract_strided_slice %23 {offsets = [0, 0, 1], sizes = [4, 8, 31], strides = [1, 1, 1]} : vector<4x8x32xf32> to vector<4x8x31xf32>
    %35 = vector.extract_strided_slice %23 {offsets = [0, 0, 0], sizes = [4, 8, 1], strides = [1, 1, 1]} : vector<4x8x32xf32> to vector<4x8x1xf32>
    %36 = tpu.concatenate %34, %35 in 2 : vector<4x8x31xf32>, vector<4x8x1xf32> -> vector<4x8x32xf32>
    %37 = vector.shape_cast %2 : vector<8x32xf32> to vector<1x8x32xf32>
    %38 = vector.broadcast %37 : vector<1x8x32xf32> to vector<4x8x32xf32>
    %39 = arith.mulf %36, %38 : vector<4x8x32xf32>
    %40 = arith.addf %33, %39 : vector<4x8x32xf32>
    %c0_13 = arith.constant 0 : index
    %c0_14 = arith.constant 0 : index
    %c0_15 = arith.constant 0 : index
    %c0_16 = arith.constant 0 : index
    %41 = vector.load %arg4[%c0_13, %c0_14, %c0_15, %c0_16] : memref<1x4x8x32xf32, #tpu.memory_space<vmem>>, vector<1x4x8x32xf32>
    %42 = vector.shape_cast %41 : vector<1x4x8x32xf32> to vector<4x8x32xf32>
    %43 = vector.extract_strided_slice %21 {offsets = [0, 0, 0], sizes = [4, 8, 4], strides = [1, 1, 1]} : vector<4x8x32xf32> to vector<4x8x4xf32>
    %44 = arith.truncf %43 : vector<4x8x4xf32> to vector<4x8x4xbf16>
    %45 = vector.extract_strided_slice %40 {offsets = [0, 0, 0], sizes = [4, 8, 4], strides = [1, 1, 1]} : vector<4x8x32xf32> to vector<4x8x4xf32>
    %46 = arith.truncf %45 : vector<4x8x4xf32> to vector<4x8x4xbf16>
    "tpu.trace_start"() <{level = 10 : i32, message = "gtd,gsd->gts"}> : () -> ()
    %cst = arith.constant dense<0.000000e+00> : vector<4x8x8xf32>
    %47 = tpu.matmul %44, %46, %cst {dimension_numbers = #tpu.dot_dimension_numbers<[2], [2], [1], [1], [0, 0, 0, 1, 1, 1], [0], [0]>} : vector<4x8x4xbf16>, vector<4x8x4xbf16>, vector<4x8x8xf32> -> vector<4x8x8xf32>
    "tpu.trace_stop"() : () -> ()
    %cst_17 = arith.constant 0.176776692 : f32
    %48 = vector.broadcast %cst_17 : f32 to vector<4x8x8xf32>
    %49 = arith.mulf %47, %48 : vector<4x8x8xf32>
    %c0_18 = arith.constant 0 : index
    %c0_19 = arith.constant 0 : index
    %c0_20 = arith.constant 0 : index
    %c0_21 = arith.constant 0 : index
    %c0_22 = arith.constant 0 : index
    %50 = vector.load %arg9[%c0_18, %c0_19, %c0_20, %c0_21, %c0_22] : memref<1x4x8x8x8xf32, #tpu.memory_space<vmem>>, vector<1x4x1x8x8xf32>
    %51 = vector.shape_cast %50 : vector<1x4x1x8x8xf32> to vector<4x8x8xf32>
    %52 = vector.shape_cast %49 : vector<4x8x8xf32> to vector<1x4x1x8x8xf32>
    tpu.vector_store %arg9[%c0_18, %c0_19, %c0_20, %c0_21, %c0_22], %52 {strides = array<i32>} : memref<1x4x8x8x8xf32, #tpu.memory_space<vmem>>, vector<1x4x1x8x8xf32>,
    %cst_23 = arith.constant dense<0xFF800000> : vector<4x8xf32>
    %53 = vector.multi_reduction <maximumf>, %49, %cst_23 [2] : vector<4x8x8xf32> to vector<4x8xf32>
    %54 = vector.shape_cast %53 : vector<4x8xf32> to vector<4x8x1xf32>
    %55 = vector.broadcast %54 : vector<4x8x1xf32> to vector<4x8x8xf32>
    %56 = arith.subf %49, %55 : vector<4x8x8xf32>
    %57 = math.exp %56 : vector<4x8x8xf32>
    %cst_24 = arith.constant dense<0.000000e+00> : vector<4x8xf32>
    %58 = vector.multi_reduction <add>, %57, %cst_24 [2] : vector<4x8x8xf32> to vector<4x8xf32>
    %59 = vector.shape_cast %58 : vector<4x8xf32> to vector<4x8x1xf32>
    %60 = tpu.reciprocal %59 {approx = true} : vector<4x8x1xf32> -> vector<4x8x1xf32>
    %61 = vector.broadcast %60 : vector<4x8x1xf32> to vector<4x8x8xf32>
    %62 = arith.mulf %57, %61 : vector<4x8x8xf32>
    %63 = vector.extract_strided_slice %42 {offsets = [0, 0, 0], sizes = [4, 8, 4], strides = [1, 1, 1]} : vector<4x8x32xf32> to vector<4x8x4xf32>
    %64 = arith.truncf %63 : vector<4x8x4xf32> to vector<4x8x4xbf16>
    %65 = arith.truncf %62 : vector<4x8x8xf32> to vector<4x8x8xbf16>
    "tpu.trace_start"() <{level = 10 : i32, message = "gts,gsd->gtd"}> : () -> ()
    %cst_25 = arith.constant dense<0.000000e+00> : vector<4x8x4xf32>
    %66 = tpu.matmul %65, %64, %cst_25 {dimension_numbers = #tpu.dot_dimension_numbers<[2], [1], [1], [2], [0, 0, 0, 1, 1, 2], [0], [0]>} : vector<4x8x8xbf16>, vector<4x8x4xbf16>, vector<4x8x4xf32> -> vector<4x8x4xf32>
    "tpu.trace_stop"() : () -> ()
    %c0_26 = arith.constant 0 : index
    %c0_27 = arith.constant 0 : index
    %c0_28 = arith.constant 0 : index
    %c0_29 = arith.constant 0 : index
    %67 = vector.load %arg8[%c0_26, %c0_27, %c0_28, %c0_29] : memref<1x4x8x32xf32, #tpu.memory_space<vmem>>, vector<1x4x8x4xf32>
    %68 = vector.shape_cast %67 : vector<1x4x8x4xf32> to vector<4x8x4xf32>
    %69 = vector.shape_cast %66 : vector<4x8x4xf32> to vector<1x4x8x4xf32>
    tpu.vector_store %arg8[%c0_26, %c0_27, %c0_28, %c0_29], %69 {strides = array<i32>} : memref<1x4x8x32xf32, #tpu.memory_space<vmem>>, vector<1x4x8x4xf32>,
    %70 = vector.extract_strided_slice %21 {offsets = [0, 0, 4], sizes = [4, 8, 4], strides = [1, 1, 1]} : vector<4x8x32xf32> to vector<4x8x4xf32>
    %71 = arith.truncf %70 : vector<4x8x4xf32> to vector<4x8x4xbf16>
    %72 = vector.extract_strided_slice %40 {offsets = [0, 0, 4], sizes = [4, 8, 4], strides = [1, 1, 1]} : vector<4x8x32xf32> to vector<4x8x4xf32>
    %73 = arith.truncf %72 : vector<4x8x4xf32> to vector<4x8x4xbf16>
    "tpu.trace_start"() <{level = 10 : i32, message = "gtd,gsd->gts"}> : () -> ()
    %cst_30 = arith.constant dense<0.000000e+00> : vector<4x8x8xf32>
    %74 = tpu.matmul %71, %73, %cst_30 {dimension_numbers = #tpu.dot_dimension_numbers<[2], [2], [1], [1], [0, 0, 0, 1, 1, 1], [0], [0]>} : vector<4x8x4xbf16>, vector<4x8x4xbf16>, vector<4x8x8xf32> -> vector<4x8x8xf32>
    "tpu.trace_stop"() : () -> ()
    %cst_31 = arith.constant 0.176776692 : f32
    %75 = vector.broadcast %cst_31 : f32 to vector<4x8x8xf32>
    %76 = arith.mulf %74, %75 : vector<4x8x8xf32>
    %c0_32 = arith.constant 0 : index
    %c0_33 = arith.constant 0 : index
    %c1 = arith.constant 1 : index
    %c0_34 = arith.constant 0 : index
    %c0_35 = arith.constant 0 : index
    %77 = vector.load %arg9[%c0_32, %c0_33, %c1, %c0_34, %c0_35] : memref<1x4x8x8x8xf32, #tpu.memory_space<vmem>>, vector<1x4x1x8x8xf32>
    %78 = vector.shape_cast %77 : vector<1x4x1x8x8xf32> to vector<4x8x8xf32>
    %79 = vector.shape_cast %76 : vector<4x8x8xf32> to vector<1x4x1x8x8xf32>
    tpu.vector_store %arg9[%c0_32, %c0_33, %c1, %c0_34, %c0_35], %79 {strides = array<i32>} : memref<1x4x8x8x8xf32, #tpu.memory_space<vmem>>, vector<1x4x1x8x8xf32>,
    %cst_36 = arith.constant dense<0xFF800000> : vector<4x8xf32>
    %80 = vector.multi_reduction <maximumf>, %76, %cst_36 [2] : vector<4x8x8xf32> to vector<4x8xf32>
    %81 = vector.shape_cast %80 : vector<4x8xf32> to vector<4x8x1xf32>
    %82 = vector.broadcast %81 : vector<4x8x1xf32> to vector<4x8x8xf32>
    %83 = arith.subf %76, %82 : vector<4x8x8xf32>
    %84 = math.exp %83 : vector<4x8x8xf32>
    %cst_37 = arith.constant dense<0.000000e+00> : vector<4x8xf32>
    %85 = vector.multi_reduction <add>, %84, %cst_37 [2] : vector<4x8x8xf32> to vector<4x8xf32>
    %86 = vector.shape_cast %85 : vector<4x8xf32> to vector<4x8x1xf32>
    %87 = tpu.reciprocal %86 {approx = true} : vector<4x8x1xf32> -> vector<4x8x1xf32>
    %88 = vector.broadcast %87 : vector<4x8x1xf32> to vector<4x8x8xf32>
    %89 = arith.mulf %84, %88 : vector<4x8x8xf32>
    %90 = vector.extract_strided_slice %42 {offsets = [0, 0, 4], sizes = [4, 8, 4], strides = [1, 1, 1]} : vector<4x8x32xf32> to vector<4x8x4xf32>
    %91 = arith.truncf %90 : vector<4x8x4xf32> to vector<4x8x4xbf16>
    %92 = arith.truncf %89 : vector<4x8x8xf32> to vector<4x8x8xbf16>
    "tpu.trace_start"() <{level = 10 : i32, message = "gts,gsd->gtd"}> : () -> ()
    %cst_38 = arith.constant dense<0.000000e+00> : vector<4x8x4xf32>
    %93 = tpu.matmul %92, %91, %cst_38 {dimension_numbers = #tpu.dot_dimension_numbers<[2], [1], [1], [2], [0, 0, 0, 1, 1, 2], [0], [0]>} : vector<4x8x8xbf16>, vector<4x8x4xbf16>, vector<4x8x4xf32> -> vector<4x8x4xf32>
    "tpu.trace_stop"() : () -> ()
    %c0_39 = arith.constant 0 : index
    %c0_40 = arith.constant 0 : index
    %c0_41 = arith.constant 0 : index
    %c4 = arith.constant 4 : index
    %94 = vector.load %arg8[%c0_39, %c0_40, %c0_41, %c4] : memref<1x4x8x32xf32, #tpu.memory_space<vmem>>, vector<1x4x8x4xf32>
    %95 = vector.shape_cast %94 : vector<1x4x8x4xf32> to vector<4x8x4xf32>
    %96 = vector.shape_cast %93 : vector<4x8x4xf32> to vector<1x4x8x4xf32>
    tpu.vector_store %arg8[%c0_39, %c0_40, %c0_41, %c4], %96 {strides = array<i32>} : memref<1x4x8x32xf32, #tpu.memory_space<vmem>>, vector<1x4x8x4xf32>,
    %97 = vector.extract_strided_slice %21 {offsets = [0, 0, 8], sizes = [4, 8, 4], strides = [1, 1, 1]} : vector<4x8x32xf32> to vector<4x8x4xf32>
    %98 = arith.truncf %97 : vector<4x8x4xf32> to vector<4x8x4xbf16>
    %99 = vector.extract_strided_slice %40 {offsets = [0, 0, 8], sizes = [4, 8, 4], strides = [1, 1, 1]} : vector<4x8x32xf32> to vector<4x8x4xf32>
    %100 = arith.truncf %99 : vector<4x8x4xf32> to vector<4x8x4xbf16>
    "tpu.trace_start"() <{level = 10 : i32, message = "gtd,gsd->gts"}> : () -> ()
    %cst_42 = arith.constant dense<0.000000e+00> : vector<4x8x8xf32>
    %101 = tpu.matmul %98, %100, %cst_42 {dimension_numbers = #tpu.dot_dimension_numbers<[2], [2], [1], [1], [0, 0, 0, 1, 1, 1], [0], [0]>} : vector<4x8x4xbf16>, vector<4x8x4xbf16>, vector<4x8x8xf32> -> vector<4x8x8xf32>
    "tpu.trace_stop"() : () -> ()
    %cst_43 = arith.constant 0.176776692 : f32
    %102 = vector.broadcast %cst_43 : f32 to vector<4x8x8xf32>
    %103 = arith.mulf %101, %102 : vector<4x8x8xf32>
    %c0_44 = arith.constant 0 : index
    %c0_45 = arith.constant 0 : index
    %c2 = arith.constant 2 : index
    %c0_46 = arith.constant 0 : index
    %c0_47 = arith.constant 0 : index
    %104 = vector.load %arg9[%c0_44, %c0_45, %c2, %c0_46, %c0_47] : memref<1x4x8x8x8xf32, #tpu.memory_space<vmem>>, vector<1x4x1x8x8xf32>
    %105 = vector.shape_cast %104 : vector<1x4x1x8x8xf32> to vector<4x8x8xf32>
    %106 = vector.shape_cast %103 : vector<4x8x8xf32> to vector<1x4x1x8x8xf32>
    tpu.vector_store %arg9[%c0_44, %c0_45, %c2, %c0_46, %c0_47], %106 {strides = array<i32>} : memref<1x4x8x8x8xf32, #tpu.memory_space<vmem>>, vector<1x4x1x8x8xf32>,
    %cst_48 = arith.constant dense<0xFF800000> : vector<4x8xf32>
    %107 = vector.multi_reduction <maximumf>, %103, %cst_48 [2] : vector<4x8x8xf32> to vector<4x8xf32>
    %108 = vector.shape_cast %107 : vector<4x8xf32> to vector<4x8x1xf32>
    %109 = vector.broadcast %108 : vector<4x8x1xf32> to vector<4x8x8xf32>
    %110 = arith.subf %103, %109 : vector<4x8x8xf32>
    %111 = math.exp %110 : vector<4x8x8xf32>
    %cst_49 = arith.constant dense<0.000000e+00> : vector<4x8xf32>
    %112 = vector.multi_reduction <add>, %111, %cst_49 [2] : vector<4x8x8xf32> to vector<4x8xf32>
    %113 = vector.shape_cast %112 : vector<4x8xf32> to vector<4x8x1xf32>
    %114 = tpu.reciprocal %113 {approx = true} : vector<4x8x1xf32> -> vector<4x8x1xf32>
    %115 = vector.broadcast %114 : vector<4x8x1xf32> to vector<4x8x8xf32>
    %116 = arith.mulf %111, %115 : vector<4x8x8xf32>
    %117 = vector.extract_strided_slice %42 {offsets = [0, 0, 8], sizes = [4, 8, 4], strides = [1, 1, 1]} : vector<4x8x32xf32> to vector<4x8x4xf32>
    %118 = arith.truncf %117 : vector<4x8x4xf32> to vector<4x8x4xbf16>
    %119 = arith.truncf %116 : vector<4x8x8xf32> to vector<4x8x8xbf16>
    "tpu.trace_start"() <{level = 10 : i32, message = "gts,gsd->gtd"}> : () -> ()
    %cst_50 = arith.constant dense<0.000000e+00> : vector<4x8x4xf32>
    %120 = tpu.matmul %119, %118, %cst_50 {dimension_numbers = #tpu.dot_dimension_numbers<[2], [1], [1], [2], [0, 0, 0, 1, 1, 2], [0], [0]>} : vector<4x8x8xbf16>, vector<4x8x4xbf16>, vector<4x8x4xf32> -> vector<4x8x4xf32>
    "tpu.trace_stop"() : () -> ()
    %c0_51 = arith.constant 0 : index
    %c0_52 = arith.constant 0 : index
    %c0_53 = arith.constant 0 : index
    %c8 = arith.constant 8 : index
    %121 = vector.load %arg8[%c0_51, %c0_52, %c0_53, %c8] : memref<1x4x8x32xf32, #tpu.memory_space<vmem>>, vector<1x4x8x4xf32>
    %122 = vector.shape_cast %121 : vector<1x4x8x4xf32> to vector<4x8x4xf32>
    %123 = vector.shape_cast %120 : vector<4x8x4xf32> to vector<1x4x8x4xf32>
    tpu.vector_store %arg8[%c0_51, %c0_52, %c0_53, %c8], %123 {strides = array<i32>} : memref<1x4x8x32xf32, #tpu.memory_space<vmem>>, vector<1x4x8x4xf32>,
    %124 = vector.extract_strided_slice %21 {offsets = [0, 0, 12], sizes = [4, 8, 4], strides = [1, 1, 1]} : vector<4x8x32xf32> to vector<4x8x4xf32>
    %125 = arith.truncf %124 : vector<4x8x4xf32> to vector<4x8x4xbf16>
    %126 = vector.extract_strided_slice %40 {offsets = [0, 0, 12], sizes = [4, 8, 4], strides = [1, 1, 1]} : vector<4x8x32xf32> to vector<4x8x4xf32>
    %127 = arith.truncf %126 : vector<4x8x4xf32> to vector<4x8x4xbf16>
    "tpu.trace_start"() <{level = 10 : i32, message = "gtd,gsd->gts"}> : () -> ()
    %cst_54 = arith.constant dense<0.000000e+00> : vector<4x8x8xf32>
    %128 = tpu.matmul %125, %127, %cst_54 {dimension_numbers = #tpu.dot_dimension_numbers<[2], [2], [1], [1], [0, 0, 0, 1, 1, 1], [0], [0]>} : vector<4x8x4xbf16>, vector<4x8x4xbf16>, vector<4x8x8xf32> -> vector<4x8x8xf32>
    "tpu.trace_stop"() : () -> ()
    %cst_55 = arith.constant 0.176776692 : f32
    %129 = vector.broadcast %cst_55 : f32 to vector<4x8x8xf32>
    %130 = arith.mulf %128, %129 : vector<4x8x8xf32>
    %c0_56 = arith.constant 0 : index
    %c0_57 = arith.constant 0 : index
    %c3 = arith.constant 3 : index
    %c0_58 = arith.constant 0 : index
    %c0_59 = arith.constant 0 : index
    %131 = vector.load %arg9[%c0_56, %c0_57, %c3, %c0_58, %c0_59] : memref<1x4x8x8x8xf32, #tpu.memory_space<vmem>>, vector<1x4x1x8x8xf32>
    %132 = vector.shape_cast %131 : vector<1x4x1x8x8xf32> to vector<4x8x8xf32>
    %133 = vector.shape_cast %130 : vector<4x8x8xf32> to vector<1x4x1x8x8xf32>
    tpu.vector_store %arg9[%c0_56, %c0_57, %c3, %c0_58, %c0_59], %133 {strides = array<i32>} : memref<1x4x8x8x8xf32, #tpu.memory_space<vmem>>, vector<1x4x1x8x8xf32>,
    %cst_60 = arith.constant dense<0xFF800000> : vector<4x8xf32>
    %134 = vector.multi_reduction <maximumf>, %130, %cst_60 [2] : vector<4x8x8xf32> to vector<4x8xf32>
    %135 = vector.shape_cast %134 : vector<4x8xf32> to vector<4x8x1xf32>
    %136 = vector.broadcast %135 : vector<4x8x1xf32> to vector<4x8x8xf32>
    %137 = arith.subf %130, %136 : vector<4x8x8xf32>
    %138 = math.exp %137 : vector<4x8x8xf32>
    %cst_61 = arith.constant dense<0.000000e+00> : vector<4x8xf32>
    %139 = vector.multi_reduction <add>, %138, %cst_61 [2] : vector<4x8x8xf32> to vector<4x8xf32>
    %140 = vector.shape_cast %139 : vector<4x8xf32> to vector<4x8x1xf32>
    %141 = tpu.reciprocal %140 {approx = true} : vector<4x8x1xf32> -> vector<4x8x1xf32>
    %142 = vector.broadcast %141 : vector<4x8x1xf32> to vector<4x8x8xf32>
    %143 = arith.mulf %138, %142 : vector<4x8x8xf32>
    %144 = vector.extract_strided_slice %42 {offsets = [0, 0, 12], sizes = [4, 8, 4], strides = [1, 1, 1]} : vector<4x8x32xf32> to vector<4x8x4xf32>
    %145 = arith.truncf %144 : vector<4x8x4xf32> to vector<4x8x4xbf16>
    %146 = arith.truncf %143 : vector<4x8x8xf32> to vector<4x8x8xbf16>
    "tpu.trace_start"() <{level = 10 : i32, message = "gts,gsd->gtd"}> : () -> ()
    %cst_62 = arith.constant dense<0.000000e+00> : vector<4x8x4xf32>
    %147 = tpu.matmul %146, %145, %cst_62 {dimension_numbers = #tpu.dot_dimension_numbers<[2], [1], [1], [2], [0, 0, 0, 1, 1, 2], [0], [0]>} : vector<4x8x8xbf16>, vector<4x8x4xbf16>, vector<4x8x4xf32> -> vector<4x8x4xf32>
    "tpu.trace_stop"() : () -> ()
    %c0_63 = arith.constant 0 : index
    %c0_64 = arith.constant 0 : index
    %c0_65 = arith.constant 0 : index
    %c12 = arith.constant 12 : index
    %148 = vector.load %arg8[%c0_63, %c0_64, %c0_65, %c12] : memref<1x4x8x32xf32, #tpu.memory_space<vmem>>, vector<1x4x8x4xf32>
    %149 = vector.shape_cast %148 : vector<1x4x8x4xf32> to vector<4x8x4xf32>
    %150 = vector.shape_cast %147 : vector<4x8x4xf32> to vector<1x4x8x4xf32>
    tpu.vector_store %arg8[%c0_63, %c0_64, %c0_65, %c12], %150 {strides = array<i32>} : memref<1x4x8x32xf32, #tpu.memory_space<vmem>>, vector<1x4x8x4xf32>,
    %151 = vector.extract_strided_slice %21 {offsets = [0, 0, 16], sizes = [4, 8, 4], strides = [1, 1, 1]} : vector<4x8x32xf32> to vector<4x8x4xf32>
    %152 = arith.truncf %151 : vector<4x8x4xf32> to vector<4x8x4xbf16>
    %153 = vector.extract_strided_slice %40 {offsets = [0, 0, 16], sizes = [4, 8, 4], strides = [1, 1, 1]} : vector<4x8x32xf32> to vector<4x8x4xf32>
    %154 = arith.truncf %153 : vector<4x8x4xf32> to vector<4x8x4xbf16>
    "tpu.trace_start"() <{level = 10 : i32, message = "gtd,gsd->gts"}> : () -> ()
    %cst_66 = arith.constant dense<0.000000e+00> : vector<4x8x8xf32>
    %155 = tpu.matmul %152, %154, %cst_66 {dimension_numbers = #tpu.dot_dimension_numbers<[2], [2], [1], [1], [0, 0, 0, 1, 1, 1], [0], [0]>} : vector<4x8x4xbf16>, vector<4x8x4xbf16>, vector<4x8x8xf32> -> vector<4x8x8xf32>
    "tpu.trace_stop"() : () -> ()
    %cst_67 = arith.constant 0.176776692 : f32
    %156 = vector.broadcast %cst_67 : f32 to vector<4x8x8xf32>
    %157 = arith.mulf %155, %156 : vector<4x8x8xf32>
    %c0_68 = arith.constant 0 : index
    %c0_69 = arith.constant 0 : index
    %c4_70 = arith.constant 4 : index
    %c0_71 = arith.constant 0 : index
    %c0_72 = arith.constant 0 : index
    %158 = vector.load %arg9[%c0_68, %c0_69, %c4_70, %c0_71, %c0_72] : memref<1x4x8x8x8xf32, #tpu.memory_space<vmem>>, vector<1x4x1x8x8xf32>
    %159 = vector.shape_cast %158 : vector<1x4x1x8x8xf32> to vector<4x8x8xf32>
    %160 = vector.shape_cast %157 : vector<4x8x8xf32> to vector<1x4x1x8x8xf32>
    tpu.vector_store %arg9[%c0_68, %c0_69, %c4_70, %c0_71, %c0_72], %160 {strides = array<i32>} : memref<1x4x8x8x8xf32, #tpu.memory_space<vmem>>, vector<1x4x1x8x8xf32>,
    %cst_73 = arith.constant dense<0xFF800000> : vector<4x8xf32>
    %161 = vector.multi_reduction <maximumf>, %157, %cst_73 [2] : vector<4x8x8xf32> to vector<4x8xf32>
    %162 = vector.shape_cast %161 : vector<4x8xf32> to vector<4x8x1xf32>
    %163 = vector.broadcast %162 : vector<4x8x1xf32> to vector<4x8x8xf32>
    %164 = arith.subf %157, %163 : vector<4x8x8xf32>
    %165 = math.exp %164 : vector<4x8x8xf32>
    %cst_74 = arith.constant dense<0.000000e+00> : vector<4x8xf32>
    %166 = vector.multi_reduction <add>, %165, %cst_74 [2] : vector<4x8x8xf32> to vector<4x8xf32>
    %167 = vector.shape_cast %166 : vector<4x8xf32> to vector<4x8x1xf32>
    %168 = tpu.reciprocal %167 {approx = true} : vector<4x8x1xf32> -> vector<4x8x1xf32>
    %169 = vector.broadcast %168 : vector<4x8x1xf32> to vector<4x8x8xf32>
    %170 = arith.mulf %165, %169 : vector<4x8x8xf32>
    %171 = vector.extract_strided_slice %42 {offsets = [0, 0, 16], sizes = [4, 8, 4], strides = [1, 1, 1]} : vector<4x8x32xf32> to vector<4x8x4xf32>
    %172 = arith.truncf %171 : vector<4x8x4xf32> to vector<4x8x4xbf16>
    %173 = arith.truncf %170 : vector<4x8x8xf32> to vector<4x8x8xbf16>
    "tpu.trace_start"() <{level = 10 : i32, message = "gts,gsd->gtd"}> : () -> ()
    %cst_75 = arith.constant dense<0.000000e+00> : vector<4x8x4xf32>
    %174 = tpu.matmul %173, %172, %cst_75 {dimension_numbers = #tpu.dot_dimension_numbers<[2], [1], [1], [2], [0, 0, 0, 1, 1, 2], [0], [0]>} : vector<4x8x8xbf16>, vector<4x8x4xbf16>, vector<4x8x4xf32> -> vector<4x8x4xf32>
    "tpu.trace_stop"() : () -> ()
    %c0_76 = arith.constant 0 : index
    %c0_77 = arith.constant 0 : index
    %c0_78 = arith.constant 0 : index
    %c16 = arith.constant 16 : index
    %175 = vector.load %arg8[%c0_76, %c0_77, %c0_78, %c16] : memref<1x4x8x32xf32, #tpu.memory_space<vmem>>, vector<1x4x8x4xf32>
    %176 = vector.shape_cast %175 : vector<1x4x8x4xf32> to vector<4x8x4xf32>
    %177 = vector.shape_cast %174 : vector<4x8x4xf32> to vector<1x4x8x4xf32>
    tpu.vector_store %arg8[%c0_76, %c0_77, %c0_78, %c16], %177 {strides = array<i32>} : memref<1x4x8x32xf32, #tpu.memory_space<vmem>>, vector<1x4x8x4xf32>,
    %178 = vector.extract_strided_slice %21 {offsets = [0, 0, 20], sizes = [4, 8, 4], strides = [1, 1, 1]} : vector<4x8x32xf32> to vector<4x8x4xf32>
    %179 = arith.truncf %178 : vector<4x8x4xf32> to vector<4x8x4xbf16>
    %180 = vector.extract_strided_slice %40 {offsets = [0, 0, 20], sizes = [4, 8, 4], strides = [1, 1, 1]} : vector<4x8x32xf32> to vector<4x8x4xf32>
    %181 = arith.truncf %180 : vector<4x8x4xf32> to vector<4x8x4xbf16>
    "tpu.trace_start"() <{level = 10 : i32, message = "gtd,gsd->gts"}> : () -> ()
    %cst_79 = arith.constant dense<0.000000e+00> : vector<4x8x8xf32>
    %182 = tpu.matmul %179, %181, %cst_79 {dimension_numbers = #tpu.dot_dimension_numbers<[2], [2], [1], [1], [0, 0, 0, 1, 1, 1], [0], [0]>} : vector<4x8x4xbf16>, vector<4x8x4xbf16>, vector<4x8x8xf32> -> vector<4x8x8xf32>
    "tpu.trace_stop"() : () -> ()
    %cst_80 = arith.constant 0.176776692 : f32
    %183 = vector.broadcast %cst_80 : f32 to vector<4x8x8xf32>
    %184 = arith.mulf %182, %183 : vector<4x8x8xf32>
    %c0_81 = arith.constant 0 : index
    %c0_82 = arith.constant 0 : index
    %c5 = arith.constant 5 : index
    %c0_83 = arith.constant 0 : index
    %c0_84 = arith.constant 0 : index
    %185 = vector.load %arg9[%c0_81, %c0_82, %c5, %c0_83, %c0_84] : memref<1x4x8x8x8xf32, #tpu.memory_space<vmem>>, vector<1x4x1x8x8xf32>
    %186 = vector.shape_cast %185 : vector<1x4x1x8x8xf32> to vector<4x8x8xf32>
    %187 = vector.shape_cast %184 : vector<4x8x8xf32> to vector<1x4x1x8x8xf32>
    tpu.vector_store %arg9[%c0_81, %c0_82, %c5, %c0_83, %c0_84], %187 {strides = array<i32>} : memref<1x4x8x8x8xf32, #tpu.memory_space<vmem>>, vector<1x4x1x8x8xf32>,
    %cst_85 = arith.constant dense<0xFF800000> : vector<4x8xf32>
    %188 = vector.multi_reduction <maximumf>, %184, %cst_85 [2] : vector<4x8x8xf32> to vector<4x8xf32>
    %189 = vector.shape_cast %188 : vector<4x8xf32> to vector<4x8x1xf32>
    %190 = vector.broadcast %189 : vector<4x8x1xf32> to vector<4x8x8xf32>
    %191 = arith.subf %184, %190 : vector<4x8x8xf32>
    %192 = math.exp %191 : vector<4x8x8xf32>
    %cst_86 = arith.constant dense<0.000000e+00> : vector<4x8xf32>
    %193 = vector.multi_reduction <add>, %192, %cst_86 [2] : vector<4x8x8xf32> to vector<4x8xf32>
    %194 = vector.shape_cast %193 : vector<4x8xf32> to vector<4x8x1xf32>
    %195 = tpu.reciprocal %194 {approx = true} : vector<4x8x1xf32> -> vector<4x8x1xf32>
    %196 = vector.broadcast %195 : vector<4x8x1xf32> to vector<4x8x8xf32>
    %197 = arith.mulf %192, %196 : vector<4x8x8xf32>
    %198 = vector.extract_strided_slice %42 {offsets = [0, 0, 20], sizes = [4, 8, 4], strides = [1, 1, 1]} : vector<4x8x32xf32> to vector<4x8x4xf32>
    %199 = arith.truncf %198 : vector<4x8x4xf32> to vector<4x8x4xbf16>
    %200 = arith.truncf %197 : vector<4x8x8xf32> to vector<4x8x8xbf16>
    "tpu.trace_start"() <{level = 10 : i32, message = "gts,gsd->gtd"}> : () -> ()
    %cst_87 = arith.constant dense<0.000000e+00> : vector<4x8x4xf32>
    %201 = tpu.matmul %200, %199, %cst_87 {dimension_numbers = #tpu.dot_dimension_numbers<[2], [1], [1], [2], [0, 0, 0, 1, 1, 2], [0], [0]>} : vector<4x8x8xbf16>, vector<4x8x4xbf16>, vector<4x8x4xf32> -> vector<4x8x4xf32>
    "tpu.trace_stop"() : () -> ()
    %c0_88 = arith.constant 0 : index
    %c0_89 = arith.constant 0 : index
    %c0_90 = arith.constant 0 : index
    %c20 = arith.constant 20 : index
    %202 = vector.load %arg8[%c0_88, %c0_89, %c0_90, %c20] : memref<1x4x8x32xf32, #tpu.memory_space<vmem>>, vector<1x4x8x4xf32>
    %203 = vector.shape_cast %202 : vector<1x4x8x4xf32> to vector<4x8x4xf32>
    %204 = vector.shape_cast %201 : vector<4x8x4xf32> to vector<1x4x8x4xf32>
    tpu.vector_store %arg8[%c0_88, %c0_89, %c0_90, %c20], %204 {strides = array<i32>} : memref<1x4x8x32xf32, #tpu.memory_space<vmem>>, vector<1x4x8x4xf32>,
    %205 = vector.extract_strided_slice %21 {offsets = [0, 0, 24], sizes = [4, 8, 4], strides = [1, 1, 1]} : vector<4x8x32xf32> to vector<4x8x4xf32>
    %206 = arith.truncf %205 : vector<4x8x4xf32> to vector<4x8x4xbf16>
    %207 = vector.extract_strided_slice %40 {offsets = [0, 0, 24], sizes = [4, 8, 4], strides = [1, 1, 1]} : vector<4x8x32xf32> to vector<4x8x4xf32>
    %208 = arith.truncf %207 : vector<4x8x4xf32> to vector<4x8x4xbf16>
    "tpu.trace_start"() <{level = 10 : i32, message = "gtd,gsd->gts"}> : () -> ()
    %cst_91 = arith.constant dense<0.000000e+00> : vector<4x8x8xf32>
    %209 = tpu.matmul %206, %208, %cst_91 {dimension_numbers = #tpu.dot_dimension_numbers<[2], [2], [1], [1], [0, 0, 0, 1, 1, 1], [0], [0]>} : vector<4x8x4xbf16>, vector<4x8x4xbf16>, vector<4x8x8xf32> -> vector<4x8x8xf32>
    "tpu.trace_stop"() : () -> ()
    %cst_92 = arith.constant 0.176776692 : f32
    %210 = vector.broadcast %cst_92 : f32 to vector<4x8x8xf32>
    %211 = arith.mulf %209, %210 : vector<4x8x8xf32>
    %c0_93 = arith.constant 0 : index
    %c0_94 = arith.constant 0 : index
    %c6 = arith.constant 6 : index
    %c0_95 = arith.constant 0 : index
    %c0_96 = arith.constant 0 : index
    %212 = vector.load %arg9[%c0_93, %c0_94, %c6, %c0_95, %c0_96] : memref<1x4x8x8x8xf32, #tpu.memory_space<vmem>>, vector<1x4x1x8x8xf32>
    %213 = vector.shape_cast %212 : vector<1x4x1x8x8xf32> to vector<4x8x8xf32>
    %214 = vector.shape_cast %211 : vector<4x8x8xf32> to vector<1x4x1x8x8xf32>
    tpu.vector_store %arg9[%c0_93, %c0_94, %c6, %c0_95, %c0_96], %214 {strides = array<i32>} : memref<1x4x8x8x8xf32, #tpu.memory_space<vmem>>, vector<1x4x1x8x8xf32>,
    %cst_97 = arith.constant dense<0xFF800000> : vector<4x8xf32>
    %215 = vector.multi_reduction <maximumf>, %211, %cst_97 [2] : vector<4x8x8xf32> to vector<4x8xf32>
    %216 = vector.shape_cast %215 : vector<4x8xf32> to vector<4x8x1xf32>
    %217 = vector.broadcast %216 : vector<4x8x1xf32> to vector<4x8x8xf32>
    %218 = arith.subf %211, %217 : vector<4x8x8xf32>
    %219 = math.exp %218 : vector<4x8x8xf32>
    %cst_98 = arith.constant dense<0.000000e+00> : vector<4x8xf32>
    %220 = vector.multi_reduction <add>, %219, %cst_98 [2] : vector<4x8x8xf32> to vector<4x8xf32>
    %221 = vector.shape_cast %220 : vector<4x8xf32> to vector<4x8x1xf32>
    %222 = tpu.reciprocal %221 {approx = true} : vector<4x8x1xf32> -> vector<4x8x1xf32>
    %223 = vector.broadcast %222 : vector<4x8x1xf32> to vector<4x8x8xf32>
    %224 = arith.mulf %219, %223 : vector<4x8x8xf32>
    %225 = vector.extract_strided_slice %42 {offsets = [0, 0, 24], sizes = [4, 8, 4], strides = [1, 1, 1]} : vector<4x8x32xf32> to vector<4x8x4xf32>
    %226 = arith.truncf %225 : vector<4x8x4xf32> to vector<4x8x4xbf16>
    %227 = arith.truncf %224 : vector<4x8x8xf32> to vector<4x8x8xbf16>
    "tpu.trace_start"() <{level = 10 : i32, message = "gts,gsd->gtd"}> : () -> ()
    %cst_99 = arith.constant dense<0.000000e+00> : vector<4x8x4xf32>
    %228 = tpu.matmul %227, %226, %cst_99 {dimension_numbers = #tpu.dot_dimension_numbers<[2], [1], [1], [2], [0, 0, 0, 1, 1, 2], [0], [0]>} : vector<4x8x8xbf16>, vector<4x8x4xbf16>, vector<4x8x4xf32> -> vector<4x8x4xf32>
    "tpu.trace_stop"() : () -> ()
    %c0_100 = arith.constant 0 : index
    %c0_101 = arith.constant 0 : index
    %c0_102 = arith.constant 0 : index
    %c24 = arith.constant 24 : index
    %229 = vector.load %arg8[%c0_100, %c0_101, %c0_102, %c24] : memref<1x4x8x32xf32, #tpu.memory_space<vmem>>, vector<1x4x8x4xf32>
    %230 = vector.shape_cast %229 : vector<1x4x8x4xf32> to vector<4x8x4xf32>
    %231 = vector.shape_cast %228 : vector<4x8x4xf32> to vector<1x4x8x4xf32>
    tpu.vector_store %arg8[%c0_100, %c0_101, %c0_102, %c24], %231 {strides = array<i32>} : memref<1x4x8x32xf32, #tpu.memory_space<vmem>>, vector<1x4x8x4xf32>,
    %232 = vector.extract_strided_slice %21 {offsets = [0, 0, 28], sizes = [4, 8, 4], strides = [1, 1, 1]} : vector<4x8x32xf32> to vector<4x8x4xf32>
    %233 = arith.truncf %232 : vector<4x8x4xf32> to vector<4x8x4xbf16>
    %234 = vector.extract_strided_slice %40 {offsets = [0, 0, 28], sizes = [4, 8, 4], strides = [1, 1, 1]} : vector<4x8x32xf32> to vector<4x8x4xf32>
    %235 = arith.truncf %234 : vector<4x8x4xf32> to vector<4x8x4xbf16>
    "tpu.trace_start"() <{level = 10 : i32, message = "gtd,gsd->gts"}> : () -> ()
    %cst_103 = arith.constant dense<0.000000e+00> : vector<4x8x8xf32>
    %236 = tpu.matmul %233, %235, %cst_103 {dimension_numbers = #tpu.dot_dimension_numbers<[2], [2], [1], [1], [0, 0, 0, 1, 1, 1], [0], [0]>} : vector<4x8x4xbf16>, vector<4x8x4xbf16>, vector<4x8x8xf32> -> vector<4x8x8xf32>
    "tpu.trace_stop"() : () -> ()
    %cst_104 = arith.constant 0.176776692 : f32
    %237 = vector.broadcast %cst_104 : f32 to vector<4x8x8xf32>
    %238 = arith.mulf %236, %237 : vector<4x8x8xf32>
    %c0_105 = arith.constant 0 : index
    %c0_106 = arith.constant 0 : index
    %c7 = arith.constant 7 : index
    %c0_107 = arith.constant 0 : index
    %c0_108 = arith.constant 0 : index
    %239 = vector.load %arg9[%c0_105, %c0_106, %c7, %c0_107, %c0_108] : memref<1x4x8x8x8xf32, #tpu.memory_space<vmem>>, vector<1x4x1x8x8xf32>
    %240 = vector.shape_cast %239 : vector<1x4x1x8x8xf32> to vector<4x8x8xf32>
    %241 = vector.shape_cast %238 : vector<4x8x8xf32> to vector<1x4x1x8x8xf32>
    tpu.vector_store %arg9[%c0_105, %c0_106, %c7, %c0_107, %c0_108], %241 {strides = array<i32>} : memref<1x4x8x8x8xf32, #tpu.memory_space<vmem>>, vector<1x4x1x8x8xf32>,
    %cst_109 = arith.constant dense<0xFF800000> : vector<4x8xf32>
    %242 = vector.multi_reduction <maximumf>, %238, %cst_109 [2] : vector<4x8x8xf32> to vector<4x8xf32>
    %243 = vector.shape_cast %242 : vector<4x8xf32> to vector<4x8x1xf32>
    %244 = vector.broadcast %243 : vector<4x8x1xf32> to vector<4x8x8xf32>
    %245 = arith.subf %238, %244 : vector<4x8x8xf32>
    %246 = math.exp %245 : vector<4x8x8xf32>
    %cst_110 = arith.constant dense<0.000000e+00> : vector<4x8xf32>
    %247 = vector.multi_reduction <add>, %246, %cst_110 [2] : vector<4x8x8xf32> to vector<4x8xf32>
    %248 = vector.shape_cast %247 : vector<4x8xf32> to vector<4x8x1xf32>
    %249 = tpu.reciprocal %248 {approx = true} : vector<4x8x1xf32> -> vector<4x8x1xf32>
    %250 = vector.broadcast %249 : vector<4x8x1xf32> to vector<4x8x8xf32>
    %251 = arith.mulf %246, %250 : vector<4x8x8xf32>
    %252 = vector.extract_strided_slice %42 {offsets = [0, 0, 28], sizes = [4, 8, 4], strides = [1, 1, 1]} : vector<4x8x32xf32> to vector<4x8x4xf32>
    %253 = arith.truncf %252 : vector<4x8x4xf32> to vector<4x8x4xbf16>
    %254 = arith.truncf %251 : vector<4x8x8xf32> to vector<4x8x8xbf16>
    "tpu.trace_start"() <{level = 10 : i32, message = "gts,gsd->gtd"}> : () -> ()
    %cst_111 = arith.constant dense<0.000000e+00> : vector<4x8x4xf32>
    %255 = tpu.matmul %254, %253, %cst_111 {dimension_numbers = #tpu.dot_dimension_numbers<[2], [1], [1], [2], [0, 0, 0, 1, 1, 2], [0], [0]>} : vector<4x8x8xbf16>, vector<4x8x4xbf16>, vector<4x8x4xf32> -> vector<4x8x4xf32>
    "tpu.trace_stop"() : () -> ()
    %c0_112 = arith.constant 0 : index
    %c0_113 = arith.constant 0 : index
    %c0_114 = arith.constant 0 : index
    %c28 = arith.constant 28 : index
    %256 = vector.load %arg8[%c0_112, %c0_113, %c0_114, %c28] : memref<1x4x8x32xf32, #tpu.memory_space<vmem>>, vector<1x4x8x4xf32>
    %257 = vector.shape_cast %256 : vector<1x4x8x4xf32> to vector<4x8x4xf32>
    %258 = vector.shape_cast %255 : vector<4x8x4xf32> to vector<1x4x8x4xf32>
    tpu.vector_store %arg8[%c0_112, %c0_113, %c0_114, %c28], %258 {strides = array<i32>} : memref<1x4x8x32xf32, #tpu.memory_space<vmem>>, vector<1x4x8x4xf32>,
    return
  }
  func.func @transform_0(%arg0: i32, %arg1: i32) -> (i32, i32, i32, i32) {
    %c0_i32 = arith.constant 0 : i32
    %0 = arith.addi %arg1, %c0_i32 : i32
    %c0_i32_0 = arith.constant 0 : i32
    %c0_i32_1 = arith.constant 0 : i32
    %c0_i32_2 = arith.constant 0 : i32
    return %arg0, %0, %c0_i32_0, %c0_i32_1 : i32, i32, i32, i32
  }
  func.func @transform_1(%arg0: i32, %arg1: i32) -> (i32, i32, i32, i32) {
    %c0_i32 = arith.constant 0 : i32
    %0 = arith.addi %arg1, %c0_i32 : i32
    %c0_i32_0 = arith.constant 0 : i32
    %c0_i32_1 = arith.constant 0 : i32
    %c0_i32_2 = arith.constant 0 : i32
    return %arg0, %0, %c0_i32_0, %c0_i32_1 : i32, i32, i32, i32
  }
  func.func @transform_2(%arg0: i32, %arg1: i32) -> (i32, i32, i32, i32) {
    %c1_i32 = arith.constant 1 : i32
    %0 = arith.addi %arg1, %c1_i32 : i32
    %c0_i32 = arith.constant 0 : i32
    %c0_i32_0 = arith.constant 0 : i32
    %c0_i32_1 = arith.constant 0 : i32
    return %arg0, %0, %c0_i32, %c0_i32_0 : i32, i32, i32, i32
  }
  func.func @transform_3(%arg0: i32, %arg1: i32) -> (i32, i32) {
    %c0_i32 = arith.constant 0 : i32
    %c0_i32_0 = arith.constant 0 : i32
    %c0_i32_1 = arith.constant 0 : i32
    return %c0_i32, %c0_i32_0 : i32, i32
  }
  func.func @transform_4(%arg0: i32, %arg1: i32) -> (i32, i32) {
    %c0_i32 = arith.constant 0 : i32
    %c0_i32_0 = arith.constant 0 : i32
    %c0_i32_1 = arith.constant 0 : i32
    return %c0_i32, %c0_i32_0 : i32, i32
  }
  func.func @transform_5(%arg0: i32, %arg1: i32) -> (i32, i32) {
    %c0_i32 = arith.constant 0 : i32
    %c0_i32_0 = arith.constant 0 : i32
    %c0_i32_1 = arith.constant 0 : i32
    return %c0_i32, %c0_i32_0 : i32, i32
  }
  func.func @transform_6(%arg0: i32, %arg1: i32) -> (i32, i32, i32, i32) {
    %c0_i32 = arith.constant 0 : i32
    %c0_i32_0 = arith.constant 0 : i32
    %c0_i32_1 = arith.constant 0 : i32
    return %arg0, %arg1, %c0_i32, %c0_i32_0 : i32, i32, i32, i32
  }
  func.func @transform_7(%arg0: i32, %arg1: i32) -> (i32, i32, i32, i32, i32) {
    %c0_i32 = arith.constant 0 : i32
    %c0_i32_0 = arith.constant 0 : i32
    %c0_i32_1 = arith.constant 0 : i32
    %c0_i32_2 = arith.constant 0 : i32
    return %arg0, %arg1, %c0_i32, %c0_i32_0, %c0_i32_1 : i32, i32, i32, i32, i32
  }
}

module attributes {stable_mosaic.version = 11 : i64} {
  func.func @_conv_flat_kernel(%arg0: i32, %arg1: memref<1x4x320xf32, #tpu.memory_space<vmem>>, %arg2: memref<3x4x4xf32, #tpu.memory_space<vmem>>, %arg3: memref<4x1xf32, #tpu.memory_space<vmem>>, %arg4: memref<1x4x256xf32, #tpu.memory_space<vmem>>, %arg5: memref<1x4x256xf32, #tpu.memory_space<vmem>>, %arg6: memref<1x4x256xf32, #tpu.memory_space<vmem>>) attributes {dimension_semantics = [#tpu.dimension_semantics<parallel>], iteration_bounds = array<i64: 2>, scalar_prefetch = 0 : i64, scratch_operands = 0 : i64, tpu.core_type = #tpu.core_type<tc>, window_params = [{transform_indices = @transform_0, window_bounds = array<i64: 1, 4, 320>}, {pipeline_mode = #tpu.pipeline_mode<synchronous>, transform_indices = @transform_1, window_bounds = array<i64: 3, 4, 4>}, {pipeline_mode = #tpu.pipeline_mode<synchronous>, transform_indices = @transform_2, window_bounds = array<i64: 4, 1>}, {transform_indices = @transform_3, window_bounds = array<i64: 1, 4, 256>}, {transform_indices = @transform_4, window_bounds = array<i64: 1, 4, 256>}, {transform_indices = @transform_5, window_bounds = array<i64: 1, 4, 256>}]} {
    %cst = arith.constant 0.000000e+00 : f32
    %0 = vector.broadcast %cst : f32 to vector<4x256xf32>
    %c0 = arith.constant 0 : index
    %c0_0 = arith.constant 0 : index
    %c0_1 = arith.constant 0 : index
    %1 = vector.load %arg1[%c0, %c0_0, %c0_1] : memref<1x4x320xf32, #tpu.memory_space<vmem>>, vector<1x4x256xf32>
    %2 = vector.shape_cast %1 : vector<1x4x256xf32> to vector<4x256xf32>
    %c0_2 = arith.constant 0 : index
    %c0_3 = arith.constant 0 : index
    %c0_4 = arith.constant 0 : index
    %3 = vector.load %arg2[%c0_2, %c0_3, %c0_4] : memref<3x4x4xf32, #tpu.memory_space<vmem>>, vector<1x4x4xf32>
    %4 = vector.shape_cast %3 : vector<1x4x4xf32> to vector<4x4xf32>
    %5 = arith.truncf %4 : vector<4x4xf32> to vector<4x4xbf16>
    %6 = arith.truncf %2 : vector<4x256xf32> to vector<4x256xbf16>
    %cst_5 = arith.constant dense<0.000000e+00> : vector<4x256xf32>
    %7 = tpu.matmul %5, %6, %cst_5 {dimension_numbers = #tpu.dot_dimension_numbers<[1], [0], [0], [1], [0, 0, 1, 1], [], []>} : vector<4x4xbf16>, vector<4x256xbf16>, vector<4x256xf32> -> vector<4x256xf32>
    %8 = arith.addf %0, %7 : vector<4x256xf32>
    %c0_6 = arith.constant 0 : index
    %c0_7 = arith.constant 0 : index
    %c32 = arith.constant 32 : index
    %9 = vector.load %arg1[%c0_6, %c0_7, %c32] : memref<1x4x320xf32, #tpu.memory_space<vmem>>, vector<1x4x256xf32>
    %10 = vector.shape_cast %9 : vector<1x4x256xf32> to vector<4x256xf32>
    %c1 = arith.constant 1 : index
    %c0_8 = arith.constant 0 : index
    %c0_9 = arith.constant 0 : index
    %11 = vector.load %arg2[%c1, %c0_8, %c0_9] : memref<3x4x4xf32, #tpu.memory_space<vmem>>, vector<1x4x4xf32>
    %12 = vector.shape_cast %11 : vector<1x4x4xf32> to vector<4x4xf32>
    %13 = arith.truncf %12 : vector<4x4xf32> to vector<4x4xbf16>
    %14 = arith.truncf %10 : vector<4x256xf32> to vector<4x256xbf16>
    %cst_10 = arith.constant dense<0.000000e+00> : vector<4x256xf32>
    %15 = tpu.matmul %13, %14, %cst_10 {dimension_numbers = #tpu.dot_dimension_numbers<[1], [0], [0], [1], [0, 0, 1, 1], [], []>} : vector<4x4xbf16>, vector<4x256xbf16>, vector<4x256xf32> -> vector<4x256xf32>
    %16 = arith.addf %8, %15 : vector<4x256xf32>
    %c0_11 = arith.constant 0 : index
    %c0_12 = arith.constant 0 : index
    %c64 = arith.constant 64 : index
    %17 = vector.load %arg1[%c0_11, %c0_12, %c64] : memref<1x4x320xf32, #tpu.memory_space<vmem>>, vector<1x4x256xf32>
    %18 = vector.shape_cast %17 : vector<1x4x256xf32> to vector<4x256xf32>
    %c2 = arith.constant 2 : index
    %c0_13 = arith.constant 0 : index
    %c0_14 = arith.constant 0 : index
    %19 = vector.load %arg2[%c2, %c0_13, %c0_14] : memref<3x4x4xf32, #tpu.memory_space<vmem>>, vector<1x4x4xf32>
    %20 = vector.shape_cast %19 : vector<1x4x4xf32> to vector<4x4xf32>
    %21 = arith.truncf %20 : vector<4x4xf32> to vector<4x4xbf16>
    %22 = arith.truncf %18 : vector<4x256xf32> to vector<4x256xbf16>
    %cst_15 = arith.constant dense<0.000000e+00> : vector<4x256xf32>
    %23 = tpu.matmul %21, %22, %cst_15 {dimension_numbers = #tpu.dot_dimension_numbers<[1], [0], [0], [1], [0, 0, 1, 1], [], []>} : vector<4x4xbf16>, vector<4x256xbf16>, vector<4x256xf32> -> vector<4x256xf32>
    %24 = arith.addf %16, %23 : vector<4x256xf32>
    %c0_16 = arith.constant 0 : index
    %c0_17 = arith.constant 0 : index
    %25 = vector.load %arg3[%c0_16, %c0_17] : memref<4x1xf32, #tpu.memory_space<vmem>>, vector<4x1xf32>
    %26 = vector.broadcast %25 : vector<4x1xf32> to vector<4x256xf32>
    %27 = arith.addf %24, %26 : vector<4x256xf32>
    %c0_18 = arith.constant 0 : index
    %c0_19 = arith.constant 0 : index
    %c0_20 = arith.constant 0 : index
    %28 = vector.load %arg4[%c0_18, %c0_19, %c0_20] : memref<1x4x256xf32, #tpu.memory_space<vmem>>, vector<1x4x256xf32>
    %29 = vector.shape_cast %28 : vector<1x4x256xf32> to vector<4x256xf32>
    %30 = arith.addf %27, %29 : vector<4x256xf32>
    %c0_21 = arith.constant 0 : index
    %c0_22 = arith.constant 0 : index
    %c0_23 = arith.constant 0 : index
    %31 = vector.load %arg5[%c0_21, %c0_22, %c0_23] : memref<1x4x256xf32, #tpu.memory_space<vmem>>, vector<1x4x256xf32>
    %32 = vector.shape_cast %31 : vector<1x4x256xf32> to vector<4x256xf32>
    %33 = arith.addf %30, %32 : vector<4x256xf32>
    %c0_24 = arith.constant 0 : index
    %c0_25 = arith.constant 0 : index
    %c0_26 = arith.constant 0 : index
    %34 = vector.load %arg6[%c0_24, %c0_25, %c0_26] : memref<1x4x256xf32, #tpu.memory_space<vmem>>, vector<1x4x256xf32>
    %35 = vector.shape_cast %34 : vector<1x4x256xf32> to vector<4x256xf32>
    %36 = vector.shape_cast %33 : vector<4x256xf32> to vector<1x4x256xf32>
    tpu.vector_store %arg6[%c0_24, %c0_25, %c0_26], %36 {strides = array<i32>} : memref<1x4x256xf32, #tpu.memory_space<vmem>>, vector<1x4x256xf32>,
    return
  }
  func.func @transform_0(%arg0: i32) -> (i32, i32, i32) {
    %c0_i32 = arith.constant 0 : i32
    %c0_i32_0 = arith.constant 0 : i32
    %c0_i32_1 = arith.constant 0 : i32
    return %arg0, %c0_i32, %c0_i32_0 : i32, i32, i32
  }
  func.func @transform_1(%arg0: i32) -> (i32, i32, i32) {
    %c0_i32 = arith.constant 0 : i32
    %c0_i32_0 = arith.constant 0 : i32
    %c0_i32_1 = arith.constant 0 : i32
    %c0_i32_2 = arith.constant 0 : i32
    return %c0_i32, %c0_i32_0, %c0_i32_1 : i32, i32, i32
  }
  func.func @transform_2(%arg0: i32) -> (i32, i32) {
    %c0_i32 = arith.constant 0 : i32
    %c0_i32_0 = arith.constant 0 : i32
    %c0_i32_1 = arith.constant 0 : i32
    return %c0_i32, %c0_i32_0 : i32, i32
  }
  func.func @transform_3(%arg0: i32) -> (i32, i32, i32) {
    %c0_i32 = arith.constant 0 : i32
    %c0_i32_0 = arith.constant 0 : i32
    %c0_i32_1 = arith.constant 0 : i32
    return %arg0, %c0_i32, %c0_i32_0 : i32, i32, i32
  }
  func.func @transform_4(%arg0: i32) -> (i32, i32, i32) {
    %c0_i32 = arith.constant 0 : i32
    %c0_i32_0 = arith.constant 0 : i32
    %c0_i32_1 = arith.constant 0 : i32
    return %arg0, %c0_i32, %c0_i32_0 : i32, i32, i32
  }
  func.func @transform_5(%arg0: i32) -> (i32, i32, i32) {
    %c0_i32 = arith.constant 0 : i32
    %c0_i32_0 = arith.constant 0 : i32
    %c0_i32_1 = arith.constant 0 : i32
    return %arg0, %c0_i32, %c0_i32_0 : i32, i32, i32
  }
}

module attributes {stable_mosaic.version = 11 : i64} {
  func.func @_conv_flat_kernel(%arg0: i32, %arg1: memref<1x4x322xf32, #tpu.memory_space<vmem>>, %arg2: memref<9x16x4xf32, #tpu.memory_space<vmem>>, %arg3: memref<16x1xf32, #tpu.memory_space<vmem>>, %arg4: memref<9x1x256xf32, #tpu.memory_space<vmem>>, %arg5: memref<1x16x256xf32, #tpu.memory_space<vmem>>) attributes {dimension_semantics = [#tpu.dimension_semantics<parallel>], iteration_bounds = array<i64: 2>, scalar_prefetch = 0 : i64, scratch_operands = 0 : i64, tpu.core_type = #tpu.core_type<tc>, window_params = [{transform_indices = @transform_0, window_bounds = array<i64: 1, 4, 322>}, {pipeline_mode = #tpu.pipeline_mode<synchronous>, transform_indices = @transform_1, window_bounds = array<i64: 9, 16, 4>}, {pipeline_mode = #tpu.pipeline_mode<synchronous>, transform_indices = @transform_2, window_bounds = array<i64: 16, 1>}, {pipeline_mode = #tpu.pipeline_mode<synchronous>, transform_indices = @transform_3, window_bounds = array<i64: 9, 1, 256>}, {transform_indices = @transform_4, window_bounds = array<i64: 1, 16, 256>}]} {
    %cst = arith.constant 0.000000e+00 : f32
    %0 = vector.broadcast %cst : f32 to vector<16x256xf32>
    %c0 = arith.constant 0 : index
    %c0_0 = arith.constant 0 : index
    %c0_1 = arith.constant 0 : index
    %1 = vector.load %arg1[%c0, %c0_0, %c0_1] : memref<1x4x322xf32, #tpu.memory_space<vmem>>, vector<1x4x256xf32>
    %2 = vector.shape_cast %1 : vector<1x4x256xf32> to vector<4x256xf32>
    %c0_2 = arith.constant 0 : index
    %c0_3 = arith.constant 0 : index
    %c0_4 = arith.constant 0 : index
    %3 = vector.load %arg4[%c0_2, %c0_3, %c0_4] : memref<9x1x256xf32, #tpu.memory_space<vmem>>, vector<1x1x256xf32>
    %4 = vector.shape_cast %3 : vector<1x1x256xf32> to vector<1x256xf32>
    %5 = vector.broadcast %4 : vector<1x256xf32> to vector<4x256xf32>
    %6 = arith.mulf %2, %5 : vector<4x256xf32>
    %c0_5 = arith.constant 0 : index
    %c0_6 = arith.constant 0 : index
    %c0_7 = arith.constant 0 : index
    %7 = vector.load %arg2[%c0_5, %c0_6, %c0_7] : memref<9x16x4xf32, #tpu.memory_space<vmem>>, vector<1x16x4xf32>
    %8 = vector.shape_cast %7 : vector<1x16x4xf32> to vector<16x4xf32>
    %9 = arith.truncf %8 : vector<16x4xf32> to vector<16x4xbf16>
    %10 = arith.truncf %6 : vector<4x256xf32> to vector<4x256xbf16>
    %cst_8 = arith.constant dense<0.000000e+00> : vector<16x256xf32>
    %11 = tpu.matmul %9, %10, %cst_8 {dimension_numbers = #tpu.dot_dimension_numbers<[1], [0], [0], [1], [0, 0, 1, 1], [], []>} : vector<16x4xbf16>, vector<4x256xbf16>, vector<16x256xf32> -> vector<16x256xf32>
    %12 = arith.addf %0, %11 : vector<16x256xf32>
    %c0_9 = arith.constant 0 : index
    %c0_10 = arith.constant 0 : index
    %c1 = arith.constant 1 : index
    %13 = vector.load %arg1[%c0_9, %c0_10, %c1] : memref<1x4x322xf32, #tpu.memory_space<vmem>>, vector<1x4x256xf32>
    %14 = vector.shape_cast %13 : vector<1x4x256xf32> to vector<4x256xf32>
    %c1_11 = arith.constant 1 : index
    %c0_12 = arith.constant 0 : index
    %c0_13 = arith.constant 0 : index
    %15 = vector.load %arg4[%c1_11, %c0_12, %c0_13] : memref<9x1x256xf32, #tpu.memory_space<vmem>>, vector<1x1x256xf32>
    %16 = vector.shape_cast %15 : vector<1x1x256xf32> to vector<1x256xf32>
    %17 = vector.broadcast %16 : vector<1x256xf32> to vector<4x256xf32>
    %18 = arith.mulf %14, %17 : vector<4x256xf32>
    %c1_14 = arith.constant 1 : index
    %c0_15 = arith.constant 0 : index
    %c0_16 = arith.constant 0 : index
    %19 = vector.load %arg2[%c1_14, %c0_15, %c0_16] : memref<9x16x4xf32, #tpu.memory_space<vmem>>, vector<1x16x4xf32>
    %20 = vector.shape_cast %19 : vector<1x16x4xf32> to vector<16x4xf32>
    %21 = arith.truncf %20 : vector<16x4xf32> to vector<16x4xbf16>
    %22 = arith.truncf %18 : vector<4x256xf32> to vector<4x256xbf16>
    %cst_17 = arith.constant dense<0.000000e+00> : vector<16x256xf32>
    %23 = tpu.matmul %21, %22, %cst_17 {dimension_numbers = #tpu.dot_dimension_numbers<[1], [0], [0], [1], [0, 0, 1, 1], [], []>} : vector<16x4xbf16>, vector<4x256xbf16>, vector<16x256xf32> -> vector<16x256xf32>
    %24 = arith.addf %12, %23 : vector<16x256xf32>
    %c0_18 = arith.constant 0 : index
    %c0_19 = arith.constant 0 : index
    %c2 = arith.constant 2 : index
    %25 = vector.load %arg1[%c0_18, %c0_19, %c2] : memref<1x4x322xf32, #tpu.memory_space<vmem>>, vector<1x4x256xf32>
    %26 = vector.shape_cast %25 : vector<1x4x256xf32> to vector<4x256xf32>
    %c2_20 = arith.constant 2 : index
    %c0_21 = arith.constant 0 : index
    %c0_22 = arith.constant 0 : index
    %27 = vector.load %arg4[%c2_20, %c0_21, %c0_22] : memref<9x1x256xf32, #tpu.memory_space<vmem>>, vector<1x1x256xf32>
    %28 = vector.shape_cast %27 : vector<1x1x256xf32> to vector<1x256xf32>
    %29 = vector.broadcast %28 : vector<1x256xf32> to vector<4x256xf32>
    %30 = arith.mulf %26, %29 : vector<4x256xf32>
    %c2_23 = arith.constant 2 : index
    %c0_24 = arith.constant 0 : index
    %c0_25 = arith.constant 0 : index
    %31 = vector.load %arg2[%c2_23, %c0_24, %c0_25] : memref<9x16x4xf32, #tpu.memory_space<vmem>>, vector<1x16x4xf32>
    %32 = vector.shape_cast %31 : vector<1x16x4xf32> to vector<16x4xf32>
    %33 = arith.truncf %32 : vector<16x4xf32> to vector<16x4xbf16>
    %34 = arith.truncf %30 : vector<4x256xf32> to vector<4x256xbf16>
    %cst_26 = arith.constant dense<0.000000e+00> : vector<16x256xf32>
    %35 = tpu.matmul %33, %34, %cst_26 {dimension_numbers = #tpu.dot_dimension_numbers<[1], [0], [0], [1], [0, 0, 1, 1], [], []>} : vector<16x4xbf16>, vector<4x256xbf16>, vector<16x256xf32> -> vector<16x256xf32>
    %36 = arith.addf %24, %35 : vector<16x256xf32>
    %c0_27 = arith.constant 0 : index
    %c0_28 = arith.constant 0 : index
    %c32 = arith.constant 32 : index
    %37 = vector.load %arg1[%c0_27, %c0_28, %c32] : memref<1x4x322xf32, #tpu.memory_space<vmem>>, vector<1x4x256xf32>
    %38 = vector.shape_cast %37 : vector<1x4x256xf32> to vector<4x256xf32>
    %c3 = arith.constant 3 : index
    %c0_29 = arith.constant 0 : index
    %c0_30 = arith.constant 0 : index
    %39 = vector.load %arg4[%c3, %c0_29, %c0_30] : memref<9x1x256xf32, #tpu.memory_space<vmem>>, vector<1x1x256xf32>
    %40 = vector.shape_cast %39 : vector<1x1x256xf32> to vector<1x256xf32>
    %41 = vector.broadcast %40 : vector<1x256xf32> to vector<4x256xf32>
    %42 = arith.mulf %38, %41 : vector<4x256xf32>
    %c3_31 = arith.constant 3 : index
    %c0_32 = arith.constant 0 : index
    %c0_33 = arith.constant 0 : index
    %43 = vector.load %arg2[%c3_31, %c0_32, %c0_33] : memref<9x16x4xf32, #tpu.memory_space<vmem>>, vector<1x16x4xf32>
    %44 = vector.shape_cast %43 : vector<1x16x4xf32> to vector<16x4xf32>
    %45 = arith.truncf %44 : vector<16x4xf32> to vector<16x4xbf16>
    %46 = arith.truncf %42 : vector<4x256xf32> to vector<4x256xbf16>
    %cst_34 = arith.constant dense<0.000000e+00> : vector<16x256xf32>
    %47 = tpu.matmul %45, %46, %cst_34 {dimension_numbers = #tpu.dot_dimension_numbers<[1], [0], [0], [1], [0, 0, 1, 1], [], []>} : vector<16x4xbf16>, vector<4x256xbf16>, vector<16x256xf32> -> vector<16x256xf32>
    %48 = arith.addf %36, %47 : vector<16x256xf32>
    %c0_35 = arith.constant 0 : index
    %c0_36 = arith.constant 0 : index
    %c33 = arith.constant 33 : index
    %49 = vector.load %arg1[%c0_35, %c0_36, %c33] : memref<1x4x322xf32, #tpu.memory_space<vmem>>, vector<1x4x256xf32>
    %50 = vector.shape_cast %49 : vector<1x4x256xf32> to vector<4x256xf32>
    %c4 = arith.constant 4 : index
    %c0_37 = arith.constant 0 : index
    %c0_38 = arith.constant 0 : index
    %51 = vector.load %arg4[%c4, %c0_37, %c0_38] : memref<9x1x256xf32, #tpu.memory_space<vmem>>, vector<1x1x256xf32>
    %52 = vector.shape_cast %51 : vector<1x1x256xf32> to vector<1x256xf32>
    %53 = vector.broadcast %52 : vector<1x256xf32> to vector<4x256xf32>
    %54 = arith.mulf %50, %53 : vector<4x256xf32>
    %c4_39 = arith.constant 4 : index
    %c0_40 = arith.constant 0 : index
    %c0_41 = arith.constant 0 : index
    %55 = vector.load %arg2[%c4_39, %c0_40, %c0_41] : memref<9x16x4xf32, #tpu.memory_space<vmem>>, vector<1x16x4xf32>
    %56 = vector.shape_cast %55 : vector<1x16x4xf32> to vector<16x4xf32>
    %57 = arith.truncf %56 : vector<16x4xf32> to vector<16x4xbf16>
    %58 = arith.truncf %54 : vector<4x256xf32> to vector<4x256xbf16>
    %cst_42 = arith.constant dense<0.000000e+00> : vector<16x256xf32>
    %59 = tpu.matmul %57, %58, %cst_42 {dimension_numbers = #tpu.dot_dimension_numbers<[1], [0], [0], [1], [0, 0, 1, 1], [], []>} : vector<16x4xbf16>, vector<4x256xbf16>, vector<16x256xf32> -> vector<16x256xf32>
    %60 = arith.addf %48, %59 : vector<16x256xf32>
    %c0_43 = arith.constant 0 : index
    %c0_44 = arith.constant 0 : index
    %c34 = arith.constant 34 : index
    %61 = vector.load %arg1[%c0_43, %c0_44, %c34] : memref<1x4x322xf32, #tpu.memory_space<vmem>>, vector<1x4x256xf32>
    %62 = vector.shape_cast %61 : vector<1x4x256xf32> to vector<4x256xf32>
    %c5 = arith.constant 5 : index
    %c0_45 = arith.constant 0 : index
    %c0_46 = arith.constant 0 : index
    %63 = vector.load %arg4[%c5, %c0_45, %c0_46] : memref<9x1x256xf32, #tpu.memory_space<vmem>>, vector<1x1x256xf32>
    %64 = vector.shape_cast %63 : vector<1x1x256xf32> to vector<1x256xf32>
    %65 = vector.broadcast %64 : vector<1x256xf32> to vector<4x256xf32>
    %66 = arith.mulf %62, %65 : vector<4x256xf32>
    %c5_47 = arith.constant 5 : index
    %c0_48 = arith.constant 0 : index
    %c0_49 = arith.constant 0 : index
    %67 = vector.load %arg2[%c5_47, %c0_48, %c0_49] : memref<9x16x4xf32, #tpu.memory_space<vmem>>, vector<1x16x4xf32>
    %68 = vector.shape_cast %67 : vector<1x16x4xf32> to vector<16x4xf32>
    %69 = arith.truncf %68 : vector<16x4xf32> to vector<16x4xbf16>
    %70 = arith.truncf %66 : vector<4x256xf32> to vector<4x256xbf16>
    %cst_50 = arith.constant dense<0.000000e+00> : vector<16x256xf32>
    %71 = tpu.matmul %69, %70, %cst_50 {dimension_numbers = #tpu.dot_dimension_numbers<[1], [0], [0], [1], [0, 0, 1, 1], [], []>} : vector<16x4xbf16>, vector<4x256xbf16>, vector<16x256xf32> -> vector<16x256xf32>
    %72 = arith.addf %60, %71 : vector<16x256xf32>
    %c0_51 = arith.constant 0 : index
    %c0_52 = arith.constant 0 : index
    %c64 = arith.constant 64 : index
    %73 = vector.load %arg1[%c0_51, %c0_52, %c64] : memref<1x4x322xf32, #tpu.memory_space<vmem>>, vector<1x4x256xf32>
    %74 = vector.shape_cast %73 : vector<1x4x256xf32> to vector<4x256xf32>
    %c6 = arith.constant 6 : index
    %c0_53 = arith.constant 0 : index
    %c0_54 = arith.constant 0 : index
    %75 = vector.load %arg4[%c6, %c0_53, %c0_54] : memref<9x1x256xf32, #tpu.memory_space<vmem>>, vector<1x1x256xf32>
    %76 = vector.shape_cast %75 : vector<1x1x256xf32> to vector<1x256xf32>
    %77 = vector.broadcast %76 : vector<1x256xf32> to vector<4x256xf32>
    %78 = arith.mulf %74, %77 : vector<4x256xf32>
    %c6_55 = arith.constant 6 : index
    %c0_56 = arith.constant 0 : index
    %c0_57 = arith.constant 0 : index
    %79 = vector.load %arg2[%c6_55, %c0_56, %c0_57] : memref<9x16x4xf32, #tpu.memory_space<vmem>>, vector<1x16x4xf32>
    %80 = vector.shape_cast %79 : vector<1x16x4xf32> to vector<16x4xf32>
    %81 = arith.truncf %80 : vector<16x4xf32> to vector<16x4xbf16>
    %82 = arith.truncf %78 : vector<4x256xf32> to vector<4x256xbf16>
    %cst_58 = arith.constant dense<0.000000e+00> : vector<16x256xf32>
    %83 = tpu.matmul %81, %82, %cst_58 {dimension_numbers = #tpu.dot_dimension_numbers<[1], [0], [0], [1], [0, 0, 1, 1], [], []>} : vector<16x4xbf16>, vector<4x256xbf16>, vector<16x256xf32> -> vector<16x256xf32>
    %84 = arith.addf %72, %83 : vector<16x256xf32>
    %c0_59 = arith.constant 0 : index
    %c0_60 = arith.constant 0 : index
    %c65 = arith.constant 65 : index
    %85 = vector.load %arg1[%c0_59, %c0_60, %c65] : memref<1x4x322xf32, #tpu.memory_space<vmem>>, vector<1x4x256xf32>
    %86 = vector.shape_cast %85 : vector<1x4x256xf32> to vector<4x256xf32>
    %c7 = arith.constant 7 : index
    %c0_61 = arith.constant 0 : index
    %c0_62 = arith.constant 0 : index
    %87 = vector.load %arg4[%c7, %c0_61, %c0_62] : memref<9x1x256xf32, #tpu.memory_space<vmem>>, vector<1x1x256xf32>
    %88 = vector.shape_cast %87 : vector<1x1x256xf32> to vector<1x256xf32>
    %89 = vector.broadcast %88 : vector<1x256xf32> to vector<4x256xf32>
    %90 = arith.mulf %86, %89 : vector<4x256xf32>
    %c7_63 = arith.constant 7 : index
    %c0_64 = arith.constant 0 : index
    %c0_65 = arith.constant 0 : index
    %91 = vector.load %arg2[%c7_63, %c0_64, %c0_65] : memref<9x16x4xf32, #tpu.memory_space<vmem>>, vector<1x16x4xf32>
    %92 = vector.shape_cast %91 : vector<1x16x4xf32> to vector<16x4xf32>
    %93 = arith.truncf %92 : vector<16x4xf32> to vector<16x4xbf16>
    %94 = arith.truncf %90 : vector<4x256xf32> to vector<4x256xbf16>
    %cst_66 = arith.constant dense<0.000000e+00> : vector<16x256xf32>
    %95 = tpu.matmul %93, %94, %cst_66 {dimension_numbers = #tpu.dot_dimension_numbers<[1], [0], [0], [1], [0, 0, 1, 1], [], []>} : vector<16x4xbf16>, vector<4x256xbf16>, vector<16x256xf32> -> vector<16x256xf32>
    %96 = arith.addf %84, %95 : vector<16x256xf32>
    %c0_67 = arith.constant 0 : index
    %c0_68 = arith.constant 0 : index
    %c66 = arith.constant 66 : index
    %97 = vector.load %arg1[%c0_67, %c0_68, %c66] : memref<1x4x322xf32, #tpu.memory_space<vmem>>, vector<1x4x256xf32>
    %98 = vector.shape_cast %97 : vector<1x4x256xf32> to vector<4x256xf32>
    %c8 = arith.constant 8 : index
    %c0_69 = arith.constant 0 : index
    %c0_70 = arith.constant 0 : index
    %99 = vector.load %arg4[%c8, %c0_69, %c0_70] : memref<9x1x256xf32, #tpu.memory_space<vmem>>, vector<1x1x256xf32>
    %100 = vector.shape_cast %99 : vector<1x1x256xf32> to vector<1x256xf32>
    %101 = vector.broadcast %100 : vector<1x256xf32> to vector<4x256xf32>
    %102 = arith.mulf %98, %101 : vector<4x256xf32>
    %c8_71 = arith.constant 8 : index
    %c0_72 = arith.constant 0 : index
    %c0_73 = arith.constant 0 : index
    %103 = vector.load %arg2[%c8_71, %c0_72, %c0_73] : memref<9x16x4xf32, #tpu.memory_space<vmem>>, vector<1x16x4xf32>
    %104 = vector.shape_cast %103 : vector<1x16x4xf32> to vector<16x4xf32>
    %105 = arith.truncf %104 : vector<16x4xf32> to vector<16x4xbf16>
    %106 = arith.truncf %102 : vector<4x256xf32> to vector<4x256xbf16>
    %cst_74 = arith.constant dense<0.000000e+00> : vector<16x256xf32>
    %107 = tpu.matmul %105, %106, %cst_74 {dimension_numbers = #tpu.dot_dimension_numbers<[1], [0], [0], [1], [0, 0, 1, 1], [], []>} : vector<16x4xbf16>, vector<4x256xbf16>, vector<16x256xf32> -> vector<16x256xf32>
    %108 = arith.addf %96, %107 : vector<16x256xf32>
    %c0_75 = arith.constant 0 : index
    %c0_76 = arith.constant 0 : index
    %109 = vector.load %arg3[%c0_75, %c0_76] : memref<16x1xf32, #tpu.memory_space<vmem>>, vector<16x1xf32>
    %110 = vector.broadcast %109 : vector<16x1xf32> to vector<16x256xf32>
    %111 = arith.addf %108, %110 : vector<16x256xf32>
    %c0_77 = arith.constant 0 : index
    %c0_78 = arith.constant 0 : index
    %c0_79 = arith.constant 0 : index
    %112 = vector.load %arg5[%c0_77, %c0_78, %c0_79] : memref<1x16x256xf32, #tpu.memory_space<vmem>>, vector<1x16x256xf32>
    %113 = vector.shape_cast %112 : vector<1x16x256xf32> to vector<16x256xf32>
    %114 = vector.shape_cast %111 : vector<16x256xf32> to vector<1x16x256xf32>
    tpu.vector_store %arg5[%c0_77, %c0_78, %c0_79], %114 {strides = array<i32>} : memref<1x16x256xf32, #tpu.memory_space<vmem>>, vector<1x16x256xf32>,
    return
  }
  func.func @transform_0(%arg0: i32) -> (i32, i32, i32) {
    %c0_i32 = arith.constant 0 : i32
    %c0_i32_0 = arith.constant 0 : i32
    %c0_i32_1 = arith.constant 0 : i32
    return %arg0, %c0_i32, %c0_i32_0 : i32, i32, i32
  }
  func.func @transform_1(%arg0: i32) -> (i32, i32, i32) {
    %c0_i32 = arith.constant 0 : i32
    %c0_i32_0 = arith.constant 0 : i32
    %c0_i32_1 = arith.constant 0 : i32
    %c0_i32_2 = arith.constant 0 : i32
    return %c0_i32, %c0_i32_0, %c0_i32_1 : i32, i32, i32
  }
  func.func @transform_2(%arg0: i32) -> (i32, i32) {
    %c0_i32 = arith.constant 0 : i32
    %c0_i32_0 = arith.constant 0 : i32
    %c0_i32_1 = arith.constant 0 : i32
    return %c0_i32, %c0_i32_0 : i32, i32
  }
  func.func @transform_3(%arg0: i32) -> (i32, i32, i32) {
    %c0_i32 = arith.constant 0 : i32
    %c0_i32_0 = arith.constant 0 : i32
    %c0_i32_1 = arith.constant 0 : i32
    %c0_i32_2 = arith.constant 0 : i32
    return %c0_i32, %c0_i32_0, %c0_i32_1 : i32, i32, i32
  }
  func.func @transform_4(%arg0: i32) -> (i32, i32, i32) {
    %c0_i32 = arith.constant 0 : i32
    %c0_i32_0 = arith.constant 0 : i32
    %c0_i32_1 = arith.constant 0 : i32
    return %arg0, %c0_i32, %c0_i32_0 : i32, i32, i32
  }
}

module attributes {stable_mosaic.version = 11 : i64} {
  func.func @_conv_flat_kernel(%arg0: i32, %arg1: memref<1x16x322xf32, #tpu.memory_space<vmem>>, %arg2: memref<9x4x16xf32, #tpu.memory_space<vmem>>, %arg3: memref<4x1xf32, #tpu.memory_space<vmem>>, %arg4: memref<9x1x256xf32, #tpu.memory_space<vmem>>, %arg5: memref<1x4x256xf32, #tpu.memory_space<vmem>>, %arg6: memref<1x4x256xf32, #tpu.memory_space<vmem>>) attributes {dimension_semantics = [#tpu.dimension_semantics<parallel>], iteration_bounds = array<i64: 2>, scalar_prefetch = 0 : i64, scratch_operands = 0 : i64, tpu.core_type = #tpu.core_type<tc>, window_params = [{transform_indices = @transform_0, window_bounds = array<i64: 1, 16, 322>}, {pipeline_mode = #tpu.pipeline_mode<synchronous>, transform_indices = @transform_1, window_bounds = array<i64: 9, 4, 16>}, {pipeline_mode = #tpu.pipeline_mode<synchronous>, transform_indices = @transform_2, window_bounds = array<i64: 4, 1>}, {pipeline_mode = #tpu.pipeline_mode<synchronous>, transform_indices = @transform_3, window_bounds = array<i64: 9, 1, 256>}, {transform_indices = @transform_4, window_bounds = array<i64: 1, 4, 256>}, {transform_indices = @transform_5, window_bounds = array<i64: 1, 4, 256>}]} {
    %cst = arith.constant 0.000000e+00 : f32
    %0 = vector.broadcast %cst : f32 to vector<4x256xf32>
    %c0 = arith.constant 0 : index
    %c0_0 = arith.constant 0 : index
    %c0_1 = arith.constant 0 : index
    %1 = vector.load %arg1[%c0, %c0_0, %c0_1] : memref<1x16x322xf32, #tpu.memory_space<vmem>>, vector<1x16x256xf32>
    %2 = vector.shape_cast %1 : vector<1x16x256xf32> to vector<16x256xf32>
    %c0_2 = arith.constant 0 : index
    %c0_3 = arith.constant 0 : index
    %c0_4 = arith.constant 0 : index
    %3 = vector.load %arg4[%c0_2, %c0_3, %c0_4] : memref<9x1x256xf32, #tpu.memory_space<vmem>>, vector<1x1x256xf32>
    %4 = vector.shape_cast %3 : vector<1x1x256xf32> to vector<1x256xf32>
    %5 = vector.broadcast %4 : vector<1x256xf32> to vector<16x256xf32>
    %6 = arith.mulf %2, %5 : vector<16x256xf32>
    %c0_5 = arith.constant 0 : index
    %c0_6 = arith.constant 0 : index
    %c0_7 = arith.constant 0 : index
    %7 = vector.load %arg2[%c0_5, %c0_6, %c0_7] : memref<9x4x16xf32, #tpu.memory_space<vmem>>, vector<1x4x16xf32>
    %8 = vector.shape_cast %7 : vector<1x4x16xf32> to vector<4x16xf32>
    %9 = arith.truncf %8 : vector<4x16xf32> to vector<4x16xbf16>
    %10 = arith.truncf %6 : vector<16x256xf32> to vector<16x256xbf16>
    %cst_8 = arith.constant dense<0.000000e+00> : vector<4x256xf32>
    %11 = tpu.matmul %9, %10, %cst_8 {dimension_numbers = #tpu.dot_dimension_numbers<[1], [0], [0], [1], [0, 0, 1, 1], [], []>} : vector<4x16xbf16>, vector<16x256xbf16>, vector<4x256xf32> -> vector<4x256xf32>
    %12 = arith.addf %0, %11 : vector<4x256xf32>
    %c0_9 = arith.constant 0 : index
    %c0_10 = arith.constant 0 : index
    %c1 = arith.constant 1 : index
    %13 = vector.load %arg1[%c0_9, %c0_10, %c1] : memref<1x16x322xf32, #tpu.memory_space<vmem>>, vector<1x16x256xf32>
    %14 = vector.shape_cast %13 : vector<1x16x256xf32> to vector<16x256xf32>
    %c1_11 = arith.constant 1 : index
    %c0_12 = arith.constant 0 : index
    %c0_13 = arith.constant 0 : index
    %15 = vector.load %arg4[%c1_11, %c0_12, %c0_13] : memref<9x1x256xf32, #tpu.memory_space<vmem>>, vector<1x1x256xf32>
    %16 = vector.shape_cast %15 : vector<1x1x256xf32> to vector<1x256xf32>
    %17 = vector.broadcast %16 : vector<1x256xf32> to vector<16x256xf32>
    %18 = arith.mulf %14, %17 : vector<16x256xf32>
    %c1_14 = arith.constant 1 : index
    %c0_15 = arith.constant 0 : index
    %c0_16 = arith.constant 0 : index
    %19 = vector.load %arg2[%c1_14, %c0_15, %c0_16] : memref<9x4x16xf32, #tpu.memory_space<vmem>>, vector<1x4x16xf32>
    %20 = vector.shape_cast %19 : vector<1x4x16xf32> to vector<4x16xf32>
    %21 = arith.truncf %20 : vector<4x16xf32> to vector<4x16xbf16>
    %22 = arith.truncf %18 : vector<16x256xf32> to vector<16x256xbf16>
    %cst_17 = arith.constant dense<0.000000e+00> : vector<4x256xf32>
    %23 = tpu.matmul %21, %22, %cst_17 {dimension_numbers = #tpu.dot_dimension_numbers<[1], [0], [0], [1], [0, 0, 1, 1], [], []>} : vector<4x16xbf16>, vector<16x256xbf16>, vector<4x256xf32> -> vector<4x256xf32>
    %24 = arith.addf %12, %23 : vector<4x256xf32>
    %c0_18 = arith.constant 0 : index
    %c0_19 = arith.constant 0 : index
    %c2 = arith.constant 2 : index
    %25 = vector.load %arg1[%c0_18, %c0_19, %c2] : memref<1x16x322xf32, #tpu.memory_space<vmem>>, vector<1x16x256xf32>
    %26 = vector.shape_cast %25 : vector<1x16x256xf32> to vector<16x256xf32>
    %c2_20 = arith.constant 2 : index
    %c0_21 = arith.constant 0 : index
    %c0_22 = arith.constant 0 : index
    %27 = vector.load %arg4[%c2_20, %c0_21, %c0_22] : memref<9x1x256xf32, #tpu.memory_space<vmem>>, vector<1x1x256xf32>
    %28 = vector.shape_cast %27 : vector<1x1x256xf32> to vector<1x256xf32>
    %29 = vector.broadcast %28 : vector<1x256xf32> to vector<16x256xf32>
    %30 = arith.mulf %26, %29 : vector<16x256xf32>
    %c2_23 = arith.constant 2 : index
    %c0_24 = arith.constant 0 : index
    %c0_25 = arith.constant 0 : index
    %31 = vector.load %arg2[%c2_23, %c0_24, %c0_25] : memref<9x4x16xf32, #tpu.memory_space<vmem>>, vector<1x4x16xf32>
    %32 = vector.shape_cast %31 : vector<1x4x16xf32> to vector<4x16xf32>
    %33 = arith.truncf %32 : vector<4x16xf32> to vector<4x16xbf16>
    %34 = arith.truncf %30 : vector<16x256xf32> to vector<16x256xbf16>
    %cst_26 = arith.constant dense<0.000000e+00> : vector<4x256xf32>
    %35 = tpu.matmul %33, %34, %cst_26 {dimension_numbers = #tpu.dot_dimension_numbers<[1], [0], [0], [1], [0, 0, 1, 1], [], []>} : vector<4x16xbf16>, vector<16x256xbf16>, vector<4x256xf32> -> vector<4x256xf32>
    %36 = arith.addf %24, %35 : vector<4x256xf32>
    %c0_27 = arith.constant 0 : index
    %c0_28 = arith.constant 0 : index
    %c32 = arith.constant 32 : index
    %37 = vector.load %arg1[%c0_27, %c0_28, %c32] : memref<1x16x322xf32, #tpu.memory_space<vmem>>, vector<1x16x256xf32>
    %38 = vector.shape_cast %37 : vector<1x16x256xf32> to vector<16x256xf32>
    %c3 = arith.constant 3 : index
    %c0_29 = arith.constant 0 : index
    %c0_30 = arith.constant 0 : index
    %39 = vector.load %arg4[%c3, %c0_29, %c0_30] : memref<9x1x256xf32, #tpu.memory_space<vmem>>, vector<1x1x256xf32>
    %40 = vector.shape_cast %39 : vector<1x1x256xf32> to vector<1x256xf32>
    %41 = vector.broadcast %40 : vector<1x256xf32> to vector<16x256xf32>
    %42 = arith.mulf %38, %41 : vector<16x256xf32>
    %c3_31 = arith.constant 3 : index
    %c0_32 = arith.constant 0 : index
    %c0_33 = arith.constant 0 : index
    %43 = vector.load %arg2[%c3_31, %c0_32, %c0_33] : memref<9x4x16xf32, #tpu.memory_space<vmem>>, vector<1x4x16xf32>
    %44 = vector.shape_cast %43 : vector<1x4x16xf32> to vector<4x16xf32>
    %45 = arith.truncf %44 : vector<4x16xf32> to vector<4x16xbf16>
    %46 = arith.truncf %42 : vector<16x256xf32> to vector<16x256xbf16>
    %cst_34 = arith.constant dense<0.000000e+00> : vector<4x256xf32>
    %47 = tpu.matmul %45, %46, %cst_34 {dimension_numbers = #tpu.dot_dimension_numbers<[1], [0], [0], [1], [0, 0, 1, 1], [], []>} : vector<4x16xbf16>, vector<16x256xbf16>, vector<4x256xf32> -> vector<4x256xf32>
    %48 = arith.addf %36, %47 : vector<4x256xf32>
    %c0_35 = arith.constant 0 : index
    %c0_36 = arith.constant 0 : index
    %c33 = arith.constant 33 : index
    %49 = vector.load %arg1[%c0_35, %c0_36, %c33] : memref<1x16x322xf32, #tpu.memory_space<vmem>>, vector<1x16x256xf32>
    %50 = vector.shape_cast %49 : vector<1x16x256xf32> to vector<16x256xf32>
    %c4 = arith.constant 4 : index
    %c0_37 = arith.constant 0 : index
    %c0_38 = arith.constant 0 : index
    %51 = vector.load %arg4[%c4, %c0_37, %c0_38] : memref<9x1x256xf32, #tpu.memory_space<vmem>>, vector<1x1x256xf32>
    %52 = vector.shape_cast %51 : vector<1x1x256xf32> to vector<1x256xf32>
    %53 = vector.broadcast %52 : vector<1x256xf32> to vector<16x256xf32>
    %54 = arith.mulf %50, %53 : vector<16x256xf32>
    %c4_39 = arith.constant 4 : index
    %c0_40 = arith.constant 0 : index
    %c0_41 = arith.constant 0 : index
    %55 = vector.load %arg2[%c4_39, %c0_40, %c0_41] : memref<9x4x16xf32, #tpu.memory_space<vmem>>, vector<1x4x16xf32>
    %56 = vector.shape_cast %55 : vector<1x4x16xf32> to vector<4x16xf32>
    %57 = arith.truncf %56 : vector<4x16xf32> to vector<4x16xbf16>
    %58 = arith.truncf %54 : vector<16x256xf32> to vector<16x256xbf16>
    %cst_42 = arith.constant dense<0.000000e+00> : vector<4x256xf32>
    %59 = tpu.matmul %57, %58, %cst_42 {dimension_numbers = #tpu.dot_dimension_numbers<[1], [0], [0], [1], [0, 0, 1, 1], [], []>} : vector<4x16xbf16>, vector<16x256xbf16>, vector<4x256xf32> -> vector<4x256xf32>
    %60 = arith.addf %48, %59 : vector<4x256xf32>
    %c0_43 = arith.constant 0 : index
    %c0_44 = arith.constant 0 : index
    %c34 = arith.constant 34 : index
    %61 = vector.load %arg1[%c0_43, %c0_44, %c34] : memref<1x16x322xf32, #tpu.memory_space<vmem>>, vector<1x16x256xf32>
    %62 = vector.shape_cast %61 : vector<1x16x256xf32> to vector<16x256xf32>
    %c5 = arith.constant 5 : index
    %c0_45 = arith.constant 0 : index
    %c0_46 = arith.constant 0 : index
    %63 = vector.load %arg4[%c5, %c0_45, %c0_46] : memref<9x1x256xf32, #tpu.memory_space<vmem>>, vector<1x1x256xf32>
    %64 = vector.shape_cast %63 : vector<1x1x256xf32> to vector<1x256xf32>
    %65 = vector.broadcast %64 : vector<1x256xf32> to vector<16x256xf32>
    %66 = arith.mulf %62, %65 : vector<16x256xf32>
    %c5_47 = arith.constant 5 : index
    %c0_48 = arith.constant 0 : index
    %c0_49 = arith.constant 0 : index
    %67 = vector.load %arg2[%c5_47, %c0_48, %c0_49] : memref<9x4x16xf32, #tpu.memory_space<vmem>>, vector<1x4x16xf32>
    %68 = vector.shape_cast %67 : vector<1x4x16xf32> to vector<4x16xf32>
    %69 = arith.truncf %68 : vector<4x16xf32> to vector<4x16xbf16>
    %70 = arith.truncf %66 : vector<16x256xf32> to vector<16x256xbf16>
    %cst_50 = arith.constant dense<0.000000e+00> : vector<4x256xf32>
    %71 = tpu.matmul %69, %70, %cst_50 {dimension_numbers = #tpu.dot_dimension_numbers<[1], [0], [0], [1], [0, 0, 1, 1], [], []>} : vector<4x16xbf16>, vector<16x256xbf16>, vector<4x256xf32> -> vector<4x256xf32>
    %72 = arith.addf %60, %71 : vector<4x256xf32>
    %c0_51 = arith.constant 0 : index
    %c0_52 = arith.constant 0 : index
    %c64 = arith.constant 64 : index
    %73 = vector.load %arg1[%c0_51, %c0_52, %c64] : memref<1x16x322xf32, #tpu.memory_space<vmem>>, vector<1x16x256xf32>
    %74 = vector.shape_cast %73 : vector<1x16x256xf32> to vector<16x256xf32>
    %c6 = arith.constant 6 : index
    %c0_53 = arith.constant 0 : index
    %c0_54 = arith.constant 0 : index
    %75 = vector.load %arg4[%c6, %c0_53, %c0_54] : memref<9x1x256xf32, #tpu.memory_space<vmem>>, vector<1x1x256xf32>
    %76 = vector.shape_cast %75 : vector<1x1x256xf32> to vector<1x256xf32>
    %77 = vector.broadcast %76 : vector<1x256xf32> to vector<16x256xf32>
    %78 = arith.mulf %74, %77 : vector<16x256xf32>
    %c6_55 = arith.constant 6 : index
    %c0_56 = arith.constant 0 : index
    %c0_57 = arith.constant 0 : index
    %79 = vector.load %arg2[%c6_55, %c0_56, %c0_57] : memref<9x4x16xf32, #tpu.memory_space<vmem>>, vector<1x4x16xf32>
    %80 = vector.shape_cast %79 : vector<1x4x16xf32> to vector<4x16xf32>
    %81 = arith.truncf %80 : vector<4x16xf32> to vector<4x16xbf16>
    %82 = arith.truncf %78 : vector<16x256xf32> to vector<16x256xbf16>
    %cst_58 = arith.constant dense<0.000000e+00> : vector<4x256xf32>
    %83 = tpu.matmul %81, %82, %cst_58 {dimension_numbers = #tpu.dot_dimension_numbers<[1], [0], [0], [1], [0, 0, 1, 1], [], []>} : vector<4x16xbf16>, vector<16x256xbf16>, vector<4x256xf32> -> vector<4x256xf32>
    %84 = arith.addf %72, %83 : vector<4x256xf32>
    %c0_59 = arith.constant 0 : index
    %c0_60 = arith.constant 0 : index
    %c65 = arith.constant 65 : index
    %85 = vector.load %arg1[%c0_59, %c0_60, %c65] : memref<1x16x322xf32, #tpu.memory_space<vmem>>, vector<1x16x256xf32>
    %86 = vector.shape_cast %85 : vector<1x16x256xf32> to vector<16x256xf32>
    %c7 = arith.constant 7 : index
    %c0_61 = arith.constant 0 : index
    %c0_62 = arith.constant 0 : index
    %87 = vector.load %arg4[%c7, %c0_61, %c0_62] : memref<9x1x256xf32, #tpu.memory_space<vmem>>, vector<1x1x256xf32>
    %88 = vector.shape_cast %87 : vector<1x1x256xf32> to vector<1x256xf32>
    %89 = vector.broadcast %88 : vector<1x256xf32> to vector<16x256xf32>
    %90 = arith.mulf %86, %89 : vector<16x256xf32>
    %c7_63 = arith.constant 7 : index
    %c0_64 = arith.constant 0 : index
    %c0_65 = arith.constant 0 : index
    %91 = vector.load %arg2[%c7_63, %c0_64, %c0_65] : memref<9x4x16xf32, #tpu.memory_space<vmem>>, vector<1x4x16xf32>
    %92 = vector.shape_cast %91 : vector<1x4x16xf32> to vector<4x16xf32>
    %93 = arith.truncf %92 : vector<4x16xf32> to vector<4x16xbf16>
    %94 = arith.truncf %90 : vector<16x256xf32> to vector<16x256xbf16>
    %cst_66 = arith.constant dense<0.000000e+00> : vector<4x256xf32>
    %95 = tpu.matmul %93, %94, %cst_66 {dimension_numbers = #tpu.dot_dimension_numbers<[1], [0], [0], [1], [0, 0, 1, 1], [], []>} : vector<4x16xbf16>, vector<16x256xbf16>, vector<4x256xf32> -> vector<4x256xf32>
    %96 = arith.addf %84, %95 : vector<4x256xf32>
    %c0_67 = arith.constant 0 : index
    %c0_68 = arith.constant 0 : index
    %c66 = arith.constant 66 : index
    %97 = vector.load %arg1[%c0_67, %c0_68, %c66] : memref<1x16x322xf32, #tpu.memory_space<vmem>>, vector<1x16x256xf32>
    %98 = vector.shape_cast %97 : vector<1x16x256xf32> to vector<16x256xf32>
    %c8 = arith.constant 8 : index
    %c0_69 = arith.constant 0 : index
    %c0_70 = arith.constant 0 : index
    %99 = vector.load %arg4[%c8, %c0_69, %c0_70] : memref<9x1x256xf32, #tpu.memory_space<vmem>>, vector<1x1x256xf32>
    %100 = vector.shape_cast %99 : vector<1x1x256xf32> to vector<1x256xf32>
    %101 = vector.broadcast %100 : vector<1x256xf32> to vector<16x256xf32>
    %102 = arith.mulf %98, %101 : vector<16x256xf32>
    %c8_71 = arith.constant 8 : index
    %c0_72 = arith.constant 0 : index
    %c0_73 = arith.constant 0 : index
    %103 = vector.load %arg2[%c8_71, %c0_72, %c0_73] : memref<9x4x16xf32, #tpu.memory_space<vmem>>, vector<1x4x16xf32>
    %104 = vector.shape_cast %103 : vector<1x4x16xf32> to vector<4x16xf32>
    %105 = arith.truncf %104 : vector<4x16xf32> to vector<4x16xbf16>
    %106 = arith.truncf %102 : vector<16x256xf32> to vector<16x256xbf16>
    %cst_74 = arith.constant dense<0.000000e+00> : vector<4x256xf32>
    %107 = tpu.matmul %105, %106, %cst_74 {dimension_numbers = #tpu.dot_dimension_numbers<[1], [0], [0], [1], [0, 0, 1, 1], [], []>} : vector<4x16xbf16>, vector<16x256xbf16>, vector<4x256xf32> -> vector<4x256xf32>
    %108 = arith.addf %96, %107 : vector<4x256xf32>
    %c0_75 = arith.constant 0 : index
    %c0_76 = arith.constant 0 : index
    %109 = vector.load %arg3[%c0_75, %c0_76] : memref<4x1xf32, #tpu.memory_space<vmem>>, vector<4x1xf32>
    %110 = vector.broadcast %109 : vector<4x1xf32> to vector<4x256xf32>
    %111 = arith.addf %108, %110 : vector<4x256xf32>
    %c0_77 = arith.constant 0 : index
    %c0_78 = arith.constant 0 : index
    %c0_79 = arith.constant 0 : index
    %112 = vector.load %arg5[%c0_77, %c0_78, %c0_79] : memref<1x4x256xf32, #tpu.memory_space<vmem>>, vector<1x4x256xf32>
    %113 = vector.shape_cast %112 : vector<1x4x256xf32> to vector<4x256xf32>
    %114 = arith.addf %111, %113 : vector<4x256xf32>
    %c0_80 = arith.constant 0 : index
    %c0_81 = arith.constant 0 : index
    %c0_82 = arith.constant 0 : index
    %115 = vector.load %arg6[%c0_80, %c0_81, %c0_82] : memref<1x4x256xf32, #tpu.memory_space<vmem>>, vector<1x4x256xf32>
    %116 = vector.shape_cast %115 : vector<1x4x256xf32> to vector<4x256xf32>
    %117 = vector.shape_cast %114 : vector<4x256xf32> to vector<1x4x256xf32>
    tpu.vector_store %arg6[%c0_80, %c0_81, %c0_82], %117 {strides = array<i32>} : memref<1x4x256xf32, #tpu.memory_space<vmem>>, vector<1x4x256xf32>,
    return
  }
  func.func @transform_0(%arg0: i32) -> (i32, i32, i32) {
    %c0_i32 = arith.constant 0 : i32
    %c0_i32_0 = arith.constant 0 : i32
    %c0_i32_1 = arith.constant 0 : i32
    return %arg0, %c0_i32, %c0_i32_0 : i32, i32, i32
  }
  func.func @transform_1(%arg0: i32) -> (i32, i32, i32) {
    %c0_i32 = arith.constant 0 : i32
    %c0_i32_0 = arith.constant 0 : i32
    %c0_i32_1 = arith.constant 0 : i32
    %c0_i32_2 = arith.constant 0 : i32
    return %c0_i32, %c0_i32_0, %c0_i32_1 : i32, i32, i32
  }
  func.func @transform_2(%arg0: i32) -> (i32, i32) {
    %c0_i32 = arith.constant 0 : i32
    %c0_i32_0 = arith.constant 0 : i32
    %c0_i32_1 = arith.constant 0 : i32
    return %c0_i32, %c0_i32_0 : i32, i32
  }
  func.func @transform_3(%arg0: i32) -> (i32, i32, i32) {
    %c0_i32 = arith.constant 0 : i32
    %c0_i32_0 = arith.constant 0 : i32
    %c0_i32_1 = arith.constant 0 : i32
    %c0_i32_2 = arith.constant 0 : i32
    return %c0_i32, %c0_i32_0, %c0_i32_1 : i32, i32, i32
  }
  func.func @transform_4(%arg0: i32) -> (i32, i32, i32) {
    %c0_i32 = arith.constant 0 : i32
    %c0_i32_0 = arith.constant 0 : i32
    %c0_i32_1 = arith.constant 0 : i32
    return %arg0, %c0_i32, %c0_i32_0 : i32, i32, i32
  }
  func.func @transform_5(%arg0: i32) -> (i32, i32, i32) {
    %c0_i32 = arith.constant 0 : i32
    %c0_i32_0 = arith.constant 0 : i32
    %c0_i32_1 = arith.constant 0 : i32
    return %arg0, %c0_i32, %c0_i32_0 : i32, i32, i32
  }
}

</mosaic_0001>

<bundles_post_ra>
// kernel: decoder_forward.12
= control target key start
LH: loop header
LB: loop body
LE: loop exit
PB: predicated region body
PF: predicated region fallthrough
CT: control target
= control target key end

     0   :  { %s449_s12 = smov 0   ;;  %s501_s0 = inlined_call_operand.vmem [shape: f32[2,4,8,32], index: 0, kind: input, shape index: {}]   ;;  %s502_s1 = inlined_call_operand.vmem [shape: f32[4,32], index: 1, kind: input, shape index: {}]   ;;  %s503_s2 = inlined_call_operand.vmem [shape: f32[4,32], index: 2, kind: input, shape index: {}]   ;;  %s504_s3 = inlined_call_operand.vmem [shape: f32[2,4,8,32], index: 3, kind: output, shape index: {}]  }
   0x1 LB: > { %s388_s13 = sadd.s32 4294967295, %s426_s12   ;;  %p392_p0 = scmp.ge.s32.totalorder %s426_s12, 1  ;;  %s426_s12 = sphi %s449_s12, %s13_s12  }
   0x2   : > { %p137_p1 = scmp.lt.s32.totalorder %s426_s12, 3 }
   0x4   : > { %p138_p2 = pnand %p392_p0, %p137_p1 }
   0x5   : > { %p161_p3 = scmp.lt.s32.totalorder (!%p138_p2), %s388_s13, 1  ;;  %vm175_vm0 = vcmask (!%p138_p2), 261120   ;;  %v428_v28 = vmov (!%p138_p2), 1966171168   ;;  %v242_v30 = vlaneseq (!%p138_p2) }
   0x6   : > { %141 = sbr.rel (%p138_p2) target bundleno = 339 (0x153), region = 32  ;;  %v240_v29 = vunpack.c.l.s4 (!%p138_p2), %v428_v28  ;;  %v397_v40 = vld.sshfl [vmem:[%s502_s1] sm:$0x33 pattern:$0x75316420] (!%p138_p2) }
   0x7   : > { %v243_v34 = vshrl.u32 (!%p138_p2), %v242_v30, 7  ;;  %v398_v45 = vld.sshfl [vmem:[%s503_s2] sm:$0x33 pattern:$0x75316420] (!%p138_p2)  ;;  %v238_v49 = vcombine.high (!%p138_p2), %v397_v40, %v397_v40 }
   0x8   : > { %v241_v33 = vunpack.c.0.s8 (!%p138_p2), %v240_v29  ;;  %v264_v52 = vcombine.high (!%p138_p2), %v398_v45, %v398_v45 }
   0x9   : > { %v283_v48 = vsub.s32 (!%p138_p2), 0, %v243_v34 }
   0xa   : > { %v244_v41 = vsub.s32 (!%p138_p2), %v241_v33, %v243_v34 }
   0xc   : > { %v245_v47 = vrot.slane (!%p138_p2), %v397_v40, %v244_v41  ;;  %v271_v51 = vrot.slane (!%p138_p2), %v398_v45, %v244_v41  ;;  %v252_v54 = vrot.slane (!%p138_p2), %v238_v49, %v244_v41  ;;  %v278_v59 = vrot.slane (!%p138_p2), %v264_v52, %v244_v41 }
   0xd   : > { %s506_s13 = smov (!%p161_p3, %s388_s13), 1 }
   0xe   : > { %s401_s14 = sshll.u32 %s506_s13, 5  ;;  %v284_v53 = vrot.slane %v245_v47, %v283_v48  ;;  %v253_v56 = vcombine.high %v245_v47, %v245_v47  ;;  %v308_v57 = vrot.slane %v271_v51, %v283_v48  ;;  %v279_v60 = vcombine.high %v271_v51, %v271_v51 }
   0xf   : > { %s165_s17 = scalar_lea.vmem %s501_s0, %s401_s14  ;;  %v288_v62 = vrot.slane %v252_v54, %v283_v48  ;;  %v254_v63 = vcombine.high %v252_v54, %v252_v54  ;;  %s170_s24 = scalar_lea.vmem %s504_s3, %s401_s14 }
  0x10   : > { %v171_v0 = vld [vmem:[%s165_s17] sm:$0xff]  ;;  %v173_v1 = vld [vmem:[%s165_s17 + $0x10] sm:$0xff]  ;;  %v172_v2 = vld [vmem:[%s165_s17 + $0x8] sm:$0xff] }
  0x11   : > { %v176_v3 = vsel %vm175_vm0, %v171_v0, 0.0  ;;  %v182_v4 = vsel %vm175_vm0, %v173_v1, 0.0  ;;  %v174_v5 = vld [vmem:[%s165_s17 + $0x18] sm:$0xff]  ;;  %v179_v6 = vsel %vm175_vm0, %v172_v2, 0.0 }
  0x12   : > { %177 = vadd.xlane.f32.xlu0 %v176_v3  ;;  %183 = vadd.xlane.f32.xlu1 %v182_v4  ;;  %v185_v7 = vsel %vm175_vm0, %v174_v5, 0.0  ;;  %v312_v4 = vrot.slane %v278_v59, %v283_v48 }
  0x16   : > { %180 = vadd.xlane.f32.xlu0 %v179_v6  ;;  %186 = vadd.xlane.f32.xlu1 %v185_v7  ;;  %v280_v6 = vcombine.high %v278_v59, %v278_v59  ;;  %v316_v7 = vrot.slane %v279_v60, %v283_v48 }
  0x9f   : > { %v178_v8 = vpop.xlane.xlu0 %177  ;;  %v184_v9 = vpop.xlane.xlu1 %183 }
  0xa0   : > { %v189_v10 = vmul.f32 0.03125, %v178_v8  ;;  %v191_v11 = vmul.f32 0.03125, %v184_v9 }
  0xa2   : > { %v193_v12 = vsub.f32 %v171_v0, %v189_v10  ;;  %v469_v13 = vsub.f32 %v173_v1, %v191_v11  ;;  %v292_v1 = vrot.slane %v253_v56, %v283_v48  ;;  %v296_v10 = vrot.slane %v254_v63, %v283_v48 }
  0xa3   : > { %v181_v14 = vpop.xlane.xlu0 %180  ;;  %v187_v15 = vpop.xlane.xlu1 %186 }
  0xa4   : > { %v190_v16 = vmul.f32 0.03125, %v181_v14  ;;  %v192_v17 = vmul.f32 0.03125, %v187_v15  ;;  %v197_v18 = vmul.f32 %v193_v12, %v193_v12  ;;  %v199_v19 = vmul.f32 %v469_v13, %v469_v13 }
  0xa5   : > { %v320_v15 = vrot.slane %v280_v6, %v283_v48 }
  0xa6   : > { %v194_v20 = vsub.f32 %v172_v2, %v190_v16  ;;  %v473_v21 = vsub.f32 %v174_v5, %v192_v17  ;;  %v201_v22 = vsel %vm175_vm0, %v197_v18, 0.0  ;;  %v207_v23 = vsel %vm175_vm0, %v199_v19, 0.0 }
  0xa7   : > { %202 = vadd.xlane.f32.xlu0 %v201_v22 }
  0xa8   : > { %v198_v24 = vmul.f32 %v194_v20, %v194_v20  ;;  %v200_v25 = vmul.f32 %v473_v21, %v473_v21 }
  0xaa   : > { %v204_v26 = vsel %vm175_vm0, %v198_v24, 0.0  ;;  %v210_v27 = vsel %vm175_vm0, %v200_v25, 0.0 }
  0xab   : > { %208 = vadd.xlane.f32.xlu0 %v207_v23  ;;  %205 = vadd.xlane.f32.xlu1 %v204_v26 }
  0xaf   : > { %211 = vadd.xlane.f32.xlu1 %v210_v27 }
 0x134   : > { %v203_v31 = vpop.xlane.xlu0 %202 }
 0x135   : > { %v213_v32 = vmul.f32 0.03125, %v203_v31 }
 0x137   : > { %v217_v35 = vadd.f32 1e-05, %v213_v32 }
 0x138   : > { %v206_v36 = vpop.xlane.xlu1 %205  ;;  %v209_v37 = vpop.xlane.xlu0 %208 }
 0x139   : > { %412 = vrsqrt.f32 %v217_v35  ;;  %v214_v38 = vmul.f32 0.03125, %v206_v36  ;;  %v215_v39 = vmul.f32 0.03125, %v209_v37 }
 0x13b   : > { %v218_v42 = vadd.f32 1e-05, %v214_v38  ;;  %v219_v43 = vadd.f32 1e-05, %v215_v39 }
 0x13c   : > { %v212_v44 = vpop.xlane.xlu1 %211 }
 0x13d   : > { %414 = vrsqrt.f32 %v218_v42  ;;  %v216_v46 = vmul.f32 0.03125, %v212_v44 }
 0x13e   : > { %416 = vrsqrt.f32 %v219_v43 }
 0x13f   : > { %v220_v50 = vadd.f32 1e-05, %v216_v46 }
 0x141   : > { %418 = vrsqrt.f32 %v220_v50 }
 0x143   : > { %v413_v55 = vpop.eup %412 }
 0x144   : > { %v225_v58 = vmul.f32 %v413_v55, %v193_v12 }
 0x146   : > { %v301_v61 = vmul.f32 %v284_v53, %v225_v58 }
 0x147   : > { %v415_v0 = vpop.eup %414 }
 0x148   : > { %v417_v2 = vpop.eup %416  ;;  %v325_v3 = vadd.f32 %v308_v57, %v301_v61  ;;  %v226_v5 = vmul.f32 %v415_v0, %v194_v20 }
 0x149   : > { %v227_v8 = vmul.f32 %v417_v2, %v469_v13 }
 0x14a   : > { %329 = vst.msk [vmem:[%s170_s24] sm:$0xff] %vm175_vm0, %v325_v3  ;;  %v302_v9 = vmul.f32 %v288_v62, %v226_v5 }
 0x14b   : > { %v419_v11 = vpop.eup %418  ;;  %v303_v12 = vmul.f32 %v292_v1, %v227_v8 }
 0x14c   : > { %v326_v14 = vadd.f32 %v312_v4, %v302_v9  ;;  %v228_v16 = vmul.f32 %v419_v11, %v473_v21 }
 0x14d   : > { %v327_v17 = vadd.f32 %v316_v7, %v303_v12 }
 0x14e   : > { %330 = vst.msk [vmem:[%s170_s24 + $0x8] sm:$0xff] %vm175_vm0, %v326_v14  ;;  %v304_v18 = vmul.f32 %v296_v10, %v228_v16 }
 0x14f   : > { %331 = vst.msk [vmem:[%s170_s24 + $0x10] sm:$0xff] %vm175_vm0, %v327_v17 }
 0x150   : > { %v328_v19 = vadd.f32 %v320_v15, %v304_v18 }
 0x152   : > { %332 = vst.msk [vmem:[%s170_s24 + $0x18] sm:$0xff] %vm175_vm0, %v328_v19 }
 0x153 PF: > { %s13_s12 = sadd.s32 1, %s426_s12  }
 0x154   : > { %p10_p4 = scmp.ge.s32.totalorder %s13_s12, 4  }
 0x156   :  { %12 = sbr.rel (!%p10_p4) target bundleno = 1 (0x1), region = 62 }

// kernel: decoder_forward.13
= control target key start
LH: loop header
LB: loop body
LE: loop exit
PB: predicated region body
PF: predicated region fallthrough
CT: control target
= control target key end

     0   :  { %s535_s12 = smov 0   ;;  %s589_s0 = inlined_call_operand.vmem [shape: f32[2,4,320], index: 0, kind: input, shape index: {}]   ;;  %s590_s1 = inlined_call_operand.vmem [shape: f32[3,12,4], index: 1, kind: input, shape index: {}]   ;;  %s591_s2 = inlined_call_operand.vmem [shape: f32[12,1], index: 2, kind: input, shape index: {}]   ;;  %s592_s3 = inlined_call_operand.vmem [shape: f32[2,12,256], index: 3, kind: output, shape index: {}]  }
   0x1 LB: > { %s460_s13 = sadd.s32 4294967295, %s510_s12   ;;  %p464_p0 = scmp.ge.s32.totalorder %s510_s12, 1  ;;  %s510_s12 = sphi %s535_s12, %s13_s12  }
   0x2   : > { %p137_p1 = scmp.lt.s32.totalorder %s510_s12, 3 }
   0x4   : > { %p138_p2 = pnand %p464_p0, %p137_p1 }
   0x5   : > { %p161_p3 = scmp.lt.s32.totalorder (!%p138_p2), %s460_s13, 1  ;;  %v512_v0 = vmov (!%p138_p2), 0   ;;  %vm203_vm0 = vcmask (!%p138_p2), 1041408   ;;  %v173_v6 = vld [vmem:[%s590_s1] sm:$0xff] (!%p138_p2)  ;;  %v174_v7 = vld [vmem:[%s590_s1 + $0x8] sm:$0xf] (!%p138_p2) }
   0x6   : > { %141 = sbr.rel (%p138_p2) target bundleno = 368 (0x170), region = 32  ;;  %294 = vmatprep.mubr.bf16.mxu0 (!%p138_p2), %v512_v0  ;;  %242 = vmatprep.mubr.bf16.mxu1 (!%p138_p2), %v512_v0  ;;  %s513_s22 = smov (!%p138_p2), 96   ;;  %v175_v11 = vpack.c.bf16 (!%p138_p2), %v174_v7, %v173_v6  ;;  %vm199_vm1 = vcmask (!%p138_p2), 31744   ;;  %v385_v13 = vld [vmem:[%s591_s2] sm:$0xff] (!%p138_p2)  ;;  %v386_v14 = vld [vmem:[%s591_s2 + $0x8] sm:$0xf] (!%p138_p2) }
   0x7   : > { %501 = vset.pattern.permute.xlu0 (!%p138_p2), %v512_v0  ;;  %502 = vset.pattern.permute.xlu1 (!%p138_p2), %v512_v0  ;;  %s514_s23 = smov (!%p138_p2), 64   ;;  %vm196_vm2 = vcmask (!%p138_p2), 785408   ;;  %v468_v17 = vld [vmem:[%s590_s1 + $0x10] sm:$0xff] (!%p138_p2)  ;;  %v469_v18 = vld [vmem:[%s590_s1 + $0x18] sm:$0xf] (!%p138_p2)  ;;  %vm326_vm3 = vcmask (!%p138_p2), 523264  }
   0x8   : > { %v185_v24 = vpack.c.bf16 (!%p138_p2), %v469_v18, %v468_v17  ;;  %v474_v25 = vld [vmem:[%s590_s1 + $0x20] sm:$0xff] (!%p138_p2)  ;;  %v475_v26 = vld [vmem:[%s590_s1 + $0x28] sm:$0xf] (!%p138_p2) }
   0x9   : > { %v310_v32 = vpack.c.bf16 (!%p138_p2), %v475_v26, %v474_v25 }
   0xd   : > { %s594_s13 = smov (!%p161_p3, %s460_s13), 1 }
   0xe   : > { %s489_s14 = smul.u32 12, %s594_s13  ;;  %s480_s9 = sshll.u32 %s594_s13, 5 }
  0x10   : > { %s165_s17 = scalar_lea.vmem %s589_s0, %s489_s14  ;;  %s170_s14 = scalar_lea.vmem %s592_s3, %s480_s9 }
  0x11   : > { %v181_v1 = vld [vmem:[%s165_s17 + $0x8] sm:$0xf]  ;;  %v172_v2 = vld [vmem:[%s165_s17] sm:$0xff] }
  0x12   : > { %v186_v3 = vpack.c.bf16 %v181_v1, %v181_v1  ;;  %v179_v4 = vpack.c.bf16 %v172_v2, %v172_v2  ;;  %v177_v5 = vcombine.high %v172_v2, %v172_v2  ;;  %v306_v10 = vld [vmem:[%s165_s17 + $0x8] sm:$0xf] }
  0x13   : > { %v316_v12 = vpack.c.bf16 %v306_v10, %v306_v10 }
  0x14   : > { %194 = vrot.lane.b32.xlu1 %v186_v3, %s513_s22  ;;  %190 = vrot.lane.b32.xlu0 %v179_v4, %s513_s22  ;;  %v180_v8 = vpack.c.bf16 %v177_v5, %v177_v5  ;;  %v257_v9 = vsel %vm203_vm0, %v179_v4, 0 }
  0x16   : > { %472 = vmatprep.subr.msk.bf16.mxu0 %vm203_vm0, %v180_v8 }
  0x17   : > { %263 = vmatpush1.bf16.msra.mxu0 %v257_v9 }
  0x18   : > { %320 = vrot.lane.b32.xlu1 %v179_v4, %s514_s23  ;;  %192 = vrot.lane.b32.xlu0 %v180_v8, %s513_s22 }
  0x1a   : > { %473 = vmatmul.mubr.msk.bf16.vlgmr.msra.gmra.mrb[0].mxu0 %vm199_vm1, %v175_v11 }
  0x1b   : > { %370 = vmatprep.mubr.bf16.mxu0 %v512_v0 }
  0x1c   : > { %324 = vrot.lane.b32.xlu1 %v316_v12, %s514_s23  ;;  %322 = vrot.lane.b32.xlu0 %v180_v8, %s514_s23 }
  0x20   : > { %389 = vperm.xlu0 %501, %v385_v13   ;;  %394 = vperm.xlu1 %502, %v386_v14  }
  0x86   : > { %v195_v15 = vpop.permute.xlu1 %194  ;;  %v191_v16 = vpop.permute.xlu0 %190 }
  0x8a   : > { %v321_v19 = vpop.permute.xlu1 %320  ;;  %v193_v20 = vpop.permute.xlu0 %192 }
  0x8b   : > { %v198_v21 = vsel %vm196_vm2, %v193_v20, %v195_v15  ;;  %v197_v22 = vsel %vm196_vm2, %v191_v16, %v193_v20 }
  0x8c   : > { %470 = vmatprep.subr.msk.bf16.mxu1 %vm203_vm0, %v198_v21  ;;  %v205_v23 = vsel %vm203_vm0, %v197_v22, 0 }
  0x8d   : > { %211 = vmatpush1.bf16.msra.mxu1 %v205_v23 }
  0x8e   : > { %v325_v27 = vpop.permute.xlu1 %324  ;;  %v323_v28 = vpop.permute.xlu0 %322 }
  0x8f   : > { %v327_v29 = vsel %vm326_vm3, %v321_v19, %v323_v28  ;;  %v328_v30 = vsel %vm326_vm3, %v323_v28, %v325_v27 }
  0x90   : > { %v333_v31 = vsel %vm203_vm0, %v327_v29, 0  ;;  %476 = vmatprep.subr.msk.bf16.mxu0 %vm203_vm0, %v328_v30  ;;  %471 = vmatmul.mubr.msk.bf16.vlgmr.msra.gmra.mrb[0].mxu1 %vm199_vm1, %v185_v24 }
  0x91   : > { %339 = vmatpush1.bf16.msra.mxu0 %v333_v31 }
  0x94   : > { %477 = vmatmul.mubr.msk.bf16.vlgmr.msra.gmra.mrb[0].mxu0 %vm199_vm1, %v310_v32 }
  0x9f   : > { %v390_v38 = vpop.permute.xlu0 %389  ;;  %v395_v43 = vpop.permute.xlu1 %394 }
 0x163   : > { %v244_v33 = vpop.f32.mrb[0].mxu1 }
 0x164   : > { %v246_v34 = vpop.f32.mrb[1].mxu1 }
 0x165   : > { %v248_v35 = vpop.f32.mrb[2].mxu1 }
 0x166   : > { %v250_v36 = vpop.f32.mrb[3].mxu1 }
 0x167   : > { %v372_v37 = vpop.f32.mrb[0].mxu0 }
 0x168   : > { %v481_v39 = vadd.f32 %v372_v37, %v244_v33  ;;  %v374_v40 = vpop.f32.mrb[1].mxu0 }
 0x169   : > { %v482_v41 = vadd.f32 %v374_v40, %v246_v34  ;;  %v376_v42 = vpop.f32.mrb[2].mxu0 }
 0x16a   : > { %v397_v44 = vadd.f32 %v481_v39, %v390_v38  ;;  %v483_v45 = vadd.f32 %v376_v42, %v248_v35  ;;  %v378_v46 = vpop.f32.mrb[3].mxu0 }
 0x16b   : > { %v398_v47 = vadd.f32 %v482_v41, %v390_v38  ;;  %v484_v48 = vadd.f32 %v378_v46, %v250_v36 }
 0x16c   : > { %401 = vst [vmem:[%s170_s14] sm:$0xff] %v397_v44  ;;  %v399_v49 = vadd.f32 %v483_v45, %v395_v43 }
 0x16d   : > { %402 = vst [vmem:[%s170_s14 + $0x8] sm:$0xff] %v398_v47  ;;  %v400_v50 = vadd.f32 %v484_v48, %v395_v43 }
 0x16e   : > { %403 = vst [vmem:[%s170_s14 + $0x10] sm:$0xf] %v399_v49 }
 0x16f   : > { %404 = vst [vmem:[%s170_s14 + $0x18] sm:$0xf] %v400_v50 }
 0x170 PF: > { %s13_s12 = sadd.s32 1, %s510_s12  }
 0x171   : > { %p10_p4 = scmp.ge.s32.totalorder %s13_s12, 4  }
 0x173   :  { %12 = sbr.rel (!%p10_p4) target bundleno = 1 (0x1), region = 64 }

// kernel: decoder_forward.15
= control target key start
LH: loop header
LB: loop body
LE: loop exit
PB: predicated region body
PF: predicated region fallthrough
CT: control target
= control target key end

     0   :  { %s506_s12 = smov 0   ;;  %s548_s0 = inlined_call_operand.vmem [shape: f32[2,4,320], index: 0, kind: input, shape index: {}]   ;;  %s549_s1 = inlined_call_operand.vmem [shape: f32[3,4,4], index: 1, kind: input, shape index: {}]   ;;  %s550_s2 = inlined_call_operand.vmem [shape: f32[4,1], index: 2, kind: input, shape index: {}]   ;;  %s551_s3 = inlined_call_operand.vmem [shape: f32[2,4,256], index: 3, kind: output, shape index: {}]  }
   0x1 LB: > { %s442_s13 = sadd.s32 4294967295, %s481_s12   ;;  %p446_p0 = scmp.ge.s32.totalorder %s481_s12, 1  ;;  %s481_s12 = sphi %s506_s12, %s13_s12  }
   0x2   : > { %p137_p1 = scmp.lt.s32.totalorder %s481_s12, 3 }
   0x4   : > { %p138_p2 = pnand %p446_p0, %p137_p1 }
   0x5   : > { %p161_p3 = scmp.lt.s32.totalorder (!%p138_p2), %s442_s13, 1  ;;  %v483_v0 = vmov (!%p138_p2), 0   ;;  %vm201_vm0 = vcmask (!%p138_p2), 1041408   ;;  %v173_v6 = vld [vmem:[%s549_s1] sm:$0xf] (!%p138_p2)  ;;  %s484_s20 = smov (!%p138_p2), 96  }
   0x6   : > { %141 = sbr.rel (%p138_p2) target bundleno = 372 (0x174), region = 32  ;;  %240 = vmatprep.mubr.bf16.mxu0 (!%p138_p2), %v483_v0  ;;  %290 = vmatprep.mubr.bf16.mxu1 (!%p138_p2), %v483_v0  ;;  %v174_v10 = vpack.c.bf16 (!%p138_p2), %v173_v6, %v173_v6  ;;  %vm197_vm1 = vcmask (!%p138_p2), 31744   ;;  %s485_s21 = smov (!%p138_p2), 64   ;;  %v374_v12 = vld [vmem:[%s550_s2] sm:$0xf] (!%p138_p2)  ;;  %vm194_vm2 = vcmask (!%p138_p2), 785408  }
   0x7   : > { %473 = vset.pattern.permute.xlu0 (!%p138_p2), %v483_v0  ;;  %v450_v15 = vld [vmem:[%s549_s1 + $0x4] sm:$0xf] (!%p138_p2)  ;;  %vm319_vm3 = vcmask (!%p138_p2), 523264   ;;  %v455_v27 = vld [vmem:[%s549_s1 + $0x8] sm:$0xf] (!%p138_p2) }
   0x8   : > { %v183_v21 = vpack.c.bf16 (!%p138_p2), %v450_v15, %v450_v15  ;;  %v303_v28 = vpack.c.bf16 (!%p138_p2), %v455_v27, %v455_v27 }
   0xd   : > { %s553_s13 = smov (!%p161_p3, %s442_s13), 1 }
   0xe   : > { %s461_s14 = smul.u32 12, %s553_s13  ;;  %s460_s28 = sshll.u32 %s553_s13, 3 }
   0xf   : > { %s170_s4 = scalar_lea.vmem %s551_s3, %s460_s28 }
  0x10   : > { %s165_s17 = scalar_lea.vmem %s548_s0, %s461_s14 }
  0x11   : > { %v180_v1 = vld [vmem:[%s165_s17 + $0x8] sm:$0xf]  ;;  %v172_v2 = vld [vmem:[%s165_s17] sm:$0xff] }
  0x12   : > { %v184_v3 = vpack.c.bf16 %v180_v1, %v180_v1  ;;  %v178_v4 = vpack.c.bf16 %v172_v2, %v172_v2  ;;  %v176_v5 = vcombine.high %v172_v2, %v172_v2  ;;  %v300_v9 = vld [vmem:[%s165_s17 + $0x8] sm:$0xf] }
  0x13   : > { %v309_v11 = vpack.c.bf16 %v300_v9, %v300_v9 }
  0x14   : > { %192 = vrot.lane.b32.xlu1 %v184_v3, %s484_s20  ;;  %188 = vrot.lane.b32.xlu0 %v178_v4, %s484_s20  ;;  %v179_v7 = vpack.c.bf16 %v176_v5, %v176_v5  ;;  %v253_v8 = vsel %vm201_vm0, %v178_v4, 0 }
  0x16   : > { %453 = vmatprep.subr.msk.bf16.mxu1 %vm201_vm0, %v179_v7 }
  0x17   : > { %259 = vmatpush1.bf16.msra.mxu1 %v253_v8 }
  0x18   : > { %313 = vrot.lane.b32.xlu1 %v178_v4, %s485_s21  ;;  %190 = vrot.lane.b32.xlu0 %v179_v7, %s484_s20 }
  0x1a   : > { %454 = vmatmul.mubr.msk.bf16.vlgmr.msra.gmra.mrb[0].mxu1 %vm197_vm1, %v174_v10 }
  0x1c   : > { %317 = vrot.lane.b32.xlu1 %v309_v11, %s485_s21  ;;  %315 = vrot.lane.b32.xlu0 %v179_v7, %s485_s21 }
  0x20   : > { %377 = vperm.xlu0 %473, %v374_v12  }
  0x86   : > { %v193_v13 = vpop.permute.xlu1 %192  ;;  %v189_v14 = vpop.permute.xlu0 %188 }
  0x8a   : > { %v314_v16 = vpop.permute.xlu1 %313  ;;  %v191_v17 = vpop.permute.xlu0 %190 }
  0x8b   : > { %v196_v18 = vsel %vm194_vm2, %v191_v17, %v193_v13  ;;  %v195_v19 = vsel %vm194_vm2, %v189_v14, %v191_v17 }
  0x8c   : > { %451 = vmatprep.subr.msk.bf16.mxu0 %vm201_vm0, %v196_v18  ;;  %v203_v20 = vsel %vm201_vm0, %v195_v19, 0 }
  0x8d   : > { %209 = vmatpush1.bf16.msra.mxu0 %v203_v20 }
  0x8e   : > { %v318_v22 = vpop.permute.xlu1 %317  ;;  %v316_v23 = vpop.permute.xlu0 %315 }
  0x8f   : > { %v320_v24 = vsel %vm319_vm3, %v314_v16, %v316_v23  ;;  %v321_v25 = vsel %vm319_vm3, %v316_v23, %v318_v22 }
  0x90   : > { %v326_v26 = vsel %vm201_vm0, %v320_v24, 0  ;;  %452 = vmatmul.mubr.msk.bf16.vlgmr.msra.gmra.mrb[0].mxu0 %vm197_vm1, %v183_v21  ;;  %456 = vmatprep.subr.msk.bf16.mxu0 %vm201_vm0, %v321_v25 }
  0x91   : > { %332 = vmatpush1.bf16.msra.mxu0 %v326_v26  ;;  %363 = vmatprep.mubr.bf16.mxu0 %v483_v0 }
  0x98   : > { %457 = vmatmul.mubr.msk.bf16.vlgmr.msra.gmra.mrb[4].mxu0 %vm197_vm1, %v303_v28 }
  0x9f   : > { %v378_v40 = vpop.permute.xlu0 %377 }
  0xed   : > { %v292_v29 = vpop.f32.mrb[0].mxu1 }
  0xee   : > { %v294_v30 = vpop.f32.mrb[1].mxu1 }
  0xef   : > { %v296_v31 = vpop.f32.mrb[2].mxu1 }
  0xf0   : > { %v297_v32 = vpop.f32.mrb[3].mxu1 }
 0x163   : > { %v242_v33 = vpop.f32.mrb[0].mxu0 }
 0x164   : > { %v293_v34 = vadd.f32 %v292_v29, %v242_v33  ;;  %v244_v35 = vpop.f32.mrb[1].mxu0 }
 0x165   : > { %v295_v36 = vadd.f32 %v294_v30, %v244_v35  ;;  %v246_v37 = vpop.f32.mrb[2].mxu0 }
 0x166   : > { %v247_v38 = vpop.f32.mrb[3].mxu0 }
 0x16b   : > { %v365_v39 = vpop.f32.mrb[4].mxu0 }
 0x16c   : > { %v372_v41 = vadd.f32 %v365_v39, %v293_v34  ;;  %v367_v42 = vpop.f32.mrb[5].mxu0 }
 0x16d   : > { %v373_v43 = vadd.f32 %v367_v42, %v295_v36  ;;  %v369_v44 = vpop.f32.mrb[6].mxu0 }
 0x16e   : > { %v380_v45 = vadd.f32 %v378_v40, %v372_v41  ;;  %v370_v46 = vpop.f32.mrb[7].mxu0 }
 0x16f   : > { %v381_v47 = vadd.f32 %v378_v40, %v373_v43 }
 0x171   : > { %v384_v48 = vcombine.low %v380_v45, %v381_v47 }
 0x173   : > { %386 = vst [vmem:[%s170_s4] sm:$0xff] %v384_v48 }
 0x174 PF: > { %s13_s12 = sadd.s32 1, %s481_s12  }
 0x175   : > { %p10_p4 = scmp.ge.s32.totalorder %s13_s12, 4  }
 0x177   :  { %12 = sbr.rel (!%p10_p4) target bundleno = 1 (0x1), region = 64 }

// kernel: decoder_forward.18
= control target key start
LH: loop header
LB: loop body
LE: loop exit
PB: predicated region body
PF: predicated region fallthrough
CT: control target
= control target key end

     0   :  { %s503_s12 = smov 0   ;;  %s545_s0 = inlined_call_operand.vmem [shape: f32[2,4,320], index: 0, kind: input, shape index: {}]   ;;  %s546_s1 = inlined_call_operand.vmem [shape: f32[3,8,4], index: 1, kind: input, shape index: {}]   ;;  %s547_s2 = inlined_call_operand.vmem [shape: f32[8,1], index: 2, kind: input, shape index: {}]   ;;  %s548_s3 = inlined_call_operand.vmem [shape: f32[2,8,256], index: 3, kind: output, shape index: {}]  }
   0x1 LB: > { %s439_s13 = sadd.s32 4294967295, %s478_s12   ;;  %p443_p0 = scmp.ge.s32.totalorder %s478_s12, 1  ;;  %s478_s12 = sphi %s503_s12, %s13_s12  }
   0x2   : > { %p137_p1 = scmp.lt.s32.totalorder %s478_s12, 3 }
   0x4   : > { %p138_p2 = pnand %p443_p0, %p137_p1 }
   0x5   : > { %p161_p3 = scmp.lt.s32.totalorder (!%p138_p2), %s439_s13, 1  ;;  %v480_v0 = vmov (!%p138_p2), 0   ;;  %vm201_vm0 = vcmask (!%p138_p2), 1041408   ;;  %v173_v6 = vld [vmem:[%s546_s1] sm:$0xff] (!%p138_p2)  ;;  %s481_s20 = smov (!%p138_p2), 96   ;;  %vm197_vm1 = vcmask (!%p138_p2), 31744  }
   0x6   : > { %141 = sbr.rel (%p138_p2) target bundleno = 370 (0x172), region = 32  ;;  %240 = vmatprep.mubr.bf16.mxu0 (!%p138_p2), %v480_v0  ;;  %290 = vmatprep.mubr.bf16.mxu1 (!%p138_p2), %v480_v0  ;;  %v174_v10 = vpack.c.bf16 (!%p138_p2), %v173_v6, %v173_v6  ;;  %s482_s21 = smov (!%p138_p2), 64   ;;  %v374_v12 = vld [vmem:[%s547_s2] sm:$0xff] (!%p138_p2)  ;;  %vm194_vm2 = vcmask (!%p138_p2), 785408   ;;  %v447_v15 = vld [vmem:[%s546_s1 + $0x8] sm:$0xff] (!%p138_p2)  ;;  %vm319_vm3 = vcmask (!%p138_p2), 523264  }
   0x7   : > { %470 = vset.pattern.permute.xlu0 (!%p138_p2), %v480_v0  ;;  %v183_v21 = vpack.c.bf16 (!%p138_p2), %v447_v15, %v447_v15  ;;  %v452_v27 = vld [vmem:[%s546_s1 + $0x10] sm:$0xff] (!%p138_p2) }
   0x8   : > { %v303_v28 = vpack.c.bf16 (!%p138_p2), %v452_v27, %v452_v27 }
   0xd   : > { %s550_s13 = smov (!%p161_p3, %s439_s13), 1 }
   0xe   : > { %s458_s14 = smul.u32 12, %s550_s13  ;;  %s457_s28 = sshll.u32 %s550_s13, 4 }
   0xf   : > { %s170_s4 = scalar_lea.vmem %s548_s3, %s457_s28 }
  0x10   : > { %s165_s17 = scalar_lea.vmem %s545_s0, %s458_s14 }
  0x11   : > { %v180_v1 = vld [vmem:[%s165_s17 + $0x8] sm:$0xf]  ;;  %v172_v2 = vld [vmem:[%s165_s17] sm:$0xff] }
  0x12   : > { %v184_v3 = vpack.c.bf16 %v180_v1, %v180_v1  ;;  %v178_v4 = vpack.c.bf16 %v172_v2, %v172_v2  ;;  %v176_v5 = vcombine.high %v172_v2, %v172_v2  ;;  %v300_v9 = vld [vmem:[%s165_s17 + $0x8] sm:$0xf] }
  0x13   : > { %v309_v11 = vpack.c.bf16 %v300_v9, %v300_v9 }
  0x14   : > { %192 = vrot.lane.b32.xlu1 %v184_v3, %s481_s20  ;;  %188 = vrot.lane.b32.xlu0 %v178_v4, %s481_s20  ;;  %v179_v7 = vpack.c.bf16 %v176_v5, %v176_v5  ;;  %v253_v8 = vsel %vm201_vm0, %v178_v4, 0 }
  0x16   : > { %450 = vmatprep.subr.msk.bf16.mxu1 %vm201_vm0, %v179_v7 }
  0x17   : > { %259 = vmatpush1.bf16.msra.mxu1 %v253_v8 }
  0x18   : > { %313 = vrot.lane.b32.xlu1 %v178_v4, %s482_s21  ;;  %190 = vrot.lane.b32.xlu0 %v179_v7, %s481_s20 }
  0x1a   : > { %451 = vmatmul.mubr.msk.bf16.vlgmr.msra.gmra.mrb[0].mxu1 %vm197_vm1, %v174_v10 }
  0x1c   : > { %317 = vrot.lane.b32.xlu1 %v309_v11, %s482_s21  ;;  %315 = vrot.lane.b32.xlu0 %v179_v7, %s482_s21 }
  0x20   : > { %377 = vperm.xlu0 %470, %v374_v12  }
  0x86   : > { %v193_v13 = vpop.permute.xlu1 %192  ;;  %v189_v14 = vpop.permute.xlu0 %188 }
  0x8a   : > { %v314_v16 = vpop.permute.xlu1 %313  ;;  %v191_v17 = vpop.permute.xlu0 %190 }
  0x8b   : > { %v196_v18 = vsel %vm194_vm2, %v191_v17, %v193_v13  ;;  %v195_v19 = vsel %vm194_vm2, %v189_v14, %v191_v17 }
  0x8c   : > { %448 = vmatprep.subr.msk.bf16.mxu0 %vm201_vm0, %v196_v18  ;;  %v203_v20 = vsel %vm201_vm0, %v195_v19, 0 }
  0x8d   : > { %209 = vmatpush1.bf16.msra.mxu0 %v203_v20 }
  0x8e   : > { %v318_v22 = vpop.permute.xlu1 %317  ;;  %v316_v23 = vpop.permute.xlu0 %315 }
  0x8f   : > { %v320_v24 = vsel %vm319_vm3, %v314_v16, %v316_v23  ;;  %v321_v25 = vsel %vm319_vm3, %v316_v23, %v318_v22 }
  0x90   : > { %v326_v26 = vsel %vm201_vm0, %v320_v24, 0  ;;  %449 = vmatmul.mubr.msk.bf16.vlgmr.msra.gmra.mrb[0].mxu0 %vm197_vm1, %v183_v21  ;;  %453 = vmatprep.subr.msk.bf16.mxu0 %vm201_vm0, %v321_v25 }
  0x91   : > { %332 = vmatpush1.bf16.msra.mxu0 %v326_v26  ;;  %363 = vmatprep.mubr.bf16.mxu0 %v480_v0 }
  0x98   : > { %454 = vmatmul.mubr.msk.bf16.vlgmr.msra.gmra.mrb[4].mxu0 %vm197_vm1, %v303_v28 }
  0x9f   : > { %v378_v40 = vpop.permute.xlu0 %377 }
  0xed   : > { %v292_v29 = vpop.f32.mrb[0].mxu1 }
  0xee   : > { %v294_v30 = vpop.f32.mrb[1].mxu1 }
  0xef   : > { %v296_v31 = vpop.f32.mrb[2].mxu1 }
  0xf0   : > { %v297_v32 = vpop.f32.mrb[3].mxu1 }
 0x163   : > { %v242_v33 = vpop.f32.mrb[0].mxu0 }
 0x164   : > { %v293_v34 = vadd.f32 %v292_v29, %v242_v33  ;;  %v244_v35 = vpop.f32.mrb[1].mxu0 }
 0x165   : > { %v295_v36 = vadd.f32 %v294_v30, %v244_v35  ;;  %v246_v37 = vpop.f32.mrb[2].mxu0 }
 0x166   : > { %v247_v38 = vpop.f32.mrb[3].mxu0 }
 0x16b   : > { %v365_v39 = vpop.f32.mrb[4].mxu0 }
 0x16c   : > { %v372_v41 = vadd.f32 %v365_v39, %v293_v34  ;;  %v367_v42 = vpop.f32.mrb[5].mxu0 }
 0x16d   : > { %v373_v43 = vadd.f32 %v367_v42, %v295_v36  ;;  %v369_v44 = vpop.f32.mrb[6].mxu0 }
 0x16e   : > { %v380_v45 = vadd.f32 %v378_v40, %v372_v41  ;;  %v370_v46 = vpop.f32.mrb[7].mxu0 }
 0x16f   : > { %v381_v47 = vadd.f32 %v378_v40, %v373_v43 }
 0x170   : > { %382 = vst [vmem:[%s170_s4] sm:$0xff] %v380_v45 }
 0x171   : > { %383 = vst [vmem:[%s170_s4 + $0x8] sm:$0xff] %v381_v47 }
 0x172 PF: > { %s13_s12 = sadd.s32 1, %s478_s12  }
 0x173   : > { %p10_p4 = scmp.ge.s32.totalorder %s13_s12, 4  }
 0x175   :  { %12 = sbr.rel (!%p10_p4) target bundleno = 1 (0x1), region = 64 }

// kernel: decoder_forward.20
= control target key start
LH: loop header
LB: loop body
LE: loop exit
PB: predicated region body
PF: predicated region fallthrough
CT: control target
= control target key end

     0   :  { %s654_s18 = smov 0   ;;  %s702_s0 = inlined_call_operand.vmem [shape: f32[2,4,320], index: 0, kind: input, shape index: {}]   ;;  %s703_s1 = inlined_call_operand.vmem [shape: f32[3,4,4], index: 1, kind: input, shape index: {}]   ;;  %s704_s2 = inlined_call_operand.vmem [shape: f32[4,1], index: 2, kind: input, shape index: {}]   ;;  %s705_s3 = inlined_call_operand.vmem [shape: f32[2,4,256], index: 3, kind: input, shape index: {}]   ;;  %s706_s4 = inlined_call_operand.vmem [shape: f32[2,4,256], index: 4, kind: input, shape index: {}]   ;;  %s707_s5 = inlined_call_operand.vmem [shape: f32[2,4,256], index: 5, kind: output, shape index: {}]  }
   0x1 LB: > { %s572_s19 = sadd.s32 4294967295, %s619_s18   ;;  %p576_p0 = scmp.ge.s32.totalorder %s619_s18, 1  ;;  %s619_s18 = sphi %s654_s18, %s15_s18  }
   0x2   : > { %p207_p1 = scmp.lt.s32.totalorder %s619_s18, 3 }
   0x4   : > { %p208_p2 = pnand %p576_p0, %p207_p1 }
   0x5   : > { %p245_p3 = scmp.lt.s32.totalorder (!%p208_p2), %s572_s19, 1  ;;  %v621_v0 = vmov (!%p208_p2), 0   ;;  %vm295_vm0 = vcmask (!%p208_p2), 1041408   ;;  %v267_v6 = vld [vmem:[%s703_s1] sm:$0xf] (!%p208_p2)  ;;  %s622_s26 = smov (!%p208_p2), 96  }
   0x6   : > { %211 = sbr.rel (%p208_p2) target bundleno = 376 (0x178), region = 40  ;;  %334 = vmatprep.mubr.bf16.mxu0 (!%p208_p2), %v621_v0  ;;  %384 = vmatprep.mubr.bf16.mxu1 (!%p208_p2), %v621_v0  ;;  %v268_v10 = vpack.c.bf16 (!%p208_p2), %v267_v6, %v267_v6  ;;  %vm291_vm1 = vcmask (!%p208_p2), 31744   ;;  %s623_s27 = smov (!%p208_p2), 64   ;;  %v468_v12 = vld [vmem:[%s704_s2] sm:$0xf] (!%p208_p2)  ;;  %vm288_vm2 = vcmask (!%p208_p2), 785408  }
   0x7   : > { %609 = vset.pattern.permute.xlu0 (!%p208_p2), %v621_v0  ;;  %v584_v15 = vld [vmem:[%s703_s1 + $0x4] sm:$0xf] (!%p208_p2)  ;;  %vm413_vm3 = vcmask (!%p208_p2), 523264   ;;  %v589_v27 = vld [vmem:[%s703_s1 + $0x8] sm:$0xf] (!%p208_p2) }
   0x8   : > { %v277_v21 = vpack.c.bf16 (!%p208_p2), %v584_v15, %v584_v15  ;;  %v397_v28 = vpack.c.bf16 (!%p208_p2), %v589_v27, %v589_v27 }
   0xd   : > { %s709_s19 = smov (!%p245_p3, %s572_s19), 1 }
   0xe   : > { %s597_s20 = smul.u32 12, %s709_s19  ;;  %s594_s9 = sshll.u32 %s709_s19, 3 }
   0xf   : > { %s254_s12 = scalar_lea.vmem %s705_s3, %s594_s9  ;;  %s259_s15 = scalar_lea.vmem %s706_s4, %s594_s9 }
  0x10   : > { %s249_s23 = scalar_lea.vmem %s702_s0, %s597_s20  ;;  %v476_v39 = vld [vmem:[%s254_s12] sm:$0xff]  ;;  %s264_s19 = scalar_lea.vmem %s707_s5, %s594_s9 }
  0x11   : > { %v274_v1 = vld [vmem:[%s249_s23 + $0x8] sm:$0xf]  ;;  %v266_v2 = vld [vmem:[%s249_s23] sm:$0xff]  ;;  %v478_v47 = vcombine.high %v476_v39, %v476_v39 }
  0x12   : > { %v278_v3 = vpack.c.bf16 %v274_v1, %v274_v1  ;;  %v272_v4 = vpack.c.bf16 %v266_v2, %v266_v2  ;;  %v270_v5 = vcombine.high %v266_v2, %v266_v2  ;;  %v394_v9 = vld [vmem:[%s249_s23 + $0x8] sm:$0xf]  ;;  %v482_v44 = vld [vmem:[%s259_s15] sm:$0xff] }
  0x13   : > { %v403_v11 = vpack.c.bf16 %v394_v9, %v394_v9  ;;  %v484_v50 = vcombine.high %v482_v44, %v482_v44 }
  0x14   : > { %286 = vrot.lane.b32.xlu1 %v278_v3, %s622_s26  ;;  %282 = vrot.lane.b32.xlu0 %v272_v4, %s622_s26  ;;  %v273_v7 = vpack.c.bf16 %v270_v5, %v270_v5  ;;  %v347_v8 = vsel %vm295_vm0, %v272_v4, 0 }
  0x16   : > { %587 = vmatprep.subr.msk.bf16.mxu1 %vm295_vm0, %v273_v7 }
  0x17   : > { %353 = vmatpush1.bf16.msra.mxu1 %v347_v8 }
  0x18   : > { %407 = vrot.lane.b32.xlu1 %v272_v4, %s623_s27  ;;  %284 = vrot.lane.b32.xlu0 %v273_v7, %s622_s26 }
  0x1a   : > { %588 = vmatmul.mubr.msk.bf16.vlgmr.msra.gmra.mrb[0].mxu1 %vm291_vm1, %v268_v10 }
  0x1c   : > { %411 = vrot.lane.b32.xlu1 %v403_v11, %s623_s27  ;;  %409 = vrot.lane.b32.xlu0 %v273_v7, %s623_s27 }
  0x20   : > { %471 = vperm.xlu0 %609, %v468_v12  }
  0x86   : > { %v287_v13 = vpop.permute.xlu1 %286  ;;  %v283_v14 = vpop.permute.xlu0 %282 }
  0x8a   : > { %v408_v16 = vpop.permute.xlu1 %407  ;;  %v285_v17 = vpop.permute.xlu0 %284 }
  0x8b   : > { %v290_v18 = vsel %vm288_vm2, %v285_v17, %v287_v13  ;;  %v289_v19 = vsel %vm288_vm2, %v283_v14, %v285_v17 }
  0x8c   : > { %585 = vmatprep.subr.msk.bf16.mxu0 %vm295_vm0, %v290_v18  ;;  %v297_v20 = vsel %vm295_vm0, %v289_v19, 0 }
  0x8d   : > { %303 = vmatpush1.bf16.msra.mxu0 %v297_v20 }
  0x8e   : > { %v412_v22 = vpop.permute.xlu1 %411  ;;  %v410_v23 = vpop.permute.xlu0 %409 }
  0x8f   : > { %v414_v24 = vsel %vm413_vm3, %v408_v16, %v410_v23  ;;  %v415_v25 = vsel %vm413_vm3, %v410_v23, %v412_v22 }
  0x90   : > { %v420_v26 = vsel %vm295_vm0, %v414_v24, 0  ;;  %586 = vmatmul.mubr.msk.bf16.vlgmr.msra.gmra.mrb[0].mxu0 %vm291_vm1, %v277_v21  ;;  %590 = vmatprep.subr.msk.bf16.mxu0 %vm295_vm0, %v415_v25 }
  0x91   : > { %426 = vmatpush1.bf16.msra.mxu0 %v420_v26  ;;  %457 = vmatprep.mubr.bf16.mxu0 %v621_v0 }
  0x98   : > { %591 = vmatmul.mubr.msk.bf16.vlgmr.msra.gmra.mrb[4].mxu0 %vm291_vm1, %v397_v28 }
  0x9f   : > { %v472_v41 = vpop.permute.xlu0 %471 }
  0xed   : > { %v386_v29 = vpop.f32.mrb[0].mxu1 }
  0xee   : > { %v388_v30 = vpop.f32.mrb[1].mxu1 }
  0xef   : > { %v390_v31 = vpop.f32.mrb[2].mxu1 }
  0xf0   : > { %v391_v32 = vpop.f32.mrb[3].mxu1 }
 0x163   : > { %v336_v33 = vpop.f32.mrb[0].mxu0 }
 0x164   : > { %v387_v34 = vadd.f32 %v386_v29, %v336_v33  ;;  %v338_v35 = vpop.f32.mrb[1].mxu0 }
 0x165   : > { %v389_v36 = vadd.f32 %v388_v30, %v338_v35  ;;  %v340_v37 = vpop.f32.mrb[2].mxu0 }
 0x166   : > { %v341_v38 = vpop.f32.mrb[3].mxu0 }
 0x16b   : > { %v459_v40 = vpop.f32.mrb[4].mxu0 }
 0x16c   : > { %v466_v42 = vadd.f32 %v459_v40, %v387_v34  ;;  %v461_v43 = vpop.f32.mrb[5].mxu0 }
 0x16d   : > { %v467_v45 = vadd.f32 %v461_v43, %v389_v36  ;;  %v463_v46 = vpop.f32.mrb[6].mxu0 }
 0x16e   : > { %v474_v48 = vadd.f32 %v472_v41, %v466_v42  ;;  %v464_v49 = vpop.f32.mrb[7].mxu0 }
 0x16f   : > { %v475_v51 = vadd.f32 %v472_v41, %v467_v45 }
 0x170   : > { %v480_v52 = vadd.f32 %v476_v39, %v474_v48 }
 0x171   : > { %v481_v53 = vadd.f32 %v478_v47, %v475_v51 }
 0x172   : > { %v486_v54 = vadd.f32 %v482_v44, %v480_v52 }
 0x173   : > { %v487_v55 = vadd.f32 %v484_v50, %v481_v53 }
 0x175   : > { %v490_v56 = vcombine.low %v486_v54, %v487_v55 }
 0x177   : > { %492 = vst [vmem:[%s264_s19] sm:$0xff] %v490_v56 }
 0x178 PF: > { %s15_s18 = sadd.s32 1, %s619_s18  }
 0x179   : > { %p12_p4 = scmp.ge.s32.totalorder %s15_s18, 4  }
 0x17b   :  { %14 = sbr.rel (!%p12_p4) target bundleno = 1 (0x1), region = 78 }

// kernel: decoder_forward.14
= control target key start
LH: loop header
LB: loop body
LE: loop exit
PB: predicated region body
PF: predicated region fallthrough
CT: control target
= control target key end

     0   :  { %13 = vsyncpa [#allocation3], 0  ;;  %s6567_s0 = inlined_call_operand.vmem [shape: f32[2,12,8,32], index: 0, kind: input, shape index: {}, may-alias: {0,1,2}]   ;;  %s6568_s1 = inlined_call_operand.vmem [shape: f32[2,12,8,32], index: 1, kind: input, shape index: {}, may-alias: {0,1,2}]   ;;  %s6569_s2 = inlined_call_operand.vmem [shape: f32[2,12,8,32], index: 2, kind: input, shape index: {}, may-alias: {0,1,2}]   ;;  %s6570_s3 = inlined_call_operand.vmem [shape: f32[8,32], index: 3, kind: input, shape index: {}]   ;;  %s6571_s4 = inlined_call_operand.vmem [shape: f32[8,32], index: 4, kind: input, shape index: {}]   ;;  %s6572_s5 = inlined_call_operand.vmem [shape: f32[8,32], index: 5, kind: input, shape index: {}]   ;;  %s6573_s6 = inlined_call_operand.vmem [shape: f32[2,4,8,32], index: 6, kind: output, shape index: {0}]   ;;  %s6574_s7 = inlined_call_operand.hbm [shape: f32[2,4,8,8,8], index: 7, kind: output, shape index: {1}]  }
   0x1   :  { %15 = vsyncpa [#allocation3 + $0x1], 0  ;;  %s5498_s24 = smov 0   ;;  %s5500_s25 = smov 0  }
   0x2   :  { %s5502_s26 = smov 0   ;;  %s5504_s27 = smov 0  }
   0x3   :  { %s5506_s28 = smov 0   ;;  %s5508_s29 = smov 0  }
   0x4 LB: > { %s4523_s30 = sadd.s32 4294967295, %s5434_s29   ;;  %s4524_s8 = sadd.s32 4294967294, %s5434_s29   ;;  %s5434_s29 = sphi %s5508_s29, %s21_s29   ;;  %s5430_s28 = sphi %s5506_s28, %s6581_s28   ;;  %s5426_s27 = sphi %s5504_s27, %s6580_s27   ;;  %s5422_s26 = sphi %s5502_s26, %s6579_s26   ;;  %s5418_s25 = sphi %s5500_s25, %s6578_s25   ;;  %s5414_s24 = sphi %s5498_s24, %s6577_s24  }
   0x5   : > { %s33_s9 = sadd.s32 1, %s5430_s28  ;;  %s221_s10 = sadd.s32 1, %s5422_s26 }
   0x6   : > { %p35_p0 = scmp.ge.s32.totalorder %s33_s9, 2  ;;  %p231_p1 = scmp.ne.s32.totalorder %s5422_s26, %s5418_s25 }
   0x7   : > { %p232_p2 = scmp.eq.s32.totalorder %s4523_s30, 1  ;;  %p237_p3 = scmp.ne.s32.totalorder %s5418_s25, %s5414_s24 }
   0x8   : > { %s6583_s9 = smov (%p35_p0, %s33_s9), 0  ;;  %p238_p5 = scmp.eq.s32.totalorder %s4524_s8, 1 }
   0x9   : > { %p5538_p4 = por %p232_p2, %p231_p1  ;;  %s216_s12 = ssub.s32 %s5430_s28, %s6583_s9 }
   0xa   : > { %p4527_p6 = scmp.ge.s32.totalorder %s5434_s29, 1  ;;  %p219_p7 = scmp.eq.s32.totalorder %s216_s12, 0 }
   0xb   : > { %p5545_p8 = por %p238_p5, %p237_p3  ;;  %p308_p9 = scmp.lt.s32.totalorder %s5434_s29, 3 }
   0xc   : > { %s5551_s14 = scalar_select %p219_p7, %s5422_s26, %s221_s10  }
   0xd   : > { %p309_p10 = pnand %p4527_p6, %p308_p9 }
   0xe   : > { %p374_p11 = scmp.lt.s32.totalorder (!%p309_p10), %s5426_s27, 1  ;;  %s5436_s21 = smov (!%p309_p10), 1   ;;  %v5438_v2 = vmov (!%p309_p10), 0.0   ;;  %vm5441_vm0 = vmmov (!%p309_p10), 0   ;;  %vm458_vm1 = vcmask (!%p309_p10), 7168   ;;  %v5651_v13 = vld [vmem:[%s6570_s3] sm:$0xff] (!%p309_p10) }
   0xf   : > { %312 = sbr.rel (%p309_p10) target bundleno = 5228 (0x146c), region = 44  ;;  %s5437_s22 = smov (!%p309_p10), 97   ;;  %4765 = vmatprep.subr.bf16.mxu0 (!%p309_p10), %v5438_v2  ;;  %4771 = vmatprep.subr.bf16.mxu1 (!%p309_p10), %v5438_v2  ;;  %v5656_v14 = vld [vmem:[%s6571_s4] sm:$0xff] (!%p309_p10)  ;;  %vm495_vm2 = vcmask (!%p309_p10), 252928   ;;  %vm604_vm3 = vcmask (!%p309_p10), 31744   ;;  %vm793_vm4 = vcmask (!%p309_p10), 64512  }
  0x10   : > { %s5439_s23 = smov (!%p309_p10), 127   ;;  %s5440_s12 = smov (!%p309_p10), 31   ;;  %4767 = vmatprep.mubr.msk.bf16.mxu0 (!%p309_p10), %vm5441_vm0, %v5438_v2  ;;  %4773 = vmatprep.mubr.msk.bf16.mxu1 (!%p309_p10), %vm5441_vm0, %v5438_v2  ;;  %v5668_v23 = vld [vmem:[%s6572_s5] sm:$0xff] (!%p309_p10)  ;;  %vm853_vm5 = vcmask (!%p309_p10), 1043456   ;;  %vm1516_vm6 = vcmask (!%p309_p10), 64544   ;;  %vm1986_vm7 = vcmask (!%p309_p10), 97344  }
  0x11   : > { %s5442_s19 = smov (!%p309_p10), 124   ;;  %vm2456_vm8 = vcmask (!%p309_p10), 130144   ;;  %vm2926_vm9 = vcmask (!%p309_p10), 162944   ;;  %vm3396_vm10 = vcmask (!%p309_p10), 195744   ;;  %vm3866_vm11 = vcmask (!%p309_p10), 228544  }
  0x16   : > { %s5555_s15 = scalar_select %p374_p11, %s5426_s27, 1 }
  0x18   : > { %s5558_s16 = smul.u32 96, %s5555_s15 }
  0x1a   : > { %s4632_s17 = sadd.s32 32, %s5558_s16  ;;  %s381_s10 = scalar_lea.vmem %s6567_s0, %s5558_s16 }
  0x1b   : > { %s392_s20 = scalar_lea.vmem %s6568_s1, %s4632_s17  ;;  %v5584_v3 = vld [vmem:[%s381_s10 + $0x8] sm:$0xff]  ;;  %v5586_v4 = vld [vmem:[%s381_s10] sm:$0xff]  ;;  %v5628_v7 = vld [vmem:[%s381_s10 + $0x10] sm:$0xff]  ;;  %s5447_s17 = smov 104  }
  0x1c   : > { %v5564_v0 = vld [vmem:[%s392_s20] sm:$0xff]  ;;  %v509_v1 = vld [vmem:[%s392_s20 + $0x8] sm:$0xff]  ;;  %v5596_v5 = vld [vmem:[%s392_s20 + $0x18] sm:$0xff]  ;;  %v427_v48 = vmul.f32 %v5584_v3, %v5651_v13  ;;  %v426_v52 = vmul.f32 %v5586_v4, %v5651_v13 }
  0x1d   : > { %532 = vrot.lane.b32.xlu1 %v5564_v0, %s5436_s21  ;;  %520 = vrot.lane.b32.xlu0 %v5564_v0, %s5437_s22  ;;  %v5598_v6 = vld [vmem:[%s392_s20 + $0x10] sm:$0xff]  ;;  %v5630_v8 = vld [vmem:[%s381_s10 + $0x18] sm:$0xff]  ;;  %v512_v19 = vmul.f32 %v5564_v0, %v5651_v13  ;;  %v513_v21 = vmul.f32 %v509_v1, %v5651_v13  ;;  %s4634_s10 = sadd.s32 64, %s5558_s16  ;;  %s4635_s16 = sshll.u32 %s5555_s15, 5 }
  0x1e   : > { %s5777_s18 = scalar_lea.vmem %s6569_s2, %s4634_s10  ;;  %s5443_s15 = smov 120  }
  0x1f   : > { %s5445_s10 = smov 112   ;;  %s5451_s20 = smov 12  }
  0x21   : > { %534 = vrot.lane.b32.xlu1 %v509_v1, %s5436_s21  ;;  %522 = vrot.lane.b32.xlu0 %v509_v1, %s5437_s22 }
  0x25   : > { %558 = vrot.lane.b32.xlu1 %v509_v1, %s5439_s23  ;;  %556 = vrot.lane.b32.xlu0 %v5564_v0, %s5439_s23 }
  0x29   : > { %570 = vrot.lane.b32.xlu1 %v509_v1, %s5440_s12  ;;  %568 = vrot.lane.b32.xlu0 %v5564_v0, %s5440_s12  ;;  %v515_v0 = vmul.f32 %v5596_v5, %v5651_v13 }
  0x2d   : > { %436 = vrot.lane.b32.xlu1 %v5584_v3, %s5437_s22  ;;  %434 = vrot.lane.b32.xlu0 %v5586_v4, %s5437_s22 }
  0x31   : > { %448 = vrot.lane.b32.xlu1 %v5584_v3, %s5436_s21  ;;  %446 = vrot.lane.b32.xlu0 %v5586_v4, %s5436_s21 }
  0x35   : > { %526 = vrot.lane.b32.xlu1 %v5596_v5, %s5437_s22  ;;  %524 = vrot.lane.b32.xlu0 %v5598_v6, %s5437_s22 }
  0x39   : > { %538 = vrot.lane.b32.xlu1 %v5596_v5, %s5436_s21  ;;  %536 = vrot.lane.b32.xlu0 %v5598_v6, %s5436_s21 }
  0x3d   : > { %473 = vrot.lane.b32.xlu1 %v5584_v3, %s5439_s23  ;;  %471 = vrot.lane.b32.xlu0 %v5586_v4, %s5439_s23 }
  0x41   : > { %485 = vrot.lane.b32.xlu1 %v5584_v3, %s5440_s12  ;;  %483 = vrot.lane.b32.xlu0 %v5586_v4, %s5440_s12 }
  0x45   : > { %560 = vrot.lane.b32.xlu0 %v5598_v6, %s5439_s23  ;;  %562 = vrot.lane.b32.xlu1 %v5596_v5, %s5439_s23 }
  0x49   : > { %572 = vrot.lane.b32.xlu0 %v5598_v6, %s5440_s12  ;;  %574 = vrot.lane.b32.xlu1 %v5596_v5, %s5440_s12 }
  0x4d   : > { %438 = vrot.lane.b32.xlu0 %v5628_v7, %s5437_s22  ;;  %440 = vrot.lane.b32.xlu1 %v5630_v8, %s5437_s22  ;;  %s5857_s22 = scalar_lea.vmem %s6573_s6, %s4635_s16  ;;  %s5450_s16 = smov 8  }
  0x51   : > { %450 = vrot.lane.b32.xlu0 %v5628_v7, %s5436_s21  ;;  %452 = vrot.lane.b32.xlu1 %v5630_v8, %s5436_s21  ;;  %s5452_s21 = smov 16  }
  0x55   : > { %475 = vrot.lane.b32.xlu0 %v5628_v7, %s5439_s23  ;;  %477 = vrot.lane.b32.xlu1 %v5630_v8, %s5439_s23  ;;  %s370_s23 = sand.u32 1, %s5418_s25  }
  0x56   : > { %s4528_s30 = sshll.u32 %s370_s23, 8 }
  0x57   : > { %s5757_s8 = scalar_lea.vmem [#allocation2], %s4528_s30  ;;  %s5444_s30 = smov 116  }
  0x59   : > { %487 = vrot.lane.b32.xlu0 %v5628_v7, %s5440_s12  ;;  %489 = vrot.lane.b32.xlu1 %v5630_v8, %s5440_s12  ;;  %s5446_s12 = smov 108  }
  0x8f   : > { %v533_v9 = vpop.permute.xlu1 %532  ;;  %v521_v10 = vpop.permute.xlu0 %520 }
  0x90   : > { %v544_v15 = vsel %vm458_vm1, %v521_v10, %v533_v9 }
  0x91   : > { %v548_v20 = vmul.f32 %v544_v15, %v5656_v14 }
  0x93   : > { %v535_v11 = vpop.permute.xlu1 %534  ;;  %v523_v12 = vpop.permute.xlu0 %522  ;;  %v552_v28 = vadd.f32 %v548_v20, %v512_v19 }
  0x94   : > { %v545_v16 = vsel %vm458_vm1, %v523_v12, %v535_v11  ;;  %v514_v11 = vmul.f32 %v5598_v6, %v5651_v13 }
  0x95   : > { %v549_v22 = vmul.f32 %v545_v16, %v5656_v14 }
  0x97   : > { %v559_v17 = vpop.permute.xlu1 %558  ;;  %v557_v18 = vpop.permute.xlu0 %556  ;;  %v553_v29 = vadd.f32 %v549_v22, %v513_v21 }
  0x9b   : > { %v571_v24 = vpop.permute.xlu1 %570  ;;  %v569_v25 = vpop.permute.xlu0 %568 }
  0x9c   : > { %v581_v26 = vsel %vm495_vm2, %v559_v17, %v571_v24  ;;  %v580_v27 = vsel %vm495_vm2, %v557_v18, %v569_v25 }
  0x9d   : > { %v585_v30 = vmul.f32 %v581_v26, %v5668_v23  ;;  %v584_v31 = vmul.f32 %v580_v27, %v5668_v23 }
  0x9f   : > { %v589_v32 = vadd.f32 %v585_v30, %v553_v29  ;;  %v588_v33 = vadd.f32 %v584_v31, %v552_v28  ;;  %v437_v34 = vpop.permute.xlu1 %436  ;;  %v435_v35 = vpop.permute.xlu0 %434 }
  0xa1   : > { %v5674_v36 = vpack.c.bf16 %v589_v32, %v589_v32  ;;  %v5676_v37 = vpack.c.bf16 %v588_v33, %v588_v33 }
  0xa3   : > { %v449_v38 = vpop.permute.xlu1 %448  ;;  %v447_v39 = vpop.permute.xlu0 %446  ;;  %v609_v40 = vsel %vm604_vm3, %v5676_v37, 0  ;;  %v655_v41 = vsel %vm604_vm3, %v5674_v36, 0 }
  0xa4   : > { %4766 = vmatpush3.bf16.xpose.msra.mxu0 %v609_v40  ;;  %4772 = vmatpush3.bf16.xpose.msra.mxu1 %v655_v41  ;;  %v460_v46 = vsel %vm458_vm1, %v437_v34, %v449_v38  ;;  %v459_v47 = vsel %vm458_vm1, %v435_v35, %v447_v39  ;;  %v428_v38 = vmul.f32 %v5628_v7, %v5651_v13 }
  0xa5   : > { %4777 = vmatprep.subr.bf16.mxu0 %v5438_v2  ;;  %4783 = vmatprep.subr.bf16.mxu1 %v5438_v2  ;;  %v464_v49 = vmul.f32 %v460_v46, %v5656_v14  ;;  %v463_v53 = vmul.f32 %v459_v47, %v5656_v14  ;;  %v429_v40 = vmul.f32 %v5630_v8, %v5651_v13 }
  0xa7   : > { %v527_v42 = vpop.permute.xlu1 %526  ;;  %v525_v43 = vpop.permute.xlu0 %524  ;;  %v468_v54 = vadd.f32 %v464_v49, %v427_v48  ;;  %v467_v60 = vadd.f32 %v463_v53, %v426_v52 }
  0xab   : > { %v539_v44 = vpop.permute.xlu1 %538  ;;  %v537_v45 = vpop.permute.xlu0 %536 }
  0xac   : > { %v547_v57 = vsel %vm458_vm1, %v527_v42, %v539_v44  ;;  %v546_v63 = vsel %vm458_vm1, %v525_v43, %v537_v45 }
  0xad   : > { %v551_v1 = vmul.f32 %v547_v57, %v5656_v14  ;;  %v550_v12 = vmul.f32 %v546_v63, %v5656_v14 }
  0xaf   : > { %v474_v50 = vpop.permute.xlu1 %473  ;;  %v472_v51 = vpop.permute.xlu0 %471  ;;  %v555_v17 = vadd.f32 %v551_v1, %v515_v0  ;;  %v554_v6 = vadd.f32 %v550_v12, %v514_v11 }
  0xb3   : > { %v486_v55 = vpop.permute.xlu1 %485  ;;  %v484_v56 = vpop.permute.xlu0 %483 }
  0xb4   : > { %v497_v58 = vsel %vm495_vm2, %v474_v50, %v486_v55  ;;  %v496_v59 = vsel %vm495_vm2, %v472_v51, %v484_v56 }
  0xb5   : > { %v501_v61 = vmul.f32 %v497_v58, %v5668_v23  ;;  %v500_v62 = vmul.f32 %v496_v59, %v5668_v23 }
  0xb7   : > { %v505_v3 = vadd.f32 %v501_v61, %v468_v54  ;;  %v504_v4 = vadd.f32 %v500_v62, %v467_v60  ;;  %v561_v9 = vpop.permute.xlu0 %560  ;;  %v563_v10 = vpop.permute.xlu1 %562 }
  0xb9   : > { %v5704_v15 = vpack.c.bf16 %v505_v3, %v505_v3  ;;  %v5706_v16 = vpack.c.bf16 %v504_v4, %v504_v4 }
  0xbb   : > { %4774 = vmatmul.mubr.msk.bf16.vlgmr.msra.gmra.mrb[0].mxu1 %vm604_vm3, %v5704_v15  ;;  %v573_v5 = vpop.permute.xlu0 %572  ;;  %4768 = vmatmul.mubr.msk.bf16.vlgmr.msra.gmra.mrb[0].mxu0 %vm604_vm3, %v5706_v16  ;;  %v575_v18 = vpop.permute.xlu1 %574 }
  0xbc   : > { %v582_v19 = vsel %vm495_vm2, %v561_v9, %v573_v5  ;;  %v583_v20 = vsel %vm495_vm2, %v563_v10, %v575_v18  ;;  %4779 = vmatprep.mubr.msk.bf16.mxu0 %vm5441_vm0, %v5438_v2  ;;  %4785 = vmatprep.mubr.msk.bf16.mxu1 %vm5441_vm0, %v5438_v2 }
  0xbd   : > { %v586_v21 = vmul.f32 %v582_v19, %v5668_v23  ;;  %v587_v22 = vmul.f32 %v583_v20, %v5668_v23 }
  0xbf   : > { %v590_v24 = vadd.f32 %v586_v21, %v554_v6  ;;  %v591_v25 = vadd.f32 %v587_v22, %v555_v17  ;;  %v439_v26 = vpop.permute.xlu0 %438  ;;  %v441_v27 = vpop.permute.xlu1 %440 }
  0xc1   : > { %v5720_v28 = vpack.c.bf16 %v590_v24, %v590_v24  ;;  %v5722_v29 = vpack.c.bf16 %v591_v25, %v591_v25 }
  0xc3   : > { %v451_v30 = vpop.permute.xlu0 %450  ;;  %v701_v31 = vsel %vm604_vm3, %v5720_v28, 0  ;;  %v453_v32 = vpop.permute.xlu1 %452  ;;  %v747_v33 = vsel %vm604_vm3, %v5722_v29, 0 }
  0xc4   : > { %v461_v34 = vsel %vm458_vm1, %v439_v26, %v451_v30  ;;  %4778 = vmatpush3.bf16.xpose.msra.mxu0 %v701_v31  ;;  %v462_v35 = vsel %vm458_vm1, %v441_v27, %v453_v32  ;;  %4784 = vmatpush3.bf16.xpose.msra.mxu1 %v747_v33 }
  0xc5   : > { %4789 = vmatprep.subr.bf16.mxu0 %v5438_v2  ;;  %4795 = vmatprep.subr.bf16.mxu1 %v5438_v2  ;;  %v465_v39 = vmul.f32 %v461_v34, %v5656_v14  ;;  %v466_v41 = vmul.f32 %v462_v35, %v5656_v14  ;;  %v592_v34 = vld [vmem:[%s5777_s18] sm:$0xff]  ;;  %v593_v35 = vld [vmem:[%s5777_s18 + $0x8] sm:$0xff] }
  0xc7   : > { %v476_v42 = vpop.permute.xlu0 %475  ;;  %v478_v43 = vpop.permute.xlu1 %477  ;;  %v469_v44 = vadd.f32 %v465_v39, %v428_v38  ;;  %v470_v45 = vadd.f32 %v466_v41, %v429_v40  ;;  %v5781_v39 = vpack.c.bf16 %v592_v34, %v592_v34  ;;  %v5783_v40 = vpack.c.bf16 %v593_v35, %v593_v35 }
  0xc9   : > { %v855_v41 = vsel %vm853_vm5, %v5781_v39, 0 }
  0xcb   : > { %v488_v46 = vpop.permute.xlu0 %487  ;;  %v490_v47 = vpop.permute.xlu1 %489 }
  0xcc   : > { %v498_v48 = vsel %vm495_vm2, %v476_v42, %v488_v46  ;;  %v499_v49 = vsel %vm495_vm2, %v478_v43, %v490_v47  ;;  %v901_v42 = vsel %vm853_vm5, %v5783_v40, 0 }
  0xcd   : > { %v502_v7 = vmul.f32 %v498_v48, %v5668_v23  ;;  %v503_v50 = vmul.f32 %v499_v49, %v5668_v23 }
  0xcf   : > { %v506_v51 = vadd.f32 %v502_v7, %v469_v44  ;;  %v507_v8 = vadd.f32 %v503_v50, %v470_v45  ;;  %v595_v50 = vld [vmem:[%s5777_s18 + $0x18] sm:$0xff] }
  0xd1   : > { %v5742_v13 = vpack.c.bf16 %v506_v51, %v506_v51  ;;  %v5744_v14 = vpack.c.bf16 %v507_v8, %v507_v8  ;;  %v594_v51 = vld [vmem:[%s5777_s18 + $0x10] sm:$0xff]  ;;  %v5811_v8 = vpack.c.bf16 %v595_v50, %v595_v50  ;;  %s5448_s18 = smov 100  }
  0xd3   : > { %4780 = vmatmul.mubr.msk.bf16.vlgmr.msra.gmra.mrb[4].mxu0 %vm604_vm3, %v5742_v13  ;;  %4786 = vmatmul.mubr.msk.bf16.vlgmr.msra.gmra.mrb[4].mxu1 %vm604_vm3, %v5744_v14 }
  0xd4   : > { %4791 = vmatprep.mubr.msk.bf16.mxu0 %vm5441_vm0, %v5438_v2  ;;  %4797 = vmatprep.mubr.msk.bf16.mxu1 %vm5441_vm0, %v5438_v2 }
  0xd5   : > { %4790 = vmatpush3.bf16.msra.mxu0 %v855_v41  ;;  %4796 = vmatpush3.bf16.msra.mxu1 %v901_v42 }
  0xd6   : > { %4807 = vmatprep.subr.bf16.mxu1 %v5438_v2  ;;  %4801 = vmatprep.subr.bf16.mxu0 %v5438_v2 }
 0x18e   : > { %v645_v23 = vpop.f32.mrb[0].mxu0  ;;  %v691_v52 = vpop.f32.mrb[0].mxu1 }
 0x18f   : > { %v789_v53 = vmul.f32 0.17677669, %v645_v23  ;;  %v790_v54 = vmul.f32 0.17677669, %v691_v52  ;;  %v4769_v55 = vpop.f32.mrb[1].mxu0  ;;  %v4775_v56 = vpop.f32.mrb[1].mxu1 }
 0x190   : > { %v648_v57 = vpop.f32.mrb[2].mxu0  ;;  %v694_v58 = vpop.f32.mrb[2].mxu1 }
 0x191   : > { %794 = vst.msk [vmem:[%s5757_s8] sm:$0xff] %vm793_vm4, %v789_v53  ;;  %795 = vst.msk [vmem:[%s5757_s8 + $0x40] sm:$0xff] %vm793_vm4, %v790_v54  ;;  %v4770_v59 = vpop.f32.mrb[3].mxu0  ;;  %v801_v60 = vsel %vm793_vm4, %v790_v54, -inf  ;;  %v798_v61 = vsel %vm793_vm4, %v789_v53, -inf  ;;  %v4776_v62 = vpop.f32.mrb[3].mxu1 }
 0x192   : > { %802 = vmax.xlane.f32.xlu1 %v801_v60  ;;  %799 = vmax.xlane.f32.xlu0 %v798_v61  ;;  %v993_v57 = vsel %vm853_vm5, %v5811_v8, 0 }
 0x1a6   : > { %v737_v63 = vpop.f32.mrb[4].mxu0  ;;  %v783_v0 = vpop.f32.mrb[4].mxu1 }
 0x1a7   : > { %v791_v1 = vmul.f32 0.17677669, %v737_v63  ;;  %v792_v3 = vmul.f32 0.17677669, %v783_v0  ;;  %v4781_v4 = vpop.f32.mrb[5].mxu0  ;;  %v4787_v9 = vpop.f32.mrb[5].mxu1 }
 0x1a8   : > { %v740_v10 = vpop.f32.mrb[6].mxu0  ;;  %v786_v11 = vpop.f32.mrb[6].mxu1 }
 0x1a9   : > { %796 = vst.msk [vmem:[%s5757_s8 + $0x80] sm:$0xff] %vm793_vm4, %v791_v1  ;;  %797 = vst.msk [vmem:[%s5757_s8 + $0xc0] sm:$0xff] %vm793_vm4, %v792_v3  ;;  %v804_v12 = vsel %vm793_vm4, %v791_v1, -inf  ;;  %v4782_v17 = vpop.f32.mrb[7].mxu0  ;;  %v4788_v5 = vpop.f32.mrb[7].mxu1  ;;  %v807_v18 = vsel %vm793_vm4, %v792_v3, -inf }
 0x1aa   : > { %805 = vmax.xlane.f32.xlu0 %v804_v12 }
 0x1ae   : > { %808 = vmax.xlane.f32.xlu0 %v807_v18 }
 0x21f   : > { %v803_v19 = vpop.xlane.xlu1 %802  ;;  %v800_v20 = vpop.xlane.xlu0 %799 }
 0x220   : > { %v811_v6 = vsub.f32 %v790_v54, %v803_v19  ;;  %v810_v21 = vsub.f32 %v789_v53, %v800_v20  ;;  %v5813_v53 = vpack.c.bf16 %v594_v51, %v594_v51 }
 0x222   : > { %v816_v22 = vmul.f32 1.442695, %v811_v6  ;;  %v814_v24 = vmul.f32 1.442695, %v810_v21  ;;  %v947_v59 = vsel %vm853_vm5, %v5813_v53, 0 }
 0x224   : > { %5228 = vpow2.f32 %v816_v22 }
 0x225   : > { %5230 = vpow2.f32 %v814_v24 }
 0x22e   : > { %v5229_v25 = vpop.eup %5228 }
 0x22f   : > { %v5231_v26 = vpop.eup %5230  ;;  %v825_v27 = vsel %vm793_vm4, %v5229_v25, 0.0 }
 0x230   : > { %v822_v30 = vsel %vm793_vm4, %v5231_v26, 0.0  ;;  %826 = vadd.xlane.f32.xlu0 %v825_v27 }
 0x231   : > { %823 = vadd.xlane.f32.xlu1 %v822_v30 }
 0x237   : > { %v806_v31 = vpop.xlane.xlu0 %805 }
 0x238   : > { %v812_v45 = vsub.f32 %v791_v1, %v806_v31 }
 0x23a   : > { %v818_v46 = vmul.f32 1.442695, %v812_v45 }
 0x23b   : > { %v809_v32 = vpop.xlane.xlu0 %808 }
 0x23c   : > { %v813_v33 = vsub.f32 %v792_v3, %v809_v32 }
 0x23e   : > { %v820_v38 = vmul.f32 1.442695, %v813_v33 }
 0x240   : > { %5232 = vpow2.f32 %v820_v38 }
 0x241   : > { %5234 = vpow2.f32 %v818_v46 }
 0x242   : > { %1043 = vrot.lane.b32.xlu1 %v5676_v37, %s5442_s19 }
 0x24a   : > { %v5233_v43 = vpop.eup %5232 }
 0x24b   : > { %v831_v44 = vsel %vm793_vm4, %v5233_v43, 0.0  ;;  %v5235_v47 = vpop.eup %5234 }
 0x24c   : > { %832 = vadd.xlane.f32.xlu0 %v831_v44  ;;  %v828_v48 = vsel %vm793_vm4, %v5235_v47, 0.0 }
 0x262   : > { %1095 = vrot.lane.b32.xlu0 %v5674_v36, %s5442_s19 }
 0x266   : > { %829 = vadd.xlane.f32.xlu1 %v828_v48  ;;  %1147 = vrot.lane.b32.xlu0 %v5720_v28, %s5442_s19 }
 0x26a   : > { %1144 = vrot.lane.b32.xlu0 %v5742_v13, %s5442_s19 }
 0x277   : > { %1040 = vrot.lane.b32.xlu1 %v5706_v16, %s5442_s19 }
 0x27b   : > { %1092 = vrot.lane.b32.xlu1 %v5704_v15, %s5442_s19 }
 0x27f   : > { %1199 = vrot.lane.b32.xlu1 %v5722_v29, %s5442_s19 }
 0x283   : > { %1196 = vrot.lane.b32.xlu1 %v5744_v14, %s5442_s19 }
 0x2bd   : > { %v827_v49 = vpop.xlane.xlu0 %826 }
 0x2be   : > { %v824_v7 = vpop.xlane.xlu1 %823  ;;  %5236 = vrcp.f32 %v827_v49 }
 0x2bf   : > { %5238 = vrcp.f32 %v824_v7 }
 0x2c2   : > { %v1044_v3 = vpop.permute.xlu1 %1043 }
 0x2c3   : > { %v1049_v19 = vsel %vm604_vm3, %v1044_v3, 0 }
 0x2c8   : > { %v5237_v23 = vpop.eup %5236 }
 0x2c9   : > { %v5239_v52 = vpop.eup %5238  ;;  %v839_v54 = vmul.f32 %v5237_v23, %v5229_v25 }
 0x2ca   : > { %v838_v55 = vmul.f32 %v5239_v52, %v5231_v26 }
 0x2cb   : > { %v847_v56 = vpack.c.bf16 %v839_v54, %v839_v54 }
 0x2cc   : > { %v846_v58 = vpack.c.bf16 %v838_v55, %v838_v55 }
 0x2cd   : > { %4798 = vmatmul.mubr.msk.bf16.vlgmr.msra.gmra.mrb[8].mxu1 %vm793_vm4, %v847_v56 }
 0x2ce   : > { %4792 = vmatmul.mubr.msk.bf16.vlgmr.msra.gmra.mrb[8].mxu0 %vm793_vm4, %v846_v58  ;;  %4808 = vmatpush3.bf16.msra.mxu1 %v993_v57 }
 0x2cf   : > { %4809 = vmatprep.mubr.msk.bf16.mxu1 %vm5441_vm0, %v5438_v2  ;;  %4819 = vmatprep.subr.bf16.mxu1 %v5438_v2 }
 0x2d0   : > { %4802 = vmatpush3.bf16.msra.mxu0 %v947_v59  ;;  %4803 = vmatprep.mubr.msk.bf16.mxu0 %vm5441_vm0, %v5438_v2 }
 0x2d1   : > { %4813 = vmatprep.subr.bf16.mxu0 %v5438_v2 }
 0x2d9   : > { %v833_v60 = vpop.xlane.xlu0 %832 }
 0x2da   : > { %5240 = vrcp.f32 %v833_v60 }
 0x2dd   : > { %v1096_v63 = vpop.permute.xlu0 %1095 }
 0x2de   : > { %v1101_v1 = vsel %vm604_vm3, %v1096_v63, 0 }
 0x2e1   : > { %v1148_v6 = vpop.permute.xlu0 %1147 }
 0x2e2   : > { %v1153_v21 = vsel %vm604_vm3, %v1148_v6, 0 }
 0x2e4   : > { %v5241_v61 = vpop.eup %5240 }
 0x2e5   : > { %v841_v62 = vmul.f32 %v5241_v61, %v5233_v43  ;;  %v1145_v22 = vpop.permute.xlu0 %1144 }
 0x2e7   : > { %v849_v0 = vpack.c.bf16 %v841_v62, %v841_v62 }
 0x2e9   : > { %4810 = vmatmul.mubr.msk.bf16.vlgmr.msra.gmra.mrb[12].mxu1 %vm793_vm4, %v849_v0 }
 0x2ea   : > { %4820 = vmatpush3.bf16.xpose.msra.mxu1 %v1101_v1  ;;  %4821 = vmatprep.mubr.msk.bf16.mxu1 %vm5441_vm0, %v5438_v2 }
 0x2eb   : > { %4831 = vmatprep.subr.bf16.mxu1 %v5438_v2 }
 0x2f3   : > { %v830_v4 = vpop.xlane.xlu1 %829 }
 0x2f4   : > { %5242 = vrcp.f32 %v830_v4 }
 0x2f7   : > { %v1041_v9 = vpop.permute.xlu1 %1040 }
 0x2fb   : > { %v1093_v10 = vpop.permute.xlu1 %1092 }
 0x2fc   : > { %4822 = vmatmul.mubr.msk.bf16.vlgmr.msra.gmra.mrb[16].mxu1 %vm604_vm3, %v1093_v10 }
 0x2fd   : > { %4833 = vmatprep.mubr.msk.bf16.mxu1 %vm5441_vm0, %v5438_v2 }
 0x2fe   : > { %v5243_v11 = vpop.eup %5242 }
 0x2ff   : > { %v1200_v12 = vpop.permute.xlu1 %1199  ;;  %v840_v17 = vmul.f32 %v5243_v11, %v5235_v47 }
 0x300   : > { %v1205_v5 = vsel %vm604_vm3, %v1200_v12, 0 }
 0x301   : > { %4832 = vmatpush3.bf16.xpose.msra.mxu1 %v1205_v5  ;;  %v848_v18 = vpack.c.bf16 %v840_v17, %v840_v17 }
 0x302   : > { %4843 = vmatprep.subr.bf16.mxu1 %v5438_v2 }
 0x303   : > { %4804 = vmatmul.mubr.msk.bf16.vlgmr.msra.gmra.mrb[12].mxu0 %vm793_vm4, %v848_v18  ;;  %v1197_v20 = vpop.permute.xlu1 %1196 }
 0x304   : > { %4814 = vmatpush3.bf16.xpose.msra.mxu0 %v1049_v19  ;;  %4815 = vmatprep.mubr.msk.bf16.mxu0 %vm5441_vm0, %v5438_v2 }
 0x305   : > { %4825 = vmatprep.subr.bf16.mxu0 %v5438_v2 }
 0x308   : > { %4834 = vmatmul.mubr.msk.bf16.vlgmr.msra.gmra.mrb[20].mxu1 %vm604_vm3, %v1197_v20 }
 0x309   : > { %4845 = vmatprep.mubr.msk.bf16.mxu1 %vm5441_vm0, %v5438_v2 }
 0x30b   : > { %4816 = vmatmul.mubr.msk.bf16.vlgmr.msra.gmra.mrb[16].mxu0 %vm604_vm3, %v1041_v9 }
 0x30c   : > { %4826 = vmatpush3.bf16.xpose.msra.mxu0 %v1153_v21  ;;  %4827 = vmatprep.mubr.msk.bf16.mxu0 %vm5441_vm0, %v5438_v2 }
 0x30d   : > { %4837 = vmatprep.subr.bf16.mxu0 %v5438_v2 }
 0x313   : > { %4828 = vmatmul.mubr.msk.bf16.vlgmr.msra.gmra.mrb[20].mxu0 %vm604_vm3, %v1145_v22 }
 0x314   : > { %4839 = vmatprep.mubr.msk.bf16.mxu0 %vm5441_vm0, %v5438_v2 }
 0x3a0   : > { %v937_v24 = vpop.f32.mrb[8].mxu1 }
 0x3a1   : > { %v891_v25 = vpop.f32.mrb[8].mxu0  ;;  %1036 = vst.msk [vmem:[%s5857_s22 + $0x8] sm:$0xff] %vm604_vm3, %v937_v24  ;;  %v4799_v26 = vpop.f32.mrb[9].mxu1 }
 0x3a2   : > { %1035 = vst.msk [vmem:[%s5857_s22] sm:$0xff] %vm604_vm3, %v891_v25  ;;  %v4793_v27 = vpop.f32.mrb[9].mxu0  ;;  %v940_v30 = vpop.f32.mrb[10].mxu1 }
 0x3a3   : > { %v894_v31 = vpop.f32.mrb[10].mxu0  ;;  %v4800_v32 = vpop.f32.mrb[11].mxu1 }
 0x3a4   : > { %v4794_v33 = vpop.f32.mrb[11].mxu0 }
 0x3bc   : > { %v1029_v34 = vpop.f32.mrb[12].mxu1 }
 0x3bd   : > { %1038 = vst.msk [vmem:[%s5857_s22 + $0x18] sm:$0xff] %vm604_vm3, %v1029_v34  ;;  %v4811_v35 = vpop.f32.mrb[13].mxu1 }
 0x3be   : > { %v1032_v38 = vpop.f32.mrb[14].mxu1 }
 0x3bf   : > { %v4812_v41 = vpop.f32.mrb[15].mxu1 }
 0x3cf   : > { %v1137_v42 = vpop.f32.mrb[16].mxu1 }
 0x3d0   : > { %v1248_v43 = vmul.f32 0.17677669, %v1137_v42  ;;  %v4823_v44 = vpop.f32.mrb[17].mxu1 }
 0x3d1   : > { %v1140_v45 = vpop.f32.mrb[18].mxu1 }
 0x3d2   : > { %4547 = vst.msk [vmem:[%s5757_s8 + $0x48] sm:$0xff] %vm793_vm4, %v1248_v43  ;;  %v4824_v46 = vpop.f32.mrb[19].mxu1  ;;  %v1259_v47 = vsel %vm793_vm4, %v1248_v43, -inf }
 0x3d3   : > { %1260 = vmax.xlane.f32.xlu1 %v1259_v47 }
 0x3d6   : > { %v983_v48 = vpop.f32.mrb[12].mxu0 }
 0x3d7   : > { %1037 = vst.msk [vmem:[%s5857_s22 + $0x10] sm:$0xff] %vm604_vm3, %v983_v48  ;;  %v4805_v49 = vpop.f32.mrb[13].mxu0 }
 0x3d8   : > { %v986_v7 = vpop.f32.mrb[14].mxu0 }
 0x3d9   : > { %v4806_v50 = vpop.f32.mrb[15].mxu0 }
 0x3db   : > { %v1241_v51 = vpop.f32.mrb[20].mxu1 }
 0x3dc   : > { %v1250_v23 = vmul.f32 0.17677669, %v1241_v51  ;;  %v4835_v52 = vpop.f32.mrb[21].mxu1 }
 0x3dd   : > { %v1244_v54 = vpop.f32.mrb[22].mxu1 }
 0x3de   : > { %4549 = vst.msk [vmem:[%s5757_s8 + $0xc8] sm:$0xff] %vm793_vm4, %v1250_v23  ;;  %v1085_v55 = vpop.f32.mrb[16].mxu0  ;;  %v4836_v56 = vpop.f32.mrb[23].mxu1  ;;  %v1265_v9 = vsel %vm793_vm4, %v1250_v23, -inf }
 0x3df   : > { %v1247_v57 = vmul.f32 0.17677669, %v1085_v55  ;;  %v4817_v58 = vpop.f32.mrb[17].mxu0 }
 0x3e0   : > { %v1088_v59 = vpop.f32.mrb[18].mxu0 }
 0x3e1   : > { %4546 = vst.msk [vmem:[%s5757_s8 + $0x8] sm:$0xff] %vm793_vm4, %v1247_v57  ;;  %v4818_v60 = vpop.f32.mrb[19].mxu0  ;;  %v1256_v61 = vsel %vm793_vm4, %v1247_v57, -inf }
 0x3e2   : > { %1257 = vmax.xlane.f32.xlu0 %v1256_v61 }
 0x3e4   : > { %1305 = vrot.lane.b32.xlu1 %v5781_v39, %s5442_s19 }
 0x3e6   : > { %v1189_v62 = vpop.f32.mrb[20].mxu0 }
 0x3e7   : > { %v1249_v63 = vmul.f32 0.17677669, %v1189_v62  ;;  %v4829_v0 = vpop.f32.mrb[21].mxu0 }
 0x3e8   : > { %v1192_v1 = vpop.f32.mrb[22].mxu0 }
 0x3e9   : > { %4548 = vst.msk [vmem:[%s5757_s8 + $0x88] sm:$0xff] %vm793_vm4, %v1249_v63  ;;  %v4830_v3 = vpop.f32.mrb[23].mxu0  ;;  %v1262_v4 = vsel %vm793_vm4, %v1249_v63, -inf }
 0x3ea   : > { %1263 = vmax.xlane.f32.xlu0 %v1262_v4 }
 0x3ee   : > { %1266 = vmax.xlane.f32.xlu0 %v1265_v9 }
 0x460   : > { %v1261_v10 = vpop.xlane.xlu1 %1260 }
 0x461   : > { %v1269_v11 = vsub.f32 %v1248_v43, %v1261_v10 }
 0x463   : > { %v1274_v12 = vmul.f32 1.442695, %v1269_v11 }
 0x464   : > { %v1306_v17 = vpop.permute.xlu1 %1305 }
 0x465   : > { %5244 = vpow2.f32 %v1274_v12  ;;  %v1311_v5 = vsel %vm853_vm5, %v1306_v17, 0 }
 0x466   : > { %4838 = vmatpush3.bf16.msra.mxu0 %v1311_v5 }
 0x467   : > { %4849 = vmatprep.subr.bf16.mxu0 %v5438_v2 }
 0x46f   : > { %v5245_v18 = vpop.eup %5244  ;;  %v1258_v19 = vpop.xlane.xlu0 %1257 }
 0x470   : > { %v1268_v20 = vsub.f32 %v1247_v57, %v1258_v19  ;;  %v1283_v6 = vsel %vm793_vm4, %v5245_v18, 0.0 }
 0x471   : > { %1284 = vadd.xlane.f32.xlu0 %v1283_v6 }
 0x472   : > { %v1272_v21 = vmul.f32 1.442695, %v1268_v20 }
 0x474   : > { %5246 = vpow2.f32 %v1272_v21 }
 0x477   : > { %v1264_v25 = vpop.xlane.xlu0 %1263 }
 0x478   : > { %v1270_v32 = vsub.f32 %v1249_v63, %v1264_v25 }
 0x47a   : > { %v1276_v34 = vmul.f32 1.442695, %v1270_v32 }
 0x47b   : > { %v1267_v26 = vpop.xlane.xlu0 %1266 }
 0x47c   : > { %v1271_v27 = vsub.f32 %v1250_v23, %v1267_v26 }
 0x47e   : > { %v5247_v22 = vpop.eup %5246  ;;  %v1278_v30 = vmul.f32 1.442695, %v1271_v27 }
 0x47f   : > { %v1280_v24 = vsel %vm793_vm4, %v5247_v22, 0.0 }
 0x480   : > { %1281 = vadd.xlane.f32.xlu1 %v1280_v24  ;;  %5248 = vpow2.f32 %v1278_v30 }
 0x481   : > { %5250 = vpow2.f32 %v1276_v34 }
 0x487   : > { %1354 = vrot.lane.b32.xlu0 %v5783_v40, %s5442_s19 }
 0x48a   : > { %v5249_v31 = vpop.eup %5248 }
 0x48b   : > { %v1289_v33 = vsel %vm793_vm4, %v5249_v31, 0.0  ;;  %v5251_v35 = vpop.eup %5250 }
 0x48c   : > { %v1286_v38 = vsel %vm793_vm4, %v5251_v35, 0.0 }
 0x491   : > { %1403 = vrot.lane.b32.xlu1 %v5813_v53, %s5442_s19 }
 0x495   : > { %1452 = vrot.lane.b32.xlu1 %v5811_v8, %s5442_s19  ;;  %s5449_s19 = smov 4  }
 0x4a6   : > { %1290 = vadd.xlane.f32.xlu0 %v1289_v33 }
 0x4b9   : > { %1287 = vadd.xlane.f32.xlu1 %v1286_v38 }
 0x4bc   : > { %1523 = vrot.lane.b32.xlu0 %v5676_v37, %s5443_s15 }
 0x4c0   : > { %1521 = vrot.lane.b32.xlu0 %v5706_v16, %s5443_s15 }
 0x4c4   : > { %1623 = vrot.lane.b32.xlu0 %v5720_v28, %s5443_s15 }
 0x4c8   : > { %1621 = vrot.lane.b32.xlu0 %v5742_v13, %s5443_s15 }
 0x4ca   : > { %1573 = vrot.lane.b32.xlu1 %v5674_v36, %s5443_s15 }
 0x4ce   : > { %1571 = vrot.lane.b32.xlu1 %v5704_v15, %s5443_s15 }
 0x4d2   : > { %1673 = vrot.lane.b32.xlu1 %v5722_v29, %s5443_s15 }
 0x4d6   : > { %1671 = vrot.lane.b32.xlu1 %v5744_v14, %s5443_s15 }
 0x4fe   : > { %v1285_v41 = vpop.xlane.xlu0 %1284 }
 0x4ff   : > { %5252 = vrcp.f32 %v1285_v41 }
 0x502   : > { %v1355_v42 = vpop.permute.xlu0 %1354 }
 0x503   : > { %v1360_v43 = vsel %vm853_vm5, %v1355_v42, 0 }
 0x504   : > { %4844 = vmatpush3.bf16.msra.mxu1 %v1360_v43 }
 0x505   : > { %4855 = vmatprep.subr.bf16.mxu1 %v5438_v2 }
 0x509   : > { %v5253_v44 = vpop.eup %5252 }
 0x50a   : > { %v1297_v45 = vmul.f32 %v5253_v44, %v5245_v18 }
 0x50c   : > { %v1301_v46 = vpack.c.bf16 %v1297_v45, %v1297_v45 }
 0x50d   : > { %v1282_v47 = vpop.xlane.xlu1 %1281 }
 0x50e   : > { %5254 = vrcp.f32 %v1282_v47  ;;  %4846 = vmatmul.mubr.msk.bf16.vlgmr.msra.gmra.mrb[24].mxu1 %vm793_vm4, %v1301_v46 }
 0x50f   : > { %4857 = vmatprep.mubr.msk.bf16.mxu1 %vm5441_vm0, %v5438_v2 }
 0x511   : > { %v1404_v48 = vpop.permute.xlu1 %1403 }
 0x512   : > { %v1409_v52 = vsel %vm853_vm5, %v1404_v48, 0 }
 0x515   : > { %v1453_v49 = vpop.permute.xlu1 %1452 }
 0x516   : > { %v1458_v7 = vsel %vm853_vm5, %v1453_v49, 0 }
 0x517   : > { %4856 = vmatpush3.bf16.msra.mxu1 %v1458_v7 }
 0x518   : > { %v5255_v50 = vpop.eup %5254  ;;  %4867 = vmatprep.subr.bf16.mxu1 %v5438_v2 }
 0x519   : > { %v1296_v51 = vmul.f32 %v5255_v50, %v5247_v22 }
 0x51b   : > { %v1300_v23 = vpack.c.bf16 %v1296_v51, %v1296_v51 }
 0x51d   : > { %4840 = vmatmul.mubr.msk.bf16.vlgmr.msra.gmra.mrb[24].mxu0 %vm793_vm4, %v1300_v23 }
 0x51e   : > { %4850 = vmatpush3.bf16.msra.mxu0 %v1409_v52  ;;  %4851 = vmatprep.mubr.msk.bf16.mxu0 %vm5441_vm0, %v5438_v2 }
 0x51f   : > { %4861 = vmatprep.subr.bf16.mxu0 %v5438_v2 }
 0x533   : > { %v1291_v54 = vpop.xlane.xlu0 %1290 }
 0x534   : > { %5256 = vrcp.f32 %v1291_v54 }
 0x537   : > { %v1524_v62 = vpop.permute.xlu0 %1523 }
 0x538   : > { %v1529_v10 = vsel %vm604_vm3, %v1524_v62, 0 }
 0x53b   : > { %v1522_v9 = vpop.permute.xlu0 %1521 }
 0x53e   : > { %v5257_v55 = vpop.eup %5256 }
 0x53f   : > { %v1299_v56 = vmul.f32 %v5257_v55, %v5249_v31  ;;  %v1624_v12 = vpop.permute.xlu0 %1623 }
 0x540   : > { %v1629_v17 = vsel %vm604_vm3, %v1624_v12, 0 }
 0x541   : > { %v1303_v57 = vpack.c.bf16 %v1299_v56, %v1299_v56 }
 0x543   : > { %4858 = vmatmul.mubr.msk.bf16.vlgmr.msra.gmra.mrb[28].mxu1 %vm793_vm4, %v1303_v57  ;;  %v1622_v5 = vpop.permute.xlu0 %1621 }
 0x544   : > { %4869 = vmatprep.mubr.msk.bf16.mxu1 %vm5441_vm0, %v5438_v2 }
 0x546   : > { %v1288_v58 = vpop.xlane.xlu1 %1287 }
 0x547   : > { %5258 = vrcp.f32 %v1288_v58 }
 0x54a   : > { %v1574_v59 = vpop.permute.xlu1 %1573 }
 0x54b   : > { %v1579_v60 = vsel %vm604_vm3, %v1574_v59, 0 }
 0x54c   : > { %4868 = vmatpush3.bf16.xpose.msra.mxu1 %v1579_v60 }
 0x54d   : > { %4879 = vmatprep.subr.bf16.mxu1 %v5438_v2 }
 0x54e   : > { %v1572_v61 = vpop.permute.xlu1 %1571 }
 0x551   : > { %v5259_v63 = vpop.eup %5258 }
 0x552   : > { %v1674_v0 = vpop.permute.xlu1 %1673  ;;  %v1298_v1 = vmul.f32 %v5259_v63, %v5251_v35 }
 0x553   : > { %v1679_v3 = vsel %vm604_vm3, %v1674_v0, 0  ;;  %4870 = vmatmul.mubr.msk.bf16.vlgmr.msra.gmra.mrb[32].mxu1 %vm604_vm3, %v1572_v61 }
 0x554   : > { %4880 = vmatpush3.bf16.xpose.msra.mxu1 %v1679_v3  ;;  %v1302_v4 = vpack.c.bf16 %v1298_v1, %v1298_v1  ;;  %4881 = vmatprep.mubr.msk.bf16.mxu1 %vm5441_vm0, %v5438_v2 }
 0x555   : > { %4891 = vmatprep.subr.bf16.mxu1 %v5438_v2 }
 0x556   : > { %4852 = vmatmul.mubr.msk.bf16.vlgmr.msra.gmra.mrb[28].mxu0 %vm793_vm4, %v1302_v4  ;;  %v1672_v11 = vpop.permute.xlu1 %1671 }
 0x557   : > { %4862 = vmatpush3.bf16.xpose.msra.mxu0 %v1529_v10  ;;  %4863 = vmatprep.mubr.msk.bf16.mxu0 %vm5441_vm0, %v5438_v2 }
 0x558   : > { %4873 = vmatprep.subr.bf16.mxu0 %v5438_v2 }
 0x55b   : > { %4882 = vmatmul.mubr.msk.bf16.vlgmr.msra.gmra.mrb[36].mxu1 %vm604_vm3, %v1672_v11 }
 0x55c   : > { %4893 = vmatprep.mubr.msk.bf16.mxu1 %vm5441_vm0, %v5438_v2 }
 0x55e   : > { %4864 = vmatmul.mubr.msk.bf16.vlgmr.msra.gmra.mrb[32].mxu0 %vm604_vm3, %v1522_v9 }
 0x55f   : > { %4874 = vmatpush3.bf16.xpose.msra.mxu0 %v1629_v17  ;;  %4875 = vmatprep.mubr.msk.bf16.mxu0 %vm5441_vm0, %v5438_v2 }
 0x560   : > { %4885 = vmatprep.subr.bf16.mxu0 %v5438_v2 }
 0x566   : > { %4876 = vmatmul.mubr.msk.bf16.vlgmr.msra.gmra.mrb[36].mxu0 %vm604_vm3, %v1622_v5 }
 0x567   : > { %4887 = vmatprep.mubr.msk.bf16.mxu0 %vm5441_vm0, %v5438_v2 }
 0x5e1   : > { %v5947_v18 = vpop.f32.mrb[24].mxu1 }
 0x5e2   : > { %v4847_v19 = vpop.f32.mrb[25].mxu1 }
 0x5e3   : > { %v1399_v20 = vpop.f32.mrb[26].mxu1 }
 0x5e4   : > { %v4848_v6 = vpop.f32.mrb[27].mxu1 }
 0x5f0   : > { %v5949_v21 = vpop.f32.mrb[24].mxu0 }
 0x5f1   : > { %v4841_v22 = vpop.f32.mrb[25].mxu0 }
 0x5f2   : > { %v1350_v24 = vpop.f32.mrb[26].mxu0 }
 0x5f3   : > { %v4842_v25 = vpop.f32.mrb[27].mxu0 }
 0x616   : > { %v5951_v26 = vpop.f32.mrb[28].mxu1 }
 0x617   : > { %v4859_v27 = vpop.f32.mrb[29].mxu1 }
 0x618   : > { %v1497_v30 = vpop.f32.mrb[30].mxu1 }
 0x619   : > { %v4860_v31 = vpop.f32.mrb[31].mxu1 }
 0x626   : > { %v1615_v32 = vpop.f32.mrb[32].mxu1 }
 0x627   : > { %v1722_v33 = vmul.f32 0.17677669, %v1615_v32  ;;  %v4871_v34 = vpop.f32.mrb[33].mxu1 }
 0x628   : > { %v1618_v35 = vpop.f32.mrb[34].mxu1 }
 0x629   : > { %4559 = vst.msk [vmem:[%s5757_s8 + $0x50] sm:$0xff] %vm793_vm4, %v1722_v33  ;;  %v5955_v38 = vpop.f32.mrb[28].mxu0  ;;  %v4872_v41 = vpop.f32.mrb[35].mxu1  ;;  %v1733_v42 = vsel %vm793_vm4, %v1722_v33, -inf }
 0x62a   : > { %1734 = vmax.xlane.f32.xlu1 %v1733_v42  ;;  %v4853_v43 = vpop.f32.mrb[29].mxu0 }
 0x62b   : > { %v1448_v44 = vpop.f32.mrb[30].mxu0 }
 0x62c   : > { %v4854_v45 = vpop.f32.mrb[31].mxu0 }
 0x62e   : > { %v1715_v46 = vpop.f32.mrb[36].mxu1 }
 0x62f   : > { %v1724_v47 = vmul.f32 0.17677669, %v1715_v46  ;;  %v4883_v48 = vpop.f32.mrb[37].mxu1 }
 0x630   : > { %v1718_v49 = vpop.f32.mrb[38].mxu1 }
 0x631   : > { %4561 = vst.msk [vmem:[%s5757_s8 + $0xd0] sm:$0xff] %vm793_vm4, %v1724_v47  ;;  %v1565_v7 = vpop.f32.mrb[32].mxu0  ;;  %v4884_v50 = vpop.f32.mrb[39].mxu1  ;;  %v1739_v62 = vsel %vm793_vm4, %v1724_v47, -inf }
 0x632   : > { %v1721_v51 = vmul.f32 0.17677669, %v1565_v7  ;;  %v4865_v23 = vpop.f32.mrb[33].mxu0 }
 0x633   : > { %v1568_v52 = vpop.f32.mrb[34].mxu0 }
 0x634   : > { %4558 = vst.msk [vmem:[%s5757_s8 + $0x10] sm:$0xff] %vm793_vm4, %v1721_v51  ;;  %v4866_v54 = vpop.f32.mrb[35].mxu0  ;;  %v1730_v55 = vsel %vm793_vm4, %v1721_v51, -inf }
 0x635   : > { %1731 = vmax.xlane.f32.xlu0 %v1730_v55 }
 0x639   : > { %v1665_v56 = vpop.f32.mrb[36].mxu0 }
 0x63a   : > { %v1723_v57 = vmul.f32 0.17677669, %v1665_v56  ;;  %v4877_v58 = vpop.f32.mrb[37].mxu0 }
 0x63b   : > { %v1668_v59 = vpop.f32.mrb[38].mxu0  ;;  %1778 = vrot.lane.b32.xlu1 %v5781_v39, %s5443_s15 }
 0x63c   : > { %4560 = vst.msk [vmem:[%s5757_s8 + $0x90] sm:$0xff] %vm793_vm4, %v1723_v57  ;;  %v4878_v60 = vpop.f32.mrb[39].mxu0  ;;  %v1736_v61 = vsel %vm793_vm4, %v1723_v57, -inf }
 0x63d   : > { %1737 = vmax.xlane.f32.xlu0 %v1736_v61 }
 0x641   : > { %1740 = vmax.xlane.f32.xlu0 %v1739_v62 }
 0x6b7   : > { %v1735_v63 = vpop.xlane.xlu1 %1734 }
 0x6b8   : > { %v1743_v0 = vsub.f32 %v1722_v33, %v1735_v63 }
 0x6ba   : > { %v1748_v1 = vmul.f32 1.442695, %v1743_v0 }
 0x6bb   : > { %v1779_v3 = vpop.permute.xlu1 %1778 }
 0x6bc   : > { %5260 = vpow2.f32 %v1748_v1  ;;  %v1784_v4 = vsel %vm853_vm5, %v1779_v3, 0 }
 0x6bd   : > { %4886 = vmatpush3.bf16.msra.mxu0 %v1784_v4 }
 0x6be   : > { %4897 = vmatprep.subr.bf16.mxu0 %v5438_v2 }
 0x6c2   : > { %v1732_v9 = vpop.xlane.xlu0 %1731 }
 0x6c3   : > { %v1742_v10 = vsub.f32 %v1721_v51, %v1732_v9 }
 0x6c5   : > { %v1746_v11 = vmul.f32 1.442695, %v1742_v10 }
 0x6c6   : > { %v5261_v12 = vpop.eup %5260 }
 0x6c7   : > { %5262 = vpow2.f32 %v1746_v11  ;;  %v1757_v17 = vsel %vm793_vm4, %v5261_v12, 0.0 }
 0x6c8   : > { %1758 = vadd.xlane.f32.xlu0 %v1757_v17 }
 0x6ca   : > { %v1738_v20 = vpop.xlane.xlu0 %1737 }
 0x6cb   : > { %v1744_v25 = vsub.f32 %v1723_v57, %v1738_v20 }
 0x6cd   : > { %v1750_v30 = vmul.f32 1.442695, %v1744_v25 }
 0x6ce   : > { %v1741_v6 = vpop.xlane.xlu0 %1740 }
 0x6cf   : > { %v1745_v22 = vsub.f32 %v1724_v47, %v1741_v6 }
 0x6d1   : > { %v5263_v5 = vpop.eup %5262  ;;  %v1752_v24 = vmul.f32 1.442695, %v1745_v22 }
 0x6d2   : > { %v1754_v19 = vsel %vm793_vm4, %v5263_v5, 0.0 }
 0x6d3   : > { %1755 = vadd.xlane.f32.xlu1 %v1754_v19  ;;  %5264 = vpow2.f32 %v1752_v24 }
 0x6d4   : > { %5266 = vpow2.f32 %v1750_v30 }
 0x6dd   : > { %v5265_v27 = vpop.eup %5264 }
 0x6de   : > { %1826 = vrot.lane.b32.xlu0 %v5783_v40, %s5443_s15  ;;  %v1763_v31 = vsel %vm793_vm4, %v5265_v27, 0.0  ;;  %v5267_v32 = vpop.eup %5266 }
 0x6df   : > { %v1760_v33 = vsel %vm793_vm4, %v5267_v32, 0.0 }
 0x6e4   : > { %1874 = vrot.lane.b32.xlu1 %v5813_v53, %s5443_s15 }
 0x6e8   : > { %1922 = vrot.lane.b32.xlu1 %v5811_v8, %s5443_s15  ;;  %s5453_s15 = smov 20  }
 0x6fd   : > { %1764 = vadd.xlane.f32.xlu0 %v1763_v31 }
 0x70c   : > { %1761 = vadd.xlane.f32.xlu1 %v1760_v33 }
 0x713   : > { %1993 = vrot.lane.b32.xlu0 %v5676_v37, %s5444_s30 }
 0x717   : > { %1991 = vrot.lane.b32.xlu0 %v5706_v16, %s5444_s30 }
 0x71b   : > { %2093 = vrot.lane.b32.xlu0 %v5720_v28, %s5444_s30 }
 0x71d   : > { %2043 = vrot.lane.b32.xlu1 %v5674_v36, %s5444_s30 }
 0x71f   : > { %2091 = vrot.lane.b32.xlu0 %v5742_v13, %s5444_s30 }
 0x721   : > { %2041 = vrot.lane.b32.xlu1 %v5704_v15, %s5444_s30 }
 0x725   : > { %2143 = vrot.lane.b32.xlu1 %v5722_v29, %s5444_s30 }
 0x729   : > { %2141 = vrot.lane.b32.xlu1 %v5744_v14, %s5444_s30 }
 0x755   : > { %v1759_v34 = vpop.xlane.xlu0 %1758 }
 0x756   : > { %5268 = vrcp.f32 %v1759_v34 }
 0x759   : > { %v1827_v35 = vpop.permute.xlu0 %1826 }
 0x75a   : > { %v1832_v41 = vsel %vm853_vm5, %v1827_v35, 0 }
 0x75b   : > { %4892 = vmatpush3.bf16.msra.mxu1 %v1832_v41 }
 0x75c   : > { %4903 = vmatprep.subr.bf16.mxu1 %v5438_v2 }
 0x760   : > { %v5269_v42 = vpop.eup %5268  ;;  %v1756_v43 = vpop.xlane.xlu1 %1755 }
 0x761   : > { %5270 = vrcp.f32 %v1756_v43  ;;  %v1771_v44 = vmul.f32 %v5269_v42, %v5261_v12 }
 0x763   : > { %v1775_v45 = vpack.c.bf16 %v1771_v44, %v1771_v44 }
 0x764   : > { %v1875_v46 = vpop.permute.xlu1 %1874 }
 0x765   : > { %4894 = vmatmul.mubr.msk.bf16.vlgmr.msra.gmra.mrb[40].mxu1 %vm793_vm4, %v1775_v45  ;;  %v1880_v51 = vsel %vm853_vm5, %v1875_v46, 0 }
 0x766   : > { %4905 = vmatprep.mubr.msk.bf16.mxu1 %vm5441_vm0, %v5438_v2 }
 0x768   : > { %v1923_v47 = vpop.permute.xlu1 %1922 }
 0x769   : > { %v1928_v48 = vsel %vm853_vm5, %v1923_v47, 0 }
 0x76a   : > { %4904 = vmatpush3.bf16.msra.mxu1 %v1928_v48 }
 0x76b   : > { %v5271_v49 = vpop.eup %5270  ;;  %4915 = vmatprep.subr.bf16.mxu1 %v5438_v2 }
 0x76c   : > { %v1770_v7 = vmul.f32 %v5271_v49, %v5263_v5 }
 0x76e   : > { %v1774_v50 = vpack.c.bf16 %v1770_v7, %v1770_v7 }
 0x770   : > { %4888 = vmatmul.mubr.msk.bf16.vlgmr.msra.gmra.mrb[40].mxu0 %vm793_vm4, %v1774_v50 }
 0x771   : > { %4898 = vmatpush3.bf16.msra.mxu0 %v1880_v51  ;;  %4899 = vmatprep.mubr.msk.bf16.mxu0 %vm5441_vm0, %v5438_v2 }
 0x772   : > { %4909 = vmatprep.subr.bf16.mxu0 %v5438_v2 }
 0x78a   : > { %v1765_v23 = vpop.xlane.xlu0 %1764 }
 0x78b   : > { %5272 = vrcp.f32 %v1765_v23 }
 0x78e   : > { %v1994_v60 = vpop.permute.xlu0 %1993 }
 0x78f   : > { %v1999_v4 = vsel %vm604_vm3, %v1994_v60, 0 }
 0x792   : > { %v1992_v3 = vpop.permute.xlu0 %1991 }
 0x795   : > { %v5273_v52 = vpop.eup %5272 }
 0x796   : > { %v1773_v54 = vmul.f32 %v5273_v52, %v5265_v27  ;;  %v2094_v10 = vpop.permute.xlu0 %2093 }
 0x797   : > { %v2099_v11 = vsel %vm604_vm3, %v2094_v10, 0 }
 0x798   : > { %v1777_v55 = vpack.c.bf16 %v1773_v54, %v1773_v54 }
 0x799   : > { %v1762_v56 = vpop.xlane.xlu1 %1761 }
 0x79a   : > { %5274 = vrcp.f32 %v1762_v56  ;;  %4906 = vmatmul.mubr.msk.bf16.vlgmr.msra.gmra.mrb[44].mxu1 %vm793_vm4, %v1777_v55  ;;  %v2092_v12 = vpop.permute.xlu0 %2091 }
 0x79b   : > { %4917 = vmatprep.mubr.msk.bf16.mxu1 %vm5441_vm0, %v5438_v2 }
 0x79d   : > { %v2044_v57 = vpop.permute.xlu1 %2043 }
 0x79e   : > { %v2049_v58 = vsel %vm604_vm3, %v2044_v57, 0 }
 0x79f   : > { %4916 = vmatpush3.bf16.xpose.msra.mxu1 %v2049_v58 }
 0x7a0   : > { %4927 = vmatprep.subr.bf16.mxu1 %v5438_v2 }
 0x7a1   : > { %v2042_v59 = vpop.permute.xlu1 %2041 }
 0x7a4   : > { %v5275_v61 = vpop.eup %5274 }
 0x7a5   : > { %v2144_v62 = vpop.permute.xlu1 %2143  ;;  %v1772_v63 = vmul.f32 %v5275_v61, %v5267_v32 }
 0x7a6   : > { %v2149_v0 = vsel %vm604_vm3, %v2144_v62, 0  ;;  %4918 = vmatmul.mubr.msk.bf16.vlgmr.msra.gmra.mrb[48].mxu1 %vm604_vm3, %v2042_v59 }
 0x7a7   : > { %4928 = vmatpush3.bf16.xpose.msra.mxu1 %v2149_v0  ;;  %v1776_v1 = vpack.c.bf16 %v1772_v63, %v1772_v63  ;;  %4929 = vmatprep.mubr.msk.bf16.mxu1 %vm5441_vm0, %v5438_v2 }
 0x7a8   : > { %4939 = vmatprep.subr.bf16.mxu1 %v5438_v2 }
 0x7a9   : > { %4900 = vmatmul.mubr.msk.bf16.vlgmr.msra.gmra.mrb[44].mxu0 %vm793_vm4, %v1776_v1  ;;  %v2142_v9 = vpop.permute.xlu1 %2141 }
 0x7aa   : > { %4910 = vmatpush3.bf16.xpose.msra.mxu0 %v1999_v4  ;;  %4911 = vmatprep.mubr.msk.bf16.mxu0 %vm5441_vm0, %v5438_v2 }
 0x7ab   : > { %4921 = vmatprep.subr.bf16.mxu0 %v5438_v2 }
 0x7ae   : > { %4930 = vmatmul.mubr.msk.bf16.vlgmr.msra.gmra.mrb[52].mxu1 %vm604_vm3, %v2142_v9 }
 0x7af   : > { %4941 = vmatprep.mubr.msk.bf16.mxu1 %vm5441_vm0, %v5438_v2 }
 0x7b1   : > { %4912 = vmatmul.mubr.msk.bf16.vlgmr.msra.gmra.mrb[48].mxu0 %vm604_vm3, %v1992_v3 }
 0x7b2   : > { %4922 = vmatpush3.bf16.xpose.msra.mxu0 %v2099_v11  ;;  %4923 = vmatprep.mubr.msk.bf16.mxu0 %vm5441_vm0, %v5438_v2 }
 0x7b3   : > { %4933 = vmatprep.subr.bf16.mxu0 %v5438_v2 }
 0x7b9   : > { %4924 = vmatmul.mubr.msk.bf16.vlgmr.msra.gmra.mrb[52].mxu0 %vm604_vm3, %v2092_v12 }
 0x7ba   : > { %4935 = vmatprep.mubr.msk.bf16.mxu0 %vm5441_vm0, %v5438_v2 }
 0x838   : > { %v6035_v17 = vpop.f32.mrb[40].mxu1 }
 0x839   : > { %v4895_v5 = vpop.f32.mrb[41].mxu1 }
 0x83a   : > { %v1871_v19 = vpop.f32.mrb[42].mxu1 }
 0x83b   : > { %v4896_v20 = vpop.f32.mrb[43].mxu1 }
 0x843   : > { %v6037_v6 = vpop.f32.mrb[40].mxu0 }
 0x844   : > { %v4889_v22 = vpop.f32.mrb[41].mxu0 }
 0x845   : > { %v1823_v24 = vpop.f32.mrb[42].mxu0 }
 0x846   : > { %v4890_v25 = vpop.f32.mrb[43].mxu0 }
 0x86d   : > { %v6039_v27 = vpop.f32.mrb[44].mxu1 }
 0x86e   : > { %v4907_v30 = vpop.f32.mrb[45].mxu1 }
 0x86f   : > { %v1967_v31 = vpop.f32.mrb[46].mxu1 }
 0x870   : > { %v4908_v32 = vpop.f32.mrb[47].mxu1 }
 0x879   : > { %v2085_v33 = vpop.f32.mrb[48].mxu1 }
 0x87a   : > { %v2192_v34 = vmul.f32 0.17677669, %v2085_v33  ;;  %v4919_v35 = vpop.f32.mrb[49].mxu1 }
 0x87b   : > { %v2088_v41 = vpop.f32.mrb[50].mxu1 }
 0x87c   : > { %4571 = vst.msk [vmem:[%s5757_s8 + $0x58] sm:$0xff] %vm793_vm4, %v2192_v34  ;;  %v6043_v42 = vpop.f32.mrb[44].mxu0  ;;  %v4920_v43 = vpop.f32.mrb[51].mxu1  ;;  %v2203_v44 = vsel %vm793_vm4, %v2192_v34, -inf }
 0x87d   : > { %2204 = vmax.xlane.f32.xlu1 %v2203_v44  ;;  %v4901_v45 = vpop.f32.mrb[45].mxu0 }
 0x87e   : > { %v1919_v46 = vpop.f32.mrb[46].mxu0 }
 0x87f   : > { %v4902_v47 = vpop.f32.mrb[47].mxu0 }
 0x881   : > { %v2185_v48 = vpop.f32.mrb[52].mxu1 }
 0x882   : > { %v2194_v49 = vmul.f32 0.17677669, %v2185_v48  ;;  %v4931_v7 = vpop.f32.mrb[53].mxu1 }
 0x883   : > { %v2188_v50 = vpop.f32.mrb[54].mxu1 }
 0x884   : > { %4573 = vst.msk [vmem:[%s5757_s8 + $0xd8] sm:$0xff] %vm793_vm4, %v2194_v49  ;;  %v2035_v51 = vpop.f32.mrb[48].mxu0  ;;  %v4932_v23 = vpop.f32.mrb[55].mxu1  ;;  %v2209_v0 = vsel %vm793_vm4, %v2194_v49, -inf }
 0x885   : > { %v2191_v52 = vmul.f32 0.17677669, %v2035_v51  ;;  %v4913_v54 = vpop.f32.mrb[49].mxu0 }
 0x886   : > { %v2038_v55 = vpop.f32.mrb[50].mxu0 }
 0x887   : > { %4570 = vst.msk [vmem:[%s5757_s8 + $0x18] sm:$0xff] %vm793_vm4, %v2191_v52  ;;  %v4914_v56 = vpop.f32.mrb[51].mxu0  ;;  %v2200_v57 = vsel %vm793_vm4, %v2191_v52, -inf }
 0x888   : > { %2201 = vmax.xlane.f32.xlu0 %v2200_v57 }
 0x88c   : > { %v2135_v58 = vpop.f32.mrb[52].mxu0 }
 0x88d   : > { %v2193_v59 = vmul.f32 0.17677669, %v2135_v58  ;;  %v4925_v60 = vpop.f32.mrb[53].mxu0 }
 0x88e   : > { %v2138_v61 = vpop.f32.mrb[54].mxu0  ;;  %2248 = vrot.lane.b32.xlu1 %v5781_v39, %s5444_s30 }
 0x88f   : > { %4572 = vst.msk [vmem:[%s5757_s8 + $0x98] sm:$0xff] %vm793_vm4, %v2193_v59  ;;  %v4926_v62 = vpop.f32.mrb[55].mxu0  ;;  %v2206_v63 = vsel %vm793_vm4, %v2193_v59, -inf }
 0x890   : > { %2207 = vmax.xlane.f32.xlu0 %v2206_v63 }
 0x894   : > { %2210 = vmax.xlane.f32.xlu0 %v2209_v0 }
 0x90a   : > { %v2205_v1 = vpop.xlane.xlu1 %2204 }
 0x90b   : > { %v2213_v3 = vsub.f32 %v2192_v34, %v2205_v1 }
 0x90d   : > { %v2218_v4 = vmul.f32 1.442695, %v2213_v3 }
 0x90e   : > { %v2249_v9 = vpop.permute.xlu1 %2248 }
 0x90f   : > { %5276 = vpow2.f32 %v2218_v4  ;;  %v2254_v10 = vsel %vm853_vm5, %v2249_v9, 0 }
 0x910   : > { %4934 = vmatpush3.bf16.msra.mxu0 %v2254_v10 }
 0x911   : > { %4945 = vmatprep.subr.bf16.mxu0 %v5438_v2 }
 0x915   : > { %v2202_v11 = vpop.xlane.xlu0 %2201 }
 0x916   : > { %v2212_v12 = vsub.f32 %v2191_v52, %v2202_v11 }
 0x918   : > { %v2216_v5 = vmul.f32 1.442695, %v2212_v12 }
 0x919   : > { %v5277_v19 = vpop.eup %5276 }
 0x91a   : > { %5278 = vpow2.f32 %v2216_v5  ;;  %v2227_v20 = vsel %vm793_vm4, %v5277_v19, 0.0 }
 0x91b   : > { %2228 = vadd.xlane.f32.xlu0 %v2227_v20 }
 0x91d   : > { %v2208_v25 = vpop.xlane.xlu0 %2207 }
 0x91e   : > { %v2214_v33 = vsub.f32 %v2193_v59, %v2208_v25 }
 0x920   : > { %v2220_v35 = vmul.f32 1.442695, %v2214_v33 }
 0x921   : > { %v2211_v30 = vpop.xlane.xlu0 %2210 }
 0x922   : > { %v2215_v31 = vsub.f32 %v2194_v49, %v2211_v30 }
 0x924   : > { %v5279_v22 = vpop.eup %5278  ;;  %v2222_v32 = vmul.f32 1.442695, %v2215_v31 }
 0x925   : > { %v2224_v24 = vsel %vm793_vm4, %v5279_v22, 0.0 }
 0x926   : > { %2225 = vadd.xlane.f32.xlu1 %v2224_v24  ;;  %5280 = vpow2.f32 %v2222_v32 }
 0x927   : > { %5282 = vpow2.f32 %v2220_v35 }
 0x930   : > { %v5281_v34 = vpop.eup %5280 }
 0x931   : > { %2296 = vrot.lane.b32.xlu0 %v5783_v40, %s5444_s30  ;;  %v2233_v41 = vsel %vm793_vm4, %v5281_v34, 0.0  ;;  %v5283_v43 = vpop.eup %5282 }
 0x932   : > { %v2230_v44 = vsel %vm793_vm4, %v5283_v43, 0.0 }
 0x937   : > { %2344 = vrot.lane.b32.xlu1 %v5813_v53, %s5444_s30 }
 0x93b   : > { %2392 = vrot.lane.b32.xlu1 %v5811_v8, %s5444_s30  ;;  %s5454_s30 = smov 24  }
 0x950   : > { %2234 = vadd.xlane.f32.xlu0 %v2233_v41 }
 0x95f   : > { %2231 = vadd.xlane.f32.xlu1 %v2230_v44 }
 0x966   : > { %2463 = vrot.lane.b32.xlu0 %v5676_v37, %s5445_s10 }
 0x96a   : > { %2461 = vrot.lane.b32.xlu0 %v5706_v16, %s5445_s10 }
 0x96e   : > { %2563 = vrot.lane.b32.xlu0 %v5720_v28, %s5445_s10 }
 0x970   : > { %2513 = vrot.lane.b32.xlu1 %v5674_v36, %s5445_s10 }
 0x972   : > { %2561 = vrot.lane.b32.xlu0 %v5742_v13, %s5445_s10 }
 0x974   : > { %2511 = vrot.lane.b32.xlu1 %v5704_v15, %s5445_s10 }
 0x978   : > { %2613 = vrot.lane.b32.xlu1 %v5722_v29, %s5445_s10 }
 0x97c   : > { %2611 = vrot.lane.b32.xlu1 %v5744_v14, %s5445_s10 }
 0x9a8   : > { %v2229_v45 = vpop.xlane.xlu0 %2228 }
 0x9a9   : > { %5284 = vrcp.f32 %v2229_v45 }
 0x9ac   : > { %v2297_v46 = vpop.permute.xlu0 %2296 }
 0x9ad   : > { %v2302_v47 = vsel %vm853_vm5, %v2297_v46, 0 }
 0x9ae   : > { %4940 = vmatpush3.bf16.msra.mxu1 %v2302_v47 }
 0x9af   : > { %4951 = vmatprep.subr.bf16.mxu1 %v5438_v2 }
 0x9b3   : > { %v5285_v48 = vpop.eup %5284  ;;  %v2226_v49 = vpop.xlane.xlu1 %2225 }
 0x9b4   : > { %5286 = vrcp.f32 %v2226_v49  ;;  %v2241_v7 = vmul.f32 %v5285_v48, %v5277_v19 }
 0x9b6   : > { %v2245_v50 = vpack.c.bf16 %v2241_v7, %v2241_v7 }
 0x9b7   : > { %v2345_v51 = vpop.permute.xlu1 %2344 }
 0x9b8   : > { %4942 = vmatmul.mubr.msk.bf16.vlgmr.msra.gmra.mrb[56].mxu1 %vm793_vm4, %v2245_v50  ;;  %v2350_v57 = vsel %vm853_vm5, %v2345_v51, 0 }
 0x9b9   : > { %4953 = vmatprep.mubr.msk.bf16.mxu1 %vm5441_vm0, %v5438_v2 }
 0x9bb   : > { %v2393_v23 = vpop.permute.xlu1 %2392 }
 0x9bc   : > { %v2398_v52 = vsel %vm853_vm5, %v2393_v23, 0 }
 0x9bd   : > { %4952 = vmatpush3.bf16.msra.mxu1 %v2398_v52 }
 0x9be   : > { %v5287_v54 = vpop.eup %5286  ;;  %4963 = vmatprep.subr.bf16.mxu1 %v5438_v2 }
 0x9bf   : > { %v2240_v55 = vmul.f32 %v5287_v54, %v5279_v22 }
 0x9c1   : > { %v2244_v56 = vpack.c.bf16 %v2240_v55, %v2240_v55 }
 0x9c3   : > { %4936 = vmatmul.mubr.msk.bf16.vlgmr.msra.gmra.mrb[56].mxu0 %vm793_vm4, %v2244_v56 }
 0x9c4   : > { %4946 = vmatpush3.bf16.msra.mxu0 %v2350_v57  ;;  %4947 = vmatprep.mubr.msk.bf16.mxu0 %vm5441_vm0, %v5438_v2 }
 0x9c5   : > { %4957 = vmatprep.subr.bf16.mxu0 %v5438_v2 }
 0x9dd   : > { %v2235_v58 = vpop.xlane.xlu0 %2234 }
 0x9de   : > { %5288 = vrcp.f32 %v2235_v58 }
 0x9e1   : > { %v2464_v3 = vpop.permute.xlu0 %2463 }
 0x9e2   : > { %v2469_v19 = vsel %vm604_vm3, %v2464_v3, 0 }
 0x9e5   : > { %v2462_v5 = vpop.permute.xlu0 %2461 }
 0x9e8   : > { %v5289_v59 = vpop.eup %5288 }
 0x9e9   : > { %v2243_v60 = vmul.f32 %v5289_v59, %v5281_v34  ;;  %v2564_v22 = vpop.permute.xlu0 %2563 }
 0x9ea   : > { %v2569_v24 = vsel %vm604_vm3, %v2564_v22, 0 }
 0x9eb   : > { %v2247_v61 = vpack.c.bf16 %v2243_v60, %v2243_v60 }
 0x9ec   : > { %v2232_v62 = vpop.xlane.xlu1 %2231 }
 0x9ed   : > { %5290 = vrcp.f32 %v2232_v62  ;;  %4954 = vmatmul.mubr.msk.bf16.vlgmr.msra.gmra.mrb[60].mxu1 %vm793_vm4, %v2247_v61  ;;  %v2562_v25 = vpop.permute.xlu0 %2561 }
 0x9ee   : > { %4965 = vmatprep.mubr.msk.bf16.mxu1 %vm5441_vm0, %v5438_v2 }
 0x9f0   : > { %v2514_v63 = vpop.permute.xlu1 %2513 }
 0x9f1   : > { %v2519_v0 = vsel %vm604_vm3, %v2514_v63, 0 }
 0x9f2   : > { %4964 = vmatpush3.bf16.xpose.msra.mxu1 %v2519_v0 }
 0x9f3   : > { %4975 = vmatprep.subr.bf16.mxu1 %v5438_v2 }
 0x9f4   : > { %v2512_v1 = vpop.permute.xlu1 %2511 }
 0x9f7   : > { %v5291_v4 = vpop.eup %5290 }
 0x9f8   : > { %v2614_v9 = vpop.permute.xlu1 %2613  ;;  %v2242_v10 = vmul.f32 %v5291_v4, %v5283_v43 }
 0x9f9   : > { %v2619_v11 = vsel %vm604_vm3, %v2614_v9, 0  ;;  %4966 = vmatmul.mubr.msk.bf16.vlgmr.msra.gmra.mrb[64].mxu1 %vm604_vm3, %v2512_v1 }
 0x9fa   : > { %4976 = vmatpush3.bf16.xpose.msra.mxu1 %v2619_v11  ;;  %v2246_v12 = vpack.c.bf16 %v2242_v10, %v2242_v10  ;;  %4977 = vmatprep.mubr.msk.bf16.mxu1 %vm5441_vm0, %v5438_v2 }
 0x9fb   : > { %4987 = vmatprep.subr.bf16.mxu1 %v5438_v2 }
 0x9fc   : > { %4948 = vmatmul.mubr.msk.bf16.vlgmr.msra.gmra.mrb[60].mxu0 %vm793_vm4, %v2246_v12  ;;  %v2612_v20 = vpop.permute.xlu1 %2611 }
 0x9fd   : > { %4958 = vmatpush3.bf16.xpose.msra.mxu0 %v2469_v19  ;;  %4959 = vmatprep.mubr.msk.bf16.mxu0 %vm5441_vm0, %v5438_v2 }
 0x9fe   : > { %4969 = vmatprep.subr.bf16.mxu0 %v5438_v2 }
 0xa01   : > { %4978 = vmatmul.mubr.msk.bf16.vlgmr.msra.gmra.mrb[68].mxu1 %vm604_vm3, %v2612_v20 }
 0xa02   : > { %4989 = vmatprep.mubr.msk.bf16.mxu1 %vm5441_vm0, %v5438_v2 }
 0xa04   : > { %4960 = vmatmul.mubr.msk.bf16.vlgmr.msra.gmra.mrb[64].mxu0 %vm604_vm3, %v2462_v5 }
 0xa05   : > { %4970 = vmatpush3.bf16.xpose.msra.mxu0 %v2569_v24  ;;  %4971 = vmatprep.mubr.msk.bf16.mxu0 %vm5441_vm0, %v5438_v2 }
 0xa06   : > { %4981 = vmatprep.subr.bf16.mxu0 %v5438_v2 }
 0xa0c   : > { %4972 = vmatmul.mubr.msk.bf16.vlgmr.msra.gmra.mrb[68].mxu0 %vm604_vm3, %v2562_v25 }
 0xa0d   : > { %4983 = vmatprep.mubr.msk.bf16.mxu0 %vm5441_vm0, %v5438_v2 }
 0xa8b   : > { %v6123_v30 = vpop.f32.mrb[56].mxu1 }
 0xa8c   : > { %v4943_v31 = vpop.f32.mrb[57].mxu1 }
 0xa8d   : > { %v2341_v32 = vpop.f32.mrb[58].mxu1 }
 0xa8e   : > { %v4944_v33 = vpop.f32.mrb[59].mxu1 }
 0xa96   : > { %v6125_v34 = vpop.f32.mrb[56].mxu0 }
 0xa97   : > { %v4937_v35 = vpop.f32.mrb[57].mxu0 }
 0xa98   : > { %v2293_v41 = vpop.f32.mrb[58].mxu0 }
 0xa99   : > { %v4938_v43 = vpop.f32.mrb[59].mxu0 }
 0xac0   : > { %v6127_v44 = vpop.f32.mrb[60].mxu1 }
 0xac1   : > { %v4955_v45 = vpop.f32.mrb[61].mxu1 }
 0xac2   : > { %v2437_v46 = vpop.f32.mrb[62].mxu1 }
 0xac3   : > { %v4956_v47 = vpop.f32.mrb[63].mxu1 }
 0xacc   : > { %v2555_v48 = vpop.f32.mrb[64].mxu1 }
 0xacd   : > { %v2662_v49 = vmul.f32 0.17677669, %v2555_v48  ;;  %v4967_v7 = vpop.f32.mrb[65].mxu1 }
 0xace   : > { %v2558_v50 = vpop.f32.mrb[66].mxu1 }
 0xacf   : > { %4583 = vst.msk [vmem:[%s5757_s8 + $0x60] sm:$0xff] %vm793_vm4, %v2662_v49  ;;  %v6131_v51 = vpop.f32.mrb[60].mxu0  ;;  %v4968_v23 = vpop.f32.mrb[67].mxu1  ;;  %v2673_v52 = vsel %vm793_vm4, %v2662_v49, -inf }
 0xad0   : > { %2674 = vmax.xlane.f32.xlu1 %v2673_v52  ;;  %v4949_v54 = vpop.f32.mrb[61].mxu0 }
 0xad1   : > { %v2389_v55 = vpop.f32.mrb[62].mxu0 }
 0xad2   : > { %v4950_v56 = vpop.f32.mrb[63].mxu0 }
 0xad4   : > { %v2655_v57 = vpop.f32.mrb[68].mxu1 }
 0xad5   : > { %v2664_v58 = vmul.f32 0.17677669, %v2655_v57  ;;  %v4979_v59 = vpop.f32.mrb[69].mxu1 }
 0xad6   : > { %v2658_v60 = vpop.f32.mrb[70].mxu1 }
 0xad7   : > { %4585 = vst.msk [vmem:[%s5757_s8 + $0xe0] sm:$0xff] %vm793_vm4, %v2664_v58  ;;  %v2505_v61 = vpop.f32.mrb[64].mxu0  ;;  %v4980_v62 = vpop.f32.mrb[71].mxu1  ;;  %v2679_v20 = vsel %vm793_vm4, %v2664_v58, -inf }
 0xad8   : > { %v2661_v63 = vmul.f32 0.17677669, %v2505_v61  ;;  %v4961_v0 = vpop.f32.mrb[65].mxu0 }
 0xad9   : > { %v2508_v1 = vpop.f32.mrb[66].mxu0 }
 0xada   : > { %4582 = vst.msk [vmem:[%s5757_s8 + $0x20] sm:$0xff] %vm793_vm4, %v2661_v63  ;;  %v4962_v3 = vpop.f32.mrb[67].mxu0  ;;  %v2670_v4 = vsel %vm793_vm4, %v2661_v63, -inf }
 0xadb   : > { %2671 = vmax.xlane.f32.xlu0 %v2670_v4 }
 0xadf   : > { %v2605_v9 = vpop.f32.mrb[68].mxu0 }
 0xae0   : > { %v2663_v10 = vmul.f32 0.17677669, %v2605_v9  ;;  %v4973_v11 = vpop.f32.mrb[69].mxu0 }
 0xae1   : > { %v2608_v12 = vpop.f32.mrb[70].mxu0  ;;  %2718 = vrot.lane.b32.xlu1 %v5781_v39, %s5445_s10 }
 0xae2   : > { %4584 = vst.msk [vmem:[%s5757_s8 + $0xa0] sm:$0xff] %vm793_vm4, %v2663_v10  ;;  %v4974_v5 = vpop.f32.mrb[71].mxu0  ;;  %v2676_v19 = vsel %vm793_vm4, %v2663_v10, -inf }
 0xae3   : > { %2677 = vmax.xlane.f32.xlu0 %v2676_v19 }
 0xae7   : > { %2680 = vmax.xlane.f32.xlu0 %v2679_v20 }
 0xb5d   : > { %v2675_v22 = vpop.xlane.xlu1 %2674 }
 0xb5e   : > { %v2683_v24 = vsub.f32 %v2662_v49, %v2675_v22 }
 0xb60   : > { %v2688_v25 = vmul.f32 1.442695, %v2683_v24 }
 0xb61   : > { %v2719_v31 = vpop.permute.xlu1 %2718 }
 0xb62   : > { %5292 = vpow2.f32 %v2688_v25  ;;  %v2724_v32 = vsel %vm853_vm5, %v2719_v31, 0 }
 0xb63   : > { %4982 = vmatpush3.bf16.msra.mxu0 %v2724_v32 }
 0xb64   : > { %4993 = vmatprep.subr.bf16.mxu0 %v5438_v2 }
 0xb68   : > { %v2672_v33 = vpop.xlane.xlu0 %2671 }
 0xb69   : > { %v2682_v35 = vsub.f32 %v2661_v63, %v2672_v33 }
 0xb6b   : > { %v2686_v41 = vmul.f32 1.442695, %v2682_v35 }
 0xb6c   : > { %v5293_v43 = vpop.eup %5292 }
 0xb6d   : > { %5294 = vpow2.f32 %v2686_v41  ;;  %v2697_v45 = vsel %vm793_vm4, %v5293_v43, 0.0 }
 0xb6e   : > { %2698 = vadd.xlane.f32.xlu0 %v2697_v45 }
 0xb70   : > { %v2678_v48 = vpop.xlane.xlu0 %2677 }
 0xb71   : > { %v2684_v23 = vsub.f32 %v2663_v10, %v2678_v48 }
 0xb73   : > { %v2690_v54 = vmul.f32 1.442695, %v2684_v23 }
 0xb74   : > { %v2681_v49 = vpop.xlane.xlu0 %2680 }
 0xb75   : > { %v2685_v7 = vsub.f32 %v2664_v58, %v2681_v49 }
 0xb77   : > { %v5295_v46 = vpop.eup %5294  ;;  %v2692_v50 = vmul.f32 1.442695, %v2685_v7 }
 0xb78   : > { %v2694_v47 = vsel %vm793_vm4, %v5295_v46, 0.0 }
 0xb79   : > { %2695 = vadd.xlane.f32.xlu1 %v2694_v47  ;;  %5296 = vpow2.f32 %v2692_v50 }
 0xb7a   : > { %5298 = vpow2.f32 %v2690_v54 }
 0xb83   : > { %v5297_v52 = vpop.eup %5296 }
 0xb84   : > { %2766 = vrot.lane.b32.xlu0 %v5783_v40, %s5445_s10  ;;  %v2703_v55 = vsel %vm793_vm4, %v5297_v52, 0.0  ;;  %v5299_v56 = vpop.eup %5298 }
 0xb85   : > { %v2700_v57 = vsel %vm793_vm4, %v5299_v56, 0.0 }
 0xb8a   : > { %2814 = vrot.lane.b32.xlu1 %v5813_v53, %s5445_s10 }
 0xb8e   : > { %2862 = vrot.lane.b32.xlu1 %v5811_v8, %s5445_s10  ;;  %s4636_s10 = sshll.u32 %s5426_s27, 12 }
 0xba3   : > { %2704 = vadd.xlane.f32.xlu0 %v2703_v55 }
 0xbb2   : > { %2701 = vadd.xlane.f32.xlu1 %v2700_v57 }
 0xbb9   : > { %2933 = vrot.lane.b32.xlu0 %v5676_v37, %s5446_s12 }
 0xbbd   : > { %2931 = vrot.lane.b32.xlu0 %v5706_v16, %s5446_s12 }
 0xbc1   : > { %3033 = vrot.lane.b32.xlu0 %v5720_v28, %s5446_s12 }
 0xbc3   : > { %2983 = vrot.lane.b32.xlu1 %v5674_v36, %s5446_s12 }
 0xbc5   : > { %3031 = vrot.lane.b32.xlu0 %v5742_v13, %s5446_s12 }
 0xbc7   : > { %2981 = vrot.lane.b32.xlu1 %v5704_v15, %s5446_s12 }
 0xbcb   : > { %3083 = vrot.lane.b32.xlu1 %v5722_v29, %s5446_s12 }
 0xbcf   : > { %3081 = vrot.lane.b32.xlu1 %v5744_v14, %s5446_s12 }
 0xbfb   : > { %v2699_v58 = vpop.xlane.xlu0 %2698 }
 0xbfc   : > { %5300 = vrcp.f32 %v2699_v58 }
 0xbff   : > { %v2767_v59 = vpop.permute.xlu0 %2766 }
 0xc00   : > { %v2772_v60 = vsel %vm853_vm5, %v2767_v59, 0 }
 0xc01   : > { %4988 = vmatpush3.bf16.msra.mxu1 %v2772_v60 }
 0xc02   : > { %4999 = vmatprep.subr.bf16.mxu1 %v5438_v2 }
 0xc06   : > { %v5301_v61 = vpop.eup %5300  ;;  %v2696_v62 = vpop.xlane.xlu1 %2695 }
 0xc07   : > { %v2711_v63 = vmul.f32 %v5301_v61, %v5293_v43  ;;  %5302 = vrcp.f32 %v2696_v62 }
 0xc09   : > { %v2715_v0 = vpack.c.bf16 %v2711_v63, %v2711_v63 }
 0xc0a   : > { %v2815_v1 = vpop.permute.xlu1 %2814 }
 0xc0b   : > { %4990 = vmatmul.mubr.msk.bf16.vlgmr.msra.gmra.mrb[72].mxu1 %vm793_vm4, %v2715_v0  ;;  %v2820_v12 = vsel %vm853_vm5, %v2815_v1, 0 }
 0xc0c   : > { %5001 = vmatprep.mubr.msk.bf16.mxu1 %vm5441_vm0, %v5438_v2 }
 0xc0e   : > { %v2863_v3 = vpop.permute.xlu1 %2862 }
 0xc0f   : > { %v2868_v4 = vsel %vm853_vm5, %v2863_v3, 0 }
 0xc10   : > { %5000 = vmatpush3.bf16.msra.mxu1 %v2868_v4 }
 0xc11   : > { %v5303_v9 = vpop.eup %5302  ;;  %5011 = vmatprep.subr.bf16.mxu1 %v5438_v2 }
 0xc12   : > { %v2710_v10 = vmul.f32 %v5303_v9, %v5295_v46 }
 0xc14   : > { %v2714_v11 = vpack.c.bf16 %v2710_v10, %v2710_v10 }
 0xc16   : > { %4984 = vmatmul.mubr.msk.bf16.vlgmr.msra.gmra.mrb[72].mxu0 %vm793_vm4, %v2714_v11 }
 0xc17   : > { %4994 = vmatpush3.bf16.msra.mxu0 %v2820_v12  ;;  %4995 = vmatprep.mubr.msk.bf16.mxu0 %vm5441_vm0, %v5438_v2 }
 0xc18   : > { %5005 = vmatprep.subr.bf16.mxu0 %v5438_v2 }
 0xc30   : > { %v2705_v5 = vpop.xlane.xlu0 %2704 }
 0xc31   : > { %5304 = vrcp.f32 %v2705_v5 }
 0xc34   : > { %v2934_v33 = vpop.permute.xlu0 %2933 }
 0xc35   : > { %v2939_v48 = vsel %vm604_vm3, %v2934_v33, 0 }
 0xc38   : > { %v2932_v47 = vpop.permute.xlu0 %2931 }
 0xc3b   : > { %v5305_v19 = vpop.eup %5304 }
 0xc3c   : > { %v2713_v20 = vmul.f32 %v5305_v19, %v5297_v52  ;;  %v3034_v7 = vpop.permute.xlu0 %3033 }
 0xc3d   : > { %v3039_v50 = vsel %vm604_vm3, %v3034_v7, 0 }
 0xc3e   : > { %v2717_v22 = vpack.c.bf16 %v2713_v20, %v2713_v20 }
 0xc3f   : > { %v2702_v24 = vpop.xlane.xlu1 %2701 }
 0xc40   : > { %5306 = vrcp.f32 %v2702_v24  ;;  %5002 = vmatmul.mubr.msk.bf16.vlgmr.msra.gmra.mrb[76].mxu1 %vm793_vm4, %v2717_v22  ;;  %v3032_v23 = vpop.permute.xlu0 %3031 }
 0xc41   : > { %5013 = vmatprep.mubr.msk.bf16.mxu1 %vm5441_vm0, %v5438_v2 }
 0xc43   : > { %v2984_v25 = vpop.permute.xlu1 %2983 }
 0xc44   : > { %v2989_v31 = vsel %vm604_vm3, %v2984_v25, 0 }
 0xc45   : > { %5012 = vmatpush3.bf16.xpose.msra.mxu1 %v2989_v31 }
 0xc46   : > { %5023 = vmatprep.subr.bf16.mxu1 %v5438_v2 }
 0xc47   : > { %v2982_v32 = vpop.permute.xlu1 %2981 }
 0xc4a   : > { %v5307_v35 = vpop.eup %5306 }
 0xc4b   : > { %v2712_v41 = vmul.f32 %v5307_v35, %v5299_v56  ;;  %v3084_v43 = vpop.permute.xlu1 %3083 }
 0xc4c   : > { %v3089_v45 = vsel %vm604_vm3, %v3084_v43, 0  ;;  %5014 = vmatmul.mubr.msk.bf16.vlgmr.msra.gmra.mrb[80].mxu1 %vm604_vm3, %v2982_v32 }
 0xc4d   : > { %5024 = vmatpush3.bf16.xpose.msra.mxu1 %v3089_v45  ;;  %v2716_v46 = vpack.c.bf16 %v2712_v41, %v2712_v41  ;;  %5025 = vmatprep.mubr.msk.bf16.mxu1 %vm5441_vm0, %v5438_v2 }
 0xc4e   : > { %5035 = vmatprep.subr.bf16.mxu1 %v5438_v2 }
 0xc4f   : > { %4996 = vmatmul.mubr.msk.bf16.vlgmr.msra.gmra.mrb[76].mxu0 %vm793_vm4, %v2716_v46  ;;  %v3082_v49 = vpop.permute.xlu1 %3081 }
 0xc50   : > { %5006 = vmatpush3.bf16.xpose.msra.mxu0 %v2939_v48  ;;  %5007 = vmatprep.mubr.msk.bf16.mxu0 %vm5441_vm0, %v5438_v2 }
 0xc51   : > { %5017 = vmatprep.subr.bf16.mxu0 %v5438_v2 }
 0xc54   : > { %5026 = vmatmul.mubr.msk.bf16.vlgmr.msra.gmra.mrb[84].mxu1 %vm604_vm3, %v3082_v49 }
 0xc55   : > { %5037 = vmatprep.mubr.msk.bf16.mxu1 %vm5441_vm0, %v5438_v2 }
 0xc57   : > { %5008 = vmatmul.mubr.msk.bf16.vlgmr.msra.gmra.mrb[80].mxu0 %vm604_vm3, %v2932_v47 }
 0xc58   : > { %5018 = vmatpush3.bf16.xpose.msra.mxu0 %v3039_v50  ;;  %5019 = vmatprep.mubr.msk.bf16.mxu0 %vm5441_vm0, %v5438_v2 }
 0xc59   : > { %5029 = vmatprep.subr.bf16.mxu0 %v5438_v2 }
 0xc5f   : > { %5020 = vmatmul.mubr.msk.bf16.vlgmr.msra.gmra.mrb[84].mxu0 %vm604_vm3, %v3032_v23 }
 0xc60   : > { %5031 = vmatprep.mubr.msk.bf16.mxu0 %vm5441_vm0, %v5438_v2 }
 0xcde   : > { %v6211_v52 = vpop.f32.mrb[72].mxu1 }
 0xcdf   : > { %v4991_v54 = vpop.f32.mrb[73].mxu1 }
 0xce0   : > { %v2811_v55 = vpop.f32.mrb[74].mxu1 }
 0xce1   : > { %v4992_v56 = vpop.f32.mrb[75].mxu1 }
 0xce9   : > { %v6213_v57 = vpop.f32.mrb[72].mxu0 }
 0xcea   : > { %v4985_v58 = vpop.f32.mrb[73].mxu0 }
 0xceb   : > { %v2763_v59 = vpop.f32.mrb[74].mxu0 }
 0xcec   : > { %v4986_v60 = vpop.f32.mrb[75].mxu0 }
 0xd13   : > { %v6215_v61 = vpop.f32.mrb[76].mxu1 }
 0xd14   : > { %v5003_v62 = vpop.f32.mrb[77].mxu1 }
 0xd15   : > { %v2907_v63 = vpop.f32.mrb[78].mxu1 }
 0xd16   : > { %v5004_v0 = vpop.f32.mrb[79].mxu1 }
 0xd1f   : > { %v3025_v1 = vpop.f32.mrb[80].mxu1 }
 0xd20   : > { %v3132_v3 = vmul.f32 0.17677669, %v3025_v1  ;;  %v5015_v4 = vpop.f32.mrb[81].mxu1 }
 0xd21   : > { %v3028_v9 = vpop.f32.mrb[82].mxu1 }
 0xd22   : > { %4595 = vst.msk [vmem:[%s5757_s8 + $0x68] sm:$0xff] %vm793_vm4, %v3132_v3  ;;  %v6219_v10 = vpop.f32.mrb[76].mxu0  ;;  %v5016_v11 = vpop.f32.mrb[83].mxu1  ;;  %v3143_v12 = vsel %vm793_vm4, %v3132_v3, -inf }
 0xd23   : > { %3144 = vmax.xlane.f32.xlu1 %v3143_v12  ;;  %v4997_v5 = vpop.f32.mrb[77].mxu0 }
 0xd24   : > { %v2859_v19 = vpop.f32.mrb[78].mxu0 }
 0xd25   : > { %v4998_v20 = vpop.f32.mrb[79].mxu0 }
 0xd27   : > { %v3125_v22 = vpop.f32.mrb[84].mxu1 }
 0xd28   : > { %v3134_v24 = vmul.f32 0.17677669, %v3125_v22  ;;  %v5027_v25 = vpop.f32.mrb[85].mxu1 }
 0xd29   : > { %v3128_v31 = vpop.f32.mrb[86].mxu1 }
 0xd2a   : > { %4597 = vst.msk [vmem:[%s5757_s8 + $0xe8] sm:$0xff] %vm793_vm4, %v3134_v24  ;;  %v2975_v32 = vpop.f32.mrb[80].mxu0  ;;  %v5028_v33 = vpop.f32.mrb[87].mxu1  ;;  %v3149_v54 = vsel %vm793_vm4, %v3134_v24, -inf }
 0xd2b   : > { %v3131_v35 = vmul.f32 0.17677669, %v2975_v32  ;;  %v5009_v41 = vpop.f32.mrb[81].mxu0 }
 0xd2c   : > { %v2978_v43 = vpop.f32.mrb[82].mxu0 }
 0xd2d   : > { %4594 = vst.msk [vmem:[%s5757_s8 + $0x28] sm:$0xff] %vm793_vm4, %v3131_v35  ;;  %v5010_v45 = vpop.f32.mrb[83].mxu0  ;;  %v3140_v46 = vsel %vm793_vm4, %v3131_v35, -inf }
 0xd2e   : > { %3141 = vmax.xlane.f32.xlu0 %v3140_v46 }
 0xd32   : > { %v3075_v47 = vpop.f32.mrb[84].mxu0 }
 0xd33   : > { %v3133_v48 = vmul.f32 0.17677669, %v3075_v47  ;;  %v5021_v49 = vpop.f32.mrb[85].mxu0 }
 0xd34   : > { %v3078_v7 = vpop.f32.mrb[86].mxu0  ;;  %3188 = vrot.lane.b32.xlu1 %v5781_v39, %s5446_s12 }
 0xd35   : > { %4596 = vst.msk [vmem:[%s5757_s8 + $0xa8] sm:$0xff] %vm793_vm4, %v3133_v48  ;;  %v5022_v50 = vpop.f32.mrb[87].mxu0  ;;  %v3146_v23 = vsel %vm793_vm4, %v3133_v48, -inf }
 0xd36   : > { %3147 = vmax.xlane.f32.xlu0 %v3146_v23 }
 0xd3a   : > { %3150 = vmax.xlane.f32.xlu0 %v3149_v54 }
 0xdb0   : > { %v3145_v55 = vpop.xlane.xlu1 %3144 }
 0xdb1   : > { %v3153_v56 = vsub.f32 %v3132_v3, %v3145_v55 }
 0xdb3   : > { %v3158_v58 = vmul.f32 1.442695, %v3153_v56 }
 0xdb4   : > { %v3189_v59 = vpop.permute.xlu1 %3188 }
 0xdb5   : > { %5308 = vpow2.f32 %v3158_v58  ;;  %v3194_v60 = vsel %vm853_vm5, %v3189_v59, 0 }
 0xdb6   : > { %5030 = vmatpush3.bf16.msra.mxu0 %v3194_v60 }
 0xdb7   : > { %5041 = vmatprep.subr.bf16.mxu0 %v5438_v2 }
 0xdbb   : > { %v3142_v62 = vpop.xlane.xlu0 %3141 }
 0xdbc   : > { %v3152_v63 = vsub.f32 %v3131_v35, %v3142_v62 }
 0xdbe   : > { %v3156_v0 = vmul.f32 1.442695, %v3152_v63 }
 0xdbf   : > { %v5309_v1 = vpop.eup %5308 }
 0xdc0   : > { %5310 = vpow2.f32 %v3156_v0  ;;  %v3167_v4 = vsel %vm793_vm4, %v5309_v1, 0.0 }
 0xdc1   : > { %3168 = vadd.xlane.f32.xlu0 %v3167_v4 }
 0xdc3   : > { %v3148_v3 = vpop.xlane.xlu0 %3147 }
 0xdc4   : > { %v3154_v20 = vsub.f32 %v3133_v48, %v3148_v3 }
 0xdc6   : > { %v3160_v25 = vmul.f32 1.442695, %v3154_v20 }
 0xdc7   : > { %v3151_v12 = vpop.xlane.xlu0 %3150 }
 0xdc8   : > { %v3155_v5 = vsub.f32 %v3134_v24, %v3151_v12 }
 0xdca   : > { %v5311_v9 = vpop.eup %5310  ;;  %v3162_v19 = vmul.f32 1.442695, %v3155_v5 }
 0xdcb   : > { %v3164_v11 = vsel %vm793_vm4, %v5311_v9, 0.0 }
 0xdcc   : > { %3165 = vadd.xlane.f32.xlu1 %v3164_v11  ;;  %5312 = vpow2.f32 %v3162_v19 }
 0xdcd   : > { %5314 = vpow2.f32 %v3160_v25 }
 0xdd6   : > { %v5313_v22 = vpop.eup %5312 }
 0xdd7   : > { %3236 = vrot.lane.b32.xlu0 %v5783_v40, %s5446_s12  ;;  %v3173_v31 = vsel %vm793_vm4, %v5313_v22, 0.0  ;;  %v5315_v32 = vpop.eup %5314 }
 0xdd8   : > { %v3170_v33 = vsel %vm793_vm4, %v5315_v32, 0.0 }
 0xddd   : > { %3284 = vrot.lane.b32.xlu1 %v5813_v53, %s5446_s12 }
 0xde1   : > { %3332 = vrot.lane.b32.xlu1 %v5811_v8, %s5446_s12  ;;  %s4371_s12 = sshll.u32 %s5757_s8, 4  ;;  %s6509_s12 = int_to_ptr.vmem [resolvable:$true] %s4371_s12 }
 0xde2   : > { %s5356_s27 = scalar_lea.vmem %s6509_s12, 4096 }
 0xde3   : > { %p5357_p12 = scmp.ne.s32.totalorder %s6509_s12, %s5356_s27 }
 0xde5   : > { %p5358_p13 = pnand %p5357_p12, %p5538_p4 }
 0xde7   : > { %p5359_p0 = pneg %p5358_p13 }
 0xdf6   : > { %3174 = vadd.xlane.f32.xlu0 %v3173_v31 }
 0xe05   : > { %3171 = vadd.xlane.f32.xlu1 %v3170_v33 }
 0xe0c   : > { %3403 = vrot.lane.b32.xlu0 %v5676_v37, %s5447_s17 }
 0xe10   : > { %3401 = vrot.lane.b32.xlu0 %v5706_v16, %s5447_s17 }
 0xe14   : > { %3503 = vrot.lane.b32.xlu0 %v5720_v28, %s5447_s17 }
 0xe16   : > { %3453 = vrot.lane.b32.xlu1 %v5674_v36, %s5447_s17 }
 0xe18   : > { %3501 = vrot.lane.b32.xlu0 %v5742_v13, %s5447_s17 }
 0xe1a   : > { %3451 = vrot.lane.b32.xlu1 %v5704_v15, %s5447_s17 }
 0xe1e   : > { %3553 = vrot.lane.b32.xlu1 %v5722_v29, %s5447_s17 }
 0xe22   : > { %3551 = vrot.lane.b32.xlu1 %v5744_v14, %s5447_s17 }
 0xe4e   : > { %v3169_v24 = vpop.xlane.xlu0 %3168 }
 0xe4f   : > { %5316 = vrcp.f32 %v3169_v24 }
 0xe52   : > { %v3237_v35 = vpop.permute.xlu0 %3236 }
 0xe53   : > { %v3242_v41 = vsel %vm853_vm5, %v3237_v35, 0 }
 0xe54   : > { %5036 = vmatpush3.bf16.msra.mxu1 %v3242_v41 }
 0xe55   : > { %5047 = vmatprep.subr.bf16.mxu1 %v5438_v2 }
 0xe59   : > { %v5317_v43 = vpop.eup %5316  ;;  %v3166_v45 = vpop.xlane.xlu1 %3165 }
 0xe5a   : > { %v3181_v46 = vmul.f32 %v5317_v43, %v5309_v1  ;;  %5318 = vrcp.f32 %v3166_v45 }
 0xe5c   : > { %v3185_v47 = vpack.c.bf16 %v3181_v46, %v3181_v46 }
 0xe5d   : > { %v3285_v48 = vpop.permute.xlu1 %3284 }
 0xe5e   : > { %5038 = vmatmul.mubr.msk.bf16.vlgmr.msra.gmra.mrb[88].mxu1 %vm793_vm4, %v3185_v47  ;;  %v3290_v55 = vsel %vm853_vm5, %v3285_v48, 0 }
 0xe5f   : > { %5049 = vmatprep.mubr.msk.bf16.mxu1 %vm5441_vm0, %v5438_v2 }
 0xe61   : > { %v3333_v49 = vpop.permute.xlu1 %3332 }
 0xe62   : > { %v3338_v7 = vsel %vm853_vm5, %v3333_v49, 0 }
 0xe63   : > { %5048 = vmatpush3.bf16.msra.mxu1 %v3338_v7 }
 0xe64   : > { %v5319_v50 = vpop.eup %5318  ;;  %5059 = vmatprep.subr.bf16.mxu1 %v5438_v2 }
 0xe65   : > { %v3180_v23 = vmul.f32 %v5319_v50, %v5311_v9 }
 0xe67   : > { %v3184_v54 = vpack.c.bf16 %v3180_v23, %v3180_v23 }
 0xe69   : > { %5032 = vmatmul.mubr.msk.bf16.vlgmr.msra.gmra.mrb[88].mxu0 %vm793_vm4, %v3184_v54 }
 0xe6a   : > { %5042 = vmatpush3.bf16.msra.mxu0 %v3290_v55  ;;  %5043 = vmatprep.mubr.msk.bf16.mxu0 %vm5441_vm0, %v5438_v2 }
 0xe6b   : > { %5053 = vmatprep.subr.bf16.mxu0 %v5438_v2 }
 0xe83   : > { %v3175_v56 = vpop.xlane.xlu0 %3174 }
 0xe84   : > { %5320 = vrcp.f32 %v3175_v56 }
 0xe87   : > { %v3404_v4 = vpop.permute.xlu0 %3403 }
 0xe88   : > { %v3409_v20 = vsel %vm604_vm3, %v3404_v4, 0 }
 0xe8b   : > { %v3402_v19 = vpop.permute.xlu0 %3401 }
 0xe8e   : > { %v5321_v58 = vpop.eup %5320 }
 0xe8f   : > { %v3183_v59 = vmul.f32 %v5321_v58, %v5313_v22  ;;  %v3504_v25 = vpop.permute.xlu0 %3503 }
 0xe90   : > { %v3509_v31 = vsel %vm604_vm3, %v3504_v25, 0 }
 0xe91   : > { %v3187_v60 = vpack.c.bf16 %v3183_v59, %v3183_v59 }
 0xe92   : > { %v3172_v62 = vpop.xlane.xlu1 %3171 }
 0xe93   : > { %5322 = vrcp.f32 %v3172_v62  ;;  %5050 = vmatmul.mubr.msk.bf16.vlgmr.msra.gmra.mrb[92].mxu1 %vm793_vm4, %v3187_v60 }
 0xe94   : > { %5061 = vmatprep.mubr.msk.bf16.mxu1 %vm5441_vm0, %v5438_v2 }
 0xe96   : > { %v3454_v63 = vpop.permute.xlu1 %3453 }
 0xe97   : > { %v3459_v0 = vsel %vm604_vm3, %v3454_v63, 0 }
 0xe98   : > { %5060 = vmatpush3.bf16.xpose.msra.mxu1 %v3459_v0 }
 0xe99   : > { %5071 = vmatprep.subr.bf16.mxu1 %v5438_v2 }
 0xe9a   : > { %v3452_v1 = vpop.permute.xlu1 %3451 }
 0xe9d   : > { %v5323_v9 = vpop.eup %5322 }
 0xe9e   : > { %v3182_v11 = vmul.f32 %v5323_v9, %v5315_v32  ;;  %v3554_v3 = vpop.permute.xlu1 %3553  ;;  %v3502_v32 = vpop.permute.xlu0 %3501 }
 0xe9f   : > { %v3559_v12 = vsel %vm604_vm3, %v3554_v3, 0  ;;  %5062 = vmatmul.mubr.msk.bf16.vlgmr.msra.gmra.mrb[96].mxu1 %vm604_vm3, %v3452_v1 }
 0xea0   : > { %5072 = vmatpush3.bf16.xpose.msra.mxu1 %v3559_v12  ;;  %v3186_v5 = vpack.c.bf16 %v3182_v11, %v3182_v11  ;;  %5073 = vmatprep.mubr.msk.bf16.mxu1 %vm5441_vm0, %v5438_v2 }
 0xea1   : > { %5083 = vmatprep.subr.bf16.mxu1 %v5438_v2 }
 0xea2   : > { %5044 = vmatmul.mubr.msk.bf16.vlgmr.msra.gmra.mrb[92].mxu0 %vm793_vm4, %v3186_v5  ;;  %v3552_v22 = vpop.permute.xlu1 %3551 }
 0xea3   : > { %5054 = vmatpush3.bf16.xpose.msra.mxu0 %v3409_v20  ;;  %5055 = vmatprep.mubr.msk.bf16.mxu0 %vm5441_vm0, %v5438_v2 }
 0xea4   : > { %5065 = vmatprep.subr.bf16.mxu0 %v5438_v2 }
 0xea7   : > { %5074 = vmatmul.mubr.msk.bf16.vlgmr.msra.gmra.mrb[100].mxu1 %vm604_vm3, %v3552_v22 }
 0xea8   : > { %5085 = vmatprep.mubr.msk.bf16.mxu1 %vm5441_vm0, %v5438_v2 }
 0xeaa   : > { %5056 = vmatmul.mubr.msk.bf16.vlgmr.msra.gmra.mrb[96].mxu0 %vm604_vm3, %v3402_v19 }
 0xeab   : > { %5066 = vmatpush3.bf16.xpose.msra.mxu0 %v3509_v31  ;;  %5067 = vmatprep.mubr.msk.bf16.mxu0 %vm5441_vm0, %v5438_v2 }
 0xeac   : > { %5077 = vmatprep.subr.bf16.mxu0 %v5438_v2 }
 0xeb2   : > { %5068 = vmatmul.mubr.msk.bf16.vlgmr.msra.gmra.mrb[100].mxu0 %vm604_vm3, %v3502_v32 }
 0xeb3   : > { %5079 = vmatprep.mubr.msk.bf16.mxu0 %vm5441_vm0, %v5438_v2 }
 0xf31   : > { %v6299_v33 = vpop.f32.mrb[88].mxu1 }
 0xf32   : > { %v5039_v24 = vpop.f32.mrb[89].mxu1 }
 0xf33   : > { %v3281_v35 = vpop.f32.mrb[90].mxu1 }
 0xf34   : > { %v5040_v41 = vpop.f32.mrb[91].mxu1 }
 0xf3c   : > { %v6301_v43 = vpop.f32.mrb[88].mxu0 }
 0xf3d   : > { %v5033_v45 = vpop.f32.mrb[89].mxu0 }
 0xf3e   : > { %v3233_v46 = vpop.f32.mrb[90].mxu0 }
 0xf3f   : > { %v5034_v47 = vpop.f32.mrb[91].mxu0 }
 0xf66   : > { %v6303_v48 = vpop.f32.mrb[92].mxu1 }
 0xf67   : > { %v5051_v49 = vpop.f32.mrb[93].mxu1 }
 0xf68   : > { %v3377_v7 = vpop.f32.mrb[94].mxu1 }
 0xf69   : > { %v5052_v50 = vpop.f32.mrb[95].mxu1 }
 0xf72   : > { %v3495_v23 = vpop.f32.mrb[96].mxu1 }
 0xf73   : > { %v3602_v54 = vmul.f32 0.17677669, %v3495_v23  ;;  %v5063_v55 = vpop.f32.mrb[97].mxu1 }
 0xf74   : > { %v3498_v56 = vpop.f32.mrb[98].mxu1 }
 0xf75   : > { %4607 = vst.msk [vmem:[%s5757_s8 + $0x70] sm:$0xff] %vm793_vm4, %v3602_v54  ;;  %v6307_v58 = vpop.f32.mrb[92].mxu0  ;;  %v5064_v59 = vpop.f32.mrb[99].mxu1  ;;  %v3613_v60 = vsel %vm793_vm4, %v3602_v54, -inf }
 0xf76   : > { %3614 = vmax.xlane.f32.xlu1 %v3613_v60  ;;  %v5045_v62 = vpop.f32.mrb[93].mxu0 }
 0xf77   : > { %v3329_v63 = vpop.f32.mrb[94].mxu0 }
 0xf78   : > { %v5046_v0 = vpop.f32.mrb[95].mxu0 }
 0xf7a   : > { %v3595_v1 = vpop.f32.mrb[100].mxu1 }
 0xf7b   : > { %v3604_v4 = vmul.f32 0.17677669, %v3595_v1  ;;  %v5075_v9 = vpop.f32.mrb[101].mxu1 }
 0xf7c   : > { %v3598_v11 = vpop.f32.mrb[102].mxu1 }
 0xf7d   : > { %4609 = vst.msk [vmem:[%s5757_s8 + $0xf0] sm:$0xff] %vm793_vm4, %v3604_v4  ;;  %v3445_v3 = vpop.f32.mrb[96].mxu0  ;;  %v5076_v12 = vpop.f32.mrb[103].mxu1  ;;  %v3619_v46 = vsel %vm793_vm4, %v3604_v4, -inf }
 0xf7e   : > { %v3601_v5 = vmul.f32 0.17677669, %v3445_v3  ;;  %v5057_v19 = vpop.f32.mrb[97].mxu0 }
 0xf7f   : > { %v3448_v20 = vpop.f32.mrb[98].mxu0 }
 0xf80   : > { %4606 = vst.msk [vmem:[%s5757_s8 + $0x30] sm:$0xff] %vm793_vm4, %v3601_v5  ;;  %v5058_v22 = vpop.f32.mrb[99].mxu0  ;;  %v3610_v25 = vsel %vm793_vm4, %v3601_v5, -inf }
 0xf81   : > { %3611 = vmax.xlane.f32.xlu0 %v3610_v25 }
 0xf85   : > { %v3545_v31 = vpop.f32.mrb[100].mxu0 }
 0xf86   : > { %v3603_v32 = vmul.f32 0.17677669, %v3545_v31  ;;  %v5069_v24 = vpop.f32.mrb[101].mxu0 }
 0xf87   : > { %v3548_v35 = vpop.f32.mrb[102].mxu0  ;;  %3658 = vrot.lane.b32.xlu1 %v5781_v39, %s5447_s17 }
 0xf88   : > { %4608 = vst.msk [vmem:[%s5757_s8 + $0xb0] sm:$0xff] %vm793_vm4, %v3603_v32  ;;  %v5070_v41 = vpop.f32.mrb[103].mxu0  ;;  %v3616_v45 = vsel %vm793_vm4, %v3603_v32, -inf }
 0xf89   : > { %3617 = vmax.xlane.f32.xlu0 %v3616_v45 }
 0xf8d   : > { %3620 = vmax.xlane.f32.xlu0 %v3619_v46 }
0x1003   : > { %v3615_v47 = vpop.xlane.xlu1 %3614 }
0x1004   : > { %v3623_v49 = vsub.f32 %v3602_v54, %v3615_v47 }
0x1006   : > { %v3628_v7 = vmul.f32 1.442695, %v3623_v49 }
0x1007   : > { %v3659_v50 = vpop.permute.xlu1 %3658 }
0x1008   : > { %5324 = vpow2.f32 %v3628_v7  ;;  %v3664_v23 = vsel %vm853_vm5, %v3659_v50, 0 }
0x1009   : > { %5078 = vmatpush3.bf16.msra.mxu0 %v3664_v23 }
0x100a   : > { %5089 = vmatprep.subr.bf16.mxu0 %v5438_v2 }
0x100e   : > { %v3612_v55 = vpop.xlane.xlu0 %3611 }
0x100f   : > { %v3622_v56 = vsub.f32 %v3601_v5, %v3612_v55 }
0x1011   : > { %v3626_v59 = vmul.f32 1.442695, %v3622_v56 }
0x1012   : > { %v5325_v60 = vpop.eup %5324 }
0x1013   : > { %5326 = vpow2.f32 %v3626_v59  ;;  %v3637_v62 = vsel %vm793_vm4, %v5325_v60, 0.0 }
0x1014   : > { %3638 = vadd.xlane.f32.xlu0 %v3637_v62 }
0x1016   : > { %v3618_v54 = vpop.xlane.xlu0 %3617 }
0x1017   : > { %v3624_v3 = vsub.f32 %v3603_v32, %v3618_v54 }
0x1019   : > { %v3630_v5 = vmul.f32 1.442695, %v3624_v3 }
0x101a   : > { %v3621_v1 = vpop.xlane.xlu0 %3620 }
0x101b   : > { %v3625_v9 = vsub.f32 %v3604_v4, %v3621_v1 }
0x101d   : > { %v5327_v63 = vpop.eup %5326  ;;  %v3632_v11 = vmul.f32 1.442695, %v3625_v9 }
0x101e   : > { %v3634_v0 = vsel %vm793_vm4, %v5327_v63, 0.0 }
0x101f   : > { %3635 = vadd.xlane.f32.xlu1 %v3634_v0  ;;  %5328 = vpow2.f32 %v3632_v11 }
0x1020   : > { %5330 = vpow2.f32 %v3630_v5 }
0x1029   : > { %v5329_v12 = vpop.eup %5328 }
0x102a   : > { %3706 = vrot.lane.b32.xlu0 %v5783_v40, %s5447_s17  ;;  %v3643_v19 = vsel %vm793_vm4, %v5329_v12, 0.0  ;;  %v5331_v20 = vpop.eup %5330 }
0x102b   : > { %v3640_v22 = vsel %vm793_vm4, %v5331_v20, 0.0 }
0x1030   : > { %3754 = vrot.lane.b32.xlu1 %v5813_v53, %s5447_s17 }
0x1034   : > { %3802 = vrot.lane.b32.xlu1 %v5811_v8, %s5447_s17  ;;  %s5455_s17 = smov 28  }
0x1049   : > { %3644 = vadd.xlane.f32.xlu0 %v3643_v19 }
0x1058   : > { %3641 = vadd.xlane.f32.xlu1 %v3640_v22 }
0x105f   : > { %3873 = vrot.lane.b32.xlu0 %v5676_v37, %s5448_s18 }
0x1063   : > { %3871 = vrot.lane.b32.xlu0 %v5706_v16, %s5448_s18 }
0x1067   : > { %3973 = vrot.lane.b32.xlu0 %v5720_v28, %s5448_s18 }
0x1069   : > { %3923 = vrot.lane.b32.xlu1 %v5674_v36, %s5448_s18 }
0x106b   : > { %3971 = vrot.lane.b32.xlu0 %v5742_v13, %s5448_s18 }
0x106d   : > { %3921 = vrot.lane.b32.xlu1 %v5704_v15, %s5448_s18 }
0x1071   : > { %4023 = vrot.lane.b32.xlu1 %v5722_v29, %s5448_s18 }
0x1075   : > { %4021 = vrot.lane.b32.xlu1 %v5744_v14, %s5448_s18 }
0x10a1   : > { %v3639_v37 = vpop.xlane.xlu0 %3638 }
0x10a2   : > { %5332 = vrcp.f32 %v3639_v37 }
0x10a5   : > { %v3707_v16 = vpop.permute.xlu0 %3706 }
0x10a6   : > { %v3712_v28 = vsel %vm853_vm5, %v3707_v16, 0 }
0x10a7   : > { %5084 = vmatpush3.bf16.msra.mxu1 %v3712_v28 }
0x10a8   : > { %5095 = vmatprep.subr.bf16.mxu1 %v5438_v2 }
0x10ac   : > { %v5333_v36 = vpop.eup %5332  ;;  %v3636_v4 = vpop.xlane.xlu1 %3635 }
0x10ad   : > { %v3651_v13 = vmul.f32 %v5333_v36, %v5325_v60  ;;  %5334 = vrcp.f32 %v3636_v4 }
0x10af   : > { %v3655_v25 = vpack.c.bf16 %v3651_v13, %v3651_v13 }
0x10b0   : > { %v3755_v15 = vpop.permute.xlu1 %3754 }
0x10b1   : > { %5086 = vmatmul.mubr.msk.bf16.vlgmr.msra.gmra.mrb[104].mxu1 %vm793_vm4, %v3655_v25  ;;  %v3760_v35 = vsel %vm853_vm5, %v3755_v15, 0 }
0x10b2   : > { %5097 = vmatprep.mubr.msk.bf16.mxu1 %vm5441_vm0, %v5438_v2 }
0x10b4   : > { %v3803_v29 = vpop.permute.xlu1 %3802 }
0x10b5   : > { %v3808_v14 = vsel %vm853_vm5, %v3803_v29, 0 }
0x10b6   : > { %5096 = vmatpush3.bf16.msra.mxu1 %v3808_v14 }
0x10b7   : > { %v5335_v31 = vpop.eup %5334  ;;  %5107 = vmatprep.subr.bf16.mxu1 %v5438_v2 }
0x10b8   : > { %v3650_v32 = vmul.f32 %v5335_v31, %v5327_v63 }
0x10ba   : > { %v3654_v24 = vpack.c.bf16 %v3650_v32, %v3650_v32 }
0x10bc   : > { %5080 = vmatmul.mubr.msk.bf16.vlgmr.msra.gmra.mrb[104].mxu0 %vm793_vm4, %v3654_v24 }
0x10bd   : > { %5090 = vmatpush3.bf16.msra.mxu0 %v3760_v35  ;;  %5091 = vmatprep.mubr.msk.bf16.mxu0 %vm5441_vm0, %v5438_v2 }
0x10be   : > { %5101 = vmatprep.subr.bf16.mxu0 %v5438_v2 }
0x10d6   : > { %v3645_v41 = vpop.xlane.xlu0 %3644 }
0x10d7   : > { %5336 = vrcp.f32 %v3645_v41 }
0x10da   : > { %v3874_v55 = vpop.permute.xlu0 %3873 }
0x10db   : > { %v3879_v54 = vsel %vm604_vm3, %v3874_v55, 0 }
0x10de   : > { %v3872_v0 = vpop.permute.xlu0 %3871 }
0x10e1   : > { %v5337_v45 = vpop.eup %5336 }
0x10e2   : > { %v3653_v46 = vmul.f32 %v5337_v45, %v5329_v12  ;;  %v3974_v9 = vpop.permute.xlu0 %3973 }
0x10e3   : > { %v3979_v11 = vsel %vm604_vm3, %v3974_v9, 0 }
0x10e4   : > { %v3657_v47 = vpack.c.bf16 %v3653_v46, %v3653_v46 }
0x10e5   : > { %v3642_v49 = vpop.xlane.xlu1 %3641 }
0x10e6   : > { %5338 = vrcp.f32 %v3642_v49  ;;  %5098 = vmatmul.mubr.msk.bf16.vlgmr.msra.gmra.mrb[108].mxu1 %vm793_vm4, %v3657_v47  ;;  %v3972_v3 = vpop.permute.xlu0 %3971 }
0x10e7   : > { %5109 = vmatprep.mubr.msk.bf16.mxu1 %vm5441_vm0, %v5438_v2 }
0x10e9   : > { %v3924_v7 = vpop.permute.xlu1 %3923 }
0x10ea   : > { %v3929_v50 = vsel %vm604_vm3, %v3924_v7, 0 }
0x10eb   : > { %5108 = vmatpush3.bf16.xpose.msra.mxu1 %v3929_v50 }
0x10ec   : > { %5119 = vmatprep.subr.bf16.mxu1 %v5438_v2 }
0x10ed   : > { %v3922_v23 = vpop.permute.xlu1 %3921 }
0x10f0   : > { %v5339_v56 = vpop.eup %5338 }
0x10f1   : > { %v3652_v59 = vmul.f32 %v5339_v56, %v5331_v20  ;;  %v4024_v60 = vpop.permute.xlu1 %4023 }
0x10f2   : > { %v4029_v62 = vsel %vm604_vm3, %v4024_v60, 0  ;;  %5110 = vmatmul.mubr.msk.bf16.vlgmr.msra.gmra.mrb[112].mxu1 %vm604_vm3, %v3922_v23 }
0x10f3   : > { %5120 = vmatpush3.bf16.xpose.msra.mxu1 %v4029_v62  ;;  %v3656_v63 = vpack.c.bf16 %v3652_v59, %v3652_v59  ;;  %5121 = vmatprep.mubr.msk.bf16.mxu1 %vm5441_vm0, %v5438_v2 }
0x10f4   : > { %5131 = vmatprep.subr.bf16.mxu1 %v5438_v2 }
0x10f5   : > { %5092 = vmatmul.mubr.msk.bf16.vlgmr.msra.gmra.mrb[108].mxu0 %vm793_vm4, %v3656_v63  ;;  %v4022_v1 = vpop.permute.xlu1 %4021 }
0x10f6   : > { %5102 = vmatpush3.bf16.xpose.msra.mxu0 %v3879_v54  ;;  %5103 = vmatprep.mubr.msk.bf16.mxu0 %vm5441_vm0, %v5438_v2 }
0x10f7   : > { %5113 = vmatprep.subr.bf16.mxu0 %v5438_v2 }
0x10fa   : > { %5122 = vmatmul.mubr.msk.bf16.vlgmr.msra.gmra.mrb[116].mxu1 %vm604_vm3, %v4022_v1 }
0x10fb   : > { %5133 = vmatprep.mubr.msk.bf16.mxu1 %vm5441_vm0, %v5438_v2 }
0x10fd   : > { %5104 = vmatmul.mubr.msk.bf16.vlgmr.msra.gmra.mrb[112].mxu0 %vm604_vm3, %v3872_v0 }
0x10fe   : > { %5114 = vmatpush3.bf16.xpose.msra.mxu0 %v3979_v11  ;;  %5115 = vmatprep.mubr.msk.bf16.mxu0 %vm5441_vm0, %v5438_v2 }
0x10ff   : > { %5125 = vmatprep.subr.bf16.mxu0 %v5438_v2 }
0x1105   : > { %5116 = vmatmul.mubr.msk.bf16.vlgmr.msra.gmra.mrb[116].mxu0 %vm604_vm3, %v3972_v3 }
0x1106   : > { %5127 = vmatprep.mubr.msk.bf16.mxu0 %vm5441_vm0, %v5438_v2 }
0x1184   : > { %v6387_v12 = vpop.f32.mrb[104].mxu1 }
0x1185   : > { %v5087_v5 = vpop.f32.mrb[105].mxu1 }
0x1186   : > { %v3751_v19 = vpop.f32.mrb[106].mxu1 }
0x1187   : > { %v5088_v20 = vpop.f32.mrb[107].mxu1 }
0x118f   : > { %v6389_v22 = vpop.f32.mrb[104].mxu0 }
0x1190   : > { %v5081_v37 = vpop.f32.mrb[105].mxu0 }
0x1191   : > { %v3703_v16 = vpop.f32.mrb[106].mxu0 }
0x1192   : > { %v5082_v28 = vpop.f32.mrb[107].mxu0 }
0x11b9   : > { %v6391_v36 = vpop.f32.mrb[108].mxu1 }
0x11ba   : > { %v5099_v4 = vpop.f32.mrb[109].mxu1 }
0x11bb   : > { %v3847_v13 = vpop.f32.mrb[110].mxu1 }
0x11bc   : > { %v5100_v25 = vpop.f32.mrb[111].mxu1 }
0x11c5   : > { %v3965_v15 = vpop.f32.mrb[112].mxu1 }
0x11c6   : > { %v4072_v29 = vmul.f32 0.17677669, %v3965_v15  ;;  %v5111_v14 = vpop.f32.mrb[113].mxu1 }
0x11c7   : > { %v3968_v31 = vpop.f32.mrb[114].mxu1 }
0x11c8   : > { %4619 = vst.msk [vmem:[%s5757_s8 + $0x78] sm:$0xff] %vm793_vm4, %v4072_v29  ;;  %v6395_v32 = vpop.f32.mrb[108].mxu0  ;;  %v5112_v24 = vpop.f32.mrb[115].mxu1  ;;  %v4083_v35 = vsel %vm793_vm4, %v4072_v29, -inf }
0x11c9   : > { %4084 = vmax.xlane.f32.xlu1 %v4083_v35  ;;  %v5093_v41 = vpop.f32.mrb[109].mxu0 }
0x11ca   : > { %v3799_v45 = vpop.f32.mrb[110].mxu0 }
0x11cb   : > { %v5094_v46 = vpop.f32.mrb[111].mxu0 }
0x11cd   : > { %v4065_v47 = vpop.f32.mrb[116].mxu1 }
0x11ce   : > { %v4074_v49 = vmul.f32 0.17677669, %v4065_v47  ;;  %v5123_v7 = vpop.f32.mrb[117].mxu1 }
0x11cf   : > { %v4068_v50 = vpop.f32.mrb[118].mxu1 }
0x11d0   : > { %4621 = vst.msk [vmem:[%s5757_s8 + $0xf8] sm:$0xff] %vm793_vm4, %v4074_v49  ;;  %v3915_v23 = vpop.f32.mrb[112].mxu0  ;;  %v5124_v55 = vpop.f32.mrb[119].mxu1  ;;  %v4089_v5 = vsel %vm793_vm4, %v4074_v49, -inf }
0x11d1   : > { %v4071_v56 = vmul.f32 0.17677669, %v3915_v23  ;;  %v5105_v59 = vpop.f32.mrb[113].mxu0 }
0x11d2   : > { %v3918_v60 = vpop.f32.mrb[114].mxu0 }
0x11d3   : > { %4618 = vst.msk [vmem:[%s5757_s8 + $0x38] sm:$0xff] %vm793_vm4, %v4071_v56  ;;  %v5106_v62 = vpop.f32.mrb[115].mxu0  ;;  %v4080_v63 = vsel %vm793_vm4, %v4071_v56, -inf }
0x11d4   : > { %4081 = vmax.xlane.f32.xlu0 %v4080_v63 }
0x11d8   : > { %v4015_v0 = vpop.f32.mrb[116].mxu0 }
0x11d9   : > { %v4073_v54 = vmul.f32 0.17677669, %v4015_v0  ;;  %v5117_v1 = vpop.f32.mrb[117].mxu0 }
0x11da   : > { %v4018_v9 = vpop.f32.mrb[118].mxu0  ;;  %4128 = vrot.lane.b32.xlu1 %v5781_v39, %s5448_s18 }
0x11db   : > { %4620 = vst.msk [vmem:[%s5757_s8 + $0xb8] sm:$0xff] %vm793_vm4, %v4073_v54  ;;  %v5118_v11 = vpop.f32.mrb[119].mxu0  ;;  %v4086_v3 = vsel %vm793_vm4, %v4073_v54, -inf  ;;  %s5456_s8 = smov [#allocation2]  }
0x11dc   : > { %4087 = vmax.xlane.f32.xlu0 %v4086_v3 }
0x11e0   : > { %4090 = vmax.xlane.f32.xlu0 %v4089_v5 }
0x1256   : > { %v4085_v19 = vpop.xlane.xlu1 %4084 }
0x1257   : > { %v4093_v20 = vsub.f32 %v4072_v29, %v4085_v19 }
0x1259   : > { %v4098_v37 = vmul.f32 1.442695, %v4093_v20 }
0x125a   : > { %v4129_v16 = vpop.permute.xlu1 %4128 }
0x125b   : > { %5340 = vpow2.f32 %v4098_v37  ;;  %v4134_v28 = vsel %vm853_vm5, %v4129_v16, 0 }
0x125c   : > { %5126 = vmatpush3.bf16.msra.mxu0 %v4134_v28 }
0x125d   : > { %5137 = vmatprep.subr.bf16.mxu0 %v5438_v2 }
0x1261   : > { %v4082_v39 = vpop.xlane.xlu0 %4081 }
0x1262   : > { %v4092_v4 = vsub.f32 %v4071_v56, %v4082_v39 }
0x1264   : > { %v4096_v13 = vmul.f32 1.442695, %v4092_v4 }
0x1265   : > { %v6411_v25 = vpop.eup %5340 }
0x1266   : > { %5342 = vpow2.f32 %v4096_v13  ;;  %v4107_v15 = vsel %vm793_vm4, %v6411_v25, 0.0 }
0x1267   : > { %4108 = vadd.xlane.f32.xlu0 %v4107_v15 }
0x1269   : > { %v4088_v14 = vpop.xlane.xlu0 %4087 }
0x126a   : > { %v4094_v29 = vsub.f32 %v4073_v54, %v4088_v14 }
0x126c   : > { %v4100_v31 = vmul.f32 1.442695, %v4094_v29 }
0x126d   : > { %v4091_v24 = vpop.xlane.xlu0 %4090 }
0x126e   : > { %5344 = vpow2.f32 %v4100_v31  ;;  %v4095_v35 = vsub.f32 %v4074_v49, %v4091_v24 }
0x1270   : > { %v5343_v41 = vpop.eup %5342  ;;  %v4102_v45 = vmul.f32 1.442695, %v4095_v35 }
0x1271   : > { %v4104_v46 = vsel %vm793_vm4, %v5343_v41, 0.0 }
0x1272   : > { %5346 = vpow2.f32 %v4102_v45  ;;  %4105 = vadd.xlane.f32.xlu1 %v4104_v46 }
0x1278   : > { %v6416_v47 = vpop.eup %5344 }
0x1279   : > { %v4110_v7 = vsel %vm793_vm4, %v6416_v47, 0.0 }
0x127a   : > { %4111 = vadd.xlane.f32.xlu1 %v4110_v7 }
0x127c   : > { %v6420_v50 = vpop.eup %5346 }
0x127d   : > { %v4113_v23 = vsel %vm793_vm4, %v6420_v50, 0.0 }
0x127e   : > { %4114 = vadd.xlane.f32.xlu0 %v4113_v23 }
0x128b   : > { %4224 = vrot.lane.b32.xlu1 %v5813_v53, %s5448_s18 }
0x128f   : > { %4272 = vrot.lane.b32.xlu1 %v5811_v8, %s5448_s18 }
0x1293   : > { %1506 = vrot.lane.b32.xlu1 %v5947_v18, %s5449_s19 }
0x1294   : > { %4176 = vrot.lane.b32.xlu0 %v5783_v40, %s5448_s18 }
0x1297   : > { %1510 = vrot.lane.b32.xlu1 %v5951_v26, %s5449_s19 }
0x1298   : > { %1504 = vrot.lane.b32.xlu0 %v5949_v21, %s5449_s19 }
0x129b   : > { %1976 = vrot.lane.b32.xlu1 %v6035_v17, %s5450_s16 }
0x129c   : > { %1508 = vrot.lane.b32.xlu0 %v5955_v38, %s5449_s19 }
0x129f   : > { %1980 = vrot.lane.b32.xlu1 %v6039_v27, %s5450_s16 }
0x12a0   : > { %1974 = vrot.lane.b32.xlu0 %v6037_v6, %s5450_s16 }
0x12a3   : > { %2446 = vrot.lane.b32.xlu1 %v6123_v30, %s5451_s20 }
0x12a4   : > { %1978 = vrot.lane.b32.xlu0 %v6043_v42, %s5450_s16 }
0x12a7   : > { %2450 = vrot.lane.b32.xlu1 %v6127_v44, %s5451_s20 }
0x12a8   : > { %2444 = vrot.lane.b32.xlu0 %v6125_v34, %s5451_s20 }
0x12ab   : > { %2916 = vrot.lane.b32.xlu1 %v6211_v52, %s5452_s21 }
0x12ac   : > { %2448 = vrot.lane.b32.xlu0 %v6131_v51, %s5451_s20  ;;  %s6507_s20 = scalar_lea.hbm %s6574_s7, %s4636_s10 }
0x12af   : > { %2920 = vrot.lane.b32.xlu1 %v6215_v61, %s5452_s21 }
0x12b0   : > { %2914 = vrot.lane.b32.xlu0 %v6213_v57, %s5452_s21 }
0x12b3   : > { %3386 = vrot.lane.b32.xlu1 %v6299_v33, %s5453_s15 }
0x12b4   : > { %2918 = vrot.lane.b32.xlu0 %v6219_v10, %s5452_s21  ;;  %s6513_s21 = scalar_lea.sflag [#allocation3], %s370_s23 }
0x12b7   : > { %3390 = vrot.lane.b32.xlu1 %v6303_v48, %s5453_s15 }
0x12b8   : > { %3384 = vrot.lane.b32.xlu0 %v6301_v43, %s5453_s15 }
0x12bb   : > { %3856 = vrot.lane.b32.xlu1 %v6387_v12, %s5454_s30 }
0x12bc   : > { %3388 = vrot.lane.b32.xlu0 %v6307_v58, %s5453_s15  ;;  %s5360_s15 = sshll.u32 %s5456_s8, 4  ;;  %s5361_s15 = int_to_ptr.vmem [resolvable:$false] %s5360_s15 }
0x12bd   : > { %p5363_p1 = scmp.lt.s32.totalorder %s6509_s12, %s5361_s15 }
0x12bf   : > { %3860 = vrot.lane.b32.xlu1 %v6391_v36, %s5454_s30 }
0x12c0   : > { %3854 = vrot.lane.b32.xlu0 %v6389_v22, %s5454_s30 }
0x12c4   : > { %3858 = vrot.lane.b32.xlu0 %v6395_v32, %s5454_s30  ;;  %s5362_s30 = scalar_lea.vmem %s5361_s15, 8192 }
0x12c5   : > { %p5364_p2 = scmp.lt.s32.totalorder %s5362_s30, %s5356_s27 }
0x12c7   : > { %p5365_p3 = por %p5364_p2, %p5363_p1 }
0x12c9   : > { %p5366_p5 = pnand %p5365_p3, %p5359_p0 }
0x12f4   : > { %v4109_v40 = vpop.xlane.xlu0 %4108 }
0x12ff   : > { %v4106_v8 = vpop.xlane.xlu1 %4105 }
0x1300   : > { %5348 = vrcp.f32 %v4106_v8 }
0x1301   : > { %5350 = vrcp.f32 %v4109_v40 }
0x1307   : > { %v4112_v53 = vpop.xlane.xlu1 %4111 }
0x1308   : > { %5352 = vrcp.f32 %v4112_v53 }
0x130a   : > { %v5349_v18 = vpop.eup %5348 }
0x130b   : > { %v5351_v21 = vpop.eup %5350  ;;  %v4120_v26 = vmul.f32 %v5349_v18, %v5343_v41  ;;  %v4225_v38 = vpop.permute.xlu1 %4224 }
0x130c   : > { %v4115_v17 = vpop.xlane.xlu0 %4114  ;;  %v4230_v6 = vsel %vm853_vm5, %v4225_v38, 0  ;;  %v4121_v42 = vmul.f32 %v5351_v21, %v6411_v25 }
0x130d   : > { %5354 = vrcp.f32 %v4115_v17  ;;  %v4124_v27 = vpack.c.bf16 %v4120_v26, %v4120_v26 }
0x130e   : > { %v4125_v57 = vpack.c.bf16 %v4121_v42, %v4121_v42 }
0x130f   : > { %5128 = vmatmul.mubr.msk.bf16.vlgmr.msra.gmra.mrb[120].mxu0 %vm793_vm4, %v4124_v27  ;;  %v4273_v30 = vpop.permute.xlu1 %4272 }
0x1310   : > { %v4177_v34 = vpop.permute.xlu0 %4176  ;;  %5138 = vmatpush3.bf16.msra.mxu0 %v4230_v6  ;;  %5139 = vmatprep.mubr.msk.bf16.mxu0 %vm5441_vm0, %v5438_v2  ;;  %v4278_v52 = vsel %vm853_vm5, %v4273_v30, 0 }
0x1311   : > { %v4182_v44 = vsel %vm853_vm5, %v4177_v34, 0 }
0x1312   : > { %5132 = vmatpush3.bf16.msra.mxu1 %v4182_v44  ;;  %v5353_v51 = vpop.eup %5352 }
0x1313   : > { %5143 = vmatprep.subr.bf16.mxu1 %v5438_v2  ;;  %v4122_v61 = vmul.f32 %v5353_v51, %v6416_v47  ;;  %v1507_v10 = vpop.permute.xlu1 %1506 }
0x1314   : > { %v1505_v33 = vpop.permute.xlu0 %1504  ;;  %1518 = vst.msk [vmem:[%s5857_s22 + $0x8] sm:$0xff] %vm1516_vm6, %v1507_v10 }
0x1315   : > { %1517 = vst.msk [vmem:[%s5857_s22] sm:$0xff] %vm1516_vm6, %v1505_v33  ;;  %5134 = vmatmul.mubr.msk.bf16.vlgmr.msra.gmra.mrb[120].mxu1 %vm793_vm4, %v4125_v57  ;;  %v4126_v43 = vpack.c.bf16 %v4122_v61, %v4122_v61 }
0x1316   : > { %5144 = vmatpush3.bf16.msra.mxu1 %v4278_v52  ;;  %5145 = vmatprep.mubr.msk.bf16.mxu1 %vm5441_vm0, %v5438_v2 }
0x1317   : > { %v5355_v48 = vpop.eup %5354  ;;  %5140 = vmatmul.mubr.msk.bf16.vlgmr.msra.gmra.mrb[124].mxu0 %vm793_vm4, %v4126_v43  ;;  %v1511_v12 = vpop.permute.xlu1 %1510 }
0x1318   : > { %v4123_v58 = vmul.f32 %v5355_v48, %v6420_v50  ;;  %v1509_v22 = vpop.permute.xlu0 %1508  ;;  %1520 = vst.msk [vmem:[%s5857_s22 + $0x18] sm:$0xff] %vm1516_vm6, %v1511_v12 }
0x1319   : > { %1519 = vst.msk [vmem:[%s5857_s22 + $0x10] sm:$0xff] %vm1516_vm6, %v1509_v22 }
0x131a   : > { %v4127_v36 = vpack.c.bf16 %v4123_v58, %v4123_v58 }
0x131b   : > { %v1977_v32 = vpop.permute.xlu1 %1976 }
0x131c   : > { %v1975_v2 = vpop.permute.xlu0 %1974  ;;  %1988 = vst.msk [vmem:[%s5857_s22 + $0x8] sm:$0xff] %vm1986_vm7, %v1977_v32 }
0x131d   : > { %1987 = vst.msk [vmem:[%s5857_s22] sm:$0xff] %vm1986_vm7, %v1975_v2  ;;  %5146 = vmatmul.mubr.msk.bf16.vlgmr.msra.gmra.mrb[124].mxu1 %vm793_vm4, %v4127_v36 }
0x131f   : > { %v1981_v49 = vpop.permute.xlu1 %1980 }
0x1320   : > { %v1979_v55 = vpop.permute.xlu0 %1978  ;;  %1990 = vst.msk [vmem:[%s5857_s22 + $0x18] sm:$0xff] %vm1986_vm7, %v1981_v49 }
0x1321   : > { %1989 = vst.msk [vmem:[%s5857_s22 + $0x10] sm:$0xff] %vm1986_vm7, %v1979_v55 }
0x1323   : > { %v2447_v56 = vpop.permute.xlu1 %2446 }
0x1324   : > { %v2445_v59 = vpop.permute.xlu0 %2444  ;;  %2458 = vst.msk [vmem:[%s5857_s22 + $0x8] sm:$0xff] %vm2456_vm8, %v2447_v56 }
0x1325   : > { %2457 = vst.msk [vmem:[%s5857_s22] sm:$0xff] %vm2456_vm8, %v2445_v59 }
0x1327   : > { %v2451_v60 = vpop.permute.xlu1 %2450 }
0x1328   : > { %v2449_v62 = vpop.permute.xlu0 %2448  ;;  %2460 = vst.msk [vmem:[%s5857_s22 + $0x18] sm:$0xff] %vm2456_vm8, %v2451_v60 }
0x1329   : > { %2459 = vst.msk [vmem:[%s5857_s22 + $0x10] sm:$0xff] %vm2456_vm8, %v2449_v62 }
0x132b   : > { %v2917_v63 = vpop.permute.xlu1 %2916 }
0x132c   : > { %v2915_v0 = vpop.permute.xlu0 %2914  ;;  %2928 = vst.msk [vmem:[%s5857_s22 + $0x8] sm:$0xff] %vm2926_vm9, %v2917_v63 }
0x132d   : > { %2927 = vst.msk [vmem:[%s5857_s22] sm:$0xff] %vm2926_vm9, %v2915_v0 }
0x132f   : > { %v2921_v54 = vpop.permute.xlu1 %2920 }
0x1330   : > { %v2919_v1 = vpop.permute.xlu0 %2918  ;;  %2930 = vst.msk [vmem:[%s5857_s22 + $0x18] sm:$0xff] %vm2926_vm9, %v2921_v54 }
0x1331   : > { %2929 = vst.msk [vmem:[%s5857_s22 + $0x10] sm:$0xff] %vm2926_vm9, %v2919_v1 }
0x1333   : > { %v3387_v9 = vpop.permute.xlu1 %3386 }
0x1334   : > { %v3385_v11 = vpop.permute.xlu0 %3384  ;;  %3398 = vst.msk [vmem:[%s5857_s22 + $0x8] sm:$0xff] %vm3396_vm10, %v3387_v9 }
0x1335   : > { %3397 = vst.msk [vmem:[%s5857_s22] sm:$0xff] %vm3396_vm10, %v3385_v11 }
0x1337   : > { %v3391_v3 = vpop.permute.xlu1 %3390 }
0x1338   : > { %v3389_v5 = vpop.permute.xlu0 %3388  ;;  %3400 = vst.msk [vmem:[%s5857_s22 + $0x18] sm:$0xff] %vm3396_vm10, %v3391_v3 }
0x1339   : > { %3399 = vst.msk [vmem:[%s5857_s22 + $0x10] sm:$0xff] %vm3396_vm10, %v3389_v5 }
0x133b   : > { %v3857_v19 = vpop.permute.xlu1 %3856 }
0x133c   : > { %v3855_v20 = vpop.permute.xlu0 %3854  ;;  %3868 = vst.msk [vmem:[%s5857_s22 + $0x8] sm:$0xff] %vm3866_vm11, %v3857_v19 }
0x133d   : > { %3867 = vst.msk [vmem:[%s5857_s22] sm:$0xff] %vm3866_vm11, %v3855_v20 }
0x133f   : > { %v3861_v37 = vpop.permute.xlu1 %3860 }
0x1340   : > { %v3859_v16 = vpop.permute.xlu0 %3858  ;;  %3870 = vst.msk [vmem:[%s5857_s22 + $0x18] sm:$0xff] %vm3866_vm11, %v3861_v37 }
0x1341   : > { %3869 = vst.msk [vmem:[%s5857_s22 + $0x10] sm:$0xff] %vm3866_vm11, %v3859_v16 }
0x13e2   : > { %v4170_v28 = vpop.f32.mrb[120].mxu0 }
0x13e3   : > { %4324 = vrot.lane.b32.xlu0 %v4170_v28, %s5455_s17  ;;  %v5129_v39 = vpop.f32.mrb[121].mxu0 }
0x13e4   : > { %v4173_v4 = vpop.f32.mrb[122].mxu0 }
0x13e5   : > { %v5130_v13 = vpop.f32.mrb[123].mxu0 }
0x13e6   : > { %5369 = shalt.err (!%p5366_p5)
}
0x13e7   : > { %s5370_s23 = scalar_lea.hbm %s6507_s20, 4096  ;;  %s5374_s19 = scalar_lea.hbm %s6574_s7, 8192 }
0x13e8   : > { %p5371_p6 = scmp.ne.s32.totalorder %s6507_s20, %s5370_s23  ;;  %p5375_p10 = scmp.lt.u32.totalorder %s6507_s20, %s6574_s7 }
0x13e9   : > { %p5376_p11 = scmp.lt.u32.totalorder %s5374_s19, %s5370_s23  ;;  %p5378_p13 = scmp.lt.u32.totalorder %s5370_s23, %s6507_s20 }
0x13ea   : > { %p5372_p7 = pnand %p5371_p6, %p5538_p4 }
0x13eb   : > { %p5377_p12 = por %p5376_p11, %p5375_p10 }
0x13ec   : > { %p5373_p9 = pneg %p5372_p7 }
0x13ed   : > { %p5379_p0 = por %p5378_p13, %p5377_p12 }
0x13ef   : > { %p5380_p1 = pnand %p5379_p0, %p5373_p9 }
0x13f1   : > { %5383 = shalt.err (!%p5380_p1)
}
0x13f2   : > { %s5457_s27 = smov 128   ;;  %v4218_v25 = vpop.f32.mrb[120].mxu1  ;;  %v4266_v31 = vpop.f32.mrb[124].mxu0  ;;  %vm4336_vm12 = vcmask 261344  }
0x13f3   : > { %5151 = dma.vmem_to_hbm [thread:$0]  (%p5538_p4), %s6509_s12, 4096, %s6507_s20, %s6513_s21, %s5457_s27, %s5457_s27, %s5450_s16   ;;  %v5135_v15 = vpop.f32.mrb[121].mxu1  ;;  %v5141_v24 = vpop.f32.mrb[125].mxu0 }
0x13f4   : > { %4326 = vrot.lane.b32.xlu1 %v4218_v25, %s5455_s17  ;;  %v4221_v14 = vpop.f32.mrb[122].mxu1  ;;  %4328 = vrot.lane.b32.xlu0 %v4266_v31, %s5455_s17  ;;  %v4269_v35 = vpop.f32.mrb[126].mxu0 }
0x13f5   : > { %v5136_v29 = vpop.f32.mrb[123].mxu1  ;;  %v5142_v41 = vpop.f32.mrb[127].mxu0 }
0x13f6   : > { %v4314_v45 = vpop.f32.mrb[124].mxu1 }
0x13f7   : > { %v5147_v46 = vpop.f32.mrb[125].mxu1 }
0x13f8   : > { %4330 = vrot.lane.b32.xlu1 %v4314_v45, %s5455_s17  ;;  %v4317_v47 = vpop.f32.mrb[126].mxu1 }
0x13f9   : > { %v5148_v7 = vpop.f32.mrb[127].mxu1 }
0x1455   : > { %v4325_v50 = vpop.permute.xlu0 %4324 }
0x1456   : > { %4337 = vst.msk [vmem:[%s5857_s22] sm:$0xff] %vm4336_vm12, %v4325_v50 }
0x1466   : > { %v4327_v23 = vpop.permute.xlu1 %4326  ;;  %v4329_v40 = vpop.permute.xlu0 %4328 }
0x1467   : > { %4338 = vst.msk [vmem:[%s5857_s22 + $0x8] sm:$0xff] %vm4336_vm12, %v4327_v23  ;;  %4339 = vst.msk [vmem:[%s5857_s22 + $0x10] sm:$0xff] %vm4336_vm12, %v4329_v40 }
0x146a   : > { %v4331_v8 = vpop.permute.xlu1 %4330 }
0x146b   : > { %4340 = vst.msk [vmem:[%s5857_s22 + $0x18] sm:$0xff] %vm4336_vm12, %v4331_v8 }
0x146c PF: > { %p5158_p4 = scmp.ge.s32.totalorder %s5434_s29, 2  ;;  %s4398_s11 = sand.u32 1, %s5414_s24  }
0x146d   : > { %s4399_s16 = scalar_lea.sflag [#allocation3], %s4398_s11 }
0x146e   : > { %p5154_p2 = pnand %p5158_p4, %p5545_p8 }
0x1470   : > { %5409 = dma.done.wait (!%p5154_p2), %s4399_s16, 4096  }
0x1471   : > { %5411 = vsyncadd (!%p5154_p2), %s4399_s16, 4294963200  ;;  %s21_s29 = sadd.s32 1, %s5434_s29   ;;  %s6577_s24 = smov %s5418_s25 }
0x1472   : > { %p18_p3 = scmp.ge.s32.totalorder %s21_s29, 4   ;;  %s6578_s25 = smov %s5422_s26 }
0x1473   : > { %s6579_s26 = smov %s5551_s14  ;;  %s6580_s27 = smov %s5430_s28 }
0x1474   : > { %s6581_s28 = smov %s6583_s9  ;;  %20 = sbr.rel (!%p18_p3) target bundleno = 4 (0x4), region = 104 }
0x147b   :  { %4404 = vsyncpa [#allocation3], 1 }
0x147c   :  { %4406 = vsyncpa [#allocation3 + $0x1], 1 }

// kernel: decoder_forward.19
= control target key start
LH: loop header
LB: loop body
LE: loop exit
PB: predicated region body
PF: predicated region fallthrough
CT: control target
= control target key end

     0   :  { %13 = vsyncpa [#allocation3], 0  ;;  %s6564_s0 = inlined_call_operand.vmem [shape: f32[2,4,8,32], index: 0, kind: input, shape index: {}]   ;;  %s6565_s1 = inlined_call_operand.vmem [shape: f32[2,8,8,32], index: 1, kind: input, shape index: {}, may-alias: {1,2}]   ;;  %s6566_s2 = inlined_call_operand.vmem [shape: f32[2,8,8,32], index: 2, kind: input, shape index: {}, may-alias: {1,2}]   ;;  %s6567_s3 = inlined_call_operand.vmem [shape: f32[8,32], index: 3, kind: input, shape index: {}]   ;;  %s6568_s4 = inlined_call_operand.vmem [shape: f32[8,32], index: 4, kind: input, shape index: {}]   ;;  %s6569_s5 = inlined_call_operand.vmem [shape: f32[8,32], index: 5, kind: input, shape index: {}]   ;;  %s6570_s6 = inlined_call_operand.vmem [shape: f32[2,4,8,32], index: 6, kind: output, shape index: {0}]   ;;  %s6571_s7 = inlined_call_operand.hbm [shape: f32[2,4,8,8,8], index: 7, kind: output, shape index: {1}]  }
   0x1   :  { %15 = vsyncpa [#allocation3 + $0x1], 0  ;;  %s5492_s24 = smov 0   ;;  %s5494_s25 = smov 0  }
   0x2   :  { %s5496_s26 = smov 0   ;;  %s5498_s27 = smov 0  }
   0x3   :  { %s5500_s28 = smov 0   ;;  %s5502_s29 = smov 0  }
   0x4 LB: > { %s4516_s30 = sadd.s32 4294967295, %s5428_s29   ;;  %s4517_s8 = sadd.s32 4294967294, %s5428_s29   ;;  %s5428_s29 = sphi %s5502_s29, %s21_s29   ;;  %s5424_s28 = sphi %s5500_s28, %s6578_s28   ;;  %s5420_s27 = sphi %s5498_s27, %s6577_s27   ;;  %s5416_s26 = sphi %s5496_s26, %s6576_s26   ;;  %s5412_s25 = sphi %s5494_s25, %s6575_s25   ;;  %s5408_s24 = sphi %s5492_s24, %s6574_s24  }
   0x5   : > { %s33_s9 = sadd.s32 1, %s5424_s28  ;;  %s219_s10 = sadd.s32 1, %s5416_s26 }
   0x6   : > { %p35_p0 = scmp.ge.s32.totalorder %s33_s9, 2  ;;  %p229_p1 = scmp.ne.s32.totalorder %s5416_s26, %s5412_s25 }
   0x7   : > { %p230_p2 = scmp.eq.s32.totalorder %s4516_s30, 1  ;;  %p235_p3 = scmp.ne.s32.totalorder %s5412_s25, %s5408_s24 }
   0x8   : > { %s6580_s9 = smov (%p35_p0, %s33_s9), 0  ;;  %p236_p5 = scmp.eq.s32.totalorder %s4517_s8, 1 }
   0x9   : > { %p5532_p4 = por %p230_p2, %p229_p1  ;;  %s214_s12 = ssub.s32 %s5424_s28, %s6580_s9 }
   0xa   : > { %p4520_p6 = scmp.ge.s32.totalorder %s5428_s29, 1  ;;  %p217_p7 = scmp.eq.s32.totalorder %s214_s12, 0 }
   0xb   : > { %p5539_p8 = por %p236_p5, %p235_p3  ;;  %p304_p9 = scmp.lt.s32.totalorder %s5428_s29, 3 }
   0xc   : > { %s5545_s14 = scalar_select %p217_p7, %s5416_s26, %s219_s10  }
   0xd   : > { %p305_p10 = pnand %p4520_p6, %p304_p9 }
   0xe   : > { %p369_p11 = scmp.lt.s32.totalorder (!%p305_p10), %s5420_s27, 1  ;;  %s5430_s20 = smov (!%p305_p10), 1   ;;  %v5432_v2 = vmov (!%p305_p10), 0.0   ;;  %vm5435_vm0 = vmmov (!%p305_p10), 0   ;;  %vm451_vm1 = vcmask (!%p305_p10), 7168   ;;  %v5647_v14 = vld [vmem:[%s6567_s3] sm:$0xff] (!%p305_p10) }
   0xf   : > { %308 = sbr.rel (%p305_p10) target bundleno = 5226 (0x146a), region = 44  ;;  %s5431_s21 = smov (!%p305_p10), 97   ;;  %4762 = vmatprep.subr.bf16.mxu0 (!%p305_p10), %v5432_v2  ;;  %4768 = vmatprep.subr.bf16.mxu1 (!%p305_p10), %v5432_v2  ;;  %v5652_v15 = vld [vmem:[%s6568_s4] sm:$0xff] (!%p305_p10)  ;;  %vm488_vm2 = vcmask (!%p305_p10), 252928   ;;  %vm597_vm3 = vcmask (!%p305_p10), 31744   ;;  %vm786_vm4 = vcmask (!%p305_p10), 64512  }
  0x10   : > { %s5433_s23 = smov (!%p305_p10), 127   ;;  %s5434_s12 = smov (!%p305_p10), 31   ;;  %4764 = vmatprep.mubr.msk.bf16.mxu0 (!%p305_p10), %vm5435_vm0, %v5432_v2  ;;  %4770 = vmatprep.mubr.msk.bf16.mxu1 (!%p305_p10), %vm5435_vm0, %v5432_v2  ;;  %v5663_v23 = vld [vmem:[%s6569_s5] sm:$0xff] (!%p305_p10)  ;;  %vm846_vm5 = vcmask (!%p305_p10), 1043456   ;;  %vm1509_vm6 = vcmask (!%p305_p10), 64544   ;;  %vm1979_vm7 = vcmask (!%p305_p10), 97344  }
  0x11   : > { %s365_s30 = sand.u32 (!%p305_p10), 1, %s5412_s25   ;;  %s5441_s17 = smov (!%p305_p10), 104   ;;  %vm2449_vm8 = vcmask (!%p305_p10), 130144   ;;  %vm2919_vm9 = vcmask (!%p305_p10), 162944   ;;  %vm3389_vm10 = vcmask (!%p305_p10), 195744   ;;  %vm3859_vm11 = vcmask (!%p305_p10), 228544  }
  0x12   : > { %s4521_s8 = sshll.u32 (!%p305_p10), %s365_s30, 8  ;;  %s5442_s18 = smov (!%p305_p10), 100  }
  0x16   : > { %s5549_s15 = scalar_select %p369_p11, %s5420_s27, 1 }
  0x18   : > { %s4628_s16 = sshll.u32 %s5549_s15, 6  ;;  %s4627_s22 = sshll.u32 %s5549_s15, 5 }
  0x19   : > { %s386_s19 = scalar_lea.vmem %s6565_s1, %s4628_s16  ;;  %s376_s10 = scalar_lea.vmem %s6564_s0, %s4627_s22 }
  0x1a   : > { %v5557_v0 = vld [vmem:[%s386_s19] sm:$0xff]  ;;  %v502_v1 = vld [vmem:[%s386_s19 + $0x8] sm:$0xff]  ;;  %v5591_v5 = vld [vmem:[%s386_s19 + $0x18] sm:$0xff]  ;;  %s5437_s15 = smov 120  }
  0x1b   : > { %525 = vrot.lane.b32.xlu1 %v5557_v0, %s5430_s20  ;;  %513 = vrot.lane.b32.xlu0 %v5557_v0, %s5431_s21  ;;  %v5579_v3 = vld [vmem:[%s376_s10 + $0x8] sm:$0xff]  ;;  %v5581_v4 = vld [vmem:[%s376_s10] sm:$0xff]  ;;  %v506_v19 = vmul.f32 %v502_v1, %v5647_v14  ;;  %v505_v21 = vmul.f32 %v5557_v0, %v5647_v14  ;;  %v508_v63 = vmul.f32 %v5591_v5, %v5647_v14 }
  0x1c   : > { %v5593_v6 = vld [vmem:[%s386_s19 + $0x10] sm:$0xff]  ;;  %v5623_v7 = vld [vmem:[%s376_s10 + $0x18] sm:$0xff]  ;;  %v420_v47 = vmul.f32 %v5579_v3, %v5647_v14  ;;  %v419_v52 = vmul.f32 %v5581_v4, %v5647_v14 }
  0x1d   : > { %v5625_v8 = vld [vmem:[%s376_s10 + $0x10] sm:$0xff]  ;;  %s5752_s10 = scalar_lea.vmem [#allocation2], %s4521_s8  ;;  %s5439_s8 = smov 112  }
  0x1f   : > { %527 = vrot.lane.b32.xlu1 %v502_v1, %s5430_s20  ;;  %515 = vrot.lane.b32.xlu0 %v502_v1, %s5431_s21 }
  0x23   : > { %551 = vrot.lane.b32.xlu1 %v502_v1, %s5433_s23  ;;  %549 = vrot.lane.b32.xlu0 %v5557_v0, %s5433_s23 }
  0x27   : > { %563 = vrot.lane.b32.xlu1 %v502_v1, %s5434_s12  ;;  %561 = vrot.lane.b32.xlu0 %v5557_v0, %s5434_s12 }
  0x2b   : > { %429 = vrot.lane.b32.xlu1 %v5579_v3, %s5431_s21  ;;  %427 = vrot.lane.b32.xlu0 %v5581_v4, %s5431_s21 }
  0x2f   : > { %441 = vrot.lane.b32.xlu1 %v5579_v3, %s5430_s20  ;;  %439 = vrot.lane.b32.xlu0 %v5581_v4, %s5430_s20 }
  0x33   : > { %519 = vrot.lane.b32.xlu1 %v5591_v5, %s5431_s21  ;;  %517 = vrot.lane.b32.xlu0 %v5593_v6, %s5431_s21 }
  0x37   : > { %531 = vrot.lane.b32.xlu1 %v5591_v5, %s5430_s20  ;;  %529 = vrot.lane.b32.xlu0 %v5593_v6, %s5430_s20 }
  0x3b   : > { %466 = vrot.lane.b32.xlu1 %v5579_v3, %s5433_s23  ;;  %464 = vrot.lane.b32.xlu0 %v5581_v4, %s5433_s23 }
  0x3f   : > { %478 = vrot.lane.b32.xlu1 %v5579_v3, %s5434_s12  ;;  %476 = vrot.lane.b32.xlu0 %v5581_v4, %s5434_s12 }
  0x43   : > { %555 = vrot.lane.b32.xlu1 %v5591_v5, %s5433_s23  ;;  %553 = vrot.lane.b32.xlu0 %v5593_v6, %s5433_s23 }
  0x47   : > { %567 = vrot.lane.b32.xlu1 %v5591_v5, %s5434_s12  ;;  %565 = vrot.lane.b32.xlu0 %v5593_v6, %s5434_s12 }
  0x4b   : > { %433 = vrot.lane.b32.xlu1 %v5623_v7, %s5431_s21  ;;  %431 = vrot.lane.b32.xlu0 %v5625_v8, %s5431_s21  ;;  %s5446_s21 = smov 16  }
  0x4f   : > { %445 = vrot.lane.b32.xlu1 %v5623_v7, %s5430_s20  ;;  %443 = vrot.lane.b32.xlu0 %v5625_v8, %s5430_s20  ;;  %s5436_s20 = smov 124  }
  0x53   : > { %470 = vrot.lane.b32.xlu1 %v5623_v7, %s5433_s23  ;;  %468 = vrot.lane.b32.xlu0 %v5625_v8, %s5433_s23  ;;  %s5854_s23 = scalar_lea.vmem %s6570_s6, %s4627_s22  ;;  %s5438_s22 = smov 116  }
  0x57   : > { %482 = vrot.lane.b32.xlu1 %v5623_v7, %s5434_s12  ;;  %480 = vrot.lane.b32.xlu0 %v5625_v8, %s5434_s12  ;;  %s4630_s12 = sadd.s32 32, %s4628_s16  ;;  %s5445_s16 = smov 12  }
  0x58   : > { %s5773_s19 = scalar_lea.vmem %s6566_s2, %s4630_s12  ;;  %s5440_s12 = smov 108  }
  0x8d   : > { %v526_v9 = vpop.permute.xlu1 %525  ;;  %v514_v10 = vpop.permute.xlu0 %513 }
  0x8e   : > { %v537_v16 = vsel %vm451_vm1, %v514_v10, %v526_v9 }
  0x8f   : > { %v541_v22 = vmul.f32 %v537_v16, %v5652_v15 }
  0x91   : > { %v528_v11 = vpop.permute.xlu1 %527  ;;  %v516_v12 = vpop.permute.xlu0 %515  ;;  %v545_v30 = vadd.f32 %v541_v22, %v505_v21 }
  0x92   : > { %v538_v13 = vsel %vm451_vm1, %v516_v12, %v528_v11  ;;  %v507_v12 = vmul.f32 %v5593_v6, %v5647_v14 }
  0x93   : > { %v542_v20 = vmul.f32 %v538_v13, %v5652_v15 }
  0x95   : > { %v552_v17 = vpop.permute.xlu1 %551  ;;  %v550_v18 = vpop.permute.xlu0 %549  ;;  %v546_v27 = vadd.f32 %v542_v20, %v506_v19 }
  0x99   : > { %v564_v24 = vpop.permute.xlu1 %563  ;;  %v562_v26 = vpop.permute.xlu0 %561 }
  0x9a   : > { %v574_v25 = vsel %vm488_vm2, %v552_v17, %v564_v24  ;;  %v573_v29 = vsel %vm488_vm2, %v550_v18, %v562_v26 }
  0x9b   : > { %v578_v28 = vmul.f32 %v574_v25, %v5663_v23  ;;  %v577_v31 = vmul.f32 %v573_v29, %v5663_v23 }
  0x9d   : > { %v582_v32 = vadd.f32 %v578_v28, %v546_v27  ;;  %v430_v33 = vpop.permute.xlu1 %429  ;;  %v581_v34 = vadd.f32 %v577_v31, %v545_v30  ;;  %v428_v35 = vpop.permute.xlu0 %427 }
  0x9f   : > { %v5669_v36 = vpack.c.bf16 %v582_v32, %v582_v32  ;;  %v5671_v37 = vpack.c.bf16 %v581_v34, %v581_v34 }
  0xa1   : > { %v442_v38 = vpop.permute.xlu1 %441  ;;  %v648_v39 = vsel %vm597_vm3, %v5669_v36, 0  ;;  %v440_v40 = vpop.permute.xlu0 %439  ;;  %v602_v41 = vsel %vm597_vm3, %v5671_v37, 0 }
  0xa2   : > { %4769 = vmatpush3.bf16.xpose.msra.mxu1 %v648_v39  ;;  %4763 = vmatpush3.bf16.xpose.msra.mxu0 %v602_v41  ;;  %v453_v45 = vsel %vm451_vm1, %v430_v33, %v442_v38  ;;  %v452_v49 = vsel %vm451_vm1, %v428_v35, %v440_v40  ;;  %v422_v38 = vmul.f32 %v5623_v7, %v5647_v14 }
  0xa3   : > { %4780 = vmatprep.subr.bf16.mxu1 %v5432_v2  ;;  %4774 = vmatprep.subr.bf16.mxu0 %v5432_v2  ;;  %v457_v48 = vmul.f32 %v453_v45, %v5652_v15  ;;  %v456_v53 = vmul.f32 %v452_v49, %v5652_v15  ;;  %v421_v41 = vmul.f32 %v5625_v8, %v5647_v14 }
  0xa5   : > { %v520_v42 = vpop.permute.xlu1 %519  ;;  %v518_v43 = vpop.permute.xlu0 %517  ;;  %v461_v54 = vadd.f32 %v457_v48, %v420_v47  ;;  %v460_v61 = vadd.f32 %v456_v53, %v419_v52 }
  0xa9   : > { %v532_v44 = vpop.permute.xlu1 %531  ;;  %v530_v46 = vpop.permute.xlu0 %529 }
  0xaa   : > { %v540_v56 = vsel %vm451_vm1, %v520_v42, %v532_v44  ;;  %v539_v1 = vsel %vm451_vm1, %v518_v43, %v530_v46 }
  0xab   : > { %v544_v0 = vmul.f32 %v540_v56, %v5652_v15  ;;  %v543_v13 = vmul.f32 %v539_v1, %v5652_v15 }
  0xad   : > { %v467_v50 = vpop.permute.xlu1 %466  ;;  %v465_v51 = vpop.permute.xlu0 %464  ;;  %v548_v17 = vadd.f32 %v544_v0, %v508_v63  ;;  %v547_v21 = vadd.f32 %v543_v13, %v507_v12 }
  0xb1   : > { %v479_v55 = vpop.permute.xlu1 %478  ;;  %v477_v58 = vpop.permute.xlu0 %476 }
  0xb2   : > { %v490_v57 = vsel %vm488_vm2, %v467_v50, %v479_v55  ;;  %v489_v60 = vsel %vm488_vm2, %v465_v51, %v477_v58 }
  0xb3   : > { %v494_v59 = vmul.f32 %v490_v57, %v5663_v23  ;;  %v493_v62 = vmul.f32 %v489_v60, %v5663_v23 }
  0xb5   : > { %v498_v3 = vadd.f32 %v494_v59, %v461_v54  ;;  %v556_v4 = vpop.permute.xlu1 %555  ;;  %v497_v9 = vadd.f32 %v493_v62, %v460_v61  ;;  %v554_v10 = vpop.permute.xlu0 %553 }
  0xb7   : > { %v5696_v11 = vpack.c.bf16 %v498_v3, %v498_v3  ;;  %v5701_v16 = vpack.c.bf16 %v497_v9, %v497_v9 }
  0xb9   : > { %4771 = vmatmul.mubr.msk.bf16.vlgmr.msra.gmra.mrb[0].mxu1 %vm597_vm3, %v5696_v11  ;;  %v568_v5 = vpop.permute.xlu1 %567  ;;  %v566_v18 = vpop.permute.xlu0 %565  ;;  %4765 = vmatmul.mubr.msk.bf16.vlgmr.msra.gmra.mrb[0].mxu0 %vm597_vm3, %v5701_v16 }
  0xba   : > { %v576_v19 = vsel %vm488_vm2, %v556_v4, %v568_v5  ;;  %4782 = vmatprep.mubr.msk.bf16.mxu1 %vm5435_vm0, %v5432_v2  ;;  %v575_v6 = vsel %vm488_vm2, %v554_v10, %v566_v18  ;;  %4776 = vmatprep.mubr.msk.bf16.mxu0 %vm5435_vm0, %v5432_v2 }
  0xbb   : > { %v580_v20 = vmul.f32 %v576_v19, %v5663_v23  ;;  %v579_v22 = vmul.f32 %v575_v6, %v5663_v23 }
  0xbd   : > { %v584_v24 = vadd.f32 %v580_v20, %v548_v17  ;;  %v434_v25 = vpop.permute.xlu1 %433  ;;  %v583_v26 = vadd.f32 %v579_v22, %v547_v21  ;;  %v432_v27 = vpop.permute.xlu0 %431 }
  0xbf   : > { %v5715_v28 = vpack.c.bf16 %v584_v24, %v584_v24  ;;  %v5717_v29 = vpack.c.bf16 %v583_v26, %v583_v26 }
  0xc1   : > { %v446_v30 = vpop.permute.xlu1 %445  ;;  %v740_v31 = vsel %vm597_vm3, %v5715_v28, 0  ;;  %v444_v32 = vpop.permute.xlu0 %443  ;;  %v694_v33 = vsel %vm597_vm3, %v5717_v29, 0 }
  0xc2   : > { %v455_v34 = vsel %vm451_vm1, %v434_v25, %v446_v30  ;;  %4781 = vmatpush3.bf16.xpose.msra.mxu1 %v740_v31  ;;  %v454_v35 = vsel %vm451_vm1, %v432_v27, %v444_v32  ;;  %4775 = vmatpush3.bf16.xpose.msra.mxu0 %v694_v33  ;;  %v585_v33 = vld [vmem:[%s5773_s19] sm:$0xff] }
  0xc3   : > { %4792 = vmatprep.subr.bf16.mxu1 %v5432_v2  ;;  %4786 = vmatprep.subr.bf16.mxu0 %v5432_v2  ;;  %v459_v39 = vmul.f32 %v455_v34, %v5652_v15  ;;  %v458_v42 = vmul.f32 %v454_v35, %v5652_v15  ;;  %v586_v34 = vld [vmem:[%s5773_s19 + $0x8] sm:$0xff] }
  0xc5   : > { %v471_v40 = vpop.permute.xlu1 %470  ;;  %v469_v43 = vpop.permute.xlu0 %468  ;;  %v463_v44 = vadd.f32 %v459_v39, %v422_v38  ;;  %v462_v46 = vadd.f32 %v458_v42, %v421_v41  ;;  %v5777_v39 = vpack.c.bf16 %v585_v33, %v585_v33 }
  0xc7   : > { %v848_v41 = vsel %vm846_vm5, %v5777_v39, 0 }
  0xc9   : > { %v483_v45 = vpop.permute.xlu1 %482  ;;  %v481_v47 = vpop.permute.xlu0 %480 }
  0xca   : > { %v492_v48 = vsel %vm488_vm2, %v471_v40, %v483_v45  ;;  %v491_v49 = vsel %vm488_vm2, %v469_v43, %v481_v47  ;;  %v5779_v40 = vpack.c.bf16 %v586_v34, %v586_v34 }
  0xcb   : > { %v496_v7 = vmul.f32 %v492_v48, %v5663_v23  ;;  %v495_v50 = vmul.f32 %v491_v49, %v5663_v23 }
  0xcc   : > { %v894_v42 = vsel %vm846_vm5, %v5779_v40, 0 }
  0xcd   : > { %v500_v51 = vadd.f32 %v496_v7, %v463_v44  ;;  %v499_v52 = vadd.f32 %v495_v50, %v462_v46  ;;  %v588_v50 = vld [vmem:[%s5773_s19 + $0x18] sm:$0xff] }
  0xcf   : > { %v5737_v8 = vpack.c.bf16 %v500_v51, %v500_v51  ;;  %v5739_v14 = vpack.c.bf16 %v499_v52, %v499_v52  ;;  %v587_v51 = vld [vmem:[%s5773_s19 + $0x10] sm:$0xff]  ;;  %v5807_v52 = vpack.c.bf16 %v588_v50, %v588_v50  ;;  %s5443_s19 = smov 4  }
  0xd1   : > { %4783 = vmatmul.mubr.msk.bf16.vlgmr.msra.gmra.mrb[4].mxu1 %vm597_vm3, %v5737_v8  ;;  %4777 = vmatmul.mubr.msk.bf16.vlgmr.msra.gmra.mrb[4].mxu0 %vm597_vm3, %v5739_v14 }
  0xd2   : > { %4794 = vmatprep.mubr.msk.bf16.mxu1 %vm5435_vm0, %v5432_v2  ;;  %4788 = vmatprep.mubr.msk.bf16.mxu0 %vm5435_vm0, %v5432_v2 }
  0xd3   : > { %4787 = vmatpush3.bf16.msra.mxu0 %v848_v41  ;;  %4793 = vmatpush3.bf16.msra.mxu1 %v894_v42 }
  0xd4   : > { %4804 = vmatprep.subr.bf16.mxu1 %v5432_v2  ;;  %4798 = vmatprep.subr.bf16.mxu0 %v5432_v2 }
 0x18c   : > { %v684_v15 = vpop.f32.mrb[0].mxu1  ;;  %v638_v23 = vpop.f32.mrb[0].mxu0 }
 0x18d   : > { %v783_v53 = vmul.f32 0.17677669, %v684_v15  ;;  %v4772_v54 = vpop.f32.mrb[1].mxu1  ;;  %v782_v55 = vmul.f32 0.17677669, %v638_v23  ;;  %v4766_v56 = vpop.f32.mrb[1].mxu0 }
 0x18e   : > { %v687_v57 = vpop.f32.mrb[2].mxu1  ;;  %v641_v58 = vpop.f32.mrb[2].mxu0 }
 0x18f   : > { %788 = vst.msk [vmem:[%s5752_s10 + $0x40] sm:$0xff] %vm786_vm4, %v783_v53  ;;  %v794_v59 = vsel %vm786_vm4, %v783_v53, -inf  ;;  %v4773_v60 = vpop.f32.mrb[3].mxu1  ;;  %787 = vst.msk [vmem:[%s5752_s10] sm:$0xff] %vm786_vm4, %v782_v55  ;;  %v4767_v61 = vpop.f32.mrb[3].mxu0  ;;  %v791_v62 = vsel %vm786_vm4, %v782_v55, -inf }
 0x190   : > { %795 = vmax.xlane.f32.xlu1 %v794_v59  ;;  %792 = vmax.xlane.f32.xlu0 %v791_v62  ;;  %v986_v57 = vsel %vm846_vm5, %v5807_v52, 0 }
 0x1a4   : > { %v776_v63 = vpop.f32.mrb[4].mxu1  ;;  %v730_v0 = vpop.f32.mrb[4].mxu0 }
 0x1a5   : > { %v785_v1 = vmul.f32 0.17677669, %v776_v63  ;;  %v4784_v3 = vpop.f32.mrb[5].mxu1  ;;  %v784_v4 = vmul.f32 0.17677669, %v730_v0  ;;  %v4778_v9 = vpop.f32.mrb[5].mxu0 }
 0x1a6   : > { %v779_v10 = vpop.f32.mrb[6].mxu1  ;;  %v733_v12 = vpop.f32.mrb[6].mxu0 }
 0x1a7   : > { %790 = vst.msk [vmem:[%s5752_s10 + $0xc0] sm:$0xff] %vm786_vm4, %v785_v1  ;;  %v4785_v13 = vpop.f32.mrb[7].mxu1  ;;  %789 = vst.msk [vmem:[%s5752_s10 + $0x80] sm:$0xff] %vm786_vm4, %v784_v4  ;;  %v797_v17 = vsel %vm786_vm4, %v784_v4, -inf  ;;  %v4779_v5 = vpop.f32.mrb[7].mxu0  ;;  %v800_v18 = vsel %vm786_vm4, %v785_v1, -inf }
 0x1a8   : > { %798 = vmax.xlane.f32.xlu0 %v797_v17 }
 0x1ac   : > { %801 = vmax.xlane.f32.xlu0 %v800_v18 }
 0x21d   : > { %v796_v19 = vpop.xlane.xlu1 %795  ;;  %v793_v20 = vpop.xlane.xlu0 %792 }
 0x21e   : > { %v804_v6 = vsub.f32 %v783_v53, %v796_v19  ;;  %v803_v21 = vsub.f32 %v782_v55, %v793_v20  ;;  %v5809_v53 = vpack.c.bf16 %v587_v51, %v587_v51 }
 0x220   : > { %v809_v22 = vmul.f32 1.442695, %v804_v6  ;;  %v807_v24 = vmul.f32 1.442695, %v803_v21  ;;  %v940_v59 = vsel %vm846_vm5, %v5809_v53, 0 }
 0x222   : > { %5222 = vpow2.f32 %v809_v22 }
 0x223   : > { %5224 = vpow2.f32 %v807_v24 }
 0x22c   : > { %v5223_v25 = vpop.eup %5222 }
 0x22d   : > { %v5225_v26 = vpop.eup %5224  ;;  %v818_v27 = vsel %vm786_vm4, %v5223_v25, 0.0 }
 0x22e   : > { %v815_v30 = vsel %vm786_vm4, %v5225_v26, 0.0  ;;  %819 = vadd.xlane.f32.xlu0 %v818_v27 }
 0x22f   : > { %816 = vadd.xlane.f32.xlu1 %v815_v30 }
 0x235   : > { %v799_v31 = vpop.xlane.xlu0 %798 }
 0x236   : > { %v805_v45 = vsub.f32 %v784_v4, %v799_v31 }
 0x238   : > { %v811_v46 = vmul.f32 1.442695, %v805_v45 }
 0x239   : > { %v802_v32 = vpop.xlane.xlu0 %801 }
 0x23a   : > { %v806_v35 = vsub.f32 %v785_v1, %v802_v32 }
 0x23c   : > { %v813_v38 = vmul.f32 1.442695, %v806_v35 }
 0x23e   : > { %5226 = vpow2.f32 %v813_v38 }
 0x23f   : > { %5228 = vpow2.f32 %v811_v46 }
 0x240   : > { %1036 = vrot.lane.b32.xlu1 %v5671_v37, %s5436_s20 }
 0x248   : > { %v5227_v43 = vpop.eup %5226 }
 0x249   : > { %v824_v44 = vsel %vm786_vm4, %v5227_v43, 0.0  ;;  %v5229_v47 = vpop.eup %5228 }
 0x24a   : > { %825 = vadd.xlane.f32.xlu0 %v824_v44  ;;  %v821_v48 = vsel %vm786_vm4, %v5229_v47, 0.0 }
 0x260   : > { %1088 = vrot.lane.b32.xlu0 %v5669_v36, %s5436_s20 }
 0x264   : > { %822 = vadd.xlane.f32.xlu1 %v821_v48  ;;  %1140 = vrot.lane.b32.xlu0 %v5717_v29, %s5436_s20 }
 0x268   : > { %1137 = vrot.lane.b32.xlu0 %v5739_v14, %s5436_s20 }
 0x275   : > { %1033 = vrot.lane.b32.xlu1 %v5701_v16, %s5436_s20 }
 0x279   : > { %1085 = vrot.lane.b32.xlu1 %v5696_v11, %s5436_s20 }
 0x27d   : > { %1192 = vrot.lane.b32.xlu1 %v5715_v28, %s5436_s20 }
 0x281   : > { %1189 = vrot.lane.b32.xlu1 %v5737_v8, %s5436_s20 }
 0x2bb   : > { %v820_v49 = vpop.xlane.xlu0 %819 }
 0x2bc   : > { %v817_v7 = vpop.xlane.xlu1 %816  ;;  %5230 = vrcp.f32 %v820_v49 }
 0x2bd   : > { %5232 = vrcp.f32 %v817_v7 }
 0x2c0   : > { %v1037_v3 = vpop.permute.xlu1 %1036 }
 0x2c1   : > { %v1042_v19 = vsel %vm597_vm3, %v1037_v3, 0 }
 0x2c6   : > { %v5231_v15 = vpop.eup %5230 }
 0x2c7   : > { %v5233_v23 = vpop.eup %5232  ;;  %v832_v54 = vmul.f32 %v5231_v15, %v5223_v25 }
 0x2c8   : > { %v831_v55 = vmul.f32 %v5233_v23, %v5225_v26 }
 0x2c9   : > { %v840_v56 = vpack.c.bf16 %v832_v54, %v832_v54 }
 0x2ca   : > { %v839_v58 = vpack.c.bf16 %v831_v55, %v831_v55 }
 0x2cb   : > { %4795 = vmatmul.mubr.msk.bf16.vlgmr.msra.gmra.mrb[8].mxu1 %vm786_vm4, %v840_v56 }
 0x2cc   : > { %4789 = vmatmul.mubr.msk.bf16.vlgmr.msra.gmra.mrb[8].mxu0 %vm786_vm4, %v839_v58  ;;  %4805 = vmatpush3.bf16.msra.mxu1 %v986_v57 }
 0x2cd   : > { %4806 = vmatprep.mubr.msk.bf16.mxu1 %vm5435_vm0, %v5432_v2  ;;  %4816 = vmatprep.subr.bf16.mxu1 %v5432_v2 }
 0x2ce   : > { %4799 = vmatpush3.bf16.msra.mxu0 %v940_v59  ;;  %4800 = vmatprep.mubr.msk.bf16.mxu0 %vm5435_vm0, %v5432_v2 }
 0x2cf   : > { %4810 = vmatprep.subr.bf16.mxu0 %v5432_v2 }
 0x2d7   : > { %v826_v60 = vpop.xlane.xlu0 %825 }
 0x2d8   : > { %5234 = vrcp.f32 %v826_v60 }
 0x2db   : > { %v1089_v63 = vpop.permute.xlu0 %1088 }
 0x2dc   : > { %v1094_v1 = vsel %vm597_vm3, %v1089_v63, 0 }
 0x2df   : > { %v1141_v20 = vpop.permute.xlu0 %1140 }
 0x2e0   : > { %v1146_v21 = vsel %vm597_vm3, %v1141_v20, 0 }
 0x2e2   : > { %v5235_v61 = vpop.eup %5234 }
 0x2e3   : > { %v834_v62 = vmul.f32 %v5235_v61, %v5227_v43  ;;  %v1138_v22 = vpop.permute.xlu0 %1137 }
 0x2e5   : > { %v842_v0 = vpack.c.bf16 %v834_v62, %v834_v62 }
 0x2e7   : > { %4807 = vmatmul.mubr.msk.bf16.vlgmr.msra.gmra.mrb[12].mxu1 %vm786_vm4, %v842_v0 }
 0x2e8   : > { %4817 = vmatpush3.bf16.xpose.msra.mxu1 %v1094_v1  ;;  %4818 = vmatprep.mubr.msk.bf16.mxu1 %vm5435_vm0, %v5432_v2 }
 0x2e9   : > { %4828 = vmatprep.subr.bf16.mxu1 %v5432_v2 }
 0x2f1   : > { %v823_v4 = vpop.xlane.xlu1 %822 }
 0x2f2   : > { %5236 = vrcp.f32 %v823_v4 }
 0x2f5   : > { %v1034_v9 = vpop.permute.xlu1 %1033 }
 0x2f9   : > { %v1086_v10 = vpop.permute.xlu1 %1085 }
 0x2fa   : > { %4819 = vmatmul.mubr.msk.bf16.vlgmr.msra.gmra.mrb[16].mxu1 %vm597_vm3, %v1086_v10 }
 0x2fb   : > { %4830 = vmatprep.mubr.msk.bf16.mxu1 %vm5435_vm0, %v5432_v2 }
 0x2fc   : > { %v5237_v12 = vpop.eup %5236 }
 0x2fd   : > { %v1193_v13 = vpop.permute.xlu1 %1192  ;;  %v833_v17 = vmul.f32 %v5237_v12, %v5229_v47 }
 0x2fe   : > { %v1198_v5 = vsel %vm597_vm3, %v1193_v13, 0 }
 0x2ff   : > { %4829 = vmatpush3.bf16.xpose.msra.mxu1 %v1198_v5  ;;  %v841_v18 = vpack.c.bf16 %v833_v17, %v833_v17 }
 0x300   : > { %4840 = vmatprep.subr.bf16.mxu1 %v5432_v2 }
 0x301   : > { %4801 = vmatmul.mubr.msk.bf16.vlgmr.msra.gmra.mrb[12].mxu0 %vm786_vm4, %v841_v18  ;;  %v1190_v6 = vpop.permute.xlu1 %1189 }
 0x302   : > { %4811 = vmatpush3.bf16.xpose.msra.mxu0 %v1042_v19  ;;  %4812 = vmatprep.mubr.msk.bf16.mxu0 %vm5435_vm0, %v5432_v2 }
 0x303   : > { %4822 = vmatprep.subr.bf16.mxu0 %v5432_v2 }
 0x306   : > { %4831 = vmatmul.mubr.msk.bf16.vlgmr.msra.gmra.mrb[20].mxu1 %vm597_vm3, %v1190_v6 }
 0x307   : > { %4842 = vmatprep.mubr.msk.bf16.mxu1 %vm5435_vm0, %v5432_v2 }
 0x309   : > { %4813 = vmatmul.mubr.msk.bf16.vlgmr.msra.gmra.mrb[16].mxu0 %vm597_vm3, %v1034_v9 }
 0x30a   : > { %4823 = vmatpush3.bf16.xpose.msra.mxu0 %v1146_v21  ;;  %4824 = vmatprep.mubr.msk.bf16.mxu0 %vm5435_vm0, %v5432_v2 }
 0x30b   : > { %4834 = vmatprep.subr.bf16.mxu0 %v5432_v2 }
 0x311   : > { %4825 = vmatmul.mubr.msk.bf16.vlgmr.msra.gmra.mrb[20].mxu0 %vm597_vm3, %v1138_v22 }
 0x312   : > { %4836 = vmatprep.mubr.msk.bf16.mxu0 %vm5435_vm0, %v5432_v2 }
 0x39e   : > { %v930_v24 = vpop.f32.mrb[8].mxu1 }
 0x39f   : > { %v884_v25 = vpop.f32.mrb[8].mxu0  ;;  %1029 = vst.msk [vmem:[%s5854_s23 + $0x8] sm:$0xff] %vm597_vm3, %v930_v24  ;;  %v4796_v26 = vpop.f32.mrb[9].mxu1 }
 0x3a0   : > { %1028 = vst.msk [vmem:[%s5854_s23] sm:$0xff] %vm597_vm3, %v884_v25  ;;  %v4790_v27 = vpop.f32.mrb[9].mxu0  ;;  %v933_v30 = vpop.f32.mrb[10].mxu1 }
 0x3a1   : > { %v887_v31 = vpop.f32.mrb[10].mxu0  ;;  %v4797_v32 = vpop.f32.mrb[11].mxu1 }
 0x3a2   : > { %v4791_v33 = vpop.f32.mrb[11].mxu0 }
 0x3ba   : > { %v1022_v34 = vpop.f32.mrb[12].mxu1 }
 0x3bb   : > { %1031 = vst.msk [vmem:[%s5854_s23 + $0x18] sm:$0xff] %vm597_vm3, %v1022_v34  ;;  %v4808_v35 = vpop.f32.mrb[13].mxu1 }
 0x3bc   : > { %v1025_v38 = vpop.f32.mrb[14].mxu1 }
 0x3bd   : > { %v4809_v41 = vpop.f32.mrb[15].mxu1 }
 0x3cd   : > { %v1130_v42 = vpop.f32.mrb[16].mxu1 }
 0x3ce   : > { %v1241_v43 = vmul.f32 0.17677669, %v1130_v42  ;;  %v4820_v44 = vpop.f32.mrb[17].mxu1 }
 0x3cf   : > { %v1133_v45 = vpop.f32.mrb[18].mxu1 }
 0x3d0   : > { %4543 = vst.msk [vmem:[%s5752_s10 + $0x48] sm:$0xff] %vm786_vm4, %v1241_v43  ;;  %v4821_v46 = vpop.f32.mrb[19].mxu1  ;;  %v1252_v47 = vsel %vm786_vm4, %v1241_v43, -inf }
 0x3d1   : > { %1253 = vmax.xlane.f32.xlu1 %v1252_v47 }
 0x3d4   : > { %v976_v48 = vpop.f32.mrb[12].mxu0 }
 0x3d5   : > { %1030 = vst.msk [vmem:[%s5854_s23 + $0x10] sm:$0xff] %vm597_vm3, %v976_v48  ;;  %v4802_v49 = vpop.f32.mrb[13].mxu0 }
 0x3d6   : > { %v979_v7 = vpop.f32.mrb[14].mxu0 }
 0x3d7   : > { %v4803_v50 = vpop.f32.mrb[15].mxu0 }
 0x3d9   : > { %v1234_v51 = vpop.f32.mrb[20].mxu1 }
 0x3da   : > { %v1243_v15 = vmul.f32 0.17677669, %v1234_v51  ;;  %v4832_v23 = vpop.f32.mrb[21].mxu1 }
 0x3db   : > { %v1237_v54 = vpop.f32.mrb[22].mxu1 }
 0x3dc   : > { %4545 = vst.msk [vmem:[%s5752_s10 + $0xc8] sm:$0xff] %vm786_vm4, %v1243_v15  ;;  %v1078_v55 = vpop.f32.mrb[16].mxu0  ;;  %v4833_v56 = vpop.f32.mrb[23].mxu1  ;;  %v1258_v9 = vsel %vm786_vm4, %v1243_v15, -inf }
 0x3dd   : > { %v1240_v57 = vmul.f32 0.17677669, %v1078_v55  ;;  %v4814_v58 = vpop.f32.mrb[17].mxu0 }
 0x3de   : > { %v1081_v59 = vpop.f32.mrb[18].mxu0 }
 0x3df   : > { %4542 = vst.msk [vmem:[%s5752_s10 + $0x8] sm:$0xff] %vm786_vm4, %v1240_v57  ;;  %v4815_v60 = vpop.f32.mrb[19].mxu0  ;;  %v1249_v61 = vsel %vm786_vm4, %v1240_v57, -inf }
 0x3e0   : > { %1250 = vmax.xlane.f32.xlu0 %v1249_v61 }
 0x3e2   : > { %1298 = vrot.lane.b32.xlu1 %v5777_v39, %s5436_s20 }
 0x3e4   : > { %v1182_v62 = vpop.f32.mrb[20].mxu0 }
 0x3e5   : > { %v1242_v63 = vmul.f32 0.17677669, %v1182_v62  ;;  %v4826_v0 = vpop.f32.mrb[21].mxu0 }
 0x3e6   : > { %v1185_v1 = vpop.f32.mrb[22].mxu0 }
 0x3e7   : > { %4544 = vst.msk [vmem:[%s5752_s10 + $0x88] sm:$0xff] %vm786_vm4, %v1242_v63  ;;  %v4827_v3 = vpop.f32.mrb[23].mxu0  ;;  %v1255_v4 = vsel %vm786_vm4, %v1242_v63, -inf }
 0x3e8   : > { %1256 = vmax.xlane.f32.xlu0 %v1255_v4 }
 0x3ec   : > { %1259 = vmax.xlane.f32.xlu0 %v1258_v9 }
 0x45e   : > { %v1254_v10 = vpop.xlane.xlu1 %1253 }
 0x45f   : > { %v1262_v12 = vsub.f32 %v1241_v43, %v1254_v10 }
 0x461   : > { %v1267_v13 = vmul.f32 1.442695, %v1262_v12 }
 0x462   : > { %v1299_v17 = vpop.permute.xlu1 %1298 }
 0x463   : > { %5238 = vpow2.f32 %v1267_v13  ;;  %v1304_v5 = vsel %vm846_vm5, %v1299_v17, 0 }
 0x464   : > { %4835 = vmatpush3.bf16.msra.mxu0 %v1304_v5 }
 0x465   : > { %4846 = vmatprep.subr.bf16.mxu0 %v5432_v2 }
 0x46d   : > { %v5239_v18 = vpop.eup %5238  ;;  %v1251_v19 = vpop.xlane.xlu0 %1250 }
 0x46e   : > { %v1261_v6 = vsub.f32 %v1240_v57, %v1251_v19  ;;  %v1276_v20 = vsel %vm786_vm4, %v5239_v18, 0.0 }
 0x46f   : > { %1277 = vadd.xlane.f32.xlu0 %v1276_v20 }
 0x470   : > { %v1265_v21 = vmul.f32 1.442695, %v1261_v6 }
 0x472   : > { %5240 = vpow2.f32 %v1265_v21 }
 0x475   : > { %v1257_v25 = vpop.xlane.xlu0 %1256 }
 0x476   : > { %v1263_v32 = vsub.f32 %v1242_v63, %v1257_v25 }
 0x478   : > { %v1269_v34 = vmul.f32 1.442695, %v1263_v32 }
 0x479   : > { %v1260_v26 = vpop.xlane.xlu0 %1259 }
 0x47a   : > { %v1264_v27 = vsub.f32 %v1243_v15, %v1260_v26 }
 0x47c   : > { %v5241_v22 = vpop.eup %5240  ;;  %v1271_v30 = vmul.f32 1.442695, %v1264_v27 }
 0x47d   : > { %v1273_v24 = vsel %vm786_vm4, %v5241_v22, 0.0 }
 0x47e   : > { %1274 = vadd.xlane.f32.xlu1 %v1273_v24  ;;  %5242 = vpow2.f32 %v1271_v30 }
 0x47f   : > { %5244 = vpow2.f32 %v1269_v34 }
 0x485   : > { %1347 = vrot.lane.b32.xlu0 %v5779_v40, %s5436_s20 }
 0x488   : > { %v5243_v31 = vpop.eup %5242 }
 0x489   : > { %v1282_v33 = vsel %vm786_vm4, %v5243_v31, 0.0  ;;  %v5245_v35 = vpop.eup %5244 }
 0x48a   : > { %v1279_v38 = vsel %vm786_vm4, %v5245_v35, 0.0 }
 0x48f   : > { %1396 = vrot.lane.b32.xlu1 %v5809_v53, %s5436_s20 }
 0x493   : > { %1445 = vrot.lane.b32.xlu1 %v5807_v52, %s5436_s20  ;;  %s5444_s20 = smov 8  }
 0x4a4   : > { %1283 = vadd.xlane.f32.xlu0 %v1282_v33 }
 0x4b7   : > { %1280 = vadd.xlane.f32.xlu1 %v1279_v38 }
 0x4ba   : > { %1516 = vrot.lane.b32.xlu0 %v5671_v37, %s5437_s15 }
 0x4be   : > { %1514 = vrot.lane.b32.xlu0 %v5701_v16, %s5437_s15 }
 0x4c2   : > { %1616 = vrot.lane.b32.xlu0 %v5717_v29, %s5437_s15 }
 0x4c6   : > { %1614 = vrot.lane.b32.xlu0 %v5739_v14, %s5437_s15 }
 0x4c8   : > { %1566 = vrot.lane.b32.xlu1 %v5669_v36, %s5437_s15 }
 0x4cc   : > { %1564 = vrot.lane.b32.xlu1 %v5696_v11, %s5437_s15 }
 0x4d0   : > { %1666 = vrot.lane.b32.xlu1 %v5715_v28, %s5437_s15 }
 0x4d4   : > { %1664 = vrot.lane.b32.xlu1 %v5737_v8, %s5437_s15 }
 0x4fc   : > { %v1278_v41 = vpop.xlane.xlu0 %1277 }
 0x4fd   : > { %5246 = vrcp.f32 %v1278_v41 }
 0x500   : > { %v1348_v42 = vpop.permute.xlu0 %1347 }
 0x501   : > { %v1353_v43 = vsel %vm846_vm5, %v1348_v42, 0 }
 0x502   : > { %4841 = vmatpush3.bf16.msra.mxu1 %v1353_v43 }
 0x503   : > { %4852 = vmatprep.subr.bf16.mxu1 %v5432_v2 }
 0x507   : > { %v5247_v44 = vpop.eup %5246 }
 0x508   : > { %v1290_v45 = vmul.f32 %v5247_v44, %v5239_v18 }
 0x50a   : > { %v1294_v46 = vpack.c.bf16 %v1290_v45, %v1290_v45 }
 0x50b   : > { %v1275_v47 = vpop.xlane.xlu1 %1274 }
 0x50c   : > { %5248 = vrcp.f32 %v1275_v47  ;;  %4843 = vmatmul.mubr.msk.bf16.vlgmr.msra.gmra.mrb[24].mxu1 %vm786_vm4, %v1294_v46 }
 0x50d   : > { %4854 = vmatprep.mubr.msk.bf16.mxu1 %vm5435_vm0, %v5432_v2 }
 0x50f   : > { %v1397_v48 = vpop.permute.xlu1 %1396 }
 0x510   : > { %v1402_v23 = vsel %vm846_vm5, %v1397_v48, 0 }
 0x513   : > { %v1446_v49 = vpop.permute.xlu1 %1445 }
 0x514   : > { %v1451_v7 = vsel %vm846_vm5, %v1446_v49, 0 }
 0x515   : > { %4853 = vmatpush3.bf16.msra.mxu1 %v1451_v7 }
 0x516   : > { %v5249_v50 = vpop.eup %5248  ;;  %4864 = vmatprep.subr.bf16.mxu1 %v5432_v2 }
 0x517   : > { %v1289_v51 = vmul.f32 %v5249_v50, %v5241_v22 }
 0x519   : > { %v1293_v15 = vpack.c.bf16 %v1289_v51, %v1289_v51 }
 0x51b   : > { %4837 = vmatmul.mubr.msk.bf16.vlgmr.msra.gmra.mrb[24].mxu0 %vm786_vm4, %v1293_v15 }
 0x51c   : > { %4847 = vmatpush3.bf16.msra.mxu0 %v1402_v23  ;;  %4848 = vmatprep.mubr.msk.bf16.mxu0 %vm5435_vm0, %v5432_v2 }
 0x51d   : > { %4858 = vmatprep.subr.bf16.mxu0 %v5432_v2 }
 0x531   : > { %v1284_v54 = vpop.xlane.xlu0 %1283 }
 0x532   : > { %5250 = vrcp.f32 %v1284_v54 }
 0x535   : > { %v1517_v62 = vpop.permute.xlu0 %1516 }
 0x536   : > { %v1522_v10 = vsel %vm597_vm3, %v1517_v62, 0 }
 0x539   : > { %v1515_v9 = vpop.permute.xlu0 %1514 }
 0x53c   : > { %v5251_v55 = vpop.eup %5250 }
 0x53d   : > { %v1292_v56 = vmul.f32 %v5251_v55, %v5243_v31  ;;  %v1617_v13 = vpop.permute.xlu0 %1616 }
 0x53e   : > { %v1622_v17 = vsel %vm597_vm3, %v1617_v13, 0 }
 0x53f   : > { %v1296_v57 = vpack.c.bf16 %v1292_v56, %v1292_v56 }
 0x541   : > { %4855 = vmatmul.mubr.msk.bf16.vlgmr.msra.gmra.mrb[28].mxu1 %vm786_vm4, %v1296_v57  ;;  %v1615_v5 = vpop.permute.xlu0 %1614 }
 0x542   : > { %4866 = vmatprep.mubr.msk.bf16.mxu1 %vm5435_vm0, %v5432_v2 }
 0x544   : > { %v1281_v58 = vpop.xlane.xlu1 %1280 }
 0x545   : > { %5252 = vrcp.f32 %v1281_v58 }
 0x548   : > { %v1567_v59 = vpop.permute.xlu1 %1566 }
 0x549   : > { %v1572_v60 = vsel %vm597_vm3, %v1567_v59, 0 }
 0x54a   : > { %4865 = vmatpush3.bf16.xpose.msra.mxu1 %v1572_v60 }
 0x54b   : > { %4876 = vmatprep.subr.bf16.mxu1 %v5432_v2 }
 0x54c   : > { %v1565_v61 = vpop.permute.xlu1 %1564 }
 0x54f   : > { %v5253_v63 = vpop.eup %5252 }
 0x550   : > { %v1667_v0 = vpop.permute.xlu1 %1666  ;;  %v1291_v1 = vmul.f32 %v5253_v63, %v5245_v35 }
 0x551   : > { %v1672_v3 = vsel %vm597_vm3, %v1667_v0, 0  ;;  %4867 = vmatmul.mubr.msk.bf16.vlgmr.msra.gmra.mrb[32].mxu1 %vm597_vm3, %v1565_v61 }
 0x552   : > { %4877 = vmatpush3.bf16.xpose.msra.mxu1 %v1672_v3  ;;  %v1295_v4 = vpack.c.bf16 %v1291_v1, %v1291_v1  ;;  %4878 = vmatprep.mubr.msk.bf16.mxu1 %vm5435_vm0, %v5432_v2 }
 0x553   : > { %4888 = vmatprep.subr.bf16.mxu1 %v5432_v2 }
 0x554   : > { %4849 = vmatmul.mubr.msk.bf16.vlgmr.msra.gmra.mrb[28].mxu0 %vm786_vm4, %v1295_v4  ;;  %v1665_v12 = vpop.permute.xlu1 %1664 }
 0x555   : > { %4859 = vmatpush3.bf16.xpose.msra.mxu0 %v1522_v10  ;;  %4860 = vmatprep.mubr.msk.bf16.mxu0 %vm5435_vm0, %v5432_v2 }
 0x556   : > { %4870 = vmatprep.subr.bf16.mxu0 %v5432_v2 }
 0x559   : > { %4879 = vmatmul.mubr.msk.bf16.vlgmr.msra.gmra.mrb[36].mxu1 %vm597_vm3, %v1665_v12 }
 0x55a   : > { %4890 = vmatprep.mubr.msk.bf16.mxu1 %vm5435_vm0, %v5432_v2 }
 0x55c   : > { %4861 = vmatmul.mubr.msk.bf16.vlgmr.msra.gmra.mrb[32].mxu0 %vm597_vm3, %v1515_v9 }
 0x55d   : > { %4871 = vmatpush3.bf16.xpose.msra.mxu0 %v1622_v17  ;;  %4872 = vmatprep.mubr.msk.bf16.mxu0 %vm5435_vm0, %v5432_v2 }
 0x55e   : > { %4882 = vmatprep.subr.bf16.mxu0 %v5432_v2 }
 0x564   : > { %4873 = vmatmul.mubr.msk.bf16.vlgmr.msra.gmra.mrb[36].mxu0 %vm597_vm3, %v1615_v5 }
 0x565   : > { %4884 = vmatprep.mubr.msk.bf16.mxu0 %vm5435_vm0, %v5432_v2 }
 0x5df   : > { %v5944_v18 = vpop.f32.mrb[24].mxu1 }
 0x5e0   : > { %v4844_v19 = vpop.f32.mrb[25].mxu1 }
 0x5e1   : > { %v1392_v6 = vpop.f32.mrb[26].mxu1 }
 0x5e2   : > { %v4845_v20 = vpop.f32.mrb[27].mxu1 }
 0x5ee   : > { %v5946_v21 = vpop.f32.mrb[24].mxu0 }
 0x5ef   : > { %v4838_v22 = vpop.f32.mrb[25].mxu0 }
 0x5f0   : > { %v1343_v24 = vpop.f32.mrb[26].mxu0 }
 0x5f1   : > { %v4839_v25 = vpop.f32.mrb[27].mxu0 }
 0x614   : > { %v5948_v26 = vpop.f32.mrb[28].mxu1 }
 0x615   : > { %v4856_v27 = vpop.f32.mrb[29].mxu1 }
 0x616   : > { %v1490_v30 = vpop.f32.mrb[30].mxu1 }
 0x617   : > { %v4857_v31 = vpop.f32.mrb[31].mxu1 }
 0x624   : > { %v1608_v32 = vpop.f32.mrb[32].mxu1 }
 0x625   : > { %v1715_v33 = vmul.f32 0.17677669, %v1608_v32  ;;  %v4868_v34 = vpop.f32.mrb[33].mxu1 }
 0x626   : > { %v1611_v35 = vpop.f32.mrb[34].mxu1 }
 0x627   : > { %4555 = vst.msk [vmem:[%s5752_s10 + $0x50] sm:$0xff] %vm786_vm4, %v1715_v33  ;;  %v5952_v38 = vpop.f32.mrb[28].mxu0  ;;  %v4869_v41 = vpop.f32.mrb[35].mxu1  ;;  %v1726_v42 = vsel %vm786_vm4, %v1715_v33, -inf }
 0x628   : > { %1727 = vmax.xlane.f32.xlu1 %v1726_v42  ;;  %v4850_v43 = vpop.f32.mrb[29].mxu0 }
 0x629   : > { %v1441_v44 = vpop.f32.mrb[30].mxu0 }
 0x62a   : > { %v4851_v45 = vpop.f32.mrb[31].mxu0 }
 0x62c   : > { %v1708_v46 = vpop.f32.mrb[36].mxu1 }
 0x62d   : > { %v1717_v47 = vmul.f32 0.17677669, %v1708_v46  ;;  %v4880_v48 = vpop.f32.mrb[37].mxu1 }
 0x62e   : > { %v1711_v49 = vpop.f32.mrb[38].mxu1 }
 0x62f   : > { %4557 = vst.msk [vmem:[%s5752_s10 + $0xd0] sm:$0xff] %vm786_vm4, %v1717_v47  ;;  %v1558_v7 = vpop.f32.mrb[32].mxu0  ;;  %v4881_v50 = vpop.f32.mrb[39].mxu1  ;;  %v1732_v62 = vsel %vm786_vm4, %v1717_v47, -inf }
 0x630   : > { %v1714_v51 = vmul.f32 0.17677669, %v1558_v7  ;;  %v4862_v15 = vpop.f32.mrb[33].mxu0 }
 0x631   : > { %v1561_v23 = vpop.f32.mrb[34].mxu0 }
 0x632   : > { %4554 = vst.msk [vmem:[%s5752_s10 + $0x10] sm:$0xff] %vm786_vm4, %v1714_v51  ;;  %v4863_v54 = vpop.f32.mrb[35].mxu0  ;;  %v1723_v55 = vsel %vm786_vm4, %v1714_v51, -inf }
 0x633   : > { %1724 = vmax.xlane.f32.xlu0 %v1723_v55 }
 0x637   : > { %v1658_v56 = vpop.f32.mrb[36].mxu0 }
 0x638   : > { %v1716_v57 = vmul.f32 0.17677669, %v1658_v56  ;;  %v4874_v58 = vpop.f32.mrb[37].mxu0 }
 0x639   : > { %v1661_v59 = vpop.f32.mrb[38].mxu0  ;;  %1771 = vrot.lane.b32.xlu1 %v5777_v39, %s5437_s15 }
 0x63a   : > { %4556 = vst.msk [vmem:[%s5752_s10 + $0x90] sm:$0xff] %vm786_vm4, %v1716_v57  ;;  %v4875_v60 = vpop.f32.mrb[39].mxu0  ;;  %v1729_v61 = vsel %vm786_vm4, %v1716_v57, -inf }
 0x63b   : > { %1730 = vmax.xlane.f32.xlu0 %v1729_v61 }
 0x63f   : > { %1733 = vmax.xlane.f32.xlu0 %v1732_v62 }
 0x6b5   : > { %v1728_v63 = vpop.xlane.xlu1 %1727 }
 0x6b6   : > { %v1736_v0 = vsub.f32 %v1715_v33, %v1728_v63 }
 0x6b8   : > { %v1741_v1 = vmul.f32 1.442695, %v1736_v0 }
 0x6b9   : > { %v1772_v3 = vpop.permute.xlu1 %1771 }
 0x6ba   : > { %5254 = vpow2.f32 %v1741_v1  ;;  %v1777_v4 = vsel %vm846_vm5, %v1772_v3, 0 }
 0x6bb   : > { %4883 = vmatpush3.bf16.msra.mxu0 %v1777_v4 }
 0x6bc   : > { %4894 = vmatprep.subr.bf16.mxu0 %v5432_v2 }
 0x6c0   : > { %v1725_v9 = vpop.xlane.xlu0 %1724 }
 0x6c1   : > { %v1735_v10 = vsub.f32 %v1714_v51, %v1725_v9 }
 0x6c3   : > { %v1739_v12 = vmul.f32 1.442695, %v1735_v10 }
 0x6c4   : > { %v5255_v13 = vpop.eup %5254 }
 0x6c5   : > { %5256 = vpow2.f32 %v1739_v12  ;;  %v1750_v17 = vsel %vm786_vm4, %v5255_v13, 0.0 }
 0x6c6   : > { %1751 = vadd.xlane.f32.xlu0 %v1750_v17 }
 0x6c8   : > { %v1731_v6 = vpop.xlane.xlu0 %1730 }
 0x6c9   : > { %v1737_v25 = vsub.f32 %v1716_v57, %v1731_v6 }
 0x6cb   : > { %v1743_v30 = vmul.f32 1.442695, %v1737_v25 }
 0x6cc   : > { %v1734_v20 = vpop.xlane.xlu0 %1733 }
 0x6cd   : > { %v1738_v22 = vsub.f32 %v1717_v47, %v1734_v20 }
 0x6cf   : > { %v5257_v5 = vpop.eup %5256  ;;  %v1745_v24 = vmul.f32 1.442695, %v1738_v22 }
 0x6d0   : > { %v1747_v19 = vsel %vm786_vm4, %v5257_v5, 0.0 }
 0x6d1   : > { %1748 = vadd.xlane.f32.xlu1 %v1747_v19  ;;  %5258 = vpow2.f32 %v1745_v24 }
 0x6d2   : > { %5260 = vpow2.f32 %v1743_v30 }
 0x6db   : > { %v5259_v27 = vpop.eup %5258 }
 0x6dc   : > { %1819 = vrot.lane.b32.xlu0 %v5779_v40, %s5437_s15  ;;  %v1756_v31 = vsel %vm786_vm4, %v5259_v27, 0.0  ;;  %v5261_v32 = vpop.eup %5260 }
 0x6dd   : > { %v1753_v33 = vsel %vm786_vm4, %v5261_v32, 0.0 }
 0x6e2   : > { %1867 = vrot.lane.b32.xlu1 %v5809_v53, %s5437_s15 }
 0x6e6   : > { %1915 = vrot.lane.b32.xlu1 %v5807_v52, %s5437_s15  ;;  %s5447_s15 = smov 20  }
 0x6fb   : > { %1757 = vadd.xlane.f32.xlu0 %v1756_v31 }
 0x70a   : > { %1754 = vadd.xlane.f32.xlu1 %v1753_v33 }
 0x711   : > { %1986 = vrot.lane.b32.xlu0 %v5671_v37, %s5438_s22 }
 0x715   : > { %1984 = vrot.lane.b32.xlu0 %v5701_v16, %s5438_s22 }
 0x719   : > { %2086 = vrot.lane.b32.xlu0 %v5717_v29, %s5438_s22 }
 0x71b   : > { %2036 = vrot.lane.b32.xlu1 %v5669_v36, %s5438_s22 }
 0x71d   : > { %2084 = vrot.lane.b32.xlu0 %v5739_v14, %s5438_s22 }
 0x71f   : > { %2034 = vrot.lane.b32.xlu1 %v5696_v11, %s5438_s22 }
 0x723   : > { %2136 = vrot.lane.b32.xlu1 %v5715_v28, %s5438_s22 }
 0x727   : > { %2134 = vrot.lane.b32.xlu1 %v5737_v8, %s5438_s22 }
 0x753   : > { %v1752_v34 = vpop.xlane.xlu0 %1751 }
 0x754   : > { %5262 = vrcp.f32 %v1752_v34 }
 0x757   : > { %v1820_v35 = vpop.permute.xlu0 %1819 }
 0x758   : > { %v1825_v41 = vsel %vm846_vm5, %v1820_v35, 0 }
 0x759   : > { %4889 = vmatpush3.bf16.msra.mxu1 %v1825_v41 }
 0x75a   : > { %4900 = vmatprep.subr.bf16.mxu1 %v5432_v2 }
 0x75e   : > { %v5263_v42 = vpop.eup %5262  ;;  %v1749_v43 = vpop.xlane.xlu1 %1748 }
 0x75f   : > { %5264 = vrcp.f32 %v1749_v43  ;;  %v1764_v44 = vmul.f32 %v5263_v42, %v5255_v13 }
 0x761   : > { %v1768_v45 = vpack.c.bf16 %v1764_v44, %v1764_v44 }
 0x762   : > { %v1868_v46 = vpop.permute.xlu1 %1867 }
 0x763   : > { %4891 = vmatmul.mubr.msk.bf16.vlgmr.msra.gmra.mrb[40].mxu1 %vm786_vm4, %v1768_v45  ;;  %v1873_v51 = vsel %vm846_vm5, %v1868_v46, 0 }
 0x764   : > { %4902 = vmatprep.mubr.msk.bf16.mxu1 %vm5435_vm0, %v5432_v2 }
 0x766   : > { %v1916_v47 = vpop.permute.xlu1 %1915 }
 0x767   : > { %v1921_v48 = vsel %vm846_vm5, %v1916_v47, 0 }
 0x768   : > { %4901 = vmatpush3.bf16.msra.mxu1 %v1921_v48 }
 0x769   : > { %v5265_v49 = vpop.eup %5264  ;;  %4912 = vmatprep.subr.bf16.mxu1 %v5432_v2 }
 0x76a   : > { %v1763_v7 = vmul.f32 %v5265_v49, %v5257_v5 }
 0x76c   : > { %v1767_v50 = vpack.c.bf16 %v1763_v7, %v1763_v7 }
 0x76e   : > { %4885 = vmatmul.mubr.msk.bf16.vlgmr.msra.gmra.mrb[40].mxu0 %vm786_vm4, %v1767_v50 }
 0x76f   : > { %4895 = vmatpush3.bf16.msra.mxu0 %v1873_v51  ;;  %4896 = vmatprep.mubr.msk.bf16.mxu0 %vm5435_vm0, %v5432_v2 }
 0x770   : > { %4906 = vmatprep.subr.bf16.mxu0 %v5432_v2 }
 0x788   : > { %v1758_v15 = vpop.xlane.xlu0 %1757 }
 0x789   : > { %5266 = vrcp.f32 %v1758_v15 }
 0x78c   : > { %v1987_v60 = vpop.permute.xlu0 %1986 }
 0x78d   : > { %v1992_v4 = vsel %vm597_vm3, %v1987_v60, 0 }
 0x790   : > { %v1985_v3 = vpop.permute.xlu0 %1984 }
 0x793   : > { %v5267_v23 = vpop.eup %5266 }
 0x794   : > { %v1766_v54 = vmul.f32 %v5267_v23, %v5259_v27  ;;  %v2087_v10 = vpop.permute.xlu0 %2086 }
 0x795   : > { %v2092_v12 = vsel %vm597_vm3, %v2087_v10, 0 }
 0x796   : > { %v1770_v55 = vpack.c.bf16 %v1766_v54, %v1766_v54 }
 0x797   : > { %v1755_v56 = vpop.xlane.xlu1 %1754 }
 0x798   : > { %5268 = vrcp.f32 %v1755_v56  ;;  %4903 = vmatmul.mubr.msk.bf16.vlgmr.msra.gmra.mrb[44].mxu1 %vm786_vm4, %v1770_v55  ;;  %v2085_v13 = vpop.permute.xlu0 %2084 }
 0x799   : > { %4914 = vmatprep.mubr.msk.bf16.mxu1 %vm5435_vm0, %v5432_v2 }
 0x79b   : > { %v2037_v57 = vpop.permute.xlu1 %2036 }
 0x79c   : > { %v2042_v58 = vsel %vm597_vm3, %v2037_v57, 0 }
 0x79d   : > { %4913 = vmatpush3.bf16.xpose.msra.mxu1 %v2042_v58 }
 0x79e   : > { %4924 = vmatprep.subr.bf16.mxu1 %v5432_v2 }
 0x79f   : > { %v2035_v59 = vpop.permute.xlu1 %2034 }
 0x7a2   : > { %v5269_v61 = vpop.eup %5268 }
 0x7a3   : > { %v2137_v62 = vpop.permute.xlu1 %2136  ;;  %v1765_v63 = vmul.f32 %v5269_v61, %v5261_v32 }
 0x7a4   : > { %v2142_v0 = vsel %vm597_vm3, %v2137_v62, 0  ;;  %4915 = vmatmul.mubr.msk.bf16.vlgmr.msra.gmra.mrb[48].mxu1 %vm597_vm3, %v2035_v59 }
 0x7a5   : > { %4925 = vmatpush3.bf16.xpose.msra.mxu1 %v2142_v0  ;;  %v1769_v1 = vpack.c.bf16 %v1765_v63, %v1765_v63  ;;  %4926 = vmatprep.mubr.msk.bf16.mxu1 %vm5435_vm0, %v5432_v2 }
 0x7a6   : > { %4936 = vmatprep.subr.bf16.mxu1 %v5432_v2 }
 0x7a7   : > { %4897 = vmatmul.mubr.msk.bf16.vlgmr.msra.gmra.mrb[44].mxu0 %vm786_vm4, %v1769_v1  ;;  %v2135_v9 = vpop.permute.xlu1 %2134 }
 0x7a8   : > { %4907 = vmatpush3.bf16.xpose.msra.mxu0 %v1992_v4  ;;  %4908 = vmatprep.mubr.msk.bf16.mxu0 %vm5435_vm0, %v5432_v2 }
 0x7a9   : > { %4918 = vmatprep.subr.bf16.mxu0 %v5432_v2 }
 0x7ac   : > { %4927 = vmatmul.mubr.msk.bf16.vlgmr.msra.gmra.mrb[52].mxu1 %vm597_vm3, %v2135_v9 }
 0x7ad   : > { %4938 = vmatprep.mubr.msk.bf16.mxu1 %vm5435_vm0, %v5432_v2 }
 0x7af   : > { %4909 = vmatmul.mubr.msk.bf16.vlgmr.msra.gmra.mrb[48].mxu0 %vm597_vm3, %v1985_v3 }
 0x7b0   : > { %4919 = vmatpush3.bf16.xpose.msra.mxu0 %v2092_v12  ;;  %4920 = vmatprep.mubr.msk.bf16.mxu0 %vm5435_vm0, %v5432_v2 }
 0x7b1   : > { %4930 = vmatprep.subr.bf16.mxu0 %v5432_v2 }
 0x7b7   : > { %4921 = vmatmul.mubr.msk.bf16.vlgmr.msra.gmra.mrb[52].mxu0 %vm597_vm3, %v2085_v13 }
 0x7b8   : > { %4932 = vmatprep.mubr.msk.bf16.mxu0 %vm5435_vm0, %v5432_v2 }
 0x836   : > { %v6032_v17 = vpop.f32.mrb[40].mxu1 }
 0x837   : > { %v4892_v5 = vpop.f32.mrb[41].mxu1 }
 0x838   : > { %v1864_v19 = vpop.f32.mrb[42].mxu1 }
 0x839   : > { %v4893_v6 = vpop.f32.mrb[43].mxu1 }
 0x841   : > { %v6034_v20 = vpop.f32.mrb[40].mxu0 }
 0x842   : > { %v4886_v22 = vpop.f32.mrb[41].mxu0 }
 0x843   : > { %v1816_v24 = vpop.f32.mrb[42].mxu0 }
 0x844   : > { %v4887_v25 = vpop.f32.mrb[43].mxu0 }
 0x86b   : > { %v6036_v27 = vpop.f32.mrb[44].mxu1 }
 0x86c   : > { %v4904_v30 = vpop.f32.mrb[45].mxu1 }
 0x86d   : > { %v1960_v31 = vpop.f32.mrb[46].mxu1 }
 0x86e   : > { %v4905_v32 = vpop.f32.mrb[47].mxu1 }
 0x877   : > { %v2078_v33 = vpop.f32.mrb[48].mxu1 }
 0x878   : > { %v2185_v34 = vmul.f32 0.17677669, %v2078_v33  ;;  %v4916_v35 = vpop.f32.mrb[49].mxu1 }
 0x879   : > { %v2081_v41 = vpop.f32.mrb[50].mxu1 }
 0x87a   : > { %4567 = vst.msk [vmem:[%s5752_s10 + $0x58] sm:$0xff] %vm786_vm4, %v2185_v34  ;;  %v6040_v42 = vpop.f32.mrb[44].mxu0  ;;  %v4917_v43 = vpop.f32.mrb[51].mxu1  ;;  %v2196_v44 = vsel %vm786_vm4, %v2185_v34, -inf }
 0x87b   : > { %2197 = vmax.xlane.f32.xlu1 %v2196_v44  ;;  %v4898_v45 = vpop.f32.mrb[45].mxu0 }
 0x87c   : > { %v1912_v46 = vpop.f32.mrb[46].mxu0 }
 0x87d   : > { %v4899_v47 = vpop.f32.mrb[47].mxu0 }
 0x87f   : > { %v2178_v48 = vpop.f32.mrb[52].mxu1 }
 0x880   : > { %v2187_v49 = vmul.f32 0.17677669, %v2178_v48  ;;  %v4928_v7 = vpop.f32.mrb[53].mxu1 }
 0x881   : > { %v2181_v50 = vpop.f32.mrb[54].mxu1 }
 0x882   : > { %4569 = vst.msk [vmem:[%s5752_s10 + $0xd8] sm:$0xff] %vm786_vm4, %v2187_v49  ;;  %v2028_v51 = vpop.f32.mrb[48].mxu0  ;;  %v4929_v15 = vpop.f32.mrb[55].mxu1  ;;  %v2202_v0 = vsel %vm786_vm4, %v2187_v49, -inf }
 0x883   : > { %v2184_v23 = vmul.f32 0.17677669, %v2028_v51  ;;  %v4910_v54 = vpop.f32.mrb[49].mxu0 }
 0x884   : > { %v2031_v55 = vpop.f32.mrb[50].mxu0 }
 0x885   : > { %4566 = vst.msk [vmem:[%s5752_s10 + $0x18] sm:$0xff] %vm786_vm4, %v2184_v23  ;;  %v4911_v56 = vpop.f32.mrb[51].mxu0  ;;  %v2193_v57 = vsel %vm786_vm4, %v2184_v23, -inf }
 0x886   : > { %2194 = vmax.xlane.f32.xlu0 %v2193_v57 }
 0x88a   : > { %v2128_v58 = vpop.f32.mrb[52].mxu0 }
 0x88b   : > { %v2186_v59 = vmul.f32 0.17677669, %v2128_v58  ;;  %v4922_v60 = vpop.f32.mrb[53].mxu0 }
 0x88c   : > { %v2131_v61 = vpop.f32.mrb[54].mxu0  ;;  %2241 = vrot.lane.b32.xlu1 %v5777_v39, %s5438_s22 }
 0x88d   : > { %4568 = vst.msk [vmem:[%s5752_s10 + $0x98] sm:$0xff] %vm786_vm4, %v2186_v59  ;;  %v4923_v62 = vpop.f32.mrb[55].mxu0  ;;  %v2199_v63 = vsel %vm786_vm4, %v2186_v59, -inf }
 0x88e   : > { %2200 = vmax.xlane.f32.xlu0 %v2199_v63 }
 0x892   : > { %2203 = vmax.xlane.f32.xlu0 %v2202_v0 }
 0x908   : > { %v2198_v1 = vpop.xlane.xlu1 %2197 }
 0x909   : > { %v2206_v3 = vsub.f32 %v2185_v34, %v2198_v1 }
 0x90b   : > { %v2211_v4 = vmul.f32 1.442695, %v2206_v3 }
 0x90c   : > { %v2242_v9 = vpop.permute.xlu1 %2241 }
 0x90d   : > { %5270 = vpow2.f32 %v2211_v4  ;;  %v2247_v10 = vsel %vm846_vm5, %v2242_v9, 0 }
 0x90e   : > { %4931 = vmatpush3.bf16.msra.mxu0 %v2247_v10 }
 0x90f   : > { %4942 = vmatprep.subr.bf16.mxu0 %v5432_v2 }
 0x913   : > { %v2195_v12 = vpop.xlane.xlu0 %2194 }
 0x914   : > { %v2205_v13 = vsub.f32 %v2184_v23, %v2195_v12 }
 0x916   : > { %v2209_v5 = vmul.f32 1.442695, %v2205_v13 }
 0x917   : > { %v5271_v19 = vpop.eup %5270 }
 0x918   : > { %5272 = vpow2.f32 %v2209_v5  ;;  %v2220_v6 = vsel %vm786_vm4, %v5271_v19, 0.0 }
 0x919   : > { %2221 = vadd.xlane.f32.xlu0 %v2220_v6 }
 0x91b   : > { %v2201_v25 = vpop.xlane.xlu0 %2200 }
 0x91c   : > { %v2207_v33 = vsub.f32 %v2186_v59, %v2201_v25 }
 0x91e   : > { %v2213_v35 = vmul.f32 1.442695, %v2207_v33 }
 0x91f   : > { %v2204_v30 = vpop.xlane.xlu0 %2203 }
 0x920   : > { %v2208_v31 = vsub.f32 %v2187_v49, %v2204_v30 }
 0x922   : > { %v5273_v22 = vpop.eup %5272  ;;  %v2215_v32 = vmul.f32 1.442695, %v2208_v31 }
 0x923   : > { %v2217_v24 = vsel %vm786_vm4, %v5273_v22, 0.0 }
 0x924   : > { %2218 = vadd.xlane.f32.xlu1 %v2217_v24  ;;  %5274 = vpow2.f32 %v2215_v32 }
 0x925   : > { %5276 = vpow2.f32 %v2213_v35 }
 0x92e   : > { %v5275_v34 = vpop.eup %5274 }
 0x92f   : > { %2289 = vrot.lane.b32.xlu0 %v5779_v40, %s5438_s22  ;;  %v2226_v41 = vsel %vm786_vm4, %v5275_v34, 0.0  ;;  %v5277_v43 = vpop.eup %5276 }
 0x930   : > { %v2223_v44 = vsel %vm786_vm4, %v5277_v43, 0.0 }
 0x935   : > { %2337 = vrot.lane.b32.xlu1 %v5809_v53, %s5438_s22 }
 0x939   : > { %2385 = vrot.lane.b32.xlu1 %v5807_v52, %s5438_s22  ;;  %s5448_s22 = smov 24  }
 0x94e   : > { %2227 = vadd.xlane.f32.xlu0 %v2226_v41 }
 0x95d   : > { %2224 = vadd.xlane.f32.xlu1 %v2223_v44 }
 0x964   : > { %2456 = vrot.lane.b32.xlu0 %v5671_v37, %s5439_s8 }
 0x968   : > { %2454 = vrot.lane.b32.xlu0 %v5701_v16, %s5439_s8 }
 0x96c   : > { %2556 = vrot.lane.b32.xlu0 %v5717_v29, %s5439_s8 }
 0x96e   : > { %2506 = vrot.lane.b32.xlu1 %v5669_v36, %s5439_s8 }
 0x970   : > { %2554 = vrot.lane.b32.xlu0 %v5739_v14, %s5439_s8 }
 0x972   : > { %2504 = vrot.lane.b32.xlu1 %v5696_v11, %s5439_s8 }
 0x976   : > { %2606 = vrot.lane.b32.xlu1 %v5715_v28, %s5439_s8 }
 0x97a   : > { %2604 = vrot.lane.b32.xlu1 %v5737_v8, %s5439_s8 }
 0x9a6   : > { %v2222_v45 = vpop.xlane.xlu0 %2221 }
 0x9a7   : > { %5278 = vrcp.f32 %v2222_v45 }
 0x9aa   : > { %v2290_v46 = vpop.permute.xlu0 %2289 }
 0x9ab   : > { %v2295_v47 = vsel %vm846_vm5, %v2290_v46, 0 }
 0x9ac   : > { %4937 = vmatpush3.bf16.msra.mxu1 %v2295_v47 }
 0x9ad   : > { %4948 = vmatprep.subr.bf16.mxu1 %v5432_v2 }
 0x9b1   : > { %v5279_v48 = vpop.eup %5278  ;;  %v2219_v49 = vpop.xlane.xlu1 %2218 }
 0x9b2   : > { %5280 = vrcp.f32 %v2219_v49  ;;  %v2234_v7 = vmul.f32 %v5279_v48, %v5271_v19 }
 0x9b4   : > { %v2238_v50 = vpack.c.bf16 %v2234_v7, %v2234_v7 }
 0x9b5   : > { %v2338_v51 = vpop.permute.xlu1 %2337 }
 0x9b6   : > { %4939 = vmatmul.mubr.msk.bf16.vlgmr.msra.gmra.mrb[56].mxu1 %vm786_vm4, %v2238_v50  ;;  %v2343_v57 = vsel %vm846_vm5, %v2338_v51, 0 }
 0x9b7   : > { %4950 = vmatprep.mubr.msk.bf16.mxu1 %vm5435_vm0, %v5432_v2 }
 0x9b9   : > { %v2386_v15 = vpop.permute.xlu1 %2385 }
 0x9ba   : > { %v2391_v23 = vsel %vm846_vm5, %v2386_v15, 0 }
 0x9bb   : > { %4949 = vmatpush3.bf16.msra.mxu1 %v2391_v23 }
 0x9bc   : > { %v5281_v54 = vpop.eup %5280  ;;  %4960 = vmatprep.subr.bf16.mxu1 %v5432_v2 }
 0x9bd   : > { %v2233_v55 = vmul.f32 %v5281_v54, %v5273_v22 }
 0x9bf   : > { %v2237_v56 = vpack.c.bf16 %v2233_v55, %v2233_v55 }
 0x9c1   : > { %4933 = vmatmul.mubr.msk.bf16.vlgmr.msra.gmra.mrb[56].mxu0 %vm786_vm4, %v2237_v56 }
 0x9c2   : > { %4943 = vmatpush3.bf16.msra.mxu0 %v2343_v57  ;;  %4944 = vmatprep.mubr.msk.bf16.mxu0 %vm5435_vm0, %v5432_v2 }
 0x9c3   : > { %4954 = vmatprep.subr.bf16.mxu0 %v5432_v2 }
 0x9db   : > { %v2228_v58 = vpop.xlane.xlu0 %2227 }
 0x9dc   : > { %5282 = vrcp.f32 %v2228_v58 }
 0x9df   : > { %v2457_v3 = vpop.permute.xlu0 %2456 }
 0x9e0   : > { %v2462_v19 = vsel %vm597_vm3, %v2457_v3, 0 }
 0x9e3   : > { %v2455_v5 = vpop.permute.xlu0 %2454 }
 0x9e6   : > { %v5283_v59 = vpop.eup %5282 }
 0x9e7   : > { %v2236_v60 = vmul.f32 %v5283_v59, %v5275_v34  ;;  %v2557_v22 = vpop.permute.xlu0 %2556 }
 0x9e8   : > { %v2562_v24 = vsel %vm597_vm3, %v2557_v22, 0 }
 0x9e9   : > { %v2240_v61 = vpack.c.bf16 %v2236_v60, %v2236_v60 }
 0x9ea   : > { %v2225_v62 = vpop.xlane.xlu1 %2224 }
 0x9eb   : > { %5284 = vrcp.f32 %v2225_v62  ;;  %4951 = vmatmul.mubr.msk.bf16.vlgmr.msra.gmra.mrb[60].mxu1 %vm786_vm4, %v2240_v61  ;;  %v2555_v25 = vpop.permute.xlu0 %2554 }
 0x9ec   : > { %4962 = vmatprep.mubr.msk.bf16.mxu1 %vm5435_vm0, %v5432_v2 }
 0x9ee   : > { %v2507_v63 = vpop.permute.xlu1 %2506 }
 0x9ef   : > { %v2512_v0 = vsel %vm597_vm3, %v2507_v63, 0 }
 0x9f0   : > { %4961 = vmatpush3.bf16.xpose.msra.mxu1 %v2512_v0 }
 0x9f1   : > { %4972 = vmatprep.subr.bf16.mxu1 %v5432_v2 }
 0x9f2   : > { %v2505_v1 = vpop.permute.xlu1 %2504 }
 0x9f5   : > { %v5285_v4 = vpop.eup %5284 }
 0x9f6   : > { %v2607_v9 = vpop.permute.xlu1 %2606  ;;  %v2235_v10 = vmul.f32 %v5285_v4, %v5277_v43 }
 0x9f7   : > { %v2612_v12 = vsel %vm597_vm3, %v2607_v9, 0  ;;  %4963 = vmatmul.mubr.msk.bf16.vlgmr.msra.gmra.mrb[64].mxu1 %vm597_vm3, %v2505_v1 }
 0x9f8   : > { %4973 = vmatpush3.bf16.xpose.msra.mxu1 %v2612_v12  ;;  %v2239_v13 = vpack.c.bf16 %v2235_v10, %v2235_v10  ;;  %4974 = vmatprep.mubr.msk.bf16.mxu1 %vm5435_vm0, %v5432_v2 }
 0x9f9   : > { %4984 = vmatprep.subr.bf16.mxu1 %v5432_v2 }
 0x9fa   : > { %4945 = vmatmul.mubr.msk.bf16.vlgmr.msra.gmra.mrb[60].mxu0 %vm786_vm4, %v2239_v13  ;;  %v2605_v6 = vpop.permute.xlu1 %2604 }
 0x9fb   : > { %4955 = vmatpush3.bf16.xpose.msra.mxu0 %v2462_v19  ;;  %4956 = vmatprep.mubr.msk.bf16.mxu0 %vm5435_vm0, %v5432_v2 }
 0x9fc   : > { %4966 = vmatprep.subr.bf16.mxu0 %v5432_v2 }
 0x9ff   : > { %4975 = vmatmul.mubr.msk.bf16.vlgmr.msra.gmra.mrb[68].mxu1 %vm597_vm3, %v2605_v6 }
 0xa00   : > { %4986 = vmatprep.mubr.msk.bf16.mxu1 %vm5435_vm0, %v5432_v2 }
 0xa02   : > { %4957 = vmatmul.mubr.msk.bf16.vlgmr.msra.gmra.mrb[64].mxu0 %vm597_vm3, %v2455_v5 }
 0xa03   : > { %4967 = vmatpush3.bf16.xpose.msra.mxu0 %v2562_v24  ;;  %4968 = vmatprep.mubr.msk.bf16.mxu0 %vm5435_vm0, %v5432_v2 }
 0xa04   : > { %4978 = vmatprep.subr.bf16.mxu0 %v5432_v2 }
 0xa0a   : > { %4969 = vmatmul.mubr.msk.bf16.vlgmr.msra.gmra.mrb[68].mxu0 %vm597_vm3, %v2555_v25 }
 0xa0b   : > { %4980 = vmatprep.mubr.msk.bf16.mxu0 %vm5435_vm0, %v5432_v2 }
 0xa89   : > { %v6120_v30 = vpop.f32.mrb[56].mxu1 }
 0xa8a   : > { %v4940_v31 = vpop.f32.mrb[57].mxu1 }
 0xa8b   : > { %v2334_v32 = vpop.f32.mrb[58].mxu1 }
 0xa8c   : > { %v4941_v33 = vpop.f32.mrb[59].mxu1 }
 0xa94   : > { %v6122_v34 = vpop.f32.mrb[56].mxu0 }
 0xa95   : > { %v4934_v35 = vpop.f32.mrb[57].mxu0 }
 0xa96   : > { %v2286_v41 = vpop.f32.mrb[58].mxu0 }
 0xa97   : > { %v4935_v43 = vpop.f32.mrb[59].mxu0 }
 0xabe   : > { %v6124_v44 = vpop.f32.mrb[60].mxu1 }
 0xabf   : > { %v4952_v45 = vpop.f32.mrb[61].mxu1 }
 0xac0   : > { %v2430_v46 = vpop.f32.mrb[62].mxu1 }
 0xac1   : > { %v4953_v47 = vpop.f32.mrb[63].mxu1 }
 0xaca   : > { %v2548_v48 = vpop.f32.mrb[64].mxu1 }
 0xacb   : > { %v2655_v49 = vmul.f32 0.17677669, %v2548_v48  ;;  %v4964_v7 = vpop.f32.mrb[65].mxu1 }
 0xacc   : > { %v2551_v50 = vpop.f32.mrb[66].mxu1 }
 0xacd   : > { %4579 = vst.msk [vmem:[%s5752_s10 + $0x60] sm:$0xff] %vm786_vm4, %v2655_v49  ;;  %v6128_v51 = vpop.f32.mrb[60].mxu0  ;;  %v4965_v15 = vpop.f32.mrb[67].mxu1  ;;  %v2666_v23 = vsel %vm786_vm4, %v2655_v49, -inf }
 0xace   : > { %2667 = vmax.xlane.f32.xlu1 %v2666_v23  ;;  %v4946_v54 = vpop.f32.mrb[61].mxu0 }
 0xacf   : > { %v2382_v55 = vpop.f32.mrb[62].mxu0 }
 0xad0   : > { %v4947_v56 = vpop.f32.mrb[63].mxu0 }
 0xad2   : > { %v2648_v57 = vpop.f32.mrb[68].mxu1 }
 0xad3   : > { %v2657_v58 = vmul.f32 0.17677669, %v2648_v57  ;;  %v4976_v59 = vpop.f32.mrb[69].mxu1 }
 0xad4   : > { %v2651_v60 = vpop.f32.mrb[70].mxu1 }
 0xad5   : > { %4581 = vst.msk [vmem:[%s5752_s10 + $0xe0] sm:$0xff] %vm786_vm4, %v2657_v58  ;;  %v2498_v61 = vpop.f32.mrb[64].mxu0  ;;  %v4977_v62 = vpop.f32.mrb[71].mxu1  ;;  %v2672_v6 = vsel %vm786_vm4, %v2657_v58, -inf }
 0xad6   : > { %v2654_v63 = vmul.f32 0.17677669, %v2498_v61  ;;  %v4958_v0 = vpop.f32.mrb[65].mxu0 }
 0xad7   : > { %v2501_v1 = vpop.f32.mrb[66].mxu0 }
 0xad8   : > { %4578 = vst.msk [vmem:[%s5752_s10 + $0x20] sm:$0xff] %vm786_vm4, %v2654_v63  ;;  %v4959_v3 = vpop.f32.mrb[67].mxu0  ;;  %v2663_v4 = vsel %vm786_vm4, %v2654_v63, -inf }
 0xad9   : > { %2664 = vmax.xlane.f32.xlu0 %v2663_v4 }
 0xadd   : > { %v2598_v9 = vpop.f32.mrb[68].mxu0 }
 0xade   : > { %v2656_v10 = vmul.f32 0.17677669, %v2598_v9  ;;  %v4970_v12 = vpop.f32.mrb[69].mxu0 }
 0xadf   : > { %v2601_v13 = vpop.f32.mrb[70].mxu0  ;;  %2711 = vrot.lane.b32.xlu1 %v5777_v39, %s5439_s8 }
 0xae0   : > { %4580 = vst.msk [vmem:[%s5752_s10 + $0xa0] sm:$0xff] %vm786_vm4, %v2656_v10  ;;  %v4971_v5 = vpop.f32.mrb[71].mxu0  ;;  %v2669_v19 = vsel %vm786_vm4, %v2656_v10, -inf }
 0xae1   : > { %2670 = vmax.xlane.f32.xlu0 %v2669_v19 }
 0xae5   : > { %2673 = vmax.xlane.f32.xlu0 %v2672_v6 }
 0xb5b   : > { %v2668_v22 = vpop.xlane.xlu1 %2667 }
 0xb5c   : > { %v2676_v24 = vsub.f32 %v2655_v49, %v2668_v22 }
 0xb5e   : > { %v2681_v25 = vmul.f32 1.442695, %v2676_v24 }
 0xb5f   : > { %v2712_v31 = vpop.permute.xlu1 %2711 }
 0xb60   : > { %5286 = vpow2.f32 %v2681_v25  ;;  %v2717_v32 = vsel %vm846_vm5, %v2712_v31, 0 }
 0xb61   : > { %4979 = vmatpush3.bf16.msra.mxu0 %v2717_v32 }
 0xb62   : > { %4990 = vmatprep.subr.bf16.mxu0 %v5432_v2 }
 0xb66   : > { %v2665_v33 = vpop.xlane.xlu0 %2664 }
 0xb67   : > { %v2675_v35 = vsub.f32 %v2654_v63, %v2665_v33 }
 0xb69   : > { %v2679_v41 = vmul.f32 1.442695, %v2675_v35 }
 0xb6a   : > { %v5287_v43 = vpop.eup %5286 }
 0xb6b   : > { %5288 = vpow2.f32 %v2679_v41  ;;  %v2690_v45 = vsel %vm786_vm4, %v5287_v43, 0.0 }
 0xb6c   : > { %2691 = vadd.xlane.f32.xlu0 %v2690_v45 }
 0xb6e   : > { %v2671_v48 = vpop.xlane.xlu0 %2670 }
 0xb6f   : > { %v2677_v15 = vsub.f32 %v2656_v10, %v2671_v48 }
 0xb71   : > { %v2683_v54 = vmul.f32 1.442695, %v2677_v15 }
 0xb72   : > { %v2674_v49 = vpop.xlane.xlu0 %2673 }
 0xb73   : > { %v2678_v7 = vsub.f32 %v2657_v58, %v2674_v49 }
 0xb75   : > { %v5289_v46 = vpop.eup %5288  ;;  %v2685_v50 = vmul.f32 1.442695, %v2678_v7 }
 0xb76   : > { %v2687_v47 = vsel %vm786_vm4, %v5289_v46, 0.0 }
 0xb77   : > { %2688 = vadd.xlane.f32.xlu1 %v2687_v47  ;;  %5290 = vpow2.f32 %v2685_v50 }
 0xb78   : > { %5292 = vpow2.f32 %v2683_v54 }
 0xb81   : > { %v5291_v23 = vpop.eup %5290 }
 0xb82   : > { %2759 = vrot.lane.b32.xlu0 %v5779_v40, %s5439_s8  ;;  %v2696_v55 = vsel %vm786_vm4, %v5291_v23, 0.0  ;;  %v5293_v56 = vpop.eup %5292 }
 0xb83   : > { %v2693_v57 = vsel %vm786_vm4, %v5293_v56, 0.0 }
 0xb88   : > { %2807 = vrot.lane.b32.xlu1 %v5809_v53, %s5439_s8 }
 0xb8c   : > { %2855 = vrot.lane.b32.xlu1 %v5807_v52, %s5439_s8  ;;  %s4632_s8 = sshll.u32 %s5420_s27, 12 }
 0xba1   : > { %2697 = vadd.xlane.f32.xlu0 %v2696_v55 }
 0xbb0   : > { %2694 = vadd.xlane.f32.xlu1 %v2693_v57 }
 0xbb7   : > { %2926 = vrot.lane.b32.xlu0 %v5671_v37, %s5440_s12 }
 0xbbb   : > { %2924 = vrot.lane.b32.xlu0 %v5701_v16, %s5440_s12 }
 0xbbf   : > { %3026 = vrot.lane.b32.xlu0 %v5717_v29, %s5440_s12 }
 0xbc1   : > { %2976 = vrot.lane.b32.xlu1 %v5669_v36, %s5440_s12 }
 0xbc3   : > { %3024 = vrot.lane.b32.xlu0 %v5739_v14, %s5440_s12 }
 0xbc5   : > { %2974 = vrot.lane.b32.xlu1 %v5696_v11, %s5440_s12 }
 0xbc9   : > { %3076 = vrot.lane.b32.xlu1 %v5715_v28, %s5440_s12 }
 0xbcd   : > { %3074 = vrot.lane.b32.xlu1 %v5737_v8, %s5440_s12 }
 0xbf9   : > { %v2692_v58 = vpop.xlane.xlu0 %2691 }
 0xbfa   : > { %5294 = vrcp.f32 %v2692_v58 }
 0xbfd   : > { %v2760_v59 = vpop.permute.xlu0 %2759 }
 0xbfe   : > { %v2765_v60 = vsel %vm846_vm5, %v2760_v59, 0 }
 0xbff   : > { %4985 = vmatpush3.bf16.msra.mxu1 %v2765_v60 }
 0xc00   : > { %4996 = vmatprep.subr.bf16.mxu1 %v5432_v2 }
 0xc04   : > { %v5295_v61 = vpop.eup %5294  ;;  %v2689_v62 = vpop.xlane.xlu1 %2688 }
 0xc05   : > { %v2704_v63 = vmul.f32 %v5295_v61, %v5287_v43  ;;  %5296 = vrcp.f32 %v2689_v62 }
 0xc07   : > { %v2708_v0 = vpack.c.bf16 %v2704_v63, %v2704_v63 }
 0xc08   : > { %v2808_v1 = vpop.permute.xlu1 %2807 }
 0xc09   : > { %4987 = vmatmul.mubr.msk.bf16.vlgmr.msra.gmra.mrb[72].mxu1 %vm786_vm4, %v2708_v0  ;;  %v2813_v13 = vsel %vm846_vm5, %v2808_v1, 0 }
 0xc0a   : > { %4998 = vmatprep.mubr.msk.bf16.mxu1 %vm5435_vm0, %v5432_v2 }
 0xc0c   : > { %v2856_v3 = vpop.permute.xlu1 %2855 }
 0xc0d   : > { %v2861_v4 = vsel %vm846_vm5, %v2856_v3, 0 }
 0xc0e   : > { %4997 = vmatpush3.bf16.msra.mxu1 %v2861_v4 }
 0xc0f   : > { %v5297_v9 = vpop.eup %5296  ;;  %5008 = vmatprep.subr.bf16.mxu1 %v5432_v2 }
 0xc10   : > { %v2703_v10 = vmul.f32 %v5297_v9, %v5289_v46 }
 0xc12   : > { %v2707_v12 = vpack.c.bf16 %v2703_v10, %v2703_v10 }
 0xc14   : > { %4981 = vmatmul.mubr.msk.bf16.vlgmr.msra.gmra.mrb[72].mxu0 %vm786_vm4, %v2707_v12 }
 0xc15   : > { %4991 = vmatpush3.bf16.msra.mxu0 %v2813_v13  ;;  %4992 = vmatprep.mubr.msk.bf16.mxu0 %vm5435_vm0, %v5432_v2 }
 0xc16   : > { %5002 = vmatprep.subr.bf16.mxu0 %v5432_v2 }
 0xc2e   : > { %v2698_v5 = vpop.xlane.xlu0 %2697 }
 0xc2f   : > { %5298 = vrcp.f32 %v2698_v5 }
 0xc32   : > { %v2927_v33 = vpop.permute.xlu0 %2926 }
 0xc33   : > { %v2932_v48 = vsel %vm597_vm3, %v2927_v33, 0 }
 0xc36   : > { %v2925_v47 = vpop.permute.xlu0 %2924 }
 0xc39   : > { %v5299_v19 = vpop.eup %5298 }
 0xc3a   : > { %v2706_v6 = vmul.f32 %v5299_v19, %v5291_v23  ;;  %v3027_v7 = vpop.permute.xlu0 %3026 }
 0xc3b   : > { %v3032_v50 = vsel %vm597_vm3, %v3027_v7, 0 }
 0xc3c   : > { %v2710_v22 = vpack.c.bf16 %v2706_v6, %v2706_v6 }
 0xc3d   : > { %v2695_v24 = vpop.xlane.xlu1 %2694 }
 0xc3e   : > { %5300 = vrcp.f32 %v2695_v24  ;;  %4999 = vmatmul.mubr.msk.bf16.vlgmr.msra.gmra.mrb[76].mxu1 %vm786_vm4, %v2710_v22  ;;  %v3025_v15 = vpop.permute.xlu0 %3024 }
 0xc3f   : > { %5010 = vmatprep.mubr.msk.bf16.mxu1 %vm5435_vm0, %v5432_v2 }
 0xc41   : > { %v2977_v25 = vpop.permute.xlu1 %2976 }
 0xc42   : > { %v2982_v31 = vsel %vm597_vm3, %v2977_v25, 0 }
 0xc43   : > { %5009 = vmatpush3.bf16.xpose.msra.mxu1 %v2982_v31 }
 0xc44   : > { %5020 = vmatprep.subr.bf16.mxu1 %v5432_v2 }
 0xc45   : > { %v2975_v32 = vpop.permute.xlu1 %2974 }
 0xc48   : > { %v5301_v35 = vpop.eup %5300 }
 0xc49   : > { %v2705_v41 = vmul.f32 %v5301_v35, %v5293_v56  ;;  %v3077_v43 = vpop.permute.xlu1 %3076 }
 0xc4a   : > { %v3082_v45 = vsel %vm597_vm3, %v3077_v43, 0  ;;  %5011 = vmatmul.mubr.msk.bf16.vlgmr.msra.gmra.mrb[80].mxu1 %vm597_vm3, %v2975_v32 }
 0xc4b   : > { %5021 = vmatpush3.bf16.xpose.msra.mxu1 %v3082_v45  ;;  %v2709_v46 = vpack.c.bf16 %v2705_v41, %v2705_v41  ;;  %5022 = vmatprep.mubr.msk.bf16.mxu1 %vm5435_vm0, %v5432_v2 }
 0xc4c   : > { %5032 = vmatprep.subr.bf16.mxu1 %v5432_v2 }
 0xc4d   : > { %4993 = vmatmul.mubr.msk.bf16.vlgmr.msra.gmra.mrb[76].mxu0 %vm786_vm4, %v2709_v46  ;;  %v3075_v49 = vpop.permute.xlu1 %3074 }
 0xc4e   : > { %5003 = vmatpush3.bf16.xpose.msra.mxu0 %v2932_v48  ;;  %5004 = vmatprep.mubr.msk.bf16.mxu0 %vm5435_vm0, %v5432_v2 }
 0xc4f   : > { %5014 = vmatprep.subr.bf16.mxu0 %v5432_v2 }
 0xc52   : > { %5023 = vmatmul.mubr.msk.bf16.vlgmr.msra.gmra.mrb[84].mxu1 %vm597_vm3, %v3075_v49 }
 0xc53   : > { %5034 = vmatprep.mubr.msk.bf16.mxu1 %vm5435_vm0, %v5432_v2 }
 0xc55   : > { %5005 = vmatmul.mubr.msk.bf16.vlgmr.msra.gmra.mrb[80].mxu0 %vm597_vm3, %v2925_v47 }
 0xc56   : > { %5015 = vmatpush3.bf16.xpose.msra.mxu0 %v3032_v50  ;;  %5016 = vmatprep.mubr.msk.bf16.mxu0 %vm5435_vm0, %v5432_v2 }
 0xc57   : > { %5026 = vmatprep.subr.bf16.mxu0 %v5432_v2 }
 0xc5d   : > { %5017 = vmatmul.mubr.msk.bf16.vlgmr.msra.gmra.mrb[84].mxu0 %vm597_vm3, %v3025_v15 }
 0xc5e   : > { %5028 = vmatprep.mubr.msk.bf16.mxu0 %vm5435_vm0, %v5432_v2 }
 0xcdc   : > { %v6208_v23 = vpop.f32.mrb[72].mxu1 }
 0xcdd   : > { %v4988_v54 = vpop.f32.mrb[73].mxu1 }
 0xcde   : > { %v2804_v55 = vpop.f32.mrb[74].mxu1 }
 0xcdf   : > { %v4989_v56 = vpop.f32.mrb[75].mxu1 }
 0xce7   : > { %v6210_v57 = vpop.f32.mrb[72].mxu0 }
 0xce8   : > { %v4982_v58 = vpop.f32.mrb[73].mxu0 }
 0xce9   : > { %v2756_v59 = vpop.f32.mrb[74].mxu0 }
 0xcea   : > { %v4983_v60 = vpop.f32.mrb[75].mxu0 }
 0xd11   : > { %v6212_v61 = vpop.f32.mrb[76].mxu1 }
 0xd12   : > { %v5000_v62 = vpop.f32.mrb[77].mxu1 }
 0xd13   : > { %v2900_v63 = vpop.f32.mrb[78].mxu1 }
 0xd14   : > { %v5001_v0 = vpop.f32.mrb[79].mxu1 }
 0xd1d   : > { %v3018_v1 = vpop.f32.mrb[80].mxu1 }
 0xd1e   : > { %v3125_v3 = vmul.f32 0.17677669, %v3018_v1  ;;  %v5012_v4 = vpop.f32.mrb[81].mxu1 }
 0xd1f   : > { %v3021_v9 = vpop.f32.mrb[82].mxu1 }
 0xd20   : > { %4591 = vst.msk [vmem:[%s5752_s10 + $0x68] sm:$0xff] %vm786_vm4, %v3125_v3  ;;  %v6216_v10 = vpop.f32.mrb[76].mxu0  ;;  %v5013_v12 = vpop.f32.mrb[83].mxu1  ;;  %v3136_v13 = vsel %vm786_vm4, %v3125_v3, -inf }
 0xd21   : > { %3137 = vmax.xlane.f32.xlu1 %v3136_v13  ;;  %v4994_v5 = vpop.f32.mrb[77].mxu0 }
 0xd22   : > { %v2852_v19 = vpop.f32.mrb[78].mxu0 }
 0xd23   : > { %v4995_v6 = vpop.f32.mrb[79].mxu0 }
 0xd25   : > { %v3118_v22 = vpop.f32.mrb[84].mxu1 }
 0xd26   : > { %v3127_v24 = vmul.f32 0.17677669, %v3118_v22  ;;  %v5024_v25 = vpop.f32.mrb[85].mxu1 }
 0xd27   : > { %v3121_v31 = vpop.f32.mrb[86].mxu1 }
 0xd28   : > { %4593 = vst.msk [vmem:[%s5752_s10 + $0xe8] sm:$0xff] %vm786_vm4, %v3127_v24  ;;  %v2968_v32 = vpop.f32.mrb[80].mxu0  ;;  %v5025_v33 = vpop.f32.mrb[87].mxu1  ;;  %v3142_v54 = vsel %vm786_vm4, %v3127_v24, -inf }
 0xd29   : > { %v3124_v35 = vmul.f32 0.17677669, %v2968_v32  ;;  %v5006_v41 = vpop.f32.mrb[81].mxu0 }
 0xd2a   : > { %v2971_v43 = vpop.f32.mrb[82].mxu0 }
 0xd2b   : > { %4590 = vst.msk [vmem:[%s5752_s10 + $0x28] sm:$0xff] %vm786_vm4, %v3124_v35  ;;  %v5007_v45 = vpop.f32.mrb[83].mxu0  ;;  %v3133_v46 = vsel %vm786_vm4, %v3124_v35, -inf }
 0xd2c   : > { %3134 = vmax.xlane.f32.xlu0 %v3133_v46 }
 0xd30   : > { %v3068_v47 = vpop.f32.mrb[84].mxu0 }
 0xd31   : > { %v3126_v48 = vmul.f32 0.17677669, %v3068_v47  ;;  %v5018_v49 = vpop.f32.mrb[85].mxu0 }
 0xd32   : > { %v3071_v7 = vpop.f32.mrb[86].mxu0  ;;  %3181 = vrot.lane.b32.xlu1 %v5777_v39, %s5440_s12 }
 0xd33   : > { %4592 = vst.msk [vmem:[%s5752_s10 + $0xa8] sm:$0xff] %vm786_vm4, %v3126_v48  ;;  %v5019_v50 = vpop.f32.mrb[87].mxu0  ;;  %v3139_v15 = vsel %vm786_vm4, %v3126_v48, -inf }
 0xd34   : > { %3140 = vmax.xlane.f32.xlu0 %v3139_v15 }
 0xd38   : > { %3143 = vmax.xlane.f32.xlu0 %v3142_v54 }
 0xdae   : > { %v3138_v55 = vpop.xlane.xlu1 %3137 }
 0xdaf   : > { %v3146_v56 = vsub.f32 %v3125_v3, %v3138_v55 }
 0xdb1   : > { %v3151_v58 = vmul.f32 1.442695, %v3146_v56 }
 0xdb2   : > { %v3182_v59 = vpop.permute.xlu1 %3181 }
 0xdb3   : > { %5302 = vpow2.f32 %v3151_v58  ;;  %v3187_v60 = vsel %vm846_vm5, %v3182_v59, 0 }
 0xdb4   : > { %5027 = vmatpush3.bf16.msra.mxu0 %v3187_v60 }
 0xdb5   : > { %5038 = vmatprep.subr.bf16.mxu0 %v5432_v2 }
 0xdb9   : > { %v3135_v62 = vpop.xlane.xlu0 %3134 }
 0xdba   : > { %v3145_v63 = vsub.f32 %v3124_v35, %v3135_v62 }
 0xdbc   : > { %v3149_v0 = vmul.f32 1.442695, %v3145_v63 }
 0xdbd   : > { %v5303_v1 = vpop.eup %5302 }
 0xdbe   : > { %5304 = vpow2.f32 %v3149_v0  ;;  %v3160_v4 = vsel %vm786_vm4, %v5303_v1, 0.0 }
 0xdbf   : > { %3161 = vadd.xlane.f32.xlu0 %v3160_v4 }
 0xdc1   : > { %v3141_v3 = vpop.xlane.xlu0 %3140 }
 0xdc2   : > { %v3147_v6 = vsub.f32 %v3126_v48, %v3141_v3 }
 0xdc4   : > { %v3153_v25 = vmul.f32 1.442695, %v3147_v6 }
 0xdc5   : > { %v3144_v13 = vpop.xlane.xlu0 %3143 }
 0xdc6   : > { %v3148_v5 = vsub.f32 %v3127_v24, %v3144_v13 }
 0xdc8   : > { %v5305_v9 = vpop.eup %5304  ;;  %v3155_v19 = vmul.f32 1.442695, %v3148_v5 }
 0xdc9   : > { %v3157_v12 = vsel %vm786_vm4, %v5305_v9, 0.0 }
 0xdca   : > { %3158 = vadd.xlane.f32.xlu1 %v3157_v12  ;;  %5306 = vpow2.f32 %v3155_v19 }
 0xdcb   : > { %5308 = vpow2.f32 %v3153_v25 }
 0xdd4   : > { %v5307_v22 = vpop.eup %5306 }
 0xdd5   : > { %3229 = vrot.lane.b32.xlu0 %v5779_v40, %s5440_s12  ;;  %v3166_v31 = vsel %vm786_vm4, %v5307_v22, 0.0  ;;  %v5309_v32 = vpop.eup %5308 }
 0xdd6   : > { %v3163_v33 = vsel %vm786_vm4, %v5309_v32, 0.0 }
 0xddb   : > { %3277 = vrot.lane.b32.xlu1 %v5809_v53, %s5440_s12 }
 0xddf   : > { %3325 = vrot.lane.b32.xlu1 %v5807_v52, %s5440_s12  ;;  %s4364_s12 = sshll.u32 %s5752_s10, 4  ;;  %s6506_s12 = int_to_ptr.vmem [resolvable:$true] %s4364_s12 }
 0xde0   : > { %s5350_s27 = scalar_lea.vmem %s6506_s12, 4096 }
 0xde1   : > { %p5351_p12 = scmp.ne.s32.totalorder %s6506_s12, %s5350_s27 }
 0xde3   : > { %p5352_p13 = pnand %p5351_p12, %p5532_p4 }
 0xde5   : > { %p5353_p0 = pneg %p5352_p13 }
 0xdf4   : > { %3167 = vadd.xlane.f32.xlu0 %v3166_v31 }
 0xe03   : > { %3164 = vadd.xlane.f32.xlu1 %v3163_v33 }
 0xe0a   : > { %3396 = vrot.lane.b32.xlu0 %v5671_v37, %s5441_s17 }
 0xe0e   : > { %3394 = vrot.lane.b32.xlu0 %v5701_v16, %s5441_s17 }
 0xe12   : > { %3496 = vrot.lane.b32.xlu0 %v5717_v29, %s5441_s17 }
 0xe14   : > { %3446 = vrot.lane.b32.xlu1 %v5669_v36, %s5441_s17 }
 0xe16   : > { %3494 = vrot.lane.b32.xlu0 %v5739_v14, %s5441_s17 }
 0xe18   : > { %3444 = vrot.lane.b32.xlu1 %v5696_v11, %s5441_s17 }
 0xe1c   : > { %3546 = vrot.lane.b32.xlu1 %v5715_v28, %s5441_s17 }
 0xe20   : > { %3544 = vrot.lane.b32.xlu1 %v5737_v8, %s5441_s17 }
 0xe4c   : > { %v3162_v24 = vpop.xlane.xlu0 %3161 }
 0xe4d   : > { %5310 = vrcp.f32 %v3162_v24 }
 0xe50   : > { %v3230_v35 = vpop.permute.xlu0 %3229 }
 0xe51   : > { %v3235_v41 = vsel %vm846_vm5, %v3230_v35, 0 }
 0xe52   : > { %5033 = vmatpush3.bf16.msra.mxu1 %v3235_v41 }
 0xe53   : > { %5044 = vmatprep.subr.bf16.mxu1 %v5432_v2 }
 0xe57   : > { %v5311_v43 = vpop.eup %5310  ;;  %v3159_v45 = vpop.xlane.xlu1 %3158 }
 0xe58   : > { %v3174_v46 = vmul.f32 %v5311_v43, %v5303_v1  ;;  %5312 = vrcp.f32 %v3159_v45 }
 0xe5a   : > { %v3178_v47 = vpack.c.bf16 %v3174_v46, %v3174_v46 }
 0xe5b   : > { %v3278_v48 = vpop.permute.xlu1 %3277 }
 0xe5c   : > { %5035 = vmatmul.mubr.msk.bf16.vlgmr.msra.gmra.mrb[88].mxu1 %vm786_vm4, %v3178_v47  ;;  %v3283_v55 = vsel %vm846_vm5, %v3278_v48, 0 }
 0xe5d   : > { %5046 = vmatprep.mubr.msk.bf16.mxu1 %vm5435_vm0, %v5432_v2 }
 0xe5f   : > { %v3326_v49 = vpop.permute.xlu1 %3325 }
 0xe60   : > { %v3331_v7 = vsel %vm846_vm5, %v3326_v49, 0 }
 0xe61   : > { %5045 = vmatpush3.bf16.msra.mxu1 %v3331_v7 }
 0xe62   : > { %v5313_v50 = vpop.eup %5312  ;;  %5056 = vmatprep.subr.bf16.mxu1 %v5432_v2 }
 0xe63   : > { %v3173_v15 = vmul.f32 %v5313_v50, %v5305_v9 }
 0xe65   : > { %v3177_v54 = vpack.c.bf16 %v3173_v15, %v3173_v15 }
 0xe67   : > { %5029 = vmatmul.mubr.msk.bf16.vlgmr.msra.gmra.mrb[88].mxu0 %vm786_vm4, %v3177_v54 }
 0xe68   : > { %5039 = vmatpush3.bf16.msra.mxu0 %v3283_v55  ;;  %5040 = vmatprep.mubr.msk.bf16.mxu0 %vm5435_vm0, %v5432_v2 }
 0xe69   : > { %5050 = vmatprep.subr.bf16.mxu0 %v5432_v2 }
 0xe81   : > { %v3168_v56 = vpop.xlane.xlu0 %3167 }
 0xe82   : > { %5314 = vrcp.f32 %v3168_v56 }
 0xe85   : > { %v3397_v4 = vpop.permute.xlu0 %3396 }
 0xe86   : > { %v3402_v6 = vsel %vm597_vm3, %v3397_v4, 0 }
 0xe89   : > { %v3395_v19 = vpop.permute.xlu0 %3394 }
 0xe8c   : > { %v5315_v58 = vpop.eup %5314 }
 0xe8d   : > { %v3176_v59 = vmul.f32 %v5315_v58, %v5307_v22  ;;  %v3497_v25 = vpop.permute.xlu0 %3496 }
 0xe8e   : > { %v3502_v31 = vsel %vm597_vm3, %v3497_v25, 0 }
 0xe8f   : > { %v3180_v60 = vpack.c.bf16 %v3176_v59, %v3176_v59 }
 0xe90   : > { %v3165_v62 = vpop.xlane.xlu1 %3164 }
 0xe91   : > { %5316 = vrcp.f32 %v3165_v62  ;;  %5047 = vmatmul.mubr.msk.bf16.vlgmr.msra.gmra.mrb[92].mxu1 %vm786_vm4, %v3180_v60 }
 0xe92   : > { %5058 = vmatprep.mubr.msk.bf16.mxu1 %vm5435_vm0, %v5432_v2 }
 0xe94   : > { %v3447_v63 = vpop.permute.xlu1 %3446 }
 0xe95   : > { %v3452_v0 = vsel %vm597_vm3, %v3447_v63, 0 }
 0xe96   : > { %5057 = vmatpush3.bf16.xpose.msra.mxu1 %v3452_v0 }
 0xe97   : > { %5068 = vmatprep.subr.bf16.mxu1 %v5432_v2 }
 0xe98   : > { %v3445_v1 = vpop.permute.xlu1 %3444 }
 0xe9b   : > { %v5317_v9 = vpop.eup %5316 }
 0xe9c   : > { %v3175_v12 = vmul.f32 %v5317_v9, %v5309_v32  ;;  %v3547_v3 = vpop.permute.xlu1 %3546  ;;  %v3495_v32 = vpop.permute.xlu0 %3494 }
 0xe9d   : > { %v3552_v13 = vsel %vm597_vm3, %v3547_v3, 0  ;;  %5059 = vmatmul.mubr.msk.bf16.vlgmr.msra.gmra.mrb[96].mxu1 %vm597_vm3, %v3445_v1 }
 0xe9e   : > { %5069 = vmatpush3.bf16.xpose.msra.mxu1 %v3552_v13  ;;  %v3179_v5 = vpack.c.bf16 %v3175_v12, %v3175_v12  ;;  %5070 = vmatprep.mubr.msk.bf16.mxu1 %vm5435_vm0, %v5432_v2 }
 0xe9f   : > { %5080 = vmatprep.subr.bf16.mxu1 %v5432_v2 }
 0xea0   : > { %5041 = vmatmul.mubr.msk.bf16.vlgmr.msra.gmra.mrb[92].mxu0 %vm786_vm4, %v3179_v5  ;;  %v3545_v22 = vpop.permute.xlu1 %3544 }
 0xea1   : > { %5051 = vmatpush3.bf16.xpose.msra.mxu0 %v3402_v6  ;;  %5052 = vmatprep.mubr.msk.bf16.mxu0 %vm5435_vm0, %v5432_v2 }
 0xea2   : > { %5062 = vmatprep.subr.bf16.mxu0 %v5432_v2 }
 0xea5   : > { %5071 = vmatmul.mubr.msk.bf16.vlgmr.msra.gmra.mrb[100].mxu1 %vm597_vm3, %v3545_v22 }
 0xea6   : > { %5082 = vmatprep.mubr.msk.bf16.mxu1 %vm5435_vm0, %v5432_v2 }
 0xea8   : > { %5053 = vmatmul.mubr.msk.bf16.vlgmr.msra.gmra.mrb[96].mxu0 %vm597_vm3, %v3395_v19 }
 0xea9   : > { %5063 = vmatpush3.bf16.xpose.msra.mxu0 %v3502_v31  ;;  %5064 = vmatprep.mubr.msk.bf16.mxu0 %vm5435_vm0, %v5432_v2 }
 0xeaa   : > { %5074 = vmatprep.subr.bf16.mxu0 %v5432_v2 }
 0xeb0   : > { %5065 = vmatmul.mubr.msk.bf16.vlgmr.msra.gmra.mrb[100].mxu0 %vm597_vm3, %v3495_v32 }
 0xeb1   : > { %5076 = vmatprep.mubr.msk.bf16.mxu0 %vm5435_vm0, %v5432_v2 }
 0xf2f   : > { %v6296_v33 = vpop.f32.mrb[88].mxu1 }
 0xf30   : > { %v5036_v24 = vpop.f32.mrb[89].mxu1 }
 0xf31   : > { %v3274_v35 = vpop.f32.mrb[90].mxu1 }
 0xf32   : > { %v5037_v41 = vpop.f32.mrb[91].mxu1 }
 0xf3a   : > { %v6298_v43 = vpop.f32.mrb[88].mxu0 }
 0xf3b   : > { %v5030_v45 = vpop.f32.mrb[89].mxu0 }
 0xf3c   : > { %v3226_v46 = vpop.f32.mrb[90].mxu0 }
 0xf3d   : > { %v5031_v47 = vpop.f32.mrb[91].mxu0 }
 0xf64   : > { %v6300_v48 = vpop.f32.mrb[92].mxu1 }
 0xf65   : > { %v5048_v49 = vpop.f32.mrb[93].mxu1 }
 0xf66   : > { %v3370_v7 = vpop.f32.mrb[94].mxu1 }
 0xf67   : > { %v5049_v50 = vpop.f32.mrb[95].mxu1 }
 0xf70   : > { %v3488_v15 = vpop.f32.mrb[96].mxu1 }
 0xf71   : > { %v3595_v54 = vmul.f32 0.17677669, %v3488_v15  ;;  %v5060_v55 = vpop.f32.mrb[97].mxu1 }
 0xf72   : > { %v3491_v56 = vpop.f32.mrb[98].mxu1 }
 0xf73   : > { %4603 = vst.msk [vmem:[%s5752_s10 + $0x70] sm:$0xff] %vm786_vm4, %v3595_v54  ;;  %v6304_v58 = vpop.f32.mrb[92].mxu0  ;;  %v5061_v59 = vpop.f32.mrb[99].mxu1  ;;  %v3606_v60 = vsel %vm786_vm4, %v3595_v54, -inf }
 0xf74   : > { %3607 = vmax.xlane.f32.xlu1 %v3606_v60  ;;  %v5042_v62 = vpop.f32.mrb[93].mxu0 }
 0xf75   : > { %v3322_v63 = vpop.f32.mrb[94].mxu0 }
 0xf76   : > { %v5043_v0 = vpop.f32.mrb[95].mxu0 }
 0xf78   : > { %v3588_v1 = vpop.f32.mrb[100].mxu1 }
 0xf79   : > { %v3597_v4 = vmul.f32 0.17677669, %v3588_v1  ;;  %v5072_v9 = vpop.f32.mrb[101].mxu1 }
 0xf7a   : > { %v3591_v12 = vpop.f32.mrb[102].mxu1 }
 0xf7b   : > { %4605 = vst.msk [vmem:[%s5752_s10 + $0xf0] sm:$0xff] %vm786_vm4, %v3597_v4  ;;  %v3438_v3 = vpop.f32.mrb[96].mxu0  ;;  %v5073_v13 = vpop.f32.mrb[103].mxu1  ;;  %v3612_v46 = vsel %vm786_vm4, %v3597_v4, -inf }
 0xf7c   : > { %v3594_v5 = vmul.f32 0.17677669, %v3438_v3  ;;  %v5054_v19 = vpop.f32.mrb[97].mxu0 }
 0xf7d   : > { %v3441_v6 = vpop.f32.mrb[98].mxu0 }
 0xf7e   : > { %4602 = vst.msk [vmem:[%s5752_s10 + $0x30] sm:$0xff] %vm786_vm4, %v3594_v5  ;;  %v5055_v22 = vpop.f32.mrb[99].mxu0  ;;  %v3603_v25 = vsel %vm786_vm4, %v3594_v5, -inf }
 0xf7f   : > { %3604 = vmax.xlane.f32.xlu0 %v3603_v25 }
 0xf83   : > { %v3538_v31 = vpop.f32.mrb[100].mxu0 }
 0xf84   : > { %v3596_v32 = vmul.f32 0.17677669, %v3538_v31  ;;  %v5066_v24 = vpop.f32.mrb[101].mxu0 }
 0xf85   : > { %v3541_v35 = vpop.f32.mrb[102].mxu0  ;;  %3651 = vrot.lane.b32.xlu1 %v5777_v39, %s5441_s17 }
 0xf86   : > { %4604 = vst.msk [vmem:[%s5752_s10 + $0xb0] sm:$0xff] %vm786_vm4, %v3596_v32  ;;  %v5067_v41 = vpop.f32.mrb[103].mxu0  ;;  %v3609_v45 = vsel %vm786_vm4, %v3596_v32, -inf }
 0xf87   : > { %3610 = vmax.xlane.f32.xlu0 %v3609_v45 }
 0xf8b   : > { %3613 = vmax.xlane.f32.xlu0 %v3612_v46 }
0x1001   : > { %v3608_v47 = vpop.xlane.xlu1 %3607 }
0x1002   : > { %v3616_v49 = vsub.f32 %v3595_v54, %v3608_v47 }
0x1004   : > { %v3621_v7 = vmul.f32 1.442695, %v3616_v49 }
0x1005   : > { %v3652_v50 = vpop.permute.xlu1 %3651 }
0x1006   : > { %5318 = vpow2.f32 %v3621_v7  ;;  %v3657_v15 = vsel %vm846_vm5, %v3652_v50, 0 }
0x1007   : > { %5075 = vmatpush3.bf16.msra.mxu0 %v3657_v15 }
0x1008   : > { %5086 = vmatprep.subr.bf16.mxu0 %v5432_v2 }
0x100c   : > { %v3605_v55 = vpop.xlane.xlu0 %3604 }
0x100d   : > { %v3615_v56 = vsub.f32 %v3594_v5, %v3605_v55 }
0x100f   : > { %v3619_v59 = vmul.f32 1.442695, %v3615_v56 }
0x1010   : > { %v5319_v60 = vpop.eup %5318 }
0x1011   : > { %5320 = vpow2.f32 %v3619_v59  ;;  %v3630_v62 = vsel %vm786_vm4, %v5319_v60, 0.0 }
0x1012   : > { %3631 = vadd.xlane.f32.xlu0 %v3630_v62 }
0x1014   : > { %v3611_v54 = vpop.xlane.xlu0 %3610 }
0x1015   : > { %v3617_v3 = vsub.f32 %v3596_v32, %v3611_v54 }
0x1017   : > { %v3623_v5 = vmul.f32 1.442695, %v3617_v3 }
0x1018   : > { %v3614_v1 = vpop.xlane.xlu0 %3613 }
0x1019   : > { %v3618_v9 = vsub.f32 %v3597_v4, %v3614_v1 }
0x101b   : > { %v5321_v63 = vpop.eup %5320  ;;  %v3625_v12 = vmul.f32 1.442695, %v3618_v9 }
0x101c   : > { %v3627_v0 = vsel %vm786_vm4, %v5321_v63, 0.0 }
0x101d   : > { %3628 = vadd.xlane.f32.xlu1 %v3627_v0  ;;  %5322 = vpow2.f32 %v3625_v12 }
0x101e   : > { %5324 = vpow2.f32 %v3623_v5 }
0x1027   : > { %v5323_v13 = vpop.eup %5322 }
0x1028   : > { %3699 = vrot.lane.b32.xlu0 %v5779_v40, %s5441_s17  ;;  %v3636_v19 = vsel %vm786_vm4, %v5323_v13, 0.0  ;;  %v5325_v6 = vpop.eup %5324 }
0x1029   : > { %v3633_v22 = vsel %vm786_vm4, %v5325_v6, 0.0 }
0x102e   : > { %3747 = vrot.lane.b32.xlu1 %v5809_v53, %s5441_s17 }
0x1032   : > { %3795 = vrot.lane.b32.xlu1 %v5807_v52, %s5441_s17  ;;  %s5449_s17 = smov 28  }
0x1047   : > { %3637 = vadd.xlane.f32.xlu0 %v3636_v19 }
0x1056   : > { %3634 = vadd.xlane.f32.xlu1 %v3633_v22 }
0x105d   : > { %3866 = vrot.lane.b32.xlu0 %v5671_v37, %s5442_s18 }
0x1061   : > { %3864 = vrot.lane.b32.xlu0 %v5701_v16, %s5442_s18 }
0x1065   : > { %3966 = vrot.lane.b32.xlu0 %v5717_v29, %s5442_s18 }
0x1067   : > { %3916 = vrot.lane.b32.xlu1 %v5669_v36, %s5442_s18 }
0x1069   : > { %3964 = vrot.lane.b32.xlu0 %v5739_v14, %s5442_s18 }
0x106b   : > { %3914 = vrot.lane.b32.xlu1 %v5696_v11, %s5442_s18 }
0x106f   : > { %4016 = vrot.lane.b32.xlu1 %v5715_v28, %s5442_s18 }
0x1073   : > { %4014 = vrot.lane.b32.xlu1 %v5737_v8, %s5442_s18 }
0x109f   : > { %v3632_v37 = vpop.xlane.xlu0 %3631 }
0x10a0   : > { %5326 = vrcp.f32 %v3632_v37 }
0x10a3   : > { %v3700_v16 = vpop.permute.xlu0 %3699 }
0x10a4   : > { %v3705_v29 = vsel %vm846_vm5, %v3700_v16, 0 }
0x10a5   : > { %5081 = vmatpush3.bf16.msra.mxu1 %v3705_v29 }
0x10a6   : > { %5092 = vmatprep.subr.bf16.mxu1 %v5432_v2 }
0x10aa   : > { %v5327_v36 = vpop.eup %5326  ;;  %v3629_v4 = vpop.xlane.xlu1 %3628 }
0x10ab   : > { %v3644_v14 = vmul.f32 %v5327_v36, %v5319_v60  ;;  %5328 = vrcp.f32 %v3629_v4 }
0x10ad   : > { %v3648_v25 = vpack.c.bf16 %v3644_v14, %v3644_v14 }
0x10ae   : > { %v3748_v11 = vpop.permute.xlu1 %3747 }
0x10af   : > { %5083 = vmatmul.mubr.msk.bf16.vlgmr.msra.gmra.mrb[104].mxu1 %vm786_vm4, %v3648_v25  ;;  %v3753_v35 = vsel %vm846_vm5, %v3748_v11, 0 }
0x10b0   : > { %5094 = vmatprep.mubr.msk.bf16.mxu1 %vm5435_vm0, %v5432_v2 }
0x10b2   : > { %v3796_v28 = vpop.permute.xlu1 %3795 }
0x10b3   : > { %v3801_v8 = vsel %vm846_vm5, %v3796_v28, 0 }
0x10b4   : > { %5093 = vmatpush3.bf16.msra.mxu1 %v3801_v8 }
0x10b5   : > { %v5329_v31 = vpop.eup %5328  ;;  %5104 = vmatprep.subr.bf16.mxu1 %v5432_v2 }
0x10b6   : > { %v3643_v32 = vmul.f32 %v5329_v31, %v5321_v63 }
0x10b8   : > { %v3647_v24 = vpack.c.bf16 %v3643_v32, %v3643_v32 }
0x10ba   : > { %5077 = vmatmul.mubr.msk.bf16.vlgmr.msra.gmra.mrb[104].mxu0 %vm786_vm4, %v3647_v24 }
0x10bb   : > { %5087 = vmatpush3.bf16.msra.mxu0 %v3753_v35  ;;  %5088 = vmatprep.mubr.msk.bf16.mxu0 %vm5435_vm0, %v5432_v2 }
0x10bc   : > { %5098 = vmatprep.subr.bf16.mxu0 %v5432_v2 }
0x10d4   : > { %v3638_v41 = vpop.xlane.xlu0 %3637 }
0x10d5   : > { %5330 = vrcp.f32 %v3638_v41 }
0x10d8   : > { %v3867_v55 = vpop.permute.xlu0 %3866 }
0x10d9   : > { %v3872_v54 = vsel %vm597_vm3, %v3867_v55, 0 }
0x10dc   : > { %v3865_v0 = vpop.permute.xlu0 %3864 }
0x10df   : > { %v5331_v45 = vpop.eup %5330 }
0x10e0   : > { %v3646_v46 = vmul.f32 %v5331_v45, %v5323_v13  ;;  %v3967_v9 = vpop.permute.xlu0 %3966 }
0x10e1   : > { %v3972_v12 = vsel %vm597_vm3, %v3967_v9, 0 }
0x10e2   : > { %v3650_v47 = vpack.c.bf16 %v3646_v46, %v3646_v46 }
0x10e3   : > { %v3635_v49 = vpop.xlane.xlu1 %3634 }
0x10e4   : > { %5332 = vrcp.f32 %v3635_v49  ;;  %5095 = vmatmul.mubr.msk.bf16.vlgmr.msra.gmra.mrb[108].mxu1 %vm786_vm4, %v3650_v47  ;;  %v3965_v3 = vpop.permute.xlu0 %3964 }
0x10e5   : > { %5106 = vmatprep.mubr.msk.bf16.mxu1 %vm5435_vm0, %v5432_v2 }
0x10e7   : > { %v3917_v7 = vpop.permute.xlu1 %3916 }
0x10e8   : > { %v3922_v50 = vsel %vm597_vm3, %v3917_v7, 0 }
0x10e9   : > { %5105 = vmatpush3.bf16.xpose.msra.mxu1 %v3922_v50 }
0x10ea   : > { %5116 = vmatprep.subr.bf16.mxu1 %v5432_v2 }
0x10eb   : > { %v3915_v15 = vpop.permute.xlu1 %3914 }
0x10ee   : > { %v5333_v56 = vpop.eup %5332 }
0x10ef   : > { %v3645_v59 = vmul.f32 %v5333_v56, %v5325_v6  ;;  %v4017_v60 = vpop.permute.xlu1 %4016 }
0x10f0   : > { %v4022_v62 = vsel %vm597_vm3, %v4017_v60, 0  ;;  %5107 = vmatmul.mubr.msk.bf16.vlgmr.msra.gmra.mrb[112].mxu1 %vm597_vm3, %v3915_v15 }
0x10f1   : > { %5117 = vmatpush3.bf16.xpose.msra.mxu1 %v4022_v62  ;;  %v3649_v63 = vpack.c.bf16 %v3645_v59, %v3645_v59  ;;  %5118 = vmatprep.mubr.msk.bf16.mxu1 %vm5435_vm0, %v5432_v2 }
0x10f2   : > { %5128 = vmatprep.subr.bf16.mxu1 %v5432_v2 }
0x10f3   : > { %5089 = vmatmul.mubr.msk.bf16.vlgmr.msra.gmra.mrb[108].mxu0 %vm786_vm4, %v3649_v63  ;;  %v4015_v1 = vpop.permute.xlu1 %4014 }
0x10f4   : > { %5099 = vmatpush3.bf16.xpose.msra.mxu0 %v3872_v54  ;;  %5100 = vmatprep.mubr.msk.bf16.mxu0 %vm5435_vm0, %v5432_v2 }
0x10f5   : > { %5110 = vmatprep.subr.bf16.mxu0 %v5432_v2 }
0x10f8   : > { %5119 = vmatmul.mubr.msk.bf16.vlgmr.msra.gmra.mrb[116].mxu1 %vm597_vm3, %v4015_v1 }
0x10f9   : > { %5130 = vmatprep.mubr.msk.bf16.mxu1 %vm5435_vm0, %v5432_v2 }
0x10fb   : > { %5101 = vmatmul.mubr.msk.bf16.vlgmr.msra.gmra.mrb[112].mxu0 %vm597_vm3, %v3865_v0 }
0x10fc   : > { %5111 = vmatpush3.bf16.xpose.msra.mxu0 %v3972_v12  ;;  %5112 = vmatprep.mubr.msk.bf16.mxu0 %vm5435_vm0, %v5432_v2 }
0x10fd   : > { %5122 = vmatprep.subr.bf16.mxu0 %v5432_v2 }
0x1103   : > { %5113 = vmatmul.mubr.msk.bf16.vlgmr.msra.gmra.mrb[116].mxu0 %vm597_vm3, %v3965_v3 }
0x1104   : > { %5124 = vmatprep.mubr.msk.bf16.mxu0 %vm5435_vm0, %v5432_v2 }
0x1182   : > { %v6384_v13 = vpop.f32.mrb[104].mxu1 }
0x1183   : > { %v5084_v5 = vpop.f32.mrb[105].mxu1 }
0x1184   : > { %v3744_v19 = vpop.f32.mrb[106].mxu1 }
0x1185   : > { %v5085_v6 = vpop.f32.mrb[107].mxu1 }
0x118d   : > { %v6386_v22 = vpop.f32.mrb[104].mxu0 }
0x118e   : > { %v5078_v37 = vpop.f32.mrb[105].mxu0 }
0x118f   : > { %v3696_v16 = vpop.f32.mrb[106].mxu0 }
0x1190   : > { %v5079_v29 = vpop.f32.mrb[107].mxu0 }
0x11b7   : > { %v6388_v36 = vpop.f32.mrb[108].mxu1 }
0x11b8   : > { %v5096_v4 = vpop.f32.mrb[109].mxu1 }
0x11b9   : > { %v3840_v14 = vpop.f32.mrb[110].mxu1 }
0x11ba   : > { %v5097_v25 = vpop.f32.mrb[111].mxu1 }
0x11c3   : > { %v3958_v11 = vpop.f32.mrb[112].mxu1 }
0x11c4   : > { %v4065_v28 = vmul.f32 0.17677669, %v3958_v11  ;;  %v5108_v8 = vpop.f32.mrb[113].mxu1 }
0x11c5   : > { %v3961_v31 = vpop.f32.mrb[114].mxu1 }
0x11c6   : > { %4615 = vst.msk [vmem:[%s5752_s10 + $0x78] sm:$0xff] %vm786_vm4, %v4065_v28  ;;  %v6392_v32 = vpop.f32.mrb[108].mxu0  ;;  %v5109_v24 = vpop.f32.mrb[115].mxu1  ;;  %v4076_v35 = vsel %vm786_vm4, %v4065_v28, -inf }
0x11c7   : > { %4077 = vmax.xlane.f32.xlu1 %v4076_v35  ;;  %v5090_v41 = vpop.f32.mrb[109].mxu0 }
0x11c8   : > { %v3792_v45 = vpop.f32.mrb[110].mxu0 }
0x11c9   : > { %v5091_v46 = vpop.f32.mrb[111].mxu0 }
0x11cb   : > { %v4058_v47 = vpop.f32.mrb[116].mxu1 }
0x11cc   : > { %v4067_v49 = vmul.f32 0.17677669, %v4058_v47  ;;  %v5120_v7 = vpop.f32.mrb[117].mxu1 }
0x11cd   : > { %v4061_v50 = vpop.f32.mrb[118].mxu1 }
0x11ce   : > { %4617 = vst.msk [vmem:[%s5752_s10 + $0xf8] sm:$0xff] %vm786_vm4, %v4067_v49  ;;  %v3908_v15 = vpop.f32.mrb[112].mxu0  ;;  %v5121_v55 = vpop.f32.mrb[119].mxu1  ;;  %v4082_v5 = vsel %vm786_vm4, %v4067_v49, -inf }
0x11cf   : > { %v4064_v56 = vmul.f32 0.17677669, %v3908_v15  ;;  %v5102_v59 = vpop.f32.mrb[113].mxu0 }
0x11d0   : > { %v3911_v60 = vpop.f32.mrb[114].mxu0 }
0x11d1   : > { %4614 = vst.msk [vmem:[%s5752_s10 + $0x38] sm:$0xff] %vm786_vm4, %v4064_v56  ;;  %v5103_v62 = vpop.f32.mrb[115].mxu0  ;;  %v4073_v63 = vsel %vm786_vm4, %v4064_v56, -inf }
0x11d2   : > { %4074 = vmax.xlane.f32.xlu0 %v4073_v63 }
0x11d6   : > { %v4008_v0 = vpop.f32.mrb[116].mxu0 }
0x11d7   : > { %v4066_v54 = vmul.f32 0.17677669, %v4008_v0  ;;  %v5114_v1 = vpop.f32.mrb[117].mxu0 }
0x11d8   : > { %v4011_v9 = vpop.f32.mrb[118].mxu0  ;;  %4121 = vrot.lane.b32.xlu1 %v5777_v39, %s5442_s18 }
0x11d9   : > { %4616 = vst.msk [vmem:[%s5752_s10 + $0xb8] sm:$0xff] %vm786_vm4, %v4066_v54  ;;  %v5115_v12 = vpop.f32.mrb[119].mxu0  ;;  %v4079_v3 = vsel %vm786_vm4, %v4066_v54, -inf  ;;  %s5450_s10 = smov [#allocation2]  }
0x11da   : > { %4080 = vmax.xlane.f32.xlu0 %v4079_v3 }
0x11de   : > { %4083 = vmax.xlane.f32.xlu0 %v4082_v5 }
0x1254   : > { %v4078_v19 = vpop.xlane.xlu1 %4077 }
0x1255   : > { %v4086_v6 = vsub.f32 %v4065_v28, %v4078_v19 }
0x1257   : > { %v4091_v37 = vmul.f32 1.442695, %v4086_v6 }
0x1258   : > { %v4122_v16 = vpop.permute.xlu1 %4121 }
0x1259   : > { %5334 = vpow2.f32 %v4091_v37  ;;  %v4127_v29 = vsel %vm846_vm5, %v4122_v16, 0 }
0x125a   : > { %5123 = vmatpush3.bf16.msra.mxu0 %v4127_v29 }
0x125b   : > { %5134 = vmatprep.subr.bf16.mxu0 %v5432_v2 }
0x125f   : > { %v4075_v39 = vpop.xlane.xlu0 %4074 }
0x1260   : > { %v4085_v4 = vsub.f32 %v4064_v56, %v4075_v39 }
0x1262   : > { %v4089_v14 = vmul.f32 1.442695, %v4085_v4 }
0x1263   : > { %v6408_v25 = vpop.eup %5334 }
0x1264   : > { %5336 = vpow2.f32 %v4089_v14  ;;  %v4100_v11 = vsel %vm786_vm4, %v6408_v25, 0.0 }
0x1265   : > { %4101 = vadd.xlane.f32.xlu0 %v4100_v11 }
0x1267   : > { %v4081_v8 = vpop.xlane.xlu0 %4080 }
0x1268   : > { %v4087_v28 = vsub.f32 %v4066_v54, %v4081_v8 }
0x126a   : > { %v4093_v31 = vmul.f32 1.442695, %v4087_v28 }
0x126b   : > { %v4084_v24 = vpop.xlane.xlu0 %4083 }
0x126c   : > { %5338 = vpow2.f32 %v4093_v31  ;;  %v4088_v35 = vsub.f32 %v4067_v49, %v4084_v24 }
0x126e   : > { %v5337_v41 = vpop.eup %5336  ;;  %v4095_v45 = vmul.f32 1.442695, %v4088_v35 }
0x126f   : > { %v4097_v46 = vsel %vm786_vm4, %v5337_v41, 0.0 }
0x1270   : > { %5340 = vpow2.f32 %v4095_v45  ;;  %4098 = vadd.xlane.f32.xlu1 %v4097_v46 }
0x1276   : > { %v6413_v47 = vpop.eup %5338 }
0x1277   : > { %v4103_v7 = vsel %vm786_vm4, %v6413_v47, 0.0 }
0x1278   : > { %4104 = vadd.xlane.f32.xlu1 %v4103_v7 }
0x127a   : > { %v6417_v50 = vpop.eup %5340 }
0x127b   : > { %v4106_v15 = vsel %vm786_vm4, %v6417_v50, 0.0 }
0x127c   : > { %4107 = vadd.xlane.f32.xlu0 %v4106_v15 }
0x1289   : > { %4217 = vrot.lane.b32.xlu1 %v5809_v53, %s5442_s18 }
0x128d   : > { %4265 = vrot.lane.b32.xlu1 %v5807_v52, %s5442_s18 }
0x1291   : > { %1499 = vrot.lane.b32.xlu1 %v5944_v18, %s5443_s19 }
0x1292   : > { %4169 = vrot.lane.b32.xlu0 %v5779_v40, %s5442_s18 }
0x1295   : > { %1503 = vrot.lane.b32.xlu1 %v5948_v26, %s5443_s19 }
0x1296   : > { %1497 = vrot.lane.b32.xlu0 %v5946_v21, %s5443_s19 }
0x1299   : > { %1969 = vrot.lane.b32.xlu1 %v6032_v17, %s5444_s20 }
0x129a   : > { %1501 = vrot.lane.b32.xlu0 %v5952_v38, %s5443_s19 }
0x129d   : > { %1973 = vrot.lane.b32.xlu1 %v6036_v27, %s5444_s20 }
0x129e   : > { %1967 = vrot.lane.b32.xlu0 %v6034_v20, %s5444_s20 }
0x12a1   : > { %2439 = vrot.lane.b32.xlu1 %v6120_v30, %s5445_s16 }
0x12a2   : > { %1971 = vrot.lane.b32.xlu0 %v6040_v42, %s5444_s20 }
0x12a5   : > { %2443 = vrot.lane.b32.xlu1 %v6124_v44, %s5445_s16 }
0x12a6   : > { %2437 = vrot.lane.b32.xlu0 %v6122_v34, %s5445_s16 }
0x12a9   : > { %2909 = vrot.lane.b32.xlu1 %v6208_v23, %s5446_s21 }
0x12aa   : > { %2441 = vrot.lane.b32.xlu0 %v6128_v51, %s5445_s16  ;;  %s6504_s16 = scalar_lea.hbm %s6571_s7, %s4632_s8 }
0x12ad   : > { %2913 = vrot.lane.b32.xlu1 %v6212_v61, %s5446_s21 }
0x12ae   : > { %2907 = vrot.lane.b32.xlu0 %v6210_v57, %s5446_s21 }
0x12b1   : > { %3379 = vrot.lane.b32.xlu1 %v6296_v33, %s5447_s15 }
0x12b2   : > { %2911 = vrot.lane.b32.xlu0 %v6216_v10, %s5446_s21  ;;  %s6510_s21 = scalar_lea.sflag [#allocation3], %s365_s30 }
0x12b5   : > { %3383 = vrot.lane.b32.xlu1 %v6300_v48, %s5447_s15 }
0x12b6   : > { %3377 = vrot.lane.b32.xlu0 %v6298_v43, %s5447_s15 }
0x12b9   : > { %3849 = vrot.lane.b32.xlu1 %v6384_v13, %s5448_s22 }
0x12ba   : > { %3381 = vrot.lane.b32.xlu0 %v6304_v58, %s5447_s15  ;;  %s5354_s15 = sshll.u32 %s5450_s10, 4  ;;  %s5355_s15 = int_to_ptr.vmem [resolvable:$false] %s5354_s15 }
0x12bb   : > { %p5357_p1 = scmp.lt.s32.totalorder %s6506_s12, %s5355_s15 }
0x12bd   : > { %3853 = vrot.lane.b32.xlu1 %v6388_v36, %s5448_s22 }
0x12be   : > { %3847 = vrot.lane.b32.xlu0 %v6386_v22, %s5448_s22 }
0x12c2   : > { %3851 = vrot.lane.b32.xlu0 %v6392_v32, %s5448_s22  ;;  %s5356_s22 = scalar_lea.vmem %s5355_s15, 8192 }
0x12c3   : > { %p5358_p2 = scmp.lt.s32.totalorder %s5356_s22, %s5350_s27 }
0x12c5   : > { %p5359_p3 = por %p5358_p2, %p5357_p1 }
0x12c7   : > { %p5360_p5 = pnand %p5359_p3, %p5353_p0 }
0x12f2   : > { %v4102_v40 = vpop.xlane.xlu0 %4101 }
0x12fd   : > { %v4099_v52 = vpop.xlane.xlu1 %4098 }
0x12fe   : > { %5342 = vrcp.f32 %v4099_v52 }
0x12ff   : > { %5344 = vrcp.f32 %v4102_v40 }
0x1305   : > { %v4105_v53 = vpop.xlane.xlu1 %4104 }
0x1306   : > { %5346 = vrcp.f32 %v4105_v53 }
0x1308   : > { %v5343_v18 = vpop.eup %5342 }
0x1309   : > { %v5345_v21 = vpop.eup %5344  ;;  %v4113_v26 = vmul.f32 %v5343_v18, %v5337_v41  ;;  %v4218_v38 = vpop.permute.xlu1 %4217 }
0x130a   : > { %v4108_v17 = vpop.xlane.xlu0 %4107  ;;  %v4223_v20 = vsel %vm846_vm5, %v4218_v38, 0  ;;  %v4114_v42 = vmul.f32 %v5345_v21, %v6408_v25 }
0x130b   : > { %5348 = vrcp.f32 %v4108_v17  ;;  %v4117_v27 = vpack.c.bf16 %v4113_v26, %v4113_v26 }
0x130c   : > { %v4118_v57 = vpack.c.bf16 %v4114_v42, %v4114_v42 }
0x130d   : > { %5125 = vmatmul.mubr.msk.bf16.vlgmr.msra.gmra.mrb[120].mxu0 %vm786_vm4, %v4117_v27  ;;  %v4266_v30 = vpop.permute.xlu1 %4265 }
0x130e   : > { %v4170_v34 = vpop.permute.xlu0 %4169  ;;  %5135 = vmatpush3.bf16.msra.mxu0 %v4223_v20  ;;  %5136 = vmatprep.mubr.msk.bf16.mxu0 %vm5435_vm0, %v5432_v2  ;;  %v4271_v23 = vsel %vm846_vm5, %v4266_v30, 0 }
0x130f   : > { %v4175_v44 = vsel %vm846_vm5, %v4170_v34, 0 }
0x1310   : > { %5129 = vmatpush3.bf16.msra.mxu1 %v4175_v44  ;;  %v5347_v51 = vpop.eup %5346 }
0x1311   : > { %5140 = vmatprep.subr.bf16.mxu1 %v5432_v2  ;;  %v4115_v61 = vmul.f32 %v5347_v51, %v6413_v47  ;;  %v1500_v10 = vpop.permute.xlu1 %1499 }
0x1312   : > { %v1498_v33 = vpop.permute.xlu0 %1497  ;;  %1511 = vst.msk [vmem:[%s5854_s23 + $0x8] sm:$0xff] %vm1509_vm6, %v1500_v10 }
0x1313   : > { %1510 = vst.msk [vmem:[%s5854_s23] sm:$0xff] %vm1509_vm6, %v1498_v33  ;;  %5131 = vmatmul.mubr.msk.bf16.vlgmr.msra.gmra.mrb[120].mxu1 %vm786_vm4, %v4118_v57  ;;  %v4119_v43 = vpack.c.bf16 %v4115_v61, %v4115_v61 }
0x1314   : > { %5141 = vmatpush3.bf16.msra.mxu1 %v4271_v23  ;;  %5142 = vmatprep.mubr.msk.bf16.mxu1 %vm5435_vm0, %v5432_v2 }
0x1315   : > { %v5349_v48 = vpop.eup %5348  ;;  %5137 = vmatmul.mubr.msk.bf16.vlgmr.msra.gmra.mrb[124].mxu0 %vm786_vm4, %v4119_v43  ;;  %v1504_v13 = vpop.permute.xlu1 %1503 }
0x1316   : > { %v4116_v58 = vmul.f32 %v5349_v48, %v6417_v50  ;;  %v1502_v22 = vpop.permute.xlu0 %1501  ;;  %1513 = vst.msk [vmem:[%s5854_s23 + $0x18] sm:$0xff] %vm1509_vm6, %v1504_v13 }
0x1317   : > { %1512 = vst.msk [vmem:[%s5854_s23 + $0x10] sm:$0xff] %vm1509_vm6, %v1502_v22 }
0x1318   : > { %v4120_v36 = vpack.c.bf16 %v4116_v58, %v4116_v58 }
0x1319   : > { %v1970_v32 = vpop.permute.xlu1 %1969 }
0x131a   : > { %v1968_v2 = vpop.permute.xlu0 %1967  ;;  %1981 = vst.msk [vmem:[%s5854_s23 + $0x8] sm:$0xff] %vm1979_vm7, %v1970_v32 }
0x131b   : > { %1980 = vst.msk [vmem:[%s5854_s23] sm:$0xff] %vm1979_vm7, %v1968_v2  ;;  %5143 = vmatmul.mubr.msk.bf16.vlgmr.msra.gmra.mrb[124].mxu1 %vm786_vm4, %v4120_v36 }
0x131d   : > { %v1974_v49 = vpop.permute.xlu1 %1973 }
0x131e   : > { %v1972_v55 = vpop.permute.xlu0 %1971  ;;  %1983 = vst.msk [vmem:[%s5854_s23 + $0x18] sm:$0xff] %vm1979_vm7, %v1974_v49 }
0x131f   : > { %1982 = vst.msk [vmem:[%s5854_s23 + $0x10] sm:$0xff] %vm1979_vm7, %v1972_v55 }
0x1321   : > { %v2440_v56 = vpop.permute.xlu1 %2439 }
0x1322   : > { %v2438_v59 = vpop.permute.xlu0 %2437  ;;  %2451 = vst.msk [vmem:[%s5854_s23 + $0x8] sm:$0xff] %vm2449_vm8, %v2440_v56 }
0x1323   : > { %2450 = vst.msk [vmem:[%s5854_s23] sm:$0xff] %vm2449_vm8, %v2438_v59 }
0x1325   : > { %v2444_v60 = vpop.permute.xlu1 %2443 }
0x1326   : > { %v2442_v62 = vpop.permute.xlu0 %2441  ;;  %2453 = vst.msk [vmem:[%s5854_s23 + $0x18] sm:$0xff] %vm2449_vm8, %v2444_v60 }
0x1327   : > { %2452 = vst.msk [vmem:[%s5854_s23 + $0x10] sm:$0xff] %vm2449_vm8, %v2442_v62 }
0x1329   : > { %v2910_v63 = vpop.permute.xlu1 %2909 }
0x132a   : > { %v2908_v0 = vpop.permute.xlu0 %2907  ;;  %2921 = vst.msk [vmem:[%s5854_s23 + $0x8] sm:$0xff] %vm2919_vm9, %v2910_v63 }
0x132b   : > { %2920 = vst.msk [vmem:[%s5854_s23] sm:$0xff] %vm2919_vm9, %v2908_v0 }
0x132d   : > { %v2914_v54 = vpop.permute.xlu1 %2913 }
0x132e   : > { %v2912_v1 = vpop.permute.xlu0 %2911  ;;  %2923 = vst.msk [vmem:[%s5854_s23 + $0x18] sm:$0xff] %vm2919_vm9, %v2914_v54 }
0x132f   : > { %2922 = vst.msk [vmem:[%s5854_s23 + $0x10] sm:$0xff] %vm2919_vm9, %v2912_v1 }
0x1331   : > { %v3380_v9 = vpop.permute.xlu1 %3379 }
0x1332   : > { %v3378_v12 = vpop.permute.xlu0 %3377  ;;  %3391 = vst.msk [vmem:[%s5854_s23 + $0x8] sm:$0xff] %vm3389_vm10, %v3380_v9 }
0x1333   : > { %3390 = vst.msk [vmem:[%s5854_s23] sm:$0xff] %vm3389_vm10, %v3378_v12 }
0x1335   : > { %v3384_v3 = vpop.permute.xlu1 %3383 }
0x1336   : > { %v3382_v5 = vpop.permute.xlu0 %3381  ;;  %3393 = vst.msk [vmem:[%s5854_s23 + $0x18] sm:$0xff] %vm3389_vm10, %v3384_v3 }
0x1337   : > { %3392 = vst.msk [vmem:[%s5854_s23 + $0x10] sm:$0xff] %vm3389_vm10, %v3382_v5 }
0x1339   : > { %v3850_v19 = vpop.permute.xlu1 %3849 }
0x133a   : > { %v3848_v6 = vpop.permute.xlu0 %3847  ;;  %3861 = vst.msk [vmem:[%s5854_s23 + $0x8] sm:$0xff] %vm3859_vm11, %v3850_v19 }
0x133b   : > { %3860 = vst.msk [vmem:[%s5854_s23] sm:$0xff] %vm3859_vm11, %v3848_v6 }
0x133d   : > { %v3854_v37 = vpop.permute.xlu1 %3853 }
0x133e   : > { %v3852_v16 = vpop.permute.xlu0 %3851  ;;  %3863 = vst.msk [vmem:[%s5854_s23 + $0x18] sm:$0xff] %vm3859_vm11, %v3854_v37 }
0x133f   : > { %3862 = vst.msk [vmem:[%s5854_s23 + $0x10] sm:$0xff] %vm3859_vm11, %v3852_v16 }
0x13e0   : > { %v4163_v29 = vpop.f32.mrb[120].mxu0 }
0x13e1   : > { %4317 = vrot.lane.b32.xlu0 %v4163_v29, %s5449_s17  ;;  %v5126_v39 = vpop.f32.mrb[121].mxu0 }
0x13e2   : > { %v4166_v4 = vpop.f32.mrb[122].mxu0 }
0x13e3   : > { %v5127_v14 = vpop.f32.mrb[123].mxu0 }
0x13e4   : > { %5363 = shalt.err (!%p5360_p5)
}
0x13e5   : > { %s5364_s30 = scalar_lea.hbm %s6504_s16, 4096  ;;  %s5368_s19 = scalar_lea.hbm %s6571_s7, 8192 }
0x13e6   : > { %p5365_p6 = scmp.ne.s32.totalorder %s6504_s16, %s5364_s30  ;;  %p5369_p10 = scmp.lt.u32.totalorder %s6504_s16, %s6571_s7 }
0x13e7   : > { %p5370_p11 = scmp.lt.u32.totalorder %s5368_s19, %s5364_s30  ;;  %p5372_p13 = scmp.lt.u32.totalorder %s5364_s30, %s6504_s16 }
0x13e8   : > { %p5366_p7 = pnand %p5365_p6, %p5532_p4 }
0x13e9   : > { %p5371_p12 = por %p5370_p11, %p5369_p10 }
0x13ea   : > { %p5367_p9 = pneg %p5366_p7 }
0x13eb   : > { %p5373_p0 = por %p5372_p13, %p5371_p12 }
0x13ed   : > { %p5374_p1 = pnand %p5373_p0, %p5367_p9 }
0x13ef   : > { %5377 = shalt.err (!%p5374_p1)
}
0x13f0   : > { %s5451_s27 = smov 128   ;;  %v4211_v25 = vpop.f32.mrb[120].mxu1  ;;  %v4259_v31 = vpop.f32.mrb[124].mxu0  ;;  %vm4329_vm12 = vcmask 261344  }
0x13f1   : > { %5146 = dma.vmem_to_hbm [thread:$0]  (%p5532_p4), %s6506_s12, 4096, %s6504_s16, %s6510_s21, %s5451_s27, %s5451_s27, %s5444_s20   ;;  %v5132_v11 = vpop.f32.mrb[121].mxu1  ;;  %v5138_v24 = vpop.f32.mrb[125].mxu0 }
0x13f2   : > { %4319 = vrot.lane.b32.xlu1 %v4211_v25, %s5449_s17  ;;  %v4214_v8 = vpop.f32.mrb[122].mxu1  ;;  %4321 = vrot.lane.b32.xlu0 %v4259_v31, %s5449_s17  ;;  %v4262_v35 = vpop.f32.mrb[126].mxu0 }
0x13f3   : > { %v5133_v28 = vpop.f32.mrb[123].mxu1  ;;  %v5139_v41 = vpop.f32.mrb[127].mxu0 }
0x13f4   : > { %v4307_v45 = vpop.f32.mrb[124].mxu1 }
0x13f5   : > { %v5144_v46 = vpop.f32.mrb[125].mxu1 }
0x13f6   : > { %4323 = vrot.lane.b32.xlu1 %v4307_v45, %s5449_s17  ;;  %v4310_v47 = vpop.f32.mrb[126].mxu1 }
0x13f7   : > { %v5145_v7 = vpop.f32.mrb[127].mxu1 }
0x1453   : > { %v4318_v50 = vpop.permute.xlu0 %4317 }
0x1454   : > { %4330 = vst.msk [vmem:[%s5854_s23] sm:$0xff] %vm4329_vm12, %v4318_v50 }
0x1464   : > { %v4320_v15 = vpop.permute.xlu1 %4319  ;;  %v4322_v40 = vpop.permute.xlu0 %4321 }
0x1465   : > { %4331 = vst.msk [vmem:[%s5854_s23 + $0x8] sm:$0xff] %vm4329_vm12, %v4320_v15  ;;  %4332 = vst.msk [vmem:[%s5854_s23 + $0x10] sm:$0xff] %vm4329_vm12, %v4322_v40 }
0x1468   : > { %v4324_v52 = vpop.permute.xlu1 %4323 }
0x1469   : > { %4333 = vst.msk [vmem:[%s5854_s23 + $0x18] sm:$0xff] %vm4329_vm12, %v4324_v52 }
0x146a PF: > { %p5152_p4 = scmp.ge.s32.totalorder %s5428_s29, 2  ;;  %s4391_s11 = sand.u32 1, %s5408_s24  }
0x146b   : > { %s4392_s20 = scalar_lea.sflag [#allocation3], %s4391_s11 }
0x146c   : > { %p5149_p2 = pnand %p5152_p4, %p5539_p8 }
0x146e   : > { %5403 = dma.done.wait (!%p5149_p2), %s4392_s20, 4096  }
0x146f   : > { %5405 = vsyncadd (!%p5149_p2), %s4392_s20, 4294963200  ;;  %s21_s29 = sadd.s32 1, %s5428_s29   ;;  %s6574_s24 = smov %s5412_s25 }
0x1470   : > { %p18_p3 = scmp.ge.s32.totalorder %s21_s29, 4   ;;  %s6575_s25 = smov %s5416_s26 }
0x1471   : > { %s6576_s26 = smov %s5545_s14  ;;  %s6577_s27 = smov %s5424_s28 }
0x1472   : > { %s6578_s28 = smov %s6580_s9  ;;  %20 = sbr.rel (!%p18_p3) target bundleno = 4 (0x4), region = 104 }
0x1479   :  { %4397 = vsyncpa [#allocation3], 1 }
0x147a   :  { %4399 = vsyncpa [#allocation3 + $0x1], 1 }

// kernel: decoder_forward.22
= control target key start
LH: loop header
LB: loop body
LE: loop exit
PB: predicated region body
PF: predicated region fallthrough
CT: control target
= control target key end

     0   :  { %s1314_s15 = smov 0   ;;  %s1496_s0 = inlined_call_operand.vmem [shape: f32[2,4,322], index: 0, kind: input, shape index: {}]   ;;  %s1497_s1 = inlined_call_operand.vmem [shape: f32[9,16,4], index: 1, kind: input, shape index: {}]   ;;  %s1498_s2 = inlined_call_operand.vmem [shape: f32[16,1], index: 2, kind: input, shape index: {}]   ;;  %s1499_s3 = inlined_call_operand.vmem [shape: f32[9,1,256], index: 3, kind: input, shape index: {}]   ;;  %s1500_s4 = inlined_call_operand.vmem [shape: f32[2,16,256], index: 4, kind: output, shape index: {}]  }
   0x1 LB: > { %s1153_s16 = sadd.s32 4294967295, %s1271_s15   ;;  %p1157_p0 = scmp.ge.s32.totalorder %s1271_s15, 1  ;;  %s1271_s15 = sphi %s1314_s15, %s14_s15  }
   0x2   : > { %p162_p1 = scmp.lt.s32.totalorder %s1271_s15, 3 }
   0x4   : > { %p163_p2 = pnand %p1157_p0, %p162_p1 }
   0x5   : > { %v202_v0 = vlaneseq (!%p163_p2)  ;;  %v1178_v2 = vld [vmem:[%s1499_s3 + $0x8] sm:$0x3] (!%p163_p2)  ;;  %v1183_v3 = vld [vmem:[%s1499_s3 + $0xa] sm:$0x3] (!%p163_p2)  ;;  %v1161_v6 = vld [vmem:[%s1499_s3 + $0x2] sm:$0x3] (!%p163_p2) }
   0x6   : > { %166 = sbr.rel (%p163_p2) target bundleno = 528 (0x210), region = 36  ;;  %v1188_v7 = vld [vmem:[%s1499_s3 + $0xc] sm:$0x3] (!%p163_p2)  ;;  %v1168_v12 = vld [vmem:[%s1499_s3 + $0x4] sm:$0x3] (!%p163_p2)  ;;  %s1273_s5 = smov (!%p163_p2), 33  }
   0x7   : > { %v203_v1 = vshrl.u32 (!%p163_p2), %v202_v0, 7  ;;  %v1193_v13 = vld [vmem:[%s1499_s3 + $0xe] sm:$0x3] (!%p163_p2)  ;;  %v200_v20 = vld [vmem:[%s1499_s3] sm:$0x3] (!%p163_p2)  ;;  %s1274_s6 = smov (!%p163_p2), 34  }
   0x8   : > { %v1173_v27 = vld [vmem:[%s1499_s3 + $0x6] sm:$0x3] (!%p163_p2)  ;;  %v1198_v28 = vld [vmem:[%s1499_s3 + $0x10] sm:$0x3] (!%p163_p2)  ;;  %s1275_s11 = smov (!%p163_p2), 1   ;;  %s1276_s12 = smov (!%p163_p2), 64  }
   0x9   : > { %v204_v4 = vsub.s32 (!%p163_p2), 0, %v203_v1  ;;  %v208_v5 = vsub.s32 (!%p163_p2), 1, %v203_v1  ;;  %s1277_s13 = smov (!%p163_p2), 2   ;;  %s1278_s14 = smov (!%p163_p2), 65   ;;  %vm590_vm0 = vcmask (!%p163_p2), 269312   ;;  %v1281_v46 = vmov (!%p163_p2), 0  }
   0xa   : > { %s1279_s17 = smov (!%p163_p2), 32   ;;  %s1280_s18 = smov (!%p163_p2), 66   ;;  %659 = vmatprep.mubr.bf16.mxu0 (!%p163_p2), %v1281_v46  ;;  %308 = vmatprep.mubr.bf16.mxu1 (!%p163_p2), %v1281_v46  ;;  %vm691_vm1 = vcmask (!%p163_p2), 277504   ;;  %vm237_vm2 = vcmask (!%p163_p2), 7168   ;;  %vm792_vm3 = vcmask (!%p163_p2), 523264   ;;  %vm388_vm4 = vcmask (!%p163_p2), 15360  }
   0xb   : > { %v581_v8 = vrot.slane (!%p163_p2), %v1178_v2, %v204_v4  ;;  %v585_v9 = vrot.slane (!%p163_p2), %v1178_v2, %v208_v5  ;;  %v682_v10 = vrot.slane (!%p163_p2), %v1183_v3, %v204_v4  ;;  %v686_v11 = vrot.slane (!%p163_p2), %v1183_v3, %v208_v5  ;;  %p188_p3 = scmp.lt.s32.totalorder (!%p163_p2), %s1153_s16, 1  ;;  %1263 = vset.pattern.permute.xlu0 (!%p163_p2), %v1281_v46  ;;  %s1282_s23 = smov (!%p163_p2), 95  }
   0xc   : > { %v228_v14 = vrot.slane (!%p163_p2), %v1161_v6, %v204_v4  ;;  %v232_v15 = vrot.slane (!%p163_p2), %v1161_v6, %v208_v5  ;;  %v783_v16 = vrot.slane (!%p163_p2), %v1188_v7, %v204_v4  ;;  %v787_v17 = vrot.slane (!%p163_p2), %v1188_v7, %v208_v5  ;;  %1264 = vset.pattern.permute.xlu1 (!%p163_p2), %v1281_v46  ;;  %s1283_s24 = smov (!%p163_p2), 127   ;;  %s1284_s25 = smov (!%p163_p2), 94  }
   0xd   : > { %v586_v18 = vcombine.low %v581_v8, %v585_v9  ;;  %v687_v19 = vcombine.low %v682_v10, %v686_v11  ;;  %v379_v21 = vrot.slane %v1168_v12, %v204_v4  ;;  %v383_v22 = vrot.slane %v1168_v12, %v208_v5  ;;  %s1502_s16 = smov (!%p188_p3, %s1153_s16), 1  ;;  %s1285_s26 = smov 126  }
   0xe   : > { %v884_v23 = vrot.slane %v1193_v13, %v204_v4  ;;  %v888_v24 = vrot.slane %v1193_v13, %v208_v5  ;;  %v233_v25 = vcombine.low %v228_v14, %v232_v15  ;;  %v788_v26 = vcombine.low %v783_v16, %v787_v17  ;;  %s1238_s19 = smul.u32 12, %s1502_s16  ;;  %s1286_s27 = smov 63  }
   0xf   : > { %587 = vrot.lane.b32.xlu0 %v586_v18, %s1273_s5  ;;  %688 = vrot.lane.b32.xlu1 %v687_v19, %s1274_s6  ;;  %v205_v29 = vrot.slane %v200_v20, %v204_v4  ;;  %v209_v30 = vrot.slane %v200_v20, %v208_v5  ;;  %v384_v31 = vcombine.low %v379_v21, %v383_v22  ;;  %vm893_vm5 = vcmask 531456   ;;  %s1287_s28 = smov 96   ;;  %s1288_s29 = smov 62  }
  0x10   : > { %v889_v32 = vcombine.low %v884_v23, %v888_v24  ;;  %v480_v33 = vrot.slane %v1173_v27, %v204_v4  ;;  %v484_v34 = vrot.slane %v1173_v27, %v208_v5  ;;  %v985_v35 = vrot.slane %v1198_v28, %v204_v4  ;;  %s1362_s22 = scalar_lea.vmem %s1496_s0, %s1238_s19 }
  0x11   : > { %v989_v36 = vrot.slane %v1198_v28, %v208_v5  ;;  %v1350_v37 = vcombine.low %v205_v29, %v209_v30  ;;  %v574_v41 = vld [vmem:[%s1362_s22 + $0x8] sm:$0xf]  ;;  %v1366_v43 = vld [vmem:[%s1362_s22] sm:$0xff]  ;;  %vm489_vm6 = vcmask 261120   ;;  %vm994_vm7 = vcmask 539648  }
  0x12   : > { %v485_v38 = vcombine.low %v480_v33, %v484_v34  ;;  %v221_v61 = vld [vmem:[%s1362_s22 + $0x8] sm:$0xf]  ;;  %vm615_vm8 = vcmask 777216   ;;  %vm269_vm9 = vcmask 1041408   ;;  %vm265_vm10 = vcmask 31744  }
  0x13   : > { %234 = vrot.lane.b32.xlu0 %v233_v25, %s1275_s11  ;;  %789 = vrot.lane.b32.xlu1 %v788_v26, %s1276_s12  ;;  %v990_v39 = vcombine.low %v985_v35, %v989_v36  ;;  %v675_v5 = vld [vmem:[%s1362_s22 + $0x8] sm:$0xf]  ;;  %vm262_vm11 = vcmask 1039360   ;;  %vm716_vm12 = vcmask 769024   ;;  %vm918_vm13 = vcmask 515072  }
  0x14   : > { %v776_v13 = vld [vmem:[%s1362_s22 + $0x8] sm:$0xf]  ;;  %vm413_vm14 = vcmask 1031168   ;;  %vm514_vm15 = vcmask 785408  }
  0x15   : > { %v372_v24 = vld [vmem:[%s1362_s22 + $0x8] sm:$0xf] }
  0x16   : > { %v877_v29 = vld [vmem:[%s1362_s22 + $0x8] sm:$0xf] }
  0x17   : > { %385 = vrot.lane.b32.xlu0 %v384_v31, %s1277_s13  ;;  %890 = vrot.lane.b32.xlu1 %v889_v32, %s1278_s14 }
  0x1b   : > { %486 = vrot.lane.b32.xlu0 %v485_v38, %s1279_s17  ;;  %991 = vrot.lane.b32.xlu1 %v990_v39, %s1280_s18 }
  0x81   : > { %v588_v40 = vpop.permute.xlu0 %587  ;;  %v689_v42 = vpop.permute.xlu1 %688 }
  0x82   : > { %v589_v44 = vrot.slane %v588_v40, 4  ;;  %v690_v45 = vrot.slane %v689_v42, 4 }
  0x84   : > { %v591_v47 = vsel %vm590_vm0, %v589_v44, %v588_v40  ;;  %v595_v48 = vmul.f32 %v589_v44, %v574_v41  ;;  %v692_v54 = vsel %vm691_vm1, %v690_v45, %v689_v42  ;;  %v696_v11 = vmul.f32 %v690_v45, %v675_v5  ;;  %v473_v45 = vld [vmem:[%s1362_s22 + $0x8] sm:$0xf] }
  0x85   : > { %v594_v49 = vmul.f32 %v591_v47, %v1366_v43  ;;  %v235_v50 = vpop.permute.xlu0 %234  ;;  %v790_v53 = vpop.permute.xlu1 %789  ;;  %v695_v60 = vmul.f32 %v692_v54, %v1366_v43  ;;  %vm1019_vm0 = vcmask 506880  }
  0x86   : > { %v236_v51 = vrot.slane %v235_v50, 4  ;;  %v605_v52 = vpack.c.bf16 %v595_v48, %v595_v48  ;;  %v791_v59 = vrot.slane %v790_v53, 4  ;;  %v706_v18 = vpack.c.bf16 %v696_v11, %v696_v11 }
  0x87   : > { %v601_v55 = vcombine.high %v594_v49, %v594_v49  ;;  %v603_v62 = vpack.c.bf16 %v594_v49, %v594_v49  ;;  %v704_v2 = vpack.c.bf16 %v695_v60, %v695_v60  ;;  %v702_v8 = vcombine.high %v695_v60, %v695_v60 }
  0x88   : > { %v238_v56 = vsel %vm237_vm2, %v236_v51, %v235_v50  ;;  %613 = vrot.lane.b32.xlu0 %v605_v52, %s1282_s23  ;;  %v242_v0 = vmul.f32 %v236_v51, %v221_v61  ;;  %v793_v1 = vsel %vm792_vm3, %v791_v59, %v790_v53  ;;  %v797_v19 = vmul.f32 %v791_v59, %v776_v13  ;;  %v1078_v61 = vld [vmem:[%s1498_s2] sm:$0xff] }
  0x89   : > { %v241_v57 = vmul.f32 %v1366_v43, %v238_v56  ;;  %v604_v58 = vpack.c.bf16 %v601_v55, %v601_v55  ;;  %v386_v4 = vpop.permute.xlu0 %385  ;;  %v796_v6 = vmul.f32 %v793_v1, %v1366_v43  ;;  %v891_v10 = vpop.permute.xlu1 %890  ;;  %v705_v16 = vpack.c.bf16 %v702_v8, %v702_v8  ;;  %v978_v56 = vld [vmem:[%s1362_s22 + $0x8] sm:$0xf]  ;;  %v1179_v1 = vld [vmem:[%s1497_s1 + $0x40] sm:$0xff]  ;;  %s1205_s22 = sshll.u32 %s1502_s16, 5 }
  0x8a   : > { %v252_v7 = vpack.c.bf16 %v242_v0, %v242_v0  ;;  %v387_v9 = vrot.slane %v386_v4, 4  ;;  %v892_v14 = vrot.slane %v891_v10, 4  ;;  %v807_v27 = vpack.c.bf16 %v797_v19, %v797_v19 }
  0x8b   : > { %611 = vrot.lane.b32.xlu1 %v604_v58, %s1282_s23  ;;  %v250_v63 = vpack.c.bf16 %v241_v57, %v241_v57  ;;  %v248_v3 = vcombine.high %v241_v57, %v241_v57  ;;  %v803_v15 = vcombine.high %v796_v6, %v796_v6  ;;  %v805_v20 = vpack.c.bf16 %v796_v6, %v796_v6 }
  0x8c   : > { %609 = vrot.lane.b32.xlu0 %v603_v62, %s1282_s23  ;;  %v389_v17 = vsel %vm388_vm4, %v387_v9, %v386_v4  ;;  %v894_v22 = vsel %vm893_vm5, %v892_v14, %v891_v10  ;;  %v393_v28 = vmul.f32 %v387_v9, %v372_v24  ;;  %v898_v33 = vmul.f32 %v892_v14, %v877_v29  ;;  %v1079_v62 = vld [vmem:[%s1498_s2 + $0x8] sm:$0xff] }
  0x8d   : > { %v251_v12 = vpack.c.bf16 %v248_v3, %v248_v3  ;;  %v392_v21 = vmul.f32 %v1366_v43, %v389_v17  ;;  %v806_v23 = vpack.c.bf16 %v803_v15, %v803_v15  ;;  %v487_v25 = vpop.permute.xlu0 %486  ;;  %v897_v26 = vmul.f32 %v894_v22, %v1366_v43  ;;  %v992_v32 = vpop.permute.xlu1 %991  ;;  %v1185_v22 = vld [vmem:[%s1497_s1 + $0x58] sm:$0xff] }
  0x8e   : > { %v488_v31 = vrot.slane %v487_v25, 4  ;;  %v403_v35 = vpack.c.bf16 %v393_v28, %v393_v28  ;;  %v993_v36 = vrot.slane %v992_v32, 4  ;;  %v908_v40 = vpack.c.bf16 %v898_v33, %v898_v33 }
  0x8f   : > { %256 = vrot.lane.b32.xlu1 %v250_v63, %s1283_s24  ;;  %v401_v30 = vpack.c.bf16 %v392_v21, %v392_v21  ;;  %v906_v34 = vpack.c.bf16 %v897_v26, %v897_v26  ;;  %v904_v38 = vcombine.high %v897_v26, %v897_v26  ;;  %v399_v47 = vcombine.high %v392_v21, %v392_v21  ;;  %v1184_v21 = vld [vmem:[%s1497_s1 + $0x50] sm:$0xff] }
  0x90   : > { %710 = vrot.lane.b32.xlu0 %v704_v2, %s1284_s25  ;;  %v490_v39 = vsel %vm489_vm6, %v488_v31, %v487_v25  ;;  %v995_v42 = vsel %vm994_vm7, %v993_v36, %v992_v32  ;;  %v494_v49 = vmul.f32 %v488_v31, %v473_v45  ;;  %v999_v59 = vmul.f32 %v993_v36, %v978_v56  ;;  %v1180_v2 = vld [vmem:[%s1497_s1 + $0x48] sm:$0xff] }
  0x91   : > { %v493_v41 = vmul.f32 %v1366_v43, %v490_v39  ;;  %v907_v44 = vpack.c.bf16 %v904_v38, %v904_v38  ;;  %v998_v48 = vmul.f32 %v995_v42, %v1366_v43  ;;  %v402_v51 = vpack.c.bf16 %v399_v47, %v399_v47  ;;  %v1190_v42 = vld [vmem:[%s1497_s1 + $0x68] sm:$0xff] }
  0x92   : > { %v504_v54 = vpack.c.bf16 %v494_v49, %v494_v49  ;;  %v1009_v60 = vpack.c.bf16 %v999_v59, %v999_v59  ;;  %v212_v3 = vmul.f32 %v1366_v43, %v1350_v37  ;;  %v599_v8 = vpack.c.bf16 %v1180_v2, %v1179_v1  ;;  %v1162_v37 = vld [vmem:[%s1497_s1 + $0x10] sm:$0xff]  ;;  %v1163_v43 = vld [vmem:[%s1497_s1 + $0x18] sm:$0xff] }
  0x93   : > { %260 = vrot.lane.b32.xlu1 %v252_v7, %s1283_s24  ;;  %v502_v50 = vpack.c.bf16 %v493_v41, %v493_v41  ;;  %v1007_v52 = vpack.c.bf16 %v998_v48, %v998_v48  ;;  %v500_v53 = vcombine.high %v493_v41, %v493_v41  ;;  %v1005_v55 = vcombine.high %v998_v48, %v998_v48  ;;  %v1189_v41 = vld [vmem:[%s1497_s1 + $0x60] sm:$0xff] }
  0x94   : > { %258 = vrot.lane.b32.xlu0 %v251_v12, %s1283_s24  ;;  %v217_v10 = vcombine.high %v212_v3, %v212_v3  ;;  %v219_v15 = vpack.c.bf16 %v212_v3, %v212_v3  ;;  %v246_v19 = vpack.c.bf16 %v1163_v43, %v1162_v37  ;;  %v700_v28 = vpack.c.bf16 %v1185_v22, %v1184_v21  ;;  %v1199_v37 = vld [vmem:[%s1497_s1 + $0x80] sm:$0xff]  ;;  %v1200_v43 = vld [vmem:[%s1497_s1 + $0x88] sm:$0xff] }
  0x95   : > { %v503_v57 = vpack.c.bf16 %v500_v53, %v500_v53  ;;  %v1008_v58 = vpack.c.bf16 %v1005_v55, %v1005_v55  ;;  %v801_v45 = vpack.c.bf16 %v1190_v42, %v1189_v41  ;;  %v1169_v53 = vld [vmem:[%s1497_s1 + $0x20] sm:$0xff] }
  0x96   : > { %v220_v13 = vpack.c.bf16 %v217_v10, %v217_v10  ;;  %v323_v25 = vsel %vm269_vm9, %v219_v15, 0 }
  0x97   : > { %712 = vrot.lane.b32.xlu1 %v705_v16, %s1284_s25 }
  0x98   : > { %714 = vrot.lane.b32.xlu0 %v706_v18, %s1284_s25  ;;  %s197_s25 = scalar_lea.vmem %s1500_s4, %s1205_s22 }
  0x9b   : > { %811 = vrot.lane.b32.xlu1 %v805_v20, %s1276_s12 }
  0x9c   : > { %813 = vrot.lane.b32.xlu0 %v806_v23, %s1276_s12 }
  0x9f   : > { %815 = vrot.lane.b32.xlu1 %v807_v27, %s1276_s12 }
  0xa0   : > { %407 = vrot.lane.b32.xlu0 %v401_v30, %s1285_s26 }
  0xa3   : > { %912 = vrot.lane.b32.xlu1 %v906_v34, %s1286_s27  ;;  %v213_v34 = vld [vmem:[%s1497_s1] sm:$0xff] }
  0xa4   : > { %411 = vrot.lane.b32.xlu0 %v403_v35, %s1285_s26  ;;  %v214_v35 = vld [vmem:[%s1497_s1 + $0x8] sm:$0xff] }
  0xa5   : > { %v215_v39 = vpack.c.bf16 %v214_v35, %v213_v34 }
  0xa7   : > { %916 = vrot.lane.b32.xlu1 %v908_v40, %s1286_s27 }
  0xa8   : > { %914 = vrot.lane.b32.xlu0 %v907_v44, %s1286_s27 }
  0xab   : > { %409 = vrot.lane.b32.xlu1 %v402_v51, %s1285_s26 }
  0xac   : > { %508 = vrot.lane.b32.xlu0 %v502_v50, %s1287_s28 }
  0xaf   : > { %1013 = vrot.lane.b32.xlu1 %v1007_v52, %s1288_s29 }
  0xb0   : > { %512 = vrot.lane.b32.xlu0 %v504_v54, %s1287_s28  ;;  %v1170_v54 = vld [vmem:[%s1497_s1 + $0x28] sm:$0xff] }
  0xb1   : > { %v397_v59 = vpack.c.bf16 %v1170_v54, %v1169_v53 }
  0xb3   : > { %510 = vrot.lane.b32.xlu1 %v503_v57, %s1287_s28 }
  0xb4   : > { %1015 = vrot.lane.b32.xlu0 %v1008_v58, %s1288_s29 }
  0xb7   : > { %1017 = vrot.lane.b32.xlu1 %v1009_v60, %s1288_s29 }
  0xb8   : > { %1082 = vperm.xlu0 %1263, %v1078_v61   ;;  %v1194_v61 = vld [vmem:[%s1497_s1 + $0x70] sm:$0xff] }
  0xbb   : > { %1087 = vperm.xlu1 %1264, %v1079_v62   ;;  %v1195_v62 = vld [vmem:[%s1497_s1 + $0x78] sm:$0xff] }
  0xfa   : > { %v614_v63 = vpop.permute.xlu0 %613 }
  0xfd   : > { %v612_v0 = vpop.permute.xlu1 %611 }
  0xfe   : > { %v610_v4 = vpop.permute.xlu0 %609  ;;  %v617_v5 = vsel %vm615_vm8, %v612_v0, %v614_v63 }
  0xff   : > { %1181 = vmatprep.subr.msk.bf16.mxu0 %vm269_vm9, %v617_v5  ;;  %v616_v6 = vsel %vm615_vm8, %v610_v4, %v612_v0  ;;  %v902_v0 = vpack.c.bf16 %v1195_v62, %v1194_v61 }
 0x100   : > { %v622_v7 = vsel %vm269_vm9, %v616_v6, 0 }
 0x101   : > { %628 = vmatpush1.bf16.msra.mxu0 %v622_v7  ;;  %v257_v9 = vpop.permute.xlu1 %256 }
 0x102   : > { %v711_v11 = vpop.permute.xlu0 %710 }
 0x104   : > { %1182 = vmatmul.mubr.msk.bf16.vlgmr.msra.gmra.mrb[0].mxu0 %vm265_vm10, %v599_v8  ;;  %v1174_v8 = vld [vmem:[%s1497_s1 + $0x30] sm:$0xff] }
 0x105   : > { %v261_v12 = vpop.permute.xlu1 %260  ;;  %760 = vmatprep.mubr.bf16.mxu0 %v1281_v46 }
 0x106   : > { %v259_v14 = vpop.permute.xlu0 %258 }
 0x107   : > { %v264_v16 = vsel %vm262_vm11, %v259_v14, %v261_v12  ;;  %v263_v17 = vsel %vm262_vm11, %v257_v9, %v259_v14  ;;  %v1175_v9 = vld [vmem:[%s1497_s1 + $0x38] sm:$0xff] }
 0x108   : > { %1164 = vmatprep.subr.msk.bf16.mxu1 %vm269_vm9, %v264_v16  ;;  %v271_v18 = vsel %vm269_vm9, %v263_v17, 0  ;;  %v498_v12 = vpack.c.bf16 %v1175_v9, %v1174_v8 }
 0x109   : > { %v713_v20 = vpop.permute.xlu1 %712  ;;  %277 = vmatpush1.bf16.msra.mxu1 %v271_v18 }
 0x10a   : > { %v717_v23 = vsel %vm716_vm12, %v711_v11, %v713_v20  ;;  %v715_v24 = vpop.permute.xlu0 %714  ;;  %1166 = vmatprep.subr.msk.bf16.mxu1 %vm269_vm9, %v220_v13  ;;  %v1003_v13 = vpack.c.bf16 %v1200_v43, %v1199_v37 }
 0x10b   : > { %v723_v26 = vsel %vm269_vm9, %v717_v23, 0  ;;  %v718_v27 = vsel %vm716_vm12, %v713_v20, %v715_v24 }
 0x10c   : > { %1165 = vmatmul.mubr.msk.bf16.vlgmr.msra.gmra.mrb[0].mxu1 %vm265_vm10, %v246_v19  ;;  %1186 = vmatprep.subr.msk.bf16.mxu0 %vm269_vm9, %v718_v27 }
 0x10d   : > { %v812_v29 = vpop.permute.xlu1 %811  ;;  %729 = vmatpush1.bf16.msra.mxu0 %v723_v26  ;;  %329 = vmatpush1.bf16.msra.mxu1 %v323_v25 }
 0x10e   : > { %v814_v30 = vpop.permute.xlu0 %813  ;;  %360 = vmatprep.mubr.bf16.mxu1 %v1281_v46 }
 0x10f   : > { %v818_v31 = vsel %vm792_vm3, %v812_v29, %v814_v30 }
 0x110   : > { %1187 = vmatmul.mubr.msk.bf16.vlgmr.msra.gmra.mrb[0].mxu0 %vm265_vm10, %v700_v28  ;;  %v824_v32 = vsel %vm269_vm9, %v818_v31, 0 }
 0x111   : > { %v816_v33 = vpop.permute.xlu1 %815  ;;  %861 = vmatprep.mubr.bf16.mxu0 %v1281_v46 }
 0x112   : > { %v819_v36 = vsel %vm792_vm3, %v814_v30, %v816_v33  ;;  %v408_v38 = vpop.permute.xlu0 %407 }
 0x113   : > { %1191 = vmatprep.subr.msk.bf16.mxu0 %vm269_vm9, %v819_v36 }
 0x114   : > { %830 = vmatpush1.bf16.msra.mxu0 %v824_v32 }
 0x115   : > { %v913_v40 = vpop.permute.xlu1 %912 }
 0x116   : > { %v412_v44 = vpop.permute.xlu0 %411 }
 0x118   : > { %1167 = vmatmul.mubr.msk.bf16.vlgmr.msra.gmra.mrb[0].mxu1 %vm265_vm10, %v215_v39 }
 0x119   : > { %v917_v47 = vpop.permute.xlu1 %916  ;;  %457 = vmatprep.mubr.bf16.mxu1 %v1281_v46 }
 0x11a   : > { %v915_v48 = vpop.permute.xlu0 %914 }
 0x11b   : > { %v919_v49 = vsel %vm918_vm13, %v913_v40, %v915_v48  ;;  %v920_v50 = vsel %vm918_vm13, %v915_v48, %v917_v47 }
 0x11c   : > { %v925_v51 = vsel %vm269_vm9, %v919_v49, 0  ;;  %1192 = vmatmul.mubr.msk.bf16.vlgmr.msra.gmra.mrb[0].mxu0 %vm265_vm10, %v801_v45  ;;  %1196 = vmatprep.subr.msk.bf16.mxu0 %vm269_vm9, %v920_v50 }
 0x11d   : > { %v410_v52 = vpop.permute.xlu1 %409  ;;  %931 = vmatpush1.bf16.msra.mxu0 %v925_v51  ;;  %962 = vmatprep.mubr.bf16.mxu0 %v1281_v46 }
 0x11e   : > { %v414_v55 = vsel %vm413_vm14, %v408_v38, %v410_v52  ;;  %v415_v56 = vsel %vm413_vm14, %v410_v52, %v412_v44  ;;  %v509_v57 = vpop.permute.xlu0 %508 }
 0x11f   : > { %v420_v58 = vsel %vm269_vm9, %v414_v55, 0  ;;  %1171 = vmatprep.subr.msk.bf16.mxu1 %vm269_vm9, %v415_v56 }
 0x120   : > { %426 = vmatpush1.bf16.msra.mxu1 %v420_v58 }
 0x121   : > { %v1014_v60 = vpop.permute.xlu1 %1013 }
 0x122   : > { %v513_v63 = vpop.permute.xlu0 %512 }
 0x124   : > { %1172 = vmatmul.mubr.msk.bf16.vlgmr.msra.gmra.mrb[0].mxu1 %vm265_vm10, %v397_v59 }
 0x125   : > { %v511_v1 = vpop.permute.xlu1 %510  ;;  %558 = vmatprep.mubr.bf16.mxu1 %v1281_v46 }
 0x126   : > { %v515_v2 = vsel %vm514_vm15, %v509_v57, %v511_v1  ;;  %v516_v3 = vsel %vm514_vm15, %v511_v1, %v513_v63  ;;  %v1016_v4 = vpop.permute.xlu0 %1015 }
 0x127   : > { %v521_v5 = vsel %vm269_vm9, %v515_v2, 0  ;;  %1176 = vmatprep.subr.msk.bf16.mxu1 %vm269_vm9, %v516_v3  ;;  %v1020_v6 = vsel %vm1019_vm0, %v1014_v60, %v1016_v4 }
 0x128   : > { %527 = vmatpush1.bf16.msra.mxu1 %v521_v5  ;;  %1197 = vmatmul.mubr.msk.bf16.vlgmr.msra.gmra.mrb[0].mxu0 %vm265_vm10, %v902_v0  ;;  %v1026_v11 = vsel %vm269_vm9, %v1020_v6, 0 }
 0x129   : > { %v1018_v7 = vpop.permute.xlu1 %1017  ;;  %1063 = vmatprep.mubr.bf16.mxu0 %v1281_v46 }
 0x12a   : > { %v1021_v10 = vsel %vm1019_vm0, %v1016_v4, %v1018_v7 }
 0x12b   : > { %1201 = vmatprep.subr.msk.bf16.mxu0 %vm269_vm9, %v1021_v10 }
 0x12c   : > { %1032 = vmatpush1.bf16.msra.mxu0 %v1026_v11 }
 0x130   : > { %1177 = vmatmul.mubr.msk.bf16.vlgmr.msra.gmra.mrb[0].mxu1 %vm265_vm10, %v498_v12 }
 0x134   : > { %1202 = vmatmul.mubr.msk.bf16.vlgmr.msra.gmra.mrb[0].mxu0 %vm265_vm10, %v1003_v13 }
 0x137   : > { %v1083_v18 = vpop.permute.xlu0 %1082 }
 0x13a   : > { %v1088_v23 = vpop.permute.xlu1 %1087 }
 0x203   : > { %v560_v46 = vpop.f32.mrb[0].mxu1 }
 0x204   : > { %v562_v14 = vpop.f32.mrb[1].mxu1 }
 0x205   : > { %v564_v15 = vpop.f32.mrb[2].mxu1 }
 0x206   : > { %v566_v16 = vpop.f32.mrb[3].mxu1 }
 0x207   : > { %v1065_v17 = vpop.f32.mrb[0].mxu0 }
 0x208   : > { %v1206_v19 = vadd.f32 %v1065_v17, %v560_v46  ;;  %v1067_v20 = vpop.f32.mrb[1].mxu0 }
 0x209   : > { %v1207_v21 = vadd.f32 %v1067_v20, %v562_v14  ;;  %v1069_v22 = vpop.f32.mrb[2].mxu0 }
 0x20a   : > { %v1208_v24 = vadd.f32 %v1069_v22, %v564_v15  ;;  %v1090_v25 = vadd.f32 %v1206_v19, %v1083_v18  ;;  %v1071_v26 = vpop.f32.mrb[3].mxu0 }
 0x20b   : > { %v1091_v27 = vadd.f32 %v1207_v21, %v1083_v18  ;;  %v1209_v28 = vadd.f32 %v1071_v26, %v566_v16 }
 0x20c   : > { %1094 = vst [vmem:[%s197_s25] sm:$0xff] %v1090_v25  ;;  %v1092_v29 = vadd.f32 %v1208_v24, %v1088_v23 }
 0x20d   : > { %1095 = vst [vmem:[%s197_s25 + $0x8] sm:$0xff] %v1091_v27  ;;  %v1093_v30 = vadd.f32 %v1209_v28, %v1088_v23 }
 0x20e   : > { %1096 = vst [vmem:[%s197_s25 + $0x10] sm:$0xff] %v1092_v29 }
 0x20f   : > { %1097 = vst [vmem:[%s197_s25 + $0x18] sm:$0xff] %v1093_v30 }
 0x210 PF: > { %s14_s15 = sadd.s32 1, %s1271_s15  }
 0x211   : > { %p11_p4 = scmp.ge.s32.totalorder %s14_s15, 4  }
 0x213   :  { %13 = sbr.rel (!%p11_p4) target bundleno = 1 (0x1), region = 82 }

// kernel: decoder_forward.23
= control target key start
LH: loop header
LB: loop body
LE: loop exit
PB: predicated region body
PF: predicated region fallthrough
CT: control target
= control target key end

     0   :  { %s1257_s18 = smov 0   ;;  %s1475_s0 = inlined_call_operand.vmem [shape: f32[2,16,322], index: 0, kind: input, shape index: {}]   ;;  %s1476_s1 = inlined_call_operand.vmem [shape: f32[9,4,16], index: 1, kind: input, shape index: {}]   ;;  %s1477_s2 = inlined_call_operand.vmem [shape: f32[4,1], index: 2, kind: input, shape index: {}]   ;;  %s1478_s3 = inlined_call_operand.vmem [shape: f32[9,1,256], index: 3, kind: input, shape index: {}]   ;;  %s1479_s4 = inlined_call_operand.vmem [shape: f32[2,4,256], index: 4, kind: input, shape index: {}]   ;;  %s1480_s5 = inlined_call_operand.vmem [shape: f32[2,4,256], index: 5, kind: output, shape index: {}]  }
   0x1 LB: > { %s1137_s19 = sadd.s32 4294967295, %s1209_s18   ;;  %p1141_p0 = scmp.ge.s32.totalorder %s1209_s18, 1  ;;  %s1209_s18 = sphi %s1257_s18, %s15_s18  }
   0x2   : > { %p197_p1 = scmp.lt.s32.totalorder %s1209_s18, 3 }
   0x4   : > { %p198_p2 = pnand %p1141_p0, %p197_p1 }
   0x5   : > { %v252_v0 = vlaneseq (!%p198_p2)  ;;  %v1151_v2 = vld [vmem:[%s1478_s3 + $0x4] sm:$0x3] (!%p198_p2)  ;;  %v1147_v3 = vld [vmem:[%s1478_s3 + $0x2] sm:$0x3] (!%p198_p2)  ;;  %s1211_s24 = smov (!%p198_p2), 2   ;;  %s1212_s25 = smov (!%p198_p2), 1  }
   0x6   : > { %201 = sbr.rel (%p198_p2) target bundleno = 522 (0x20a), region = 40  ;;  %v1154_v10 = vld [vmem:[%s1478_s3 + $0x6] sm:$0x3] (!%p198_p2)  ;;  %v1157_v13 = vld [vmem:[%s1478_s3 + $0x8] sm:$0x3] (!%p198_p2)  ;;  %s1213_s30 = smov (!%p198_p2), 32  }
   0x7   : > { %v253_v1 = vshrl.u32 (!%p198_p2), %v252_v0, 7  ;;  %v1160_v16 = vld [vmem:[%s1478_s3 + $0xa] sm:$0x3] (!%p198_p2)  ;;  %s1214_s8 = smov (!%p198_p2), 33   ;;  %v1163_v19 = vld [vmem:[%s1478_s3 + $0xc] sm:$0x3] (!%p198_p2) }
   0x8   : > { %s1215_s11 = smov (!%p198_p2), 34   ;;  %v1166_v22 = vld [vmem:[%s1478_s3 + $0xe] sm:$0x3] (!%p198_p2)  ;;  %s1216_s14 = smov (!%p198_p2), 64   ;;  %v1169_v25 = vld [vmem:[%s1478_s3 + $0x10] sm:$0x3] (!%p198_p2) }
   0x9   : > { %v1271_v4 = vsub.s32 (!%p198_p2), 0, %v253_v1  ;;  %v1273_v5 = vsub.s32 (!%p198_p2), 1, %v253_v1  ;;  %s1217_s17 = smov (!%p198_p2), 65   ;;  %s1218_s20 = smov (!%p198_p2), 66   ;;  %vm287_vm0 = vcmask (!%p198_p2), 7168   ;;  %vm422_vm1 = vcmask (!%p198_p2), 15360  }
   0xa   : > { %p230_p3 = scmp.lt.s32.totalorder (!%p198_p2), %s1137_s19, 1  ;;  %v250_v37 = vld [vmem:[%s1478_s3] sm:$0x3] (!%p198_p2)  ;;  %s1219_s27 = smov (!%p198_p2), 127   ;;  %vm514_vm2 = vcmask (!%p198_p2), 261120   ;;  %vm318_vm3 = vcmask (!%p198_p2), 130048  }
   0xb   : > { %v413_v6 = vrot.slane (!%p198_p2), %v1151_v2, %v1271_v4  ;;  %v278_v7 = vrot.slane (!%p198_p2), %v1147_v3, %v1271_v4  ;;  %v417_v8 = vrot.slane (!%p198_p2), %v1151_v2, %v1273_v5  ;;  %v282_v9 = vrot.slane (!%p198_p2), %v1147_v3, %v1273_v5  ;;  %s1220_s28 = smov (!%p198_p2), 126   ;;  %s1222_s29 = smov (!%p198_p2), 96  }
   0xc   : > { %v505_v11 = vrot.slane (!%p198_p2), %v1154_v10, %v1271_v4  ;;  %v509_v12 = vrot.slane (!%p198_p2), %v1154_v10, %v1273_v5  ;;  %v601_v14 = vrot.slane (!%p198_p2), %v1157_v13, %v1273_v5  ;;  %v597_v15 = vrot.slane (!%p198_p2), %v1157_v13, %v1271_v4  ;;  %s1223_s7 = smov (!%p198_p2), 95   ;;  %s1225_s9 = smov (!%p198_p2), 63  }
   0xd   : > { %418 = vrot.lane.b32.xlu1 %v413_v6, %s1211_s24  ;;  %283 = vrot.lane.b32.xlu0 %v278_v7, %s1212_s25  ;;  %v689_v17 = vrot.slane %v1160_v16, %v1271_v4  ;;  %v693_v18 = vrot.slane %v1160_v16, %v1273_v5  ;;  %v785_v20 = vrot.slane %v1163_v19, %v1273_v5  ;;  %s1482_s19 = smov (!%p230_p3, %s1137_s19), 1  ;;  %v1221_v2 = vmov 0   ;;  %s1226_s10 = smov 62  }
   0xe   : > { %v781_v21 = vrot.slane %v1163_v19, %v1271_v4  ;;  %v873_v23 = vrot.slane %v1166_v22, %v1271_v4  ;;  %v877_v24 = vrot.slane %v1166_v22, %v1273_v5  ;;  %v969_v26 = vrot.slane %v1169_v25, %v1273_v5  ;;  %s1176_s21 = smul.u32 48, %s1482_s19  ;;  %354 = vmatprep.mubr.bf16.mxu0 %v1221_v2  ;;  %s1174_s6 = sshll.u32 %s1482_s19, 3 }
   0xf   : > { %v965_v27 = vrot.slane %v1169_v25, %v1271_v4  ;;  %v259_v40 = vrot.slane %v250_v37, %v1273_v5  ;;  %v255_v62 = vrot.slane %v250_v37, %v1271_v4  ;;  %398 = vmatprep.mubr.bf16.mxu1 %v1221_v2  ;;  %1201 = vset.pattern.permute.xlu0 %v1221_v2  ;;  %vm606_vm4 = vcmask 269312  }
  0x10   : > { %vm698_vm5 = vcmask 277504   ;;  %vm790_vm6 = vcmask 523264   ;;  %vm882_vm7 = vcmask 531456   ;;  %vm974_vm8 = vcmask 539648  }
  0x11   : > { %420 = vrot.lane.b32.xlu1 %v417_v8, %s1211_s24  ;;  %285 = vrot.lane.b32.xlu0 %v282_v9, %s1212_s25  ;;  %s234_s24 = scalar_lea.vmem %s1475_s0, %s1176_s21  ;;  %vm313_vm9 = vcmask 1039360   ;;  %vm448_vm10 = vcmask 1031168   ;;  %vm540_vm11 = vcmask 785408   ;;  %vm632_vm12 = vcmask 777216  }
  0x12   : > { %v1321_v28 = vld [vmem:[%s234_s24] sm:$0xff]  ;;  %v1323_v29 = vld [vmem:[%s234_s24 + $0x18] sm:$0xff]  ;;  %v1329_v34 = vld [vmem:[%s234_s24 + $0x10] sm:$0xff]  ;;  %vm724_vm13 = vcmask 769024   ;;  %vm908_vm14 = vcmask 515072   ;;  %vm1000_vm15 = vcmask 506880  }
  0x13   : > { %v1331_v35 = vld [vmem:[%s234_s24 + $0x28] sm:$0xff]  ;;  %v1343_v46 = vld [vmem:[%s234_s24 + $0x20] sm:$0xff]  ;;  %v262_v9 = vmul.f32 %v255_v62, %v1321_v28 }
  0x14   : > { %v1340_v43 = vld [vmem:[%s234_s24 + $0x8] sm:$0xff]  ;;  %v265_v54 = vmul.f32 %v259_v40, %v1343_v46 }
  0x15   : > { %510 = vrot.lane.b32.xlu0 %v505_v11, %s1213_s30  ;;  %512 = vrot.lane.b32.xlu1 %v509_v12, %s1213_s30  ;;  %v263_v53 = vmul.f32 %v259_v40, %v1340_v43  ;;  %v264_v12 = vmul.f32 %v255_v62, %v1323_v29 }
  0x17   : > { %v269_v3 = vpack.c.bf16 %v265_v54, %v263_v53 }
  0x19   : > { %604 = vrot.lane.b32.xlu1 %v601_v14, %s1214_s8  ;;  %602 = vrot.lane.b32.xlu0 %v597_v15, %s1214_s8  ;;  %v266_v15 = vld [vmem:[%s1476_s1] sm:$0xf]  ;;  %s1224_s8 = smov 94  }
  0x1a   : > { %366 = vmatprep.subr.bf16.mxu1 %v269_v3 }
  0x1d   : > { %694 = vrot.lane.b32.xlu0 %v689_v17, %s1215_s11  ;;  %696 = vrot.lane.b32.xlu1 %v693_v18, %s1215_s11  ;;  %s244_s11 = scalar_lea.vmem %s1480_s5, %s1174_s6 }
  0x21   : > { %788 = vrot.lane.b32.xlu1 %v785_v20, %s1216_s14  ;;  %786 = vrot.lane.b32.xlu0 %v781_v21, %s1216_s14  ;;  %v268_v20 = vpack.c.bf16 %v264_v12, %v262_v9 }
  0x23   : > { %367 = vmatpush1.bf16.msra.mxu1 %v268_v20 }
  0x25   : > { %878 = vrot.lane.b32.xlu0 %v873_v23, %s1217_s17  ;;  %880 = vrot.lane.b32.xlu1 %v877_v24, %s1217_s17  ;;  %v267_v23 = vpack.c.bf16 %v266_v15, %v266_v15 }
  0x27   : > { %1150 = vmatmul.mubr.msk.bf16.vlgmr.msra.gmra.mrb[0].mxu1 %vm318_vm3, %v267_v23 }
  0x28   : > { %580 = vmatprep.mubr.bf16.mxu1 %v1221_v2 }
  0x29   : > { %972 = vrot.lane.b32.xlu1 %v969_v26, %s1218_s20  ;;  %970 = vrot.lane.b32.xlu0 %v965_v27, %s1218_s20 }
  0x7f   : > { %v1325_v30 = vpop.permute.xlu1 %418  ;;  %v284_v31 = vpop.permute.xlu0 %283 }
  0x80   : > { %v292_v32 = vmul.f32 %v284_v31, %v1321_v28  ;;  %v295_v33 = vmul.f32 %v284_v31, %v1323_v29  ;;  %v427_v49 = vmul.f32 %v1325_v30, %v1321_v28  ;;  %v430_v50 = vmul.f32 %v1325_v30, %v1323_v29 }
  0x82   : > { %v301_v36 = vpack.c.bf16 %v295_v33, %v292_v32  ;;  %v436_v5 = vpack.c.bf16 %v430_v50, %v427_v49 }
  0x83   : > { %v421_v38 = vpop.permute.xlu1 %420  ;;  %v286_v39 = vpop.permute.xlu0 %285 }
  0x84   : > { %v429_v41 = vmul.f32 %v421_v38, %v1329_v34  ;;  %v432_v42 = vmul.f32 %v421_v38, %v1331_v35  ;;  %307 = vrot.lane.b32.xlu0 %v301_v36, %s1219_s27  ;;  %v288_v44 = vsel %vm287_vm0, %v284_v31, %v286_v39  ;;  %v294_v45 = vmul.f32 %v286_v39, %v1329_v34 }
  0x85   : > { %v297_v47 = vmul.f32 %v286_v39, %v1331_v35  ;;  %v293_v55 = vmul.f32 %v288_v44, %v1340_v43  ;;  %v296_v59 = vmul.f32 %v288_v44, %v1343_v46  ;;  %v423_v19 = vsel %vm422_vm1, %v1325_v30, %v421_v38 }
  0x86   : > { %v438_v48 = vpack.c.bf16 %v432_v42, %v429_v41  ;;  %v428_v24 = vmul.f32 %v423_v19, %v1340_v43  ;;  %v431_v25 = vmul.f32 %v423_v19, %v1343_v46 }
  0x87   : > { %v511_v51 = vpop.permute.xlu0 %510  ;;  %v513_v52 = vpop.permute.xlu1 %512  ;;  %v303_v58 = vpack.c.bf16 %v297_v47, %v294_v45  ;;  %v302_v8 = vpack.c.bf16 %v296_v59, %v293_v55 }
  0x88   : > { %v519_v56 = vmul.f32 %v511_v51, %v1321_v28  ;;  %v522_v57 = vmul.f32 %v511_v51, %v1323_v29  ;;  %446 = vrot.lane.b32.xlu0 %v438_v48, %s1220_s28  ;;  %v521_v60 = vmul.f32 %v513_v52, %v1329_v34  ;;  %v524_v61 = vmul.f32 %v513_v52, %v1331_v35 }
  0x89   : > { %311 = vrot.lane.b32.xlu1 %v303_v58, %s1219_s27  ;;  %v515_v21 = vsel %vm514_vm2, %v511_v51, %v513_v52  ;;  %v437_v37 = vpack.c.bf16 %v431_v25, %v428_v24 }
  0x8a   : > { %v528_v63 = vpack.c.bf16 %v522_v57, %v519_v56  ;;  %v530_v4 = vpack.c.bf16 %v524_v61, %v521_v60  ;;  %v520_v27 = vmul.f32 %v515_v21, %v1340_v43  ;;  %v523_v30 = vmul.f32 %v515_v21, %v1343_v46 }
  0x8b   : > { %v605_v0 = vpop.permute.xlu1 %604  ;;  %v603_v1 = vpop.permute.xlu0 %602 }
  0x8c   : > { %534 = vrot.lane.b32.xlu0 %v528_v63, %s1222_s29  ;;  %v613_v6 = vmul.f32 %v605_v0, %v1329_v34  ;;  %v616_v7 = vmul.f32 %v605_v0, %v1331_v35  ;;  %v611_v10 = vmul.f32 %v603_v1, %v1321_v28  ;;  %v614_v11 = vmul.f32 %v603_v1, %v1323_v29 }
  0x8d   : > { %442 = vrot.lane.b32.xlu1 %v436_v5, %s1220_s28  ;;  %v607_v40 = vsel %vm606_vm4, %v603_v1, %v605_v0  ;;  %v529_v42 = vpack.c.bf16 %v523_v30, %v520_v27 }
  0x8e   : > { %v622_v18 = vpack.c.bf16 %v616_v7, %v613_v6  ;;  %v620_v22 = vpack.c.bf16 %v614_v11, %v611_v10  ;;  %v612_v45 = vmul.f32 %v607_v40, %v1340_v43  ;;  %v615_v47 = vmul.f32 %v607_v40, %v1343_v46 }
  0x8f   : > { %v695_v13 = vpop.permute.xlu0 %694  ;;  %v697_v14 = vpop.permute.xlu1 %696 }
  0x90   : > { %309 = vrot.lane.b32.xlu0 %v302_v8, %s1219_s27  ;;  %v703_v16 = vmul.f32 %v695_v13, %v1321_v28  ;;  %v706_v17 = vmul.f32 %v695_v13, %v1323_v29  ;;  %v705_v32 = vmul.f32 %v697_v14, %v1329_v34  ;;  %v708_v33 = vmul.f32 %v697_v14, %v1331_v35 }
  0x91   : > { %538 = vrot.lane.b32.xlu1 %v530_v4, %s1222_s29  ;;  %v699_v44 = vsel %vm698_vm5, %v695_v13, %v697_v14  ;;  %v621_v56 = vpack.c.bf16 %v615_v47, %v612_v45 }
  0x92   : > { %v712_v26 = vpack.c.bf16 %v706_v17, %v703_v16  ;;  %v714_v41 = vpack.c.bf16 %v708_v33, %v705_v32  ;;  %v704_v50 = vmul.f32 %v699_v44, %v1340_v43  ;;  %v707_v51 = vmul.f32 %v699_v44, %v1343_v46  ;;  %v1152_v32 = vld [vmem:[%s1476_s1 + $0x8] sm:$0xf] }
  0x93   : > { %v789_v31 = vpop.permute.xlu1 %788  ;;  %v787_v36 = vpop.permute.xlu0 %786  ;;  %v435_v40 = vpack.c.bf16 %v1152_v32, %v1152_v32 }
  0x94   : > { %630 = vrot.lane.b32.xlu0 %v622_v18, %s1223_s7  ;;  %v797_v38 = vmul.f32 %v789_v31, %v1329_v34  ;;  %v800_v39 = vmul.f32 %v789_v31, %v1331_v35  ;;  %v795_v52 = vmul.f32 %v787_v36, %v1321_v28  ;;  %v798_v53 = vmul.f32 %v787_v36, %v1323_v29 }
  0x95   : > { %626 = vrot.lane.b32.xlu1 %v620_v22, %s1223_s7  ;;  %v791_v55 = vsel %vm790_vm6, %v787_v36, %v789_v31  ;;  %v713_v61 = vpack.c.bf16 %v707_v51, %v704_v50 }
  0x96   : > { %v806_v48 = vpack.c.bf16 %v800_v39, %v797_v38  ;;  %v804_v60 = vpack.c.bf16 %v798_v53, %v795_v52  ;;  %v796_v62 = vmul.f32 %v791_v55, %v1340_v43  ;;  %v799_v63 = vmul.f32 %v791_v55, %v1343_v46  ;;  %v1155_v38 = vld [vmem:[%s1476_s1 + $0xc] sm:$0xf]  ;;  %v1161_v52 = vld [vmem:[%s1476_s1 + $0x14] sm:$0xf] }
  0x97   : > { %v879_v49 = vpop.permute.xlu0 %878  ;;  %v881_v54 = vpop.permute.xlu1 %880  ;;  %v527_v45 = vpack.c.bf16 %v1155_v38, %v1155_v38 }
  0x98   : > { %718 = vrot.lane.b32.xlu0 %v712_v26, %s1224_s8  ;;  %v887_v57 = vmul.f32 %v879_v49, %v1321_v28  ;;  %v890_v58 = vmul.f32 %v879_v49, %v1323_v29  ;;  %v883_v59 = vsel %vm882_vm7, %v879_v49, %v881_v54  ;;  %v889_v7 = vmul.f32 %v881_v54, %v1329_v34 }
  0x99   : > { %444 = vrot.lane.b32.xlu1 %v437_v37, %s1220_s28  ;;  %v888_v0 = vmul.f32 %v883_v59, %v1340_v43  ;;  %v891_v1 = vmul.f32 %v883_v59, %v1343_v46  ;;  %v892_v4 = vmul.f32 %v881_v54, %v1331_v35  ;;  %v805_v9 = vpack.c.bf16 %v799_v63, %v796_v62 }
  0x9a   : > { %v896_v3 = vpack.c.bf16 %v890_v58, %v887_v57  ;;  %v711_v58 = vpack.c.bf16 %v1161_v52, %v1161_v52 }
  0x9b   : > { %v973_v5 = vpop.permute.xlu1 %972  ;;  %v971_v6 = vpop.permute.xlu0 %970  ;;  %v897_v12 = vpack.c.bf16 %v891_v1, %v888_v0  ;;  %v898_v15 = vpack.c.bf16 %v892_v4, %v889_v7 }
  0x9c   : > { %536 = vrot.lane.b32.xlu0 %v529_v42, %s1222_s29  ;;  %v975_v8 = vsel %vm974_vm8, %v971_v6, %v973_v5  ;;  %v981_v10 = vmul.f32 %v973_v5, %v1329_v34  ;;  %v984_v11 = vmul.f32 %v973_v5, %v1331_v35  ;;  %v979_v18 = vmul.f32 %v971_v6, %v1321_v28  ;;  %v1051_v34 = vld [vmem:[%s1477_s2] sm:$0xf]  ;;  %v1148_v28 = vld [vmem:[%s1476_s1 + $0x4] sm:$0xf] }
  0x9d   : > { %722 = vrot.lane.b32.xlu1 %v714_v41, %s1224_s8  ;;  %v980_v13 = vmul.f32 %v975_v8, %v1340_v43  ;;  %v983_v14 = vmul.f32 %v975_v8, %v1343_v46  ;;  %v982_v19 = vmul.f32 %v971_v6, %v1323_v29  ;;  %v300_v26 = vpack.c.bf16 %v1148_v28, %v1148_v28 }
  0x9e   : > { %v990_v16 = vpack.c.bf16 %v984_v11, %v981_v10  ;;  %v1170_v11 = vld [vmem:[%s1476_s1 + $0x20] sm:$0xf] }
  0x9f   : > { %v989_v17 = vpack.c.bf16 %v983_v14, %v980_v13  ;;  %v988_v35 = vpack.c.bf16 %v982_v19, %v979_v18  ;;  %v987_v14 = vpack.c.bf16 %v1170_v11, %v1170_v11 }
  0xa0   : > { %814 = vrot.lane.b32.xlu0 %v806_v48, %s1216_s14  ;;  %v1158_v48 = vld [vmem:[%s1476_s1 + $0x10] sm:$0xf] }
  0xa1   : > { %628 = vrot.lane.b32.xlu1 %v621_v56, %s1223_s7  ;;  %v619_v54 = vpack.c.bf16 %v1158_v48, %v1158_v48 }
  0xa4   : > { %720 = vrot.lane.b32.xlu0 %v713_v61, %s1224_s8 }
  0xa5   : > { %810 = vrot.lane.b32.xlu1 %v804_v60, %s1216_s14  ;;  %v1164_v60 = vld [vmem:[%s1476_s1 + $0x18] sm:$0xf] }
  0xa6   : > { %v803_v1 = vpack.c.bf16 %v1164_v60, %v1164_v60 }
  0xa8   : > { %902 = vrot.lane.b32.xlu0 %v896_v3, %s1225_s9  ;;  %v1167_v3 = vld [vmem:[%s1476_s1 + $0x1c] sm:$0xf] }
  0xa9   : > { %812 = vrot.lane.b32.xlu1 %v805_v9, %s1216_s14  ;;  %v895_v8 = vpack.c.bf16 %v1167_v3, %v1167_v3 }
  0xac   : > { %904 = vrot.lane.b32.xlu0 %v897_v12, %s1225_s9 }
  0xad   : > { %906 = vrot.lane.b32.xlu1 %v898_v15, %s1225_s9  ;;  %s239_s9 = scalar_lea.vmem %s1479_s4, %s1174_s6 }
  0xae   : > { %v1059_v60 = vld [vmem:[%s239_s9] sm:$0xff] }
  0xaf   : > { %v1061_v3 = vcombine.high %v1059_v60, %v1059_v60 }
  0xb0   : > { %998 = vrot.lane.b32.xlu0 %v990_v16, %s1226_s10 }
  0xb1   : > { %996 = vrot.lane.b32.xlu1 %v989_v17, %s1226_s10 }
  0xb4   : > { %1054 = vperm.xlu0 %1201, %v1051_v34  }
  0xb5   : > { %994 = vrot.lane.b32.xlu1 %v988_v35, %s1226_s10 }
  0xf6   : > { %v308_v43 = vpop.permute.xlu0 %307 }
  0xfa   : > { %v447_v46 = vpop.permute.xlu0 %446  ;;  %v400_v15 = vpop.f32.mrb[0].mxu1 }
  0xfb   : > { %v312_v20 = vpop.permute.xlu1 %311  ;;  %v402_v16 = vpop.f32.mrb[1].mxu1 }
  0xfc   : > { %v404_v17 = vpop.f32.mrb[2].mxu1 }
  0xfd   : > { %v405_v18 = vpop.f32.mrb[3].mxu1 }
  0xfe   : > { %v535_v21 = vpop.permute.xlu0 %534 }
  0xff   : > { %v443_v22 = vpop.permute.xlu1 %442 }
 0x102   : > { %v310_v29 = vpop.permute.xlu0 %309 }
 0x103   : > { %v315_v23 = vsel %vm313_vm9, %v310_v29, %v312_v20  ;;  %v314_v24 = vsel %vm313_vm9, %v308_v43, %v310_v29  ;;  %v539_v25 = vpop.permute.xlu1 %538 }
 0x104   : > { %322 = vmatprep.subr.bf16.mxu0 %v315_v23 }
 0x105   : > { %323 = vmatpush1.bf16.msra.mxu0 %v314_v24 }
 0x106   : > { %v631_v27 = vpop.permute.xlu0 %630 }
 0x107   : > { %v627_v31 = vpop.permute.xlu1 %626 }
 0x108   : > { %1149 = vmatmul.mubr.msk.bf16.vlgmr.msra.gmra.mrb[0].mxu0 %vm318_vm3, %v300_v26 }
 0x109   : > { %488 = vmatprep.mubr.bf16.mxu0 %v1221_v2 }
 0x10a   : > { %v719_v30 = vpop.permute.xlu0 %718 }
 0x10b   : > { %v445_v33 = vpop.permute.xlu1 %444 }
 0x10c   : > { %v449_v36 = vsel %vm448_vm10, %v443_v22, %v445_v33  ;;  %v450_v37 = vsel %vm448_vm10, %v445_v33, %v447_v46 }
 0x10d   : > { %456 = vmatprep.subr.bf16.mxu0 %v450_v37 }
 0x10e   : > { %v537_v39 = vpop.permute.xlu0 %536  ;;  %457 = vmatpush1.bf16.msra.mxu0 %v449_v36 }
 0x10f   : > { %v541_v41 = vsel %vm540_vm11, %v535_v21, %v537_v39  ;;  %v542_v42 = vsel %vm540_vm11, %v537_v39, %v539_v25  ;;  %v723_v44 = vpop.permute.xlu1 %722 }
 0x110   : > { %548 = vmatprep.subr.bf16.mxu1 %v542_v42 }
 0x111   : > { %549 = vmatpush1.bf16.msra.mxu1 %v541_v41  ;;  %1153 = vmatmul.mubr.msk.bf16.vlgmr.msra.gmra.mrb[4].mxu0 %vm318_vm3, %v435_v40 }
 0x112   : > { %v815_v47 = vpop.permute.xlu0 %814  ;;  %672 = vmatprep.mubr.bf16.mxu0 %v1221_v2 }
 0x113   : > { %v629_v49 = vpop.permute.xlu1 %628 }
 0x114   : > { %1156 = vmatmul.mubr.msk.bf16.vlgmr.msra.gmra.mrb[4].mxu1 %vm318_vm3, %v527_v45  ;;  %v633_v50 = vsel %vm632_vm12, %v627_v31, %v629_v49  ;;  %v634_v51 = vsel %vm632_vm12, %v629_v49, %v631_v27 }
 0x115   : > { %764 = vmatprep.mubr.bf16.mxu1 %v1221_v2  ;;  %640 = vmatprep.subr.bf16.mxu0 %v634_v51 }
 0x116   : > { %v721_v53 = vpop.permute.xlu0 %720  ;;  %641 = vmatpush1.bf16.msra.mxu0 %v633_v50 }
 0x117   : > { %v725_v55 = vsel %vm724_vm13, %v719_v30, %v721_v53  ;;  %v726_v56 = vsel %vm724_vm13, %v721_v53, %v723_v44  ;;  %v811_v57 = vpop.permute.xlu1 %810 }
 0x118   : > { %732 = vmatprep.subr.bf16.mxu1 %v726_v56 }
 0x119   : > { %733 = vmatpush1.bf16.msra.mxu1 %v725_v55  ;;  %1159 = vmatmul.mubr.msk.bf16.vlgmr.msra.gmra.mrb[8].mxu0 %vm318_vm3, %v619_v54 }
 0x11a   : > { %v903_v59 = vpop.permute.xlu0 %902  ;;  %856 = vmatprep.mubr.bf16.mxu0 %v1221_v2 }
 0x11b   : > { %v813_v61 = vpop.permute.xlu1 %812 }
 0x11c   : > { %1162 = vmatmul.mubr.msk.bf16.vlgmr.msra.gmra.mrb[8].mxu1 %vm318_vm3, %v711_v58  ;;  %v817_v62 = vsel %vm790_vm6, %v811_v57, %v813_v61  ;;  %v818_v63 = vsel %vm790_vm6, %v813_v61, %v815_v47 }
 0x11d   : > { %948 = vmatprep.mubr.bf16.mxu1 %v1221_v2  ;;  %824 = vmatprep.subr.bf16.mxu0 %v818_v63 }
 0x11e   : > { %v905_v0 = vpop.permute.xlu0 %904  ;;  %825 = vmatpush1.bf16.msra.mxu0 %v817_v62 }
 0x11f   : > { %v907_v5 = vpop.permute.xlu1 %906  ;;  %v909_v6 = vsel %vm908_vm14, %v903_v59, %v905_v0 }
 0x120   : > { %v910_v7 = vsel %vm908_vm14, %v905_v0, %v907_v5 }
 0x121   : > { %1165 = vmatmul.mubr.msk.bf16.vlgmr.msra.gmra.mrb[12].mxu0 %vm318_vm3, %v803_v1  ;;  %916 = vmatprep.subr.bf16.mxu1 %v910_v7 }
 0x122   : > { %v999_v4 = vpop.permute.xlu0 %998  ;;  %917 = vmatpush1.bf16.msra.mxu1 %v909_v6  ;;  %1040 = vmatprep.mubr.bf16.mxu0 %v1221_v2 }
 0x123   : > { %v997_v9 = vpop.permute.xlu1 %996 }
 0x124   : > { %v1002_v10 = vsel %vm1000_vm15, %v997_v9, %v999_v4 }
 0x125   : > { %1168 = vmatmul.mubr.msk.bf16.vlgmr.msra.gmra.mrb[12].mxu1 %vm318_vm3, %v895_v8  ;;  %1008 = vmatprep.subr.bf16.mxu0 %v1002_v10 }
 0x127   : > { %v995_v12 = vpop.permute.xlu1 %994 }
 0x128   : > { %v1001_v13 = vsel %vm1000_vm15, %v995_v12, %v997_v9 }
 0x129   : > { %1009 = vmatpush1.bf16.msra.mxu0 %v1001_v13 }
 0x12c   : > { %1171 = vmatmul.mubr.msk.bf16.vlgmr.msra.gmra.mrb[16].mxu0 %vm318_vm3, %v987_v14 }
 0x133   : > { %v1055_v62 = vpop.permute.xlu0 %1054 }
 0x1db   : > { %v356_v2 = vpop.f32.mrb[0].mxu0 }
 0x1dc   : > { %v358_v19 = vpop.f32.mrb[1].mxu0  ;;  %v401_v34 = vadd.f32 %v400_v15, %v356_v2 }
 0x1dd   : > { %v360_v35 = vpop.f32.mrb[2].mxu0  ;;  %v403_v43 = vadd.f32 %v402_v16, %v358_v19 }
 0x1de   : > { %v361_v46 = vpop.f32.mrb[3].mxu0 }
 0x1e4   : > { %v490_v20 = vpop.f32.mrb[4].mxu0 }
 0x1e5   : > { %v497_v21 = vadd.f32 %v490_v20, %v401_v34  ;;  %v492_v22 = vpop.f32.mrb[5].mxu0 }
 0x1e6   : > { %v498_v28 = vadd.f32 %v492_v22, %v403_v43  ;;  %v494_v23 = vpop.f32.mrb[6].mxu0 }
 0x1e7   : > { %v582_v29 = vpop.f32.mrb[4].mxu1  ;;  %v495_v26 = vpop.f32.mrb[7].mxu0 }
 0x1e8   : > { %v589_v24 = vadd.f32 %v582_v29, %v497_v21  ;;  %v584_v25 = vpop.f32.mrb[5].mxu1 }
 0x1e9   : > { %v590_v27 = vadd.f32 %v584_v25, %v498_v28  ;;  %v586_v31 = vpop.f32.mrb[6].mxu1 }
 0x1ea   : > { %v587_v30 = vpop.f32.mrb[7].mxu1 }
 0x1ec   : > { %v674_v32 = vpop.f32.mrb[8].mxu0 }
 0x1ed   : > { %v681_v33 = vadd.f32 %v674_v32, %v589_v24  ;;  %v676_v36 = vpop.f32.mrb[9].mxu0 }
 0x1ee   : > { %v682_v37 = vadd.f32 %v676_v36, %v590_v27  ;;  %v678_v39 = vpop.f32.mrb[10].mxu0 }
 0x1ef   : > { %v766_v38 = vpop.f32.mrb[8].mxu1  ;;  %v679_v42 = vpop.f32.mrb[11].mxu0 }
 0x1f0   : > { %v773_v40 = vadd.f32 %v766_v38, %v681_v33  ;;  %v768_v41 = vpop.f32.mrb[9].mxu1 }
 0x1f1   : > { %v774_v44 = vadd.f32 %v768_v41, %v682_v37  ;;  %v770_v45 = vpop.f32.mrb[10].mxu1 }
 0x1f2   : > { %v771_v47 = vpop.f32.mrb[11].mxu1 }
 0x1f4   : > { %v858_v48 = vpop.f32.mrb[12].mxu0 }
 0x1f5   : > { %v865_v49 = vadd.f32 %v858_v48, %v773_v40  ;;  %v860_v50 = vpop.f32.mrb[13].mxu0 }
 0x1f6   : > { %v866_v51 = vadd.f32 %v860_v50, %v774_v44  ;;  %v862_v52 = vpop.f32.mrb[14].mxu0 }
 0x1f7   : > { %v863_v53 = vpop.f32.mrb[15].mxu0 }
 0x1f8   : > { %v950_v54 = vpop.f32.mrb[12].mxu1 }
 0x1f9   : > { %v957_v55 = vadd.f32 %v950_v54, %v865_v49  ;;  %v952_v56 = vpop.f32.mrb[13].mxu1 }
 0x1fa   : > { %v958_v57 = vadd.f32 %v952_v56, %v866_v51  ;;  %v954_v58 = vpop.f32.mrb[14].mxu1 }
 0x1fb   : > { %v955_v59 = vpop.f32.mrb[15].mxu1 }
 0x1ff   : > { %v1042_v61 = vpop.f32.mrb[16].mxu0 }
 0x200   : > { %v1049_v63 = vadd.f32 %v1042_v61, %v957_v55  ;;  %v1044_v0 = vpop.f32.mrb[17].mxu0 }
 0x201   : > { %v1050_v1 = vadd.f32 %v1044_v0, %v958_v57  ;;  %v1046_v5 = vpop.f32.mrb[18].mxu0 }
 0x202   : > { %v1057_v6 = vadd.f32 %v1055_v62, %v1049_v63  ;;  %v1047_v7 = vpop.f32.mrb[19].mxu0 }
 0x203   : > { %v1058_v4 = vadd.f32 %v1055_v62, %v1050_v1 }
 0x204   : > { %v1063_v8 = vadd.f32 %v1059_v60, %v1057_v6 }
 0x205   : > { %v1064_v9 = vadd.f32 %v1061_v3, %v1058_v4 }
 0x207   : > { %v1067_v10 = vcombine.low %v1063_v8, %v1064_v9 }
 0x209   : > { %1069 = vst [vmem:[%s244_s11] sm:$0xff] %v1067_v10 }
 0x20a PF: > { %s15_s18 = sadd.s32 1, %s1209_s18  }
 0x20b   : > { %p12_p4 = scmp.ge.s32.totalorder %s15_s18, 4  }
 0x20d   :  { %14 = sbr.rel (!%p12_p4) target bundleno = 1 (0x1), region = 89 }

</bundles_post_ra>
